<compile_context>
chip_gen: v6e
topology: v6e:2x2x1
jax: 0.10.0
libtpu: 0.0.40
codegen_flags: <defaults>
</compile_context>

<pallas_src>
import functools

import jax
import jax.numpy as jnp
from jax.experimental import pallas as pl
from jax.experimental.pallas import tpu as pltpu


def _patch_expand_kernel(x_ref, w_ref, g_ref, b_ref, o_ref, *, eps):
    # x_ref : (TH, W, D)      TH full image rows of the input
    # w_ref : (2, D, D)       expand weight, transposed and split by p1-half
    # g_ref : (1, D)          LayerNorm gamma, tiled 2x over the p2 groups
    # b_ref : (1, D)          LayerNorm beta,  tiled 2x over the p2 groups
    # o_ref : (TH, 2, W, D)   output block laid out as (h, p1, w, (p2 c))
    th, w_dim, d = x_ref.shape
    c2 = d // 2
    m = th * w_dim
    inv_c2 = 1.0 / c2

    x2 = x_ref[...].reshape(m, d)
    g = g_ref[...]
    b = b_ref[...]

    # Static unroll: one MXU matmul + grouped LayerNorm + store per p1-half.
    for p1 in range(2):
        # Linear expand (this half only), f32 accumulation on the MXU.
        y = jnp.dot(x2, w_ref[p1], preferred_element_type=jnp.float32)  # (m, D)

        # Grouped LayerNorm over the 2 contiguous c2-wide channel groups
        # (one group per p2 output pixel).  Single-pass statistics.
        y2 = y.reshape(m, 2, c2)
        s1 = jnp.sum(y2, axis=-1, keepdims=True)                        # (m, 2, 1)
        s2 = jnp.sum(y2 * y2, axis=-1, keepdims=True)                   # (m, 2, 1)
        mean = s1 * inv_c2
        var = s2 * inv_c2 - mean * mean
        inv = jax.lax.rsqrt(var + eps)
        yn = ((y2 - mean) * inv).reshape(m, d)                          # dense lanes
        out = (yn * g + b).astype(o_ref.dtype)

        # Pixel shuffle folded into the store: p1 selects output image row
        # (2h + p1); (p2, c) stay packed as the minor D channels of the block.
        o_ref[:, p1:p1 + 1, :, :] = out.reshape(th, 1, w_dim, d)


def patch_expand(x, w_expand, gamma, beta, *, eps=1e-5, max_tile_rows=512,
                 compute_dtype=None, vmem_limit_bytes=None):
    """PatchExpand forward (dim_scale=2).

    x        : (B, H, W, D)
    w_expand : (2D, D)      nn.Linear(dim, 2*dim, bias=False).weight
    gamma    : (D // 2,)    LayerNorm weight
    beta     : (D // 2,)    LayerNorm bias
    returns  : (B, 2H, 2W, D // 2), same dtype as x
    """
    B, H, W, D = x.shape
    assert D % 2 == 0, "PatchExpand requires an even channel dim"
    c2 = D // 2
    two_d = 2 * D
    BH = B * H

    out_dtype = x.dtype
    cdt = jnp.dtype(compute_dtype) if compute_dtype is not None else jnp.dtype(x.dtype)

    x3 = x.reshape(BH, W, D).astype(cdt)
    wt = w_expand.T.astype(cdt)                                 # (D, 2D), cols = (p1, p2, c)
    w_split = jnp.stack([wt[:, :D], wt[:, D:]], axis=0)         # (2, D, D), [p1]
    gamma_t = jnp.tile(gamma.astype(jnp.float32), 2).reshape(1, D)
    beta_t = jnp.tile(beta.astype(jnp.float32), 2).reshape(1, D)

    in_item = cdt.itemsize
    out_item = jnp.dtype(out_dtype).itemsize

    def _vmem_est(th_):
        rows = th_ * W
        est = 2 * rows * D * in_item          # x tile, double-buffered
        est += 2 * rows * two_d * out_item    # output tile, double-buffered
        est += 2 * two_d * D * in_item        # expand weight (2 pipeline buffers)
        est += 4 * rows * D * 4               # f32 intermediates of the live half
        est += 4 * D * 4                      # gamma / beta
        return est

    # Largest divisor of B*H whose tile fits the row target and a conservative
    # scoped-VMEM budget (default scoped VMEM: 16 MiB v5e, 32 MiB v6e/v7x);
    # prefer tiles whose matmul row count is sublane-aligned (multiple of 8).
    budget = 26 * 1024 * 1024
    cands = []
    for cand in range(1, BH + 1):
        if BH % cand != 0:
            continue
        if cand > 1 and (cand * W > max_tile_rows or _vmem_est(cand) > budget):
            continue
        cands.append(cand)
    aligned = [c for c in cands if (c * W) % 8 == 0]
    th = max(aligned) if aligned else max(cands)

    if vmem_limit_bytes is None and _vmem_est(th) > 14 * 1024 * 1024:
        # Raise the scoped-VMEM limit past v5e's 16 MiB default; stays well
        # under the smallest physical VMEM (64 MiB on v7x).
        vmem_limit_bytes = 48 * 1024 * 1024

    kernel = functools.partial(_patch_expand_kernel, eps=eps)

    m_total = BH * W
    cost = pl.CostEstimate(
        flops=2 * m_total * D * two_d,
        transcendentals=4 * m_total,          # one rsqrt per up-sampled pixel
        bytes_accessed=(x3.size * in_item + w_split.size * in_item
                        + (gamma_t.size + beta_t.size) * 4
                        + m_total * two_d * out_item),
    )

    y = pl.pallas_call(
        kernel,
        out_shape=jax.ShapeDtypeStruct((BH, 2, W, D), out_dtype),
        grid_spec=pltpu.PrefetchScalarGridSpec(
            num_scalar_prefetch=0,
            grid=(BH // th,),
            in_specs=[
                pl.BlockSpec((th, W, D), lambda i: (i, 0, 0)),
                pl.BlockSpec((2, D, D), lambda i: (0, 0, 0)),
                pl.BlockSpec((1, D), lambda i: (0, 0)),
                pl.BlockSpec((1, D), lambda i: (0, 0)),
            ],
            out_specs=pl.BlockSpec((th, 2, W, D), lambda i: (i, 0, 0, 0)),
        ),
        compiler_params=pltpu.CompilerParams(
            dimension_semantics=("parallel",),
            vmem_limit_bytes=vmem_limit_bytes,
        ),
        cost_estimate=cost,
    )(x3, w_split, gamma_t, beta_t)

    # (BH, 2, W, D) == 'b h p1 w (p2 c)' in row-major order, which is exactly
    # the element order of (B, 2H, 2W, c2): this reshape is free (no transpose,
    # no extra HBM pass).
    return y.reshape(B, 2 * H, 2 * W, c2)


def _reference(x, w_expand, gamma, beta, eps=1e-5):
    B, H, W, D = x.shape
    c2 = D // 2
    y = jnp.einsum("bhwd,ed->bhwe", x, w_expand)            # Linear, no bias
    y = y.reshape(B, H, W, 2, 2, c2).transpose(0, 1, 3, 2, 4, 5)
    y = y.reshape(B, 2 * H, 2 * W, c2)
    mean = jnp.mean(y, axis=-1, keepdims=True)
    var = jnp.mean((y - mean) ** 2, axis=-1, keepdims=True)
    return (y - mean) / jnp.sqrt(var + eps) * gamma + beta


if __name__ == "__main__":
    key = jax.random.PRNGKey(0)
    B, H, W, dim = 2, 8, 8, 64

    kx, kw = jax.random.split(key)
    x = jax.random.normal(kx, (B, H, W, dim), dtype=jnp.float32)
    # nn.Linear(dim, 2*dim, bias=False).weight has shape (2*dim, dim)
    bound = 1.0 / (dim ** 0.5)
    w_expand = jax.random.uniform(kw, (2 * dim, dim), jnp.float32,
                                  minval=-bound, maxval=bound)
    # non-trivial affine so the scale/shift path is exercised
    gamma = 1.0 + 0.1 * jax.random.normal(jax.random.PRNGKey(1),
                                          (dim // 2,), jnp.float32)
    beta = 0.1 * jax.random.normal(jax.random.PRNGKey(2),
                                   (dim // 2,), jnp.float32)

    ref = _reference(x, w_expand, gamma, beta)

    # 1) default config (single large tile at this size)
    out = jax.block_until_ready(patch_expand(x, w_expand, gamma, beta))
    assert out.shape == (B, 2 * H, 2 * W, dim // 2)
    assert jnp.allclose(out, ref, atol=1e-4, rtol=1e-4)

    # 2) force a multi-step grid to exercise the pipeline across tiles
    out2 = jax.block_until_ready(
        patch_expand(x, w_expand, gamma, beta, max_tile_rows=32))
    assert jnp.allclose(out2, ref, atol=1e-4, rtol=1e-4)

    # 3) lane-dense case (c = dim // 2 = 128)
    B3, H3, W3, dim3 = 1, 4, 8, 256
    k3x, k3w = jax.random.split(jax.random.PRNGKey(3))
    x3 = jax.random.normal(k3x, (B3, H3, W3, dim3), jnp.float32)
    b3nd = 1.0 / (dim3 ** 0.5)
    w3 = jax.random.uniform(k3w, (2 * dim3, dim3), jnp.float32,
                            minval=-b3nd, maxval=b3nd)
    g3 = jnp.ones((dim3 // 2,), jnp.float32)
    bt3 = jnp.zeros((dim3 // 2,), jnp.float32)
    out3 = jax.block_until_ready(patch_expand(x3, w3, g3, bt3))
    ref3 = _reference(x3, w3, g3, bt3)
    assert out3.shape == (B3, 2 * H3, 2 * W3, dim3 // 2)
    assert jnp.allclose(out3, ref3, atol=1e-4, rtol=1e-4)

    # 4) optional bf16 compute path (halves input-side HBM traffic)
    out_bf16 = jax.block_until_ready(
        patch_expand(x, w_expand, gamma, beta, compute_dtype=jnp.bfloat16))
    assert out_bf16.dtype == x.dtype
    assert float(jnp.max(jnp.abs(out_bf16 - ref))) < 0.1

    print("KERNEL_OK")
</pallas_src>

<mosaic_0001>
module attributes {stable_mosaic.version = 11 : i64} {
  func.func @_patch_expand_kernel(%arg0: i32, %arg1: memref<16x8x64xf32, #tpu.memory_space<vmem>>, %arg2: memref<2x64x64xf32, #tpu.memory_space<vmem>>, %arg3: memref<1x64xf32, #tpu.memory_space<vmem>>, %arg4: memref<1x64xf32, #tpu.memory_space<vmem>>, %arg5: memref<16x2x8x64xf32, #tpu.memory_space<vmem>>) attributes {dimension_semantics = [#tpu.dimension_semantics<parallel>], iteration_bounds = array<i64: 1>, scalar_prefetch = 0 : i64, scratch_operands = 0 : i64, tpu.core_type = #tpu.core_type<tc>, window_params = [{transform_indices = @transform_0, window_bounds = array<i64: 16, 8, 64>}, {pipeline_mode = #tpu.pipeline_mode<synchronous>, transform_indices = @transform_1, window_bounds = array<i64: 2, 64, 64>}, {pipeline_mode = #tpu.pipeline_mode<synchronous>, transform_indices = @transform_2, window_bounds = array<i64: 1, 64>}, {pipeline_mode = #tpu.pipeline_mode<synchronous>, transform_indices = @transform_3, window_bounds = array<i64: 1, 64>}, {transform_indices = @transform_4, window_bounds = array<i64: 16, 2, 8, 64>}]} {
    %c0 = arith.constant 0 : index
    %c0_0 = arith.constant 0 : index
    %c0_1 = arith.constant 0 : index
    %0 = vector.load %arg1[%c0, %c0_0, %c0_1] : memref<16x8x64xf32, #tpu.memory_space<vmem>>, vector<16x8x64xf32>
    %1 = vector.shape_cast %0 : vector<16x8x64xf32> to vector<128x64xf32>
    %c0_2 = arith.constant 0 : index
    %c0_3 = arith.constant 0 : index
    %2 = vector.load %arg3[%c0_2, %c0_3] : memref<1x64xf32, #tpu.memory_space<vmem>>, vector<1x64xf32>
    %c0_4 = arith.constant 0 : index
    %c0_5 = arith.constant 0 : index
    %3 = vector.load %arg4[%c0_4, %c0_5] : memref<1x64xf32, #tpu.memory_space<vmem>>, vector<1x64xf32>
    %c0_6 = arith.constant 0 : index
    %c0_7 = arith.constant 0 : index
    %c0_8 = arith.constant 0 : index
    %4 = vector.load %arg2[%c0_6, %c0_7, %c0_8] : memref<2x64x64xf32, #tpu.memory_space<vmem>>, vector<1x64x64xf32>
    %5 = vector.shape_cast %4 : vector<1x64x64xf32> to vector<64x64xf32>
    %cst = arith.constant dense<0.000000e+00> : vector<128x64xf32>
    %6 = tpu.matmul %1, %5, %cst {dimension_numbers = #tpu.dot_dimension_numbers<[1], [0], [0], [1], [0, 0, 1, 1], [], []>} : vector<128x64xf32>, vector<64x64xf32>, vector<128x64xf32> -> vector<128x64xf32>
    %7 = vector.shape_cast %6 : vector<128x64xf32> to vector<128x2x32xf32>
    %cst_9 = arith.constant dense<0.000000e+00> : vector<128x2xf32>
    %8 = vector.multi_reduction <add>, %7, %cst_9 [2] : vector<128x2x32xf32> to vector<128x2xf32>
    %9 = vector.shape_cast %8 : vector<128x2xf32> to vector<128x2x1xf32>
    %10 = arith.mulf %7, %7 : vector<128x2x32xf32>
    %cst_10 = arith.constant dense<0.000000e+00> : vector<128x2xf32>
    %11 = vector.multi_reduction <add>, %10, %cst_10 [2] : vector<128x2x32xf32> to vector<128x2xf32>
    %12 = vector.shape_cast %11 : vector<128x2xf32> to vector<128x2x1xf32>
    %cst_11 = arith.constant 3.125000e-02 : f32
    %13 = vector.broadcast %cst_11 : f32 to vector<128x2x1xf32>
    %14 = arith.mulf %9, %13 : vector<128x2x1xf32>
    %cst_12 = arith.constant 3.125000e-02 : f32
    %15 = vector.broadcast %cst_12 : f32 to vector<128x2x1xf32>
    %16 = arith.mulf %12, %15 : vector<128x2x1xf32>
    %17 = arith.mulf %14, %14 : vector<128x2x1xf32>
    %18 = arith.subf %16, %17 : vector<128x2x1xf32>
    %cst_13 = arith.constant 9.99999974E-6 : f32
    %19 = vector.broadcast %cst_13 : f32 to vector<128x2x1xf32>
    %20 = arith.addf %18, %19 : vector<128x2x1xf32>
    %21 = math.rsqrt %20 : vector<128x2x1xf32>
    %22 = vector.broadcast %14 : vector<128x2x1xf32> to vector<128x2x32xf32>
    %23 = arith.subf %7, %22 : vector<128x2x32xf32>
    %24 = vector.broadcast %21 : vector<128x2x1xf32> to vector<128x2x32xf32>
    %25 = arith.mulf %23, %24 : vector<128x2x32xf32>
    %26 = vector.shape_cast %25 : vector<128x2x32xf32> to vector<128x64xf32>
    %27 = vector.broadcast %2 : vector<1x64xf32> to vector<128x64xf32>
    %28 = arith.mulf %26, %27 : vector<128x64xf32>
    %29 = vector.broadcast %3 : vector<1x64xf32> to vector<128x64xf32>
    %30 = arith.addf %28, %29 : vector<128x64xf32>
    %31 = vector.shape_cast %30 : vector<128x64xf32> to vector<16x1x8x64xf32>
    %c0_14 = arith.constant 0 : index
    %c0_15 = arith.constant 0 : index
    %c0_16 = arith.constant 0 : index
    %c0_17 = arith.constant 0 : index
    %32 = vector.load %arg5[%c0_14, %c0_15, %c0_16, %c0_17] : memref<16x2x8x64xf32, #tpu.memory_space<vmem>>, vector<16x1x8x64xf32>
    tpu.vector_store %arg5[%c0_14, %c0_15, %c0_16, %c0_17], %31 {strides = array<i32>} : memref<16x2x8x64xf32, #tpu.memory_space<vmem>>, vector<16x1x8x64xf32>,
    %c1 = arith.constant 1 : index
    %c0_18 = arith.constant 0 : index
    %c0_19 = arith.constant 0 : index
    %33 = vector.load %arg2[%c1, %c0_18, %c0_19] : memref<2x64x64xf32, #tpu.memory_space<vmem>>, vector<1x64x64xf32>
    %34 = vector.shape_cast %33 : vector<1x64x64xf32> to vector<64x64xf32>
    %cst_20 = arith.constant dense<0.000000e+00> : vector<128x64xf32>
    %35 = tpu.matmul %1, %34, %cst_20 {dimension_numbers = #tpu.dot_dimension_numbers<[1], [0], [0], [1], [0, 0, 1, 1], [], []>} : vector<128x64xf32>, vector<64x64xf32>, vector<128x64xf32> -> vector<128x64xf32>
    %36 = vector.shape_cast %35 : vector<128x64xf32> to vector<128x2x32xf32>
    %cst_21 = arith.constant dense<0.000000e+00> : vector<128x2xf32>
    %37 = vector.multi_reduction <add>, %36, %cst_21 [2] : vector<128x2x32xf32> to vector<128x2xf32>
    %38 = vector.shape_cast %37 : vector<128x2xf32> to vector<128x2x1xf32>
    %39 = arith.mulf %36, %36 : vector<128x2x32xf32>
    %cst_22 = arith.constant dense<0.000000e+00> : vector<128x2xf32>
    %40 = vector.multi_reduction <add>, %39, %cst_22 [2] : vector<128x2x32xf32> to vector<128x2xf32>
    %41 = vector.shape_cast %40 : vector<128x2xf32> to vector<128x2x1xf32>
    %cst_23 = arith.constant 3.125000e-02 : f32
    %42 = vector.broadcast %cst_23 : f32 to vector<128x2x1xf32>
    %43 = arith.mulf %38, %42 : vector<128x2x1xf32>
    %cst_24 = arith.constant 3.125000e-02 : f32
    %44 = vector.broadcast %cst_24 : f32 to vector<128x2x1xf32>
    %45 = arith.mulf %41, %44 : vector<128x2x1xf32>
    %46 = arith.mulf %43, %43 : vector<128x2x1xf32>
    %47 = arith.subf %45, %46 : vector<128x2x1xf32>
    %cst_25 = arith.constant 9.99999974E-6 : f32
    %48 = vector.broadcast %cst_25 : f32 to vector<128x2x1xf32>
    %49 = arith.addf %47, %48 : vector<128x2x1xf32>
    %50 = math.rsqrt %49 : vector<128x2x1xf32>
    %51 = vector.broadcast %43 : vector<128x2x1xf32> to vector<128x2x32xf32>
    %52 = arith.subf %36, %51 : vector<128x2x32xf32>
    %53 = vector.broadcast %50 : vector<128x2x1xf32> to vector<128x2x32xf32>
    %54 = arith.mulf %52, %53 : vector<128x2x32xf32>
    %55 = vector.shape_cast %54 : vector<128x2x32xf32> to vector<128x64xf32>
    %56 = vector.broadcast %2 : vector<1x64xf32> to vector<128x64xf32>
    %57 = arith.mulf %55, %56 : vector<128x64xf32>
    %58 = vector.broadcast %3 : vector<1x64xf32> to vector<128x64xf32>
    %59 = arith.addf %57, %58 : vector<128x64xf32>
    %60 = vector.shape_cast %59 : vector<128x64xf32> to vector<16x1x8x64xf32>
    %c0_26 = arith.constant 0 : index
    %c1_27 = arith.constant 1 : index
    %c0_28 = arith.constant 0 : index
    %c0_29 = arith.constant 0 : index
    %61 = vector.load %arg5[%c0_26, %c1_27, %c0_28, %c0_29] : memref<16x2x8x64xf32, #tpu.memory_space<vmem>>, vector<16x1x8x64xf32>
    tpu.vector_store %arg5[%c0_26, %c1_27, %c0_28, %c0_29], %60 {strides = array<i32>} : memref<16x2x8x64xf32, #tpu.memory_space<vmem>>, vector<16x1x8x64xf32>,
    return
  }
  func.func @transform_0(%arg0: i32) -> (i32, i32, i32) {
    %c0_i32 = arith.constant 0 : i32
    %c0_i32_0 = arith.constant 0 : i32
    %c0_i32_1 = arith.constant 0 : i32
    return %arg0, %c0_i32, %c0_i32_0 : i32, i32, i32
  }
  func.func @transform_1(%arg0: i32) -> (i32, i32, i32) {
    %c0_i32 = arith.constant 0 : i32
    %c0_i32_0 = arith.constant 0 : i32
    %c0_i32_1 = arith.constant 0 : i32
    %c0_i32_2 = arith.constant 0 : i32
    return %c0_i32, %c0_i32_0, %c0_i32_1 : i32, i32, i32
  }
  func.func @transform_2(%arg0: i32) -> (i32, i32) {
    %c0_i32 = arith.constant 0 : i32
    %c0_i32_0 = arith.constant 0 : i32
    %c0_i32_1 = arith.constant 0 : i32
    return %c0_i32, %c0_i32_0 : i32, i32
  }
  func.func @transform_3(%arg0: i32) -> (i32, i32) {
    %c0_i32 = arith.constant 0 : i32
    %c0_i32_0 = arith.constant 0 : i32
    %c0_i32_1 = arith.constant 0 : i32
    return %c0_i32, %c0_i32_0 : i32, i32
  }
  func.func @transform_4(%arg0: i32) -> (i32, i32, i32, i32) {
    %c0_i32 = arith.constant 0 : i32
    %c0_i32_0 = arith.constant 0 : i32
    %c0_i32_1 = arith.constant 0 : i32
    %c0_i32_2 = arith.constant 0 : i32
    return %arg0, %c0_i32, %c0_i32_0, %c0_i32_1 : i32, i32, i32, i32
  }
}

</mosaic_0001>

<bundles_post_ra>
// kernel: tpu_custom_call.1
= control target key start
LH: loop header
LB: loop body
LE: loop exit
PB: predicated region body
PF: predicated region fallthrough
CT: control target
= control target key end

     0   :  { %9 = vsyncpa [#allocation3], 0  ;;  %s17031_s0 = inlined_call_operand.hbm [shape: f32[16,8,64], index: 0, kind: input, shape index: {}]   ;;  %s17032_s1 = inlined_call_operand.hbm [shape: f32[2,64,64], index: 1, kind: input, shape index: {}]   ;;  %s17033_s2 = inlined_call_operand.vmem [shape: f32[1,64], index: 2, kind: input, shape index: {}]   ;;  %s17034_s3 = inlined_call_operand.vmem [shape: f32[1,64], index: 3, kind: input, shape index: {}]   ;;  %s17035_s4 = inlined_call_operand.hbm [shape: f32[16,2,8,64], index: 4, kind: output, shape index: {}]  }
   0x1   :  { %10 = vsyncpa [#allocation6], 0 }
   0x2   :  { %11 = vsyncpa [#allocation4], 0  ;;  %s9156_s15 = smov [#allocation2]  }
   0x3   :  { %s17_s16 = sshll.u32 %s9156_s15, 4  ;;  %s18_s16 = int_to_ptr.vmem [resolvable:$true] %s17_s16 }
   0x4   :  { %s9098_s17 = scalar_lea.vmem %s18_s16, 2048  ;;  %p9103_p1 = scmp.lt.s32.totalorder %s18_s16, %s18_s16 }
   0x5   :  { %p9099_p0 = scmp.ne.s32.totalorder %s18_s16, %s9098_s17  ;;  %p9104_p2 = scmp.lt.s32.totalorder %s9098_s17, %s9098_s17 }
   0x7   :  { %p9105_p3 = por %p9104_p2, %p9103_p1 }
   0x9   :  { %p9106_p4 = pnand %p9105_p3, %p9099_p0 }
   0xb   :  { %9109 = shalt.err (!%p9106_p4)
}
   0xc   :  { %s9157_s18 = smov 128   ;;  %s9158_s19 = smov 8  }
   0xd   :  { %23 = dma.hbm_to_vmem [thread:$0]  %s17031_s0, 2048, %s18_s16, [#allocation3], %s9157_s18, %s9157_s18, %s9158_s19  }
   0xe   :  { %s9159_s22 = smov [#allocation5]  }
   0xf   :  { %s29_s23 = sshll.u32 %s9159_s22, 4  ;;  %s30_s23 = int_to_ptr.vmem [resolvable:$true] %s29_s23 }
  0x10   :  { %s9118_s24 = scalar_lea.vmem %s30_s23, 2048  ;;  %p9123_p6 = scmp.lt.s32.totalorder %s30_s23, %s30_s23 }
  0x11   :  { %p9119_p5 = scmp.ne.s32.totalorder %s30_s23, %s9118_s24  ;;  %p9124_p7 = scmp.lt.s32.totalorder %s9118_s24, %s9118_s24 }
  0x13   :  { %p9125_p8 = por %p9124_p7, %p9123_p6 }
  0x15   :  { %p9126_p9 = pnand %p9125_p8, %p9119_p5 }
  0x17   :  { %9129 = shalt.err (!%p9126_p9)
}
  0x18   :  { %35 = dma.hbm_to_vmem [thread:$0]  %s17032_s1, 2048, %s30_s23, [#allocation6], %s9157_s18, %s9157_s18, %s9158_s19  }
  0x19   :  { %9150 = dma.done.wait [#allocation3], 2048  }
  0x1a   :  { %9151 = vsyncadd [#allocation3], 4294965248 }
  0x1b   :  { %9152 = dma.done.wait [#allocation6], 2048  }
  0x1c   :  { %9153 = vsyncadd [#allocation6], 4294965248  ;;  %v71_v0 = vld [vmem:[#allocation5 + $0x38] sm:$0xff]  ;;  %v70_v1 = vld [vmem:[#allocation5 + $0x30] sm:$0xff]  ;;  %vm72_vm0 = vcmask 523264   ;;  %s9160_s0 = smov 96   ;;  %v334_v42 = vlaneseq }
  0x1d   :  { %8471 = vmatprep.subr.mxu0 %v71_v0  ;;  %v69_v2 = vld [vmem:[#allocation5 + $0x28] sm:$0xff]  ;;  %v46_v3 = vld [vmem:[#allocation2] sm:$0xff]  ;;  %v67_v5 = vld [vmem:[#allocation5 + $0x18] sm:$0xff]  ;;  %v9161_v40 = vmov 1983009808   ;;  %v17036_v55 = vmov 0.0  }
  0x1e   :  { %8472 = vmatpush3.msra.mxu0 %v71_v0  ;;  %8487 = vmatprep.mubr.msk.f32.mxu0 %vm72_vm0, %v46_v3  ;;  %v68_v4 = vld [vmem:[#allocation5 + $0x20] sm:$0xff]  ;;  %v66_v6 = vld [vmem:[#allocation5 + $0x10] sm:$0xff]  ;;  %v65_v7 = vld [vmem:[#allocation5 + $0x8] sm:$0xff]  ;;  %v332_v41 = vunpack.c.l.s4 %v9161_v40  ;;  %v335_v44 = vshrl.u32 %v334_v42, 7  ;;  %v9162_v45 = vmov 1934713408  }
  0x1f   :  { %8473 = vmatprep.subr.mxu0 %v70_v1  ;;  %8527 = vmatprep.mubr.msk.f32.mxu1 %vm72_vm0, %v46_v3  ;;  %v64_v8 = vld [vmem:[#allocation5] sm:$0xff]  ;;  %v47_v9 = vld [vmem:[#allocation2 + $0x8] sm:$0xff]  ;;  %v48_v10 = vld [vmem:[#allocation2 + $0x10] sm:$0xff]  ;;  %v363_v46 = vunpack.c.l.s4 %v9162_v45  ;;  %vm1386_vm1 = vcmask 254976   ;;  %s9164_s1 = smov 32   ;;  %vm4171_vm2 = vcmask 261120  }
  0x20   :  { %8474 = vmatpush3.msra.mxu0 %v70_v1  ;;  %v49_v11 = vld [vmem:[#allocation2 + $0x18] sm:$0xff]  ;;  %v50_v12 = vld [vmem:[#allocation2 + $0x20] sm:$0xff]  ;;  %v51_v13 = vld [vmem:[#allocation2 + $0x28] sm:$0xff]  ;;  %v333_v43 = vunpack.c.0.s8 %v332_v41 }
  0x21   :  { %8475 = vmatprep.subr.mxu0 %v69_v2  ;;  %v52_v14 = vld [vmem:[#allocation2 + $0x30] sm:$0xff]  ;;  %v53_v15 = vld [vmem:[#allocation2 + $0x38] sm:$0xff]  ;;  %v54_v16 = vld [vmem:[#allocation2 + $0x40] sm:$0xff]  ;;  %v364_v48 = vunpack.c.0.s8 %v363_v46 }
  0x22   :  { %8476 = vmatpush3.msra.mxu0 %v69_v2  ;;  %v55_v17 = vld [vmem:[#allocation2 + $0x48] sm:$0xff]  ;;  %v56_v18 = vld [vmem:[#allocation2 + $0x50] sm:$0xff]  ;;  %v57_v19 = vld [vmem:[#allocation2 + $0x58] sm:$0xff]  ;;  %v9281_v47 = vsub.s32 %v333_v43, %v335_v44 }
  0x23   :  { %8477 = vmatprep.subr.mxu0 %v68_v4  ;;  %v58_v20 = vld [vmem:[#allocation2 + $0x60] sm:$0xff]  ;;  %v59_v21 = vld [vmem:[#allocation2 + $0x68] sm:$0xff]  ;;  %v60_v22 = vld [vmem:[#allocation2 + $0x70] sm:$0xff]  ;;  %v9284_v51 = vsub.s32 %v364_v48, %v335_v44 }
  0x24   :  { %8478 = vmatpush3.msra.mxu0 %v68_v4  ;;  %v61_v23 = vld [vmem:[#allocation2 + $0x78] sm:$0xff]  ;;  %17722 = vst [vmem:[#allocation14_spill] sm:$0xff] %v9281_v47 }
  0x25   :  { %8479 = vmatprep.subr.mxu0 %v67_v5  ;;  %17723 = vst [vmem:[#allocation15_spill] sm:$0xff] %v9284_v51 }
  0x26   :  { %8480 = vmatpush3.msra.mxu0 %v67_v5 }
  0x27   :  { %8481 = vmatprep.subr.mxu0 %v66_v6 }
  0x28   :  { %8482 = vmatpush3.msra.mxu0 %v66_v6 }
  0x29   :  { %8483 = vmatprep.subr.mxu0 %v65_v7 }
  0x2a   :  { %8484 = vmatpush3.msra.mxu0 %v65_v7 }
  0x2b   :  { %8485 = vmatprep.subr.mxu0 %v64_v8 }
  0x2c   :  { %8486 = vmatpush3.msra.mxu0 %v64_v8 }
  0x2d   :  { %8488 = vmatmul.mubr.msk.f32.vlgmr.msra.gmra.mxu0 %vm72_vm0, %v47_v9 }
  0x2e   :  { %8490 = vmatprep.mubr.msk.f32.mxu0 %vm72_vm0, %v48_v10 }
  0x31   :  { %8491 = vmatmul.mubr.msk.f32.gmra.mxu0 %vm72_vm0, %v49_v11 }
  0x32   :  { %8493 = vmatprep.mubr.msk.f32.mxu0 %vm72_vm0, %v50_v12 }
  0x35   :  { %8494 = vmatmul.mubr.msk.f32.gmra.mxu0 %vm72_vm0, %v51_v13 }
  0x36   :  { %8496 = vmatprep.mubr.msk.f32.mxu0 %vm72_vm0, %v52_v14 }
  0x39   :  { %8497 = vmatmul.mubr.msk.f32.gmra.mxu0 %vm72_vm0, %v53_v15 }
  0x3a   :  { %8499 = vmatprep.mubr.msk.f32.mxu0 %vm72_vm0, %v54_v16 }
  0x3d   :  { %8500 = vmatmul.mubr.msk.f32.gmra.mxu0 %vm72_vm0, %v55_v17 }
  0x3e   :  { %8502 = vmatprep.mubr.msk.f32.mxu0 %vm72_vm0, %v56_v18 }
  0x41   :  { %8503 = vmatmul.mubr.msk.f32.gmra.mxu0 %vm72_vm0, %v57_v19 }
  0x42   :  { %8505 = vmatprep.mubr.msk.f32.mxu0 %vm72_vm0, %v58_v20 }
  0x45   :  { %8506 = vmatmul.mubr.msk.f32.gmra.mxu0 %vm72_vm0, %v59_v21 }
  0x46   :  { %8508 = vmatprep.mubr.msk.f32.mxu0 %vm72_vm0, %v60_v22 }
  0x49   :  { %8509 = vmatmul.mubr.msk.f32.gmra.mxu0 %vm72_vm0, %v61_v23 }
  0xed   :  { %v8489_v24 = vpop.f32.mrf.mxu0 }
  0xee   :  { %284 = vrot.lane.b32.xlu0 %v8489_v24, %s9160_s0  ;;  %v403_v50 = vrot.slane %v8489_v24, %v9281_v47  ;;  %v396_v60 = vcombine.high %v8489_v24, %v17036_v55 }
  0xef   :  { %v9221_v25 = vpop.f32.mrf.mxu0 }
  0xf0   :  { %v337_v61 = vrot.slane %v9221_v25, %v9281_v47  ;;  %v410_v4 = vrot.slane %v396_v60, %v9281_v47 }
  0xf1   :  { %v9223_v26 = vpop.f32.mrf.mxu0 }
  0xf2   :  { %282 = vrot.lane.b32.xlu0 %v9221_v25, %s9160_s0  ;;  %288 = vrot.lane.b32.xlu1 %v9223_v26, %s9160_s0 }
  0xf3   :  { %v9229_v27 = vpop.f32.mrf.mxu0 }
  0xf5   :  { %v9231_v28 = vpop.f32.mrf.mxu0 }
  0xf6   :  { %286 = vrot.lane.b32.xlu1 %v9229_v27, %s9160_s0 }
  0xf7   :  { %v9235_v29 = vpop.f32.mrf.mxu0 }
  0xf8   :  { %290 = vrot.lane.b32.xlu0 %v9235_v29, %s9160_s0 }
  0xf9   :  { %v9239_v30 = vpop.f32.mrf.mxu0 }
  0xfa   :  { %292 = vrot.lane.b32.xlu1 %v9231_v28, %s9160_s0 }
  0xfb   :  { %v9243_v31 = vpop.f32.mrf.mxu0 }
  0xfc   :  { %294 = vrot.lane.b32.xlu0 %v9243_v31, %s9160_s0 }
  0xfd   :  { %v9247_v32 = vpop.f32.mrf.mxu0 }
  0xfe   :  { %296 = vrot.lane.b32.xlu1 %v9239_v30, %s9160_s0  ;;  %v924_v23 = vcombine.high %v9247_v32, %v17036_v55 }
  0xff   :  { %v9251_v33 = vpop.f32.mrf.mxu0 }
 0x100   :  { %298 = vrot.lane.b32.xlu0 %v9251_v33, %s9160_s0  ;;  %v858_v17 = vcombine.high %v9251_v33, %v17036_v55  ;;  %v9357_v45 = vrot.slane %v924_v23, %v9281_v47 }
 0x101   :  { %v9255_v34 = vpop.f32.mrf.mxu0 }
 0x102   :  { %300 = vrot.lane.b32.xlu1 %v9247_v32, %s9160_s0  ;;  %v9342_v24 = vrot.slane %v858_v17, %v9281_v47 }
 0x103   :  { %v9259_v35 = vpop.f32.mrf.mxu0 }
 0x104   :  { %302 = vrot.lane.b32.xlu0 %v9259_v35, %s9160_s0 }
 0x105   :  { %v9263_v36 = vpop.f32.mrf.mxu0 }
 0x106   :  { %304 = vrot.lane.b32.xlu1 %v9255_v34, %s9160_s0 }
 0x107   :  { %v9267_v37 = vpop.f32.mrf.mxu0 }
 0x108   :  { %17719 = vst [vmem:[#allocation11_spill] sm:$0xff] %v9267_v37  ;;  %306 = vrot.lane.b32.xlu0 %v9267_v37, %s9160_s0 }
 0x109   :  { %v9271_v38 = vpop.f32.mrf.mxu0 }
 0x10a   :  { %17720 = vst [vmem:[#allocation12_spill] sm:$0xff] %v9271_v38  ;;  %308 = vrot.lane.b32.xlu1 %v9263_v36, %s9160_s0 }
 0x10b   :  { %v9275_v39 = vpop.f32.mrf.mxu0 }
 0x10c   :  { %17721 = vst [vmem:[#allocation13_spill] sm:$0xff] %v9275_v39  ;;  %310 = vrot.lane.b32.xlu0 %v9275_v39, %s9160_s0 }
 0x10e   :  { %312 = vrot.lane.b32.xlu1 %v9271_v38, %s9160_s0 }
 0x160   :  { %v285_v49 = vpop.permute.xlu0 %284 }
 0x161   :  { %v418_v52 = vrot.slane %v285_v49, %v9281_v47  ;;  %v411_v56 = vcombine.high %v285_v49, %v17036_v55 }
 0x163   :  { %v426_v53 = vcombine.low %v403_v50, %v418_v52  ;;  %v427_v54 = vcombine.high %v403_v50, %v418_v52  ;;  %v425_v1 = vrot.slane %v411_v56, %v9281_v47 }
 0x164   :  { %v283_v57 = vpop.permute.xlu0 %282  ;;  %v9288_v58 = vpop.permute.xlu1 %288 }
 0x165   :  { %v9291_v59 = vrot.slane %v426_v53, %v9284_v51  ;;  %v352_v62 = vrot.slane %v283_v57, %v9281_v47  ;;  %v9298_v63 = vrot.slane %v427_v54, %v9284_v51  ;;  %v442_v8 = vcombine.low %v410_v4, %v425_v1 }
 0x166   :  { %v443_v21 = vcombine.high %v410_v4, %v425_v1  ;;  %v330_v1 = vcombine.high %v9221_v25, %v17036_v55 }
 0x167   :  { %v1411_v0 = vsel %vm1386_vm1, %v9291_v59, 0.0  ;;  %v360_v2 = vcombine.low %v337_v61, %v352_v62  ;;  %v1417_v7 = vsel %vm1386_vm1, %v9298_v63, 0.0  ;;  %v361_v10 = vcombine.high %v337_v61, %v352_v62 }
 0x168   :  { %v9303_v3 = vpop.permute.xlu1 %286  ;;  %1412 = vadd.xlane.f32.xlu1 %v1411_v0  ;;  %v9322_v14 = vrot.slane %v442_v8, %v9284_v51  ;;  %v9354_v44 = vrot.slane %v443_v21, %v9284_v51  ;;  %v9370_v52 = vcombine.high %v9291_v59, %v17036_v55  ;;  %v1779_v54 = vmul.f32 %v9291_v59, %v9291_v59 }
 0x169   :  { %v9307_v5 = vrot.slane %v360_v2, %v9284_v51  ;;  %v9325_v15 = vrot.slane %v361_v10, %v9284_v51  ;;  %v9378_v56 = vcombine.high %v9298_v63, %v17036_v55  ;;  %v345_v62 = vcombine.high %v283_v57, %v17036_v55 }
 0x16a   :  { %v9309_v6 = vpop.permute.xlu0 %290  ;;  %v1423_v18 = vsel %vm1386_vm1, %v9322_v14, 0.0  ;;  %v1429_v50 = vsel %vm1386_vm1, %v9354_v44, 0.0  ;;  %v1414_v53 = vsel %vm1386_vm1, %v9370_v52, 0.0  ;;  %v1923_v60 = vsel %vm1386_vm1, %v1779_v54, 0.0 }
 0x16b   :  { %v1387_v11 = vsel %vm1386_vm1, %v9307_v5, 0.0  ;;  %v1393_v22 = vsel %vm1386_vm1, %v9325_v15, 0.0  ;;  %v1420_v61 = vsel %vm1386_vm1, %v9378_v56, 0.0  ;;  %v1781_v0 = vmul.f32 %v9298_v63, %v9298_v63 }
 0x16c   :  { %v9313_v9 = vpop.permute.xlu1 %292  ;;  %1418 = vadd.xlane.f32.xlu1 %v1417_v7  ;;  %1388 = vadd.xlane.f32.xlu0 %v1387_v11  ;;  %v9390_v2 = vcombine.high %v9325_v15, %v17036_v55  ;;  %v359_v7 = vrot.slane %v345_v62, %v9281_v47  ;;  %v344_v8 = vrot.slane %v330_v1, %v9281_v47 }
 0x16d   :  { %v1929_v4 = vsel %vm1386_vm1, %v1781_v0, 0.0  ;;  %v9399_v10 = vcombine.high %v9307_v5, %v17036_v55  ;;  %v9405_v17 = vcombine.high %v9322_v14, %v17036_v55  ;;  %v535_v21 = vrot.slane %v9223_v26, %v9281_v47 }
 0x16e   :  { %v9317_v12 = vpop.permute.xlu0 %294  ;;  %v1396_v57 = vsel %vm1386_vm1, %v9390_v2, 0.0  ;;  %v376_v25 = vcombine.low %v344_v8, %v359_v7  ;;  %v1774_v42 = vmul.f32 %v9390_v2, %v9390_v2  ;;  %v682_v48 = vrot.slane %v9313_v9, %v9281_v47 }
 0x16f   :  { %v1390_v11 = vsel %vm1386_vm1, %v9399_v10, 0.0 }
 0x170   :  { %v9319_v13 = vpop.permute.xlu1 %296  ;;  %1424 = vadd.xlane.f32.xlu1 %v1423_v18  ;;  %1394 = vadd.xlane.f32.xlu0 %v1393_v22  ;;  %v377_v18 = vcombine.high %v344_v8, %v359_v7  ;;  %v1426_v22 = vsel %vm1386_vm1, %v9405_v17, 0.0  ;;  %v9414_v23 = vrot.slane %v376_v25, %v9284_v51  ;;  %v1782_v7 = vmul.f32 %v9378_v56, %v9378_v56 }
 0x172   :  { %v9327_v16 = vpop.permute.xlu0 %298  ;;  %v9423_v54 = vrot.slane %v377_v18, %v9284_v51  ;;  %v1932_v25 = vsel %vm1386_vm1, %v1782_v7, 0.0  ;;  %v469_v7 = vrot.slane %v9229_v27, %v9281_v47 }
 0x173   :  { %v873_v19 = vcombine.high %v9327_v16, %v17036_v55 }
 0x174   :  { %v9335_v20 = vpop.permute.xlu1 %300  ;;  %1430 = vadd.xlane.f32.xlu1 %v1429_v50  ;;  %1415 = vadd.xlane.f32.xlu0 %v1414_v53  ;;  %v1399_v53 = vsel %vm1386_vm1, %v9414_v23, 0.0  ;;  %17724 = vst [vmem:[#allocation16_spill] sm:$0xff] %v9423_v54  ;;  %v1405_v1 = vsel %vm1386_vm1, %v9423_v54, 0.0 }
 0x175   :  { %v9345_v40 = vrot.slane %v873_v19, %v9281_v47  ;;  %v939_v41 = vcombine.high %v9335_v20, %v17036_v55  ;;  %v550_v19 = vrot.slane %v9288_v58, %v9281_v47 }
 0x177   :  { %v9360_v46 = vrot.slane %v939_v41, %v9281_v47  ;;  %v9418_v41 = vcombine.high %v9354_v44, %v17036_v55  ;;  %v558_v50 = vcombine.low %v535_v21, %v550_v19  ;;  %v559_v62 = vcombine.high %v535_v21, %v550_v19 }
 0x178   :  { %1924 = vadd.xlane.f32.xlu1 %v1923_v60  ;;  %1421 = vadd.xlane.f32.xlu0 %v1420_v61  ;;  %v1780_v61 = vmul.f32 %v9370_v52, %v9370_v52  ;;  %v1771_v19 = vmul.f32 %v9307_v5, %v9307_v5  ;;  %v9624_v39 = vpop.permute.xlu1 %304 }
 0x179   :  { %v1432_v60 = vsel %vm1386_vm1, %v9418_v41, 0.0  ;;  %v9430_v0 = vrot.slane %v558_v50, %v9284_v51  ;;  %v9438_v8 = vrot.slane %v559_v62, %v9284_v51  ;;  %v484_v62 = vrot.slane %v9303_v3, %v9281_v47 }
 0x17a   :  { %v1899_v50 = vsel %vm1386_vm1, %v1771_v19, 0.0 }
 0x17b   :  { %17725 = vst [vmem:[#allocation17_spill] sm:$0xff] %v9430_v0  ;;  %17726 = vst [vmem:[#allocation18_spill] sm:$0xff] %v9438_v8  ;;  %v1465_v18 = vsel %vm1386_vm1, %v9438_v8, 0.0  ;;  %v492_v19 = vcombine.low %v469_v7, %v484_v62 }
 0x17c   :  { %1930 = vadd.xlane.f32.xlu1 %v1929_v4  ;;  %1397 = vadd.xlane.f32.xlu0 %v1396_v57  ;;  %v1926_v4 = vsel %vm1386_vm1, %v1780_v61, 0.0  ;;  %v1459_v57 = vsel %vm1386_vm1, %v9430_v0, 0.0  ;;  %v9464_v61 = vcombine.high %v9430_v0, %v17036_v55 }
 0x17d   :  { %v9492_v43 = vrot.slane %v492_v19, %v9284_v51 }
 0x17e   :  { %17729 = vst [vmem:[#allocation21_spill] sm:$0xff] %v9464_v61 }
 0x17f   :  { %17731 = vst [vmem:[#allocation23_spill] sm:$0xff] %v9492_v43 }
 0x180   :  { %1391 = vadd.xlane.f32.xlu1 %v1390_v11  ;;  %1427 = vadd.xlane.f32.xlu0 %v1426_v22  ;;  %v9445_v11 = vcombine.high %v9414_v23, %v17036_v55  ;;  %v9455_v22 = vcombine.high %v9423_v54, %v17036_v55 }
 0x182   :  { %17727 = vst [vmem:[#allocation19_spill] sm:$0xff] %v9445_v11  ;;  %v1402_v21 = vsel %vm1386_vm1, %v9445_v11, 0.0  ;;  %17728 = vst [vmem:[#allocation20_spill] sm:$0xff] %v9455_v22 }
 0x184   :  { %1400 = vadd.xlane.f32.xlu1 %v1399_v53  ;;  %1433 = vadd.xlane.f32.xlu0 %v1432_v60  ;;  %v1773_v53 = vmul.f32 %v9325_v15, %v9325_v15  ;;  %v1408_v60 = vsel %vm1386_vm1, %v9455_v22, 0.0 }
 0x188   :  { %1406 = vadd.xlane.f32.xlu1 %v1405_v1  ;;  %1927 = vadd.xlane.f32.xlu0 %v1926_v4  ;;  %v1905_v1 = vsel %vm1386_vm1, %v1773_v53, 0.0  ;;  %v1783_v4 = vmul.f32 %v9322_v14, %v9322_v14  ;;  %v528_v53 = vcombine.high %v9223_v26, %v17036_v55 }
 0x18c   :  { %1460 = vadd.xlane.f32.xlu1 %v1459_v57  ;;  %1933 = vadd.xlane.f32.xlu0 %v1932_v25  ;;  %v1462_v57 = vsel %vm1386_vm1, %v9464_v61, 0.0  ;;  %v9477_v25 = vcombine.high %v9438_v8, %v17036_v55 }
 0x18e   :  { %17730 = vst [vmem:[#allocation22_spill] sm:$0xff] %v9477_v25 }
 0x190   :  { %1466 = vadd.xlane.f32.xlu1 %v1465_v18  ;;  %1403 = vadd.xlane.f32.xlu0 %v1402_v21  ;;  %v543_v18 = vcombine.high %v9288_v58, %v17036_v55  ;;  %v1935_v21 = vsel %vm1386_vm1, %v1783_v4, 0.0  ;;  %v493_v58 = vcombine.high %v469_v7, %v484_v62  ;;  %v1435_v62 = vsel %vm1386_vm1, %v9492_v43, 0.0 }
 0x191   :  { %v1908_v7 = vsel %vm1386_vm1, %v1774_v42, 0.0 }
 0x194   :  { %1900 = vadd.xlane.f32.xlu1 %v1899_v50  ;;  %1409 = vadd.xlane.f32.xlu0 %v1408_v60  ;;  %v1785_v50 = vmul.f32 %v9354_v44, %v9354_v44  ;;  %v1468_v60 = vsel %vm1386_vm1, %v9477_v25, 0.0 }
 0x196   :  { %v1941_v4 = vsel %vm1386_vm1, %v1785_v50, 0.0 }
 0x198   :  { %1906 = vadd.xlane.f32.xlu1 %v1905_v1  ;;  %1463 = vadd.xlane.f32.xlu0 %v1462_v57  ;;  %v1772_v1 = vmul.f32 %v9399_v10, %v9399_v10  ;;  %v557_v57 = vrot.slane %v543_v18, %v9281_v47  ;;  %v1784_v18 = vmul.f32 %v9405_v17, %v9405_v17 }
 0x19a   :  { %v1902_v26 = vsel %vm1386_vm1, %v1772_v1, 0.0  ;;  %v1938_v1 = vsel %vm1386_vm1, %v1784_v18, 0.0  ;;  %v477_v18 = vcombine.high %v9303_v3, %v17036_v55 }
 0x19c   :  { %1936 = vadd.xlane.f32.xlu1 %v1935_v21  ;;  %1469 = vadd.xlane.f32.xlu0 %v1468_v60  ;;  %v542_v21 = vrot.slane %v528_v53, %v9281_v47  ;;  %v9500_v60 = vrot.slane %v493_v58, %v9284_v51  ;;  %v1786_v58 = vmul.f32 %v9418_v41, %v9418_v41 }
 0x19e   :  { %v574_v49 = vcombine.low %v542_v21, %v557_v57  ;;  %17732 = vst [vmem:[#allocation24_spill] sm:$0xff] %v9500_v60  ;;  %v575_v19 = vcombine.high %v542_v21, %v557_v57  ;;  %v1441_v50 = vsel %vm1386_vm1, %v9500_v60, 0.0  ;;  %v1944_v57 = vsel %vm1386_vm1, %v1786_v58, 0.0 }
 0x1a0   :  { %1942 = vadd.xlane.f32.xlu1 %v1941_v4  ;;  %1903 = vadd.xlane.f32.xlu0 %v1902_v26  ;;  %v9510_v53 = vrot.slane %v574_v49, %v9284_v51  ;;  %v9518_v4 = vrot.slane %v575_v19, %v9284_v51  ;;  %v9523_v49 = vcombine.high %v9492_v43, %v17036_v55 }
 0x1a1   :  { %v1775_v26 = vmul.f32 %v9414_v23, %v9414_v23 }
 0x1a2   :  { %17733 = vst [vmem:[#allocation25_spill] sm:$0xff] %v9510_v53  ;;  %v1471_v42 = vsel %vm1386_vm1, %v9510_v53, 0.0  ;;  %17734 = vst [vmem:[#allocation26_spill] sm:$0xff] %v9518_v4  ;;  %v1477_v21 = vsel %vm1386_vm1, %v9518_v4, 0.0 }
 0x1a3   :  { %17735 = vst [vmem:[#allocation27_spill] sm:$0xff] %v9523_v49  ;;  %v1911_v19 = vsel %vm1386_vm1, %v1775_v26, 0.0 }
 0x1a4   :  { %1436 = vadd.xlane.f32.xlu1 %v1435_v62  ;;  %1909 = vadd.xlane.f32.xlu0 %v1908_v7  ;;  %v1438_v62 = vsel %vm1386_vm1, %v9523_v49, 0.0  ;;  %v9533_v7 = vcombine.high %v9500_v60, %v17036_v55 }
 0x1a6   :  { %17736 = vst [vmem:[#allocation28_spill] sm:$0xff] %v9533_v7  ;;  %v1444_v58 = vsel %vm1386_vm1, %v9533_v7, 0.0 }
 0x1a8   :  { %1442 = vadd.xlane.f32.xlu1 %v1441_v50  ;;  %1939 = vadd.xlane.f32.xlu0 %v1938_v1  ;;  %v1777_v50 = vmul.f32 %v9423_v54, %v9423_v54  ;;  %v462_v1 = vcombine.high %v9229_v27, %v17036_v55 }
 0x1aa   :  { %v1917_v3 = vsel %vm1386_vm1, %v1777_v50, 0.0  ;;  %v476_v26 = vrot.slane %v462_v1, %v9281_v47  ;;  %v1776_v1 = vmul.f32 %v9445_v11, %v9445_v11 }
 0x1ac   :  { %1472 = vadd.xlane.f32.xlu1 %v1471_v42  ;;  %1945 = vadd.xlane.f32.xlu0 %v1944_v57  ;;  %v9546_v42 = vcombine.high %v9510_v53, %v17036_v55  ;;  %v491_v57 = vrot.slane %v477_v18, %v9281_v47  ;;  %v1797_v18 = vmul.f32 %v9438_v8, %v9438_v8 }
 0x1ae   :  { %17737 = vst [vmem:[#allocation29_spill] sm:$0xff] %v9546_v42  ;;  %v1474_v27 = vsel %vm1386_vm1, %v9546_v42, 0.0 }
 0x1b0   :  { %1478 = vadd.xlane.f32.xlu1 %v1477_v21  ;;  %1439 = vadd.xlane.f32.xlu0 %v1438_v62  ;;  %v1795_v21 = vmul.f32 %v9430_v0, %v9430_v0  ;;  %v9557_v62 = vcombine.high %v9518_v4, %v17036_v55 }
 0x1b2   :  { %17738 = vst [vmem:[#allocation30_spill] sm:$0xff] %v9557_v62  ;;  %v1480_v50 = vsel %vm1386_vm1, %v9557_v62, 0.0  ;;  %v1778_v62 = vmul.f32 %v9455_v22, %v9455_v22 }
 0x1b4   :  { %1912 = vadd.xlane.f32.xlu1 %v1911_v19  ;;  %1445 = vadd.xlane.f32.xlu0 %v1444_v58  ;;  %v508_v19 = vcombine.low %v476_v26, %v491_v57  ;;  %v1971_v58 = vsel %vm1386_vm1, %v1795_v21, 0.0  ;;  %v667_v21 = vrot.slane %v9231_v28, %v9281_v47 }
 0x1b6   :  { %v9570_v55 = vrot.slane %v508_v19, %v9284_v51  ;;  %v1920_v19 = vsel %vm1386_vm1, %v1778_v62, 0.0 }
 0x1b8   :  { %1918 = vadd.xlane.f32.xlu1 %v1917_v3  ;;  %1475 = vadd.xlane.f32.xlu0 %v1474_v27  ;;  %v509_v3 = vcombine.high %v476_v26, %v491_v57  ;;  %v1977_v27 = vsel %vm1386_vm1, %v1797_v18, 0.0  ;;  %17739 = vst [vmem:[#allocation31_spill] sm:$0xff] %v9570_v55  ;;  %v1447_v57 = vsel %vm1386_vm1, %v9570_v55, 0.0  ;;  %v1796_v18 = vmul.f32 %v9464_v61, %v9464_v61 }
 0x1ba   :  { %v9580_v26 = vrot.slane %v509_v3, %v9284_v51  ;;  %v1974_v42 = vsel %vm1386_vm1, %v1796_v18, 0.0  ;;  %v1798_v3 = vmul.f32 %v9477_v25, %v9477_v25  ;;  %v1787_v18 = vmul.f32 %v9492_v43, %v9492_v43 }
 0x1bc   :  { %1972 = vadd.xlane.f32.xlu1 %v1971_v58  ;;  %1481 = vadd.xlane.f32.xlu0 %v1480_v50  ;;  %v1914_v58 = vsel %vm1386_vm1, %v1776_v1, 0.0  ;;  %v690_v50 = vcombine.low %v667_v21, %v682_v48  ;;  %17740 = vst [vmem:[#allocation32_spill] sm:$0xff] %v9580_v26  ;;  %v1947_v4 = vsel %vm1386_vm1, %v1787_v18, 0.0 }
 0x1be   :  { %v9586_v1 = vrot.slane %v690_v50, %v9284_v51 }
 0x1c0   :  { %1978 = vadd.xlane.f32.xlu1 %v1977_v27  ;;  %1915 = vadd.xlane.f32.xlu0 %v1914_v58  ;;  %v691_v27 = vcombine.high %v667_v21, %v682_v48  ;;  %17741 = vst [vmem:[#allocation33_spill] sm:$0xff] %v9586_v1  ;;  %v1453_v58 = vsel %vm1386_vm1, %v9580_v26, 0.0  ;;  %v1980_v48 = vsel %vm1386_vm1, %v1798_v3, 0.0  ;;  %v17743_v21 = vmov 0.0  }
 0x1c1   :  { %v9601_v50 = vcombine.high %v9570_v55, %v17743_v21  ;;  %v9615_v3 = vcombine.high %v9580_v26, %v17743_v21  ;;  %v660_v53 = vcombine.high %v9231_v28, %v17743_v21 }
 0x1c2   :  { %v9594_v62 = vrot.slane %v691_v27, %v9284_v51  ;;  %v601_v27 = vrot.slane %v9235_v29, %v9281_v47 }
 0x1c3   :  { %17744 = vst [vmem:[#allocation35_spill] sm:$0xff] %v9601_v50  ;;  %17745 = vst [vmem:[#allocation36_spill] sm:$0xff] %v9615_v3  ;;  %v1456_v43 = vsel %vm1386_vm1, %v9615_v3, 0.0  ;;  %v674_v28 = vrot.slane %v660_v53, %v9281_v47 }
 0x1c4   :  { %1448 = vadd.xlane.f32.xlu1 %v1447_v57  ;;  %1921 = vadd.xlane.f32.xlu0 %v1920_v19  ;;  %17742 = vst [vmem:[#allocation34_spill] sm:$0xff] %v9594_v62  ;;  %v1507_v57 = vsel %vm1386_vm1, %v9586_v1, 0.0  ;;  %v616_v19 = vrot.slane %v9309_v6, %v9281_v47  ;;  %v9642_v25 = vcombine.high %v9594_v62, %v17743_v21 }
 0x1c6   :  { %17748 = vst [vmem:[#allocation39_spill] sm:$0xff] %v9642_v25  ;;  %v1516_v53 = vsel %vm1386_vm1, %v9642_v25, 0.0  ;;  %v609_v25 = vcombine.high %v9309_v6, %v17743_v21 }
 0x1c8   :  { %1454 = vadd.xlane.f32.xlu1 %v1453_v58  ;;  %1975 = vadd.xlane.f32.xlu0 %v1974_v42  ;;  %v1513_v42 = vsel %vm1386_vm1, %v9594_v62, 0.0  ;;  %v1450_v58 = vsel %vm1386_vm1, %v9601_v50, 0.0  ;;  %v1790_v62 = vmul.f32 %v9533_v7, %v9533_v7  ;;  %v623_v6 = vrot.slane %v609_v25, %v9281_v47 }
 0x1c9   :  { %v1793_v7 = vmul.f32 %v9580_v26, %v9580_v26 }
 0x1cc   :  { %1508 = vadd.xlane.f32.xlu1 %v1507_v57  ;;  %1981 = vadd.xlane.f32.xlu0 %v1980_v48  ;;  %v624_v57 = vcombine.low %v601_v27, %v616_v19  ;;  %v675_v48 = vcombine.high %v9313_v9, %v17743_v21  ;;  %v625_v9 = vcombine.high %v601_v27, %v616_v19  ;;  %v9647_v27 = vpop.permute.xlu1 %308 }
 0x1ce   :  { %v9633_v18 = vrot.slane %v624_v57, %v9284_v51 }
 0x1d0   :  { %1514 = vadd.xlane.f32.xlu1 %v1513_v42  ;;  %1451 = vadd.xlane.f32.xlu0 %v1450_v58  ;;  %v1789_v42 = vmul.f32 %v9500_v60, %v9500_v60  ;;  %v9630_v58 = vcombine.high %v9586_v1, %v17743_v21  ;;  %17747 = vst [vmem:[#allocation38_spill] sm:$0xff] %v9633_v18  ;;  %v1483_v57 = vsel %vm1386_vm1, %v9633_v18, 0.0 }
 0x1d1   :  { %v689_v60 = vrot.slane %v675_v48, %v9281_v47  ;;  %v9651_v48 = vpop.permute.xlu0 %302 }
 0x1d2   :  { %17746 = vst [vmem:[#allocation37_spill] sm:$0xff] %v9630_v58  ;;  %v1510_v38 = vsel %vm1386_vm1, %v9630_v58, 0.0  ;;  %v9662_v58 = vpop.permute.xlu1 %312 }
 0x1d3   :  { %v706_v19 = vcombine.low %v674_v28, %v689_v60  ;;  %17751 = vst [vmem:[#allocation42_spill] sm:$0xff] %v9662_v58 }
 0x1d4   :  { %1948 = vadd.xlane.f32.xlu1 %v1947_v4  ;;  %1457 = vadd.xlane.f32.xlu0 %v1456_v43  ;;  %v1953_v4 = vsel %vm1386_vm1, %v1789_v42, 0.0  ;;  %v9645_v43 = vrot.slane %v625_v9, %v9284_v51  ;;  %v1788_v42 = vmul.f32 %v9523_v49, %v9523_v49 }
 0x1d6   :  { %17749 = vst [vmem:[#allocation40_spill] sm:$0xff] %v9645_v43  ;;  %v1489_v9 = vsel %vm1386_vm1, %v9645_v43, 0.0 }
 0x1d8   :  { %1954 = vadd.xlane.f32.xlu1 %v1953_v4  ;;  %1511 = vadd.xlane.f32.xlu0 %v1510_v38  ;;  %v707_v38 = vcombine.high %v674_v28, %v689_v60  ;;  %v9660_v4 = vrot.slane %v706_v19, %v9284_v51  ;;  %v594_v19 = vcombine.high %v9235_v29, %v17743_v21 }
 0x1da   :  { %17750 = vst [vmem:[#allocation41_spill] sm:$0xff] %v9660_v4  ;;  %v1519_v60 = vsel %vm1386_vm1, %v9660_v4, 0.0  ;;  %v9674_v28 = vrot.slane %v707_v38, %v9284_v51  ;;  %v1791_v38 = vmul.f32 %v9570_v55, %v9570_v55 }
 0x1dc   :  { %1484 = vadd.xlane.f32.xlu1 %v1483_v57  ;;  %1517 = vadd.xlane.f32.xlu0 %v1516_v53  ;;  %v1950_v57 = vsel %vm1386_vm1, %v1788_v42, 0.0  ;;  %v9669_v53 = vpop.permute.xlu0 %306  ;;  %17753 = vst [vmem:[#allocation44_spill] sm:$0xff] %v9674_v28  ;;  %v1956_v42 = vsel %vm1386_vm1, %v1790_v62, 0.0  ;;  %v1525_v1 = vsel %vm1386_vm1, %v9674_v28, 0.0 }
 0x1dd   :  { %17752 = vst [vmem:[#allocation43_spill] sm:$0xff] %v9669_v53 }
 0x1e0   :  { %1490 = vadd.xlane.f32.xlu1 %v1489_v9  ;;  %1951 = vadd.xlane.f32.xlu0 %v1950_v57  ;;  %v9681_v9 = vcombine.high %v9633_v18, %v17743_v21  ;;  %v9689_v29 = vpop.permute.xlu0 %310  ;;  %v9695_v18 = vcombine.high %v9645_v43, %v17743_v21 }
 0x1e1   :  { %17755 = vst [vmem:[#allocation46_spill] sm:$0xff] %v9689_v29 }
 0x1e2   :  { %17754 = vst [vmem:[#allocation45_spill] sm:$0xff] %v9681_v9  ;;  %v1486_v62 = vsel %vm1386_vm1, %v9681_v9, 0.0  ;;  %17756 = vst [vmem:[#allocation47_spill] sm:$0xff] %v9695_v18 }
 0x1e4   :  { %1520 = vadd.xlane.f32.xlu1 %v1519_v60  ;;  %1957 = vadd.xlane.f32.xlu0 %v1956_v42  ;;  %v608_v60 = vrot.slane %v594_v19, %v9281_v47  ;;  %v1959_v42 = vsel %vm1386_vm1, %v1791_v38, 0.0  ;;  %v9704_v19 = vcombine.high %v9660_v4, %v17743_v21  ;;  %v1965_v38 = vsel %vm1386_vm1, %v1793_v7, 0.0 }
 0x1e6   :  { %v640_v25 = vcombine.low %v608_v60, %v623_v6  ;;  %17757 = vst [vmem:[#allocation48_spill] sm:$0xff] %v9704_v19  ;;  %v641_v43 = vcombine.high %v608_v60, %v623_v6  ;;  %v1522_v4 = vsel %vm1386_vm1, %v9704_v19, 0.0  ;;  %v1792_v19 = vmul.f32 %v9601_v50, %v9601_v50 }
 0x1e7   :  { %v1794_v50 = vmul.f32 %v9615_v3, %v9615_v3 }
 0x1e8   :  { %1526 = vadd.xlane.f32.xlu1 %v1525_v1  ;;  %1487 = vadd.xlane.f32.xlu0 %v1486_v62  ;;  %v1492_v1 = vsel %vm1386_vm1, %v9695_v18, 0.0  ;;  %v814_v62 = vrot.slane %v9319_v13, %v9281_v47  ;;  %v9712_v26 = vrot.slane %v640_v25, %v9284_v51  ;;  %v9720_v18 = vcombine.high %v9674_v28, %v17743_v21 }
 0x1e9   :  { %v9727_v25 = vrot.slane %v641_v43, %v9284_v51  ;;  %v1968_v61 = vsel %vm1386_vm1, %v1794_v50, 0.0 }
 0x1ea   :  { %17758 = vst [vmem:[#allocation49_spill] sm:$0xff] %v9712_v26  ;;  %17759 = vst [vmem:[#allocation50_spill] sm:$0xff] %v9720_v18  ;;  %v1495_v7 = vsel %vm1386_vm1, %v9712_v26, 0.0 }
 0x1eb   :  { %17760 = vst [vmem:[#allocation51_spill] sm:$0xff] %v9727_v25  ;;  %v1501_v43 = vsel %vm1386_vm1, %v9727_v25, 0.0 }
 0x1ec   :  { %1960 = vadd.xlane.f32.xlu1 %v1959_v42  ;;  %1493 = vadd.xlane.f32.xlu0 %v1492_v1  ;;  %v799_v42 = vrot.slane %v9239_v30, %v9281_v47 }
 0x1ee   :  { %v822_v60 = vcombine.low %v799_v42, %v814_v62  ;;  %v823_v28 = vcombine.high %v799_v42, %v814_v62  ;;  %v807_v42 = vcombine.high %v9319_v13, %v17743_v21  ;;  %v9767_v13 = vcombine.high %v9712_v26, %v17743_v21 }
 0x1f0   :  { %1966 = vadd.xlane.f32.xlu1 %v1965_v38  ;;  %1523 = vadd.xlane.f32.xlu0 %v1522_v4  ;;  %v1528_v38 = vsel %vm1386_vm1, %v9720_v18, 0.0  ;;  %v748_v4 = vrot.slane %v9317_v12, %v9281_v47  ;;  %v9738_v49 = vrot.slane %v822_v60, %v9284_v51  ;;  %v9756_v58 = vrot.slane %v823_v28, %v9284_v51 }
 0x1f1   :  { %v1413_v57 = vpop.xlane.xlu1 %1412  ;;  %17763 = vst [vmem:[#allocation54_spill] sm:$0xff] %v9767_v13  ;;  %v821_v22 = vrot.slane %v807_v42, %v9281_v47 }
 0x1f2   :  { %17761 = vst [vmem:[#allocation52_spill] sm:$0xff] %v9738_v49  ;;  %v9746_v18 = vmul.f32 0.03125, %v1413_v57  ;;  %17762 = vst [vmem:[#allocation53_spill] sm:$0xff] %v9756_v58  ;;  %v792_v57 = vcombine.high %v9239_v30, %v17743_v21 }
 0x1f4   :  { %1496 = vadd.xlane.f32.xlu1 %v1495_v7  ;;  %1529 = vadd.xlane.f32.xlu0 %v1528_v38  ;;  %v733_v7 = vrot.slane %v9243_v31, %v9281_v47  ;;  %v1962_v38 = vsel %vm1386_vm1, %v1792_v19, 0.0  ;;  %v2547_v3 = vmul.f32 %v9746_v18, %v9746_v18  ;;  %v806_v50 = vrot.slane %v792_v57, %v9281_v47 }
 0x1f5   :  { %v1419_v55 = vpop.xlane.xlu1 %1418  ;;  %v9706_v9 = vpop.xlane.xlu0 %1388 }
 0x1f6   :  { %v756_v60 = vcombine.low %v733_v7, %v748_v4  ;;  %v757_v28 = vcombine.high %v733_v7, %v748_v4  ;;  %v9773_v30 = vmul.f32 0.03125, %v1419_v55  ;;  %v9782_v4 = vcombine.high %v9727_v25, %v17743_v21 }
 0x1f7   :  { %v838_v7 = vcombine.low %v806_v50, %v821_v22  ;;  %v839_v25 = vcombine.high %v806_v50, %v821_v22  ;;  %v9816_v22 = vcombine.high %v9756_v58, %v17743_v21 }
 0x1f8   :  { %1502 = vadd.xlane.f32.xlu1 %v1501_v43  ;;  %1963 = vadd.xlane.f32.xlu0 %v1962_v38  ;;  %v1555_v43 = vsel %vm1386_vm1, %v9738_v49, 0.0  ;;  %v9771_v11 = vrot.slane %v756_v60, %v9284_v51  ;;  %17765 = vst [vmem:[#allocation56_spill] sm:$0xff] %v9782_v4  ;;  %v9787_v55 = vrot.slane %v757_v28, %v9284_v51 }
 0x1f9   :  { %v9722_v6 = vpop.xlane.xlu1 %1424  ;;  %v9729_v1 = vpop.xlane.xlu0 %1394  ;;  %v2549_v42 = vmul.f32 %v9773_v30, %v9773_v30  ;;  %17769 = vst [vmem:[#allocation60_spill] sm:$0xff] %v9816_v22 }
 0x1fa   :  { %17764 = vst [vmem:[#allocation55_spill] sm:$0xff] %v9771_v11  ;;  %17766 = vst [vmem:[#allocation57_spill] sm:$0xff] %v9787_v55  ;;  %v1531_v57 = vsel %vm1386_vm1, %v9771_v11, 0.0 }
 0x1fc   :  { %1556 = vadd.xlane.f32.xlu1 %v1555_v43  ;;  %1969 = vadd.xlane.f32.xlu0 %v1968_v61  ;;  %v1561_v43 = vsel %vm1386_vm1, %v9756_v58, 0.0  ;;  %v741_v61 = vcombine.high %v9317_v12, %v17743_v21  ;;  %v1504_v12 = vsel %vm1386_vm1, %v9782_v4, 0.0 }
 0x1fd   :  { %v9742_v29 = vpop.xlane.xlu1 %1430  ;;  %v9751_v62 = vpop.xlane.xlu0 %1415 }
 0x200   :  { %1562 = vadd.xlane.f32.xlu1 %v1561_v43  ;;  %v726_v43 = vcombine.high %v9243_v31, %v17743_v21  ;;  %v1537_v31 = vsel %vm1386_vm1, %v9787_v55, 0.0 }
 0x201   :  { %v1925_v19 = vpop.xlane.xlu1 %1924  ;;  %v1422_v37 = vpop.xlane.xlu0 %1421 }
 0x202   :  { %v2419_v38 = vmul.f32 0.03125, %v1925_v19  ;;  %v1498_v19 = vsel %vm1386_vm1, %v9767_v13, 0.0 }
 0x203   :  { %1499 = vadd.xlane.f32.xlu0 %v1498_v19  ;;  %v9801_v19 = vcombine.high %v9738_v49, %v17743_v21  ;;  %v9862_v49 = vmul.f32 0.03125, %v1422_v37  ;;  %v880_v37 = vrot.slane %v9327_v16, %v9281_v47  ;;  %v865_v16 = vrot.slane %v9251_v33, %v9281_v47 }
 0x204   :  { %v2675_v8 = vsub.f32 %v2419_v38, %v2547_v3  ;;  %1532 = vadd.xlane.f32.xlu1 %v1531_v57 }
 0x205   :  { %v1931_v3 = vpop.xlane.xlu1 %1930  ;;  %v9797_v13 = vpop.xlane.xlu0 %1397  ;;  %17767 = vst [vmem:[#allocation58_spill] sm:$0xff] %v9801_v19 }
 0x206   :  { %v2803_v60 = vadd.f32 1e-05, %v2675_v8  ;;  %v2421_v38 = vmul.f32 0.03125, %v1931_v3  ;;  %v755_v8 = vrot.slane %v741_v61, %v9281_v47  ;;  %v9805_v3 = vrot.slane %v838_v7, %v9284_v51 }
 0x207   :  { %1505 = vadd.xlane.f32.xlu0 %v1504_v12  ;;  %v9819_v61 = vrot.slane %v839_v25, %v9284_v51 }
 0x208   :  { %v2677_v28 = vsub.f32 %v2421_v38, %v2549_v42  ;;  %17768 = vst [vmem:[#allocation59_spill] sm:$0xff] %v9805_v3  ;;  %8561 = vrsqrt.f32 %v2803_v60  ;;  %1538 = vadd.xlane.f32.xlu1 %v1537_v31  ;;  %v740_v42 = vrot.slane %v726_v43, %v9281_v47  ;;  %v1558_v38 = vsel %vm1386_vm1, %v9801_v19, 0.0 }
 0x209   :  { %v9809_v4 = vpop.xlane.xlu1 %1391  ;;  %17770 = vst [vmem:[#allocation61_spill] sm:$0xff] %v9819_v61  ;;  %v9821_v7 = vpop.xlane.xlu0 %1427  ;;  %v1567_v60 = vsel %vm1386_vm1, %v9805_v3, 0.0  ;;  %v1564_v43 = vsel %vm1386_vm1, %v9816_v22, 0.0  ;;  %v946_v31 = vrot.slane %v9335_v20, %v9281_v47  ;;  %v9843_v22 = vmul.f32 0.03125, %v9751_v62 }
 0x20a   :  { %v2805_v57 = vadd.f32 1e-05, %v2677_v28  ;;  %v772_v50 = vcombine.low %v740_v42, %v755_v8  ;;  %v9831_v28 = vcombine.high %v9771_v11, %v17743_v21  ;;  %v931_v19 = vrot.slane %v9247_v32, %v9281_v47 }
 0x20b   :  { %1559 = vadd.xlane.f32.xlu0 %v1558_v38  ;;  %v9853_v20 = vcombine.high %v9787_v55, %v17743_v21  ;;  %v2548_v32 = vmul.f32 %v9843_v22, %v9843_v22  ;;  %v3059_v55 = vsub.f32 %v9291_v59, %v9746_v18  ;;  %v9874_v26 = vcombine.high %v9805_v3, %v17743_v21 }
 0x20c   :  { %8563 = vrsqrt.f32 %v2805_v57  ;;  %1568 = vadd.xlane.f32.xlu1 %v1567_v60  ;;  %17771 = vst [vmem:[#allocation62_spill] sm:$0xff] %v9831_v28  ;;  %v773_v57 = vcombine.high %v740_v42, %v755_v8  ;;  %v9834_v25 = vrot.slane %v772_v50, %v9284_v51  ;;  %v1573_v60 = vsel %vm1386_vm1, %v9819_v61, 0.0 }
 0x20d   :  { %v9827_v12 = vpop.xlane.xlu1 %1400  ;;  %v9838_v38 = vpop.xlane.xlu0 %1433  ;;  %v1534_v8 = vsel %vm1386_vm1, %v9831_v28, 0.0  ;;  %17773 = vst [vmem:[#allocation64_spill] sm:$0xff] %v9853_v20  ;;  %17775 = vst [vmem:[#allocation66_spill] sm:$0xff] %v9874_v26  ;;  %v2550_v3 = vmul.f32 %v9862_v49, %v9862_v49 }
 0x20e   :  { %17772 = vst [vmem:[#allocation63_spill] sm:$0xff] %v9834_v25  ;;  %v9856_v50 = vrot.slane %v773_v57, %v9284_v51  ;;  %v3061_v57 = vsub.f32 %v9298_v63, %v9773_v30 }
 0x20f   :  { %1565 = vadd.xlane.f32.xlu0 %v1564_v43  ;;  %v954_v43 = vcombine.low %v931_v19, %v946_v31 }
 0x210   :  { %1574 = vadd.xlane.f32.xlu1 %v1573_v60  ;;  %17774 = vst [vmem:[#allocation65_spill] sm:$0xff] %v9856_v50  ;;  %v1543_v60 = vsel %vm1386_vm1, %v9834_v25, 0.0  ;;  %v1549_v18 = vsel %vm1386_vm1, %v9856_v50, 0.0 }
 0x211   :  { %v9849_v42 = vpop.xlane.xlu1 %1406  ;;  %v1928_v62 = vpop.xlane.xlu0 %1927  ;;  %v9879_v59 = vrot.slane %v954_v43, %v9284_v51  ;;  %v888_v43 = vcombine.low %v865_v16, %v880_v37 }
 0x212   :  { %v2420_v28 = vmul.f32 0.03125, %v1928_v62  ;;  %v955_v62 = vcombine.high %v931_v19, %v946_v31  ;;  %v1570_v19 = vsel %vm1386_vm1, %v9874_v26, 0.0 }
 0x213   :  { %1535 = vadd.xlane.f32.xlu0 %v1534_v8  ;;  %v1540_v8 = vsel %vm1386_vm1, %v9853_v20, 0.0  ;;  %17776 = vst [vmem:[#allocation67_spill] sm:$0xff] %v9879_v59 }
 0x214   :  { %1544 = vadd.xlane.f32.xlu1 %v1543_v60  ;;  %v2676_v60 = vsub.f32 %v2420_v28, %v2548_v32  ;;  %v9905_v33 = vrot.slane %v955_v62, %v9284_v51  ;;  %v889_v62 = vcombine.high %v865_v16, %v880_v37  ;;  %v9936_v37 = vcombine.high %v9856_v50, %v17743_v21 }
 0x215   :  { %v8562_v58 = vpop.eup %8561  ;;  %v9870_v11 = vpop.xlane.xlu1 %1460 }
 0x216   :  { %v1934_v63 = vpop.xlane.xlu0 %1933  ;;  %v9883_v30 = vmul.f32 %v8562_v58, %v3059_v55  ;;  %v2804_v54 = vadd.f32 1e-05, %v2676_v60  ;;  %v9897_v58 = vcombine.high %v9819_v61, %v17743_v21  ;;  %v9902_v55 = vmul.f32 0.03125, %v9706_v9  ;;  %17778 = vst [vmem:[#allocation69_spill] sm:$0xff] %v9905_v33  ;;  %17781 = vst [vmem:[#allocation72_spill] sm:$0xff] %v9936_v37 }
 0x217   :  { %1541 = vadd.xlane.f32.xlu0 %v1540_v8  ;;  %v2422_v53 = vmul.f32 0.03125, %v1934_v63  ;;  %v9920_v9 = vmul.f32 0.03125, %v9729_v1 }
 0x218   :  { %1550 = vadd.xlane.f32.xlu1 %v1549_v18  ;;  %17777 = vst [vmem:[#allocation68_spill] sm:$0xff] %v9897_v58  ;;  %8565 = vrsqrt.f32 %v2804_v54  ;;  %v1576_v60 = vsel %vm1386_vm1, %v9897_v58, 0.0  ;;  %v9915_v54 = vcombine.high %v9834_v25, %v17743_v21  ;;  %v9923_v18 = vrot.slane %v888_v43, %v9284_v51 }
 0x219   :  { %v8564_v0 = vpop.eup %8563  ;;  %v9893_v28 = vpop.xlane.xlu1 %1466  ;;  %v2678_v31 = vsub.f32 %v2422_v53, %v2550_v3  ;;  %v2539_v53 = vmul.f32 %v9902_v55, %v9902_v55  ;;  %v2541_v16 = vmul.f32 %v9920_v9, %v9920_v9  ;;  %v1552_v58 = vsel %vm1386_vm1, %v9936_v37, 0.0 }
 0x21a   :  { %v9885_v20 = vmul.f32 %v8564_v0, %v3061_v57  ;;  %v9907_v32 = vpop.xlane.xlu0 %1403  ;;  %v1603_v57 = vsel %vm1386_vm1, %v9879_v59, 0.0  ;;  %17779 = vst [vmem:[#allocation70_spill] sm:$0xff] %v9915_v54  ;;  %17780 = vst [vmem:[#allocation71_spill] sm:$0xff] %v9923_v18  ;;  %v9930_v0 = vmul.f32 0.03125, %v9722_v6  ;;  %v1546_v1 = vsel %vm1386_vm1, %v9915_v54, 0.0 }
 0x21b   :  { %1571 = vadd.xlane.f32.xlu0 %v1570_v19  ;;  %v2806_v8 = vadd.f32 1e-05, %v2678_v31  ;;  %v1609_v31 = vsel %vm1386_vm1, %v9905_v33, 0.0  ;;  %v1579_v6 = vsel %vm1386_vm1, %v9923_v18, 0.0 }
 0x21c   :  { %1604 = vadd.xlane.f32.xlu1 %v1603_v57 }
 0x21d   :  { %v1901_v63 = vpop.xlane.xlu1 %1900  ;;  %8567 = vrsqrt.f32 %v2806_v8 }
 0x21e   :  { %v2411_v3 = vmul.f32 0.03125, %v1901_v63  ;;  %v9925_v19 = vpop.xlane.xlu0 %1409 }
 0x21f   :  { %1577 = vadd.xlane.f32.xlu0 %v1576_v60  ;;  %v9941_v60 = vrot.slane %v889_v62, %v9284_v51  ;;  %v9956_v62 = vmul.f32 0.03125, %v9742_v29 }
 0x220   :  { %v2667_v57 = vsub.f32 %v2411_v3, %v2539_v53  ;;  %1610 = vadd.xlane.f32.xlu1 %v1609_v31  ;;  %v2551_v31 = vmul.f32 %v9930_v0, %v9930_v0 }
 0x221   :  { %v1907_v8 = vpop.xlane.xlu1 %1906  ;;  %17782 = vst [vmem:[#allocation73_spill] sm:$0xff] %v9941_v60  ;;  %v1585_v29 = vsel %vm1386_vm1, %v9941_v60, 0.0 }
 0x222   :  { %v2413_v43 = vmul.f32 0.03125, %v1907_v8  ;;  %v2795_v63 = vadd.f32 1e-05, %v2667_v57  ;;  %v9943_v53 = vpop.xlane.xlu0 %1463  ;;  %v3060_v57 = vsub.f32 %v9370_v52, %v9843_v22 }
 0x223   :  { %1547 = vadd.xlane.f32.xlu0 %v1546_v1  ;;  %v9953_v1 = vcombine.high %v9879_v59, %v17743_v21  ;;  %v9971_v59 = vmul.f32 0.03125, %v9809_v4 }
 0x224   :  { %v2669_v3 = vsub.f32 %v2413_v43, %v2541_v16  ;;  %1580 = vadd.xlane.f32.xlu1 %v1579_v6  ;;  %v17784_v6 = vcombine.low %v9357_v45, %v9360_v46  ;;  %8569 = vrsqrt.f32 %v2795_v63  ;;  %v2553_v63 = vmul.f32 %v9956_v62, %v9956_v62 }
 0x225   :  { %v1937_v26 = vpop.xlane.xlu1 %1936  ;;  %17783 = vst [vmem:[#allocation74_spill] sm:$0xff] %v9953_v1  ;;  %v8566_v43 = vpop.eup %8565  ;;  %v1606_v22 = vsel %vm1386_vm1, %v9953_v1, 0.0  ;;  %v9993_v1 = vcombine.high %v9923_v18, %v17743_v21 }
 0x226   :  { %v2797_v8 = vadd.f32 1e-05, %v2669_v3  ;;  %v2423_v16 = vmul.f32 0.03125, %v1937_v26  ;;  %v9964_v61 = vrot.slane %v17784_v6, %v9284_v51  ;;  %v9966_v37 = vpop.xlane.xlu0 %1469  ;;  %v3188_v26 = vmul.f32 %v8566_v43, %v3060_v57 }
 0x227   :  { %1553 = vadd.xlane.f32.xlu0 %v1552_v58  ;;  %v9977_v3 = vcombine.high %v9905_v33, %v17743_v21  ;;  %v3062_v6 = vsub.f32 %v9378_v56, %v9862_v49  ;;  %17789 = vst [vmem:[#allocation78_spill] sm:$0xff] %v9993_v1  ;;  %v2540_v56 = vmul.f32 %v9971_v59, %v9971_v59 }
 0x228   :  { %17785 = vst [vmem:[#allocation75_spill] sm:$0xff] %v9964_v61  ;;  %8571 = vrsqrt.f32 %v2797_v8  ;;  %v2679_v52 = vsub.f32 %v2423_v16, %v2551_v31  ;;  %1586 = vadd.xlane.f32.xlu1 %v1585_v29  ;;  %v17787_v31 = vcombine.high %v9357_v45, %v9360_v46  ;;  %v1615_v29 = vsel %vm1386_vm1, %v9964_v61, 0.0 }
 0x229   :  { %v1943_v58 = vpop.xlane.xlu1 %1942  ;;  %17786 = vst [vmem:[#allocation76_spill] sm:$0xff] %v9977_v3  ;;  %v9999_v45 = vrot.slane %v9255_v34, %v9281_v47  ;;  %v10002_v46 = vmul.f32 0.03125, %v9797_v13  ;;  %v17790_v33 = vcombine.low %v9342_v24, %v9345_v40 }
 0x22a   :  { %v2425_v4 = vmul.f32 0.03125, %v1943_v58  ;;  %v8568_v8 = vpop.eup %8567  ;;  %v9987_v57 = vrot.slane %v17787_v31, %v9284_v51  ;;  %v2807_v16 = vadd.f32 1e-05, %v2679_v52  ;;  %v1904_v43 = vpop.xlane.xlu0 %1903  ;;  %v1612_v52 = vsel %vm1386_vm1, %v9977_v3, 0.0 }
 0x22b   :  { %1607 = vadd.xlane.f32.xlu0 %v1606_v22  ;;  %v2412_v22 = vmul.f32 0.03125, %v1904_v43  ;;  %v3190_v58 = vmul.f32 %v8568_v8, %v3062_v6  ;;  %v10016_v43 = vrot.slane %v9624_v39, %v9281_v47  ;;  %v10022_v3 = vcombine.high %v9941_v60, %v17743_v21 }
 0x22c   :  { %17788 = vst [vmem:[#allocation77_spill] sm:$0xff] %v9987_v57  ;;  %v2681_v49 = vsub.f32 %v2425_v4, %v2553_v63  ;;  %1616 = vadd.xlane.f32.xlu1 %v1615_v29  ;;  %v10012_v63 = vrot.slane %v17790_v33, %v9284_v51  ;;  %8573 = vrsqrt.f32 %v2807_v16  ;;  %v1621_v29 = vsel %vm1386_vm1, %v9987_v57, 0.0 }
 0x22d   :  { %v10006_v31 = vpop.xlane.xlu1 %1436  ;;  %v2668_v6 = vsub.f32 %v2412_v22, %v2540_v56  ;;  %v3365_v8 = vcombine.low %v3188_v26, %v3190_v58  ;;  %17792 = vst [vmem:[#allocation80_spill] sm:$0xff] %v10022_v3  ;;  %v10025_v33 = vmul.f32 0.03125, %v9821_v7  ;;  %v1582_v26 = vsel %vm1386_vm1, %v9993_v1, 0.0 }
 0x22e   :  { %17791 = vst [vmem:[#allocation79_spill] sm:$0xff] %v10012_v63  ;;  %v2809_v4 = vadd.f32 1e-05, %v2681_v49  ;;  %v1910_v13 = vpop.xlane.xlu0 %1909  ;;  %v2542_v16 = vmul.f32 %v10002_v46, %v10002_v46  ;;  %v17793_v58 = vcombine.low %v9883_v30, %v9885_v20  ;;  %v1086_v20 = vcombine.low %v9999_v45, %v10016_v43 }
 0x22f   :  { %1613 = vadd.xlane.f32.xlu0 %v1612_v52  ;;  %v2796_v56 = vadd.f32 1e-05, %v2668_v6  ;;  %v2414_v49 = vmul.f32 0.03125, %v1910_v13  ;;  %v10040_v7 = vrot.slane %v3365_v8, %v9281_v47  ;;  %v17794_v6 = vcombine.high %v9342_v24, %v9345_v40 }
 0x230   :  { %8575 = vrsqrt.f32 %v2809_v4  ;;  %1622 = vadd.xlane.f32.xlu1 %v1621_v29  ;;  %v10037_v52 = vrot.slane %v17793_v58, %v9281_v47  ;;  %v10044_v4 = vrot.slane %v9259_v35, %v9281_v47  ;;  %v10054_v29 = vrot.slane %v9651_v48, %v9281_v47 }
 0x231   :  { %v10031_v22 = vpop.xlane.xlu1 %1442  ;;  %v10050_v13 = vrot.slane %v17794_v6, %v9284_v51  ;;  %8577 = vrsqrt.f32 %v2796_v56  ;;  %v2670_v30 = vsub.f32 %v2414_v49, %v2542_v16  ;;  %v1591_v58 = vsel %vm1386_vm1, %v10012_v63, 0.0  ;;  %v8570_v24 = vpop.eup %8569 }
 0x232   :  { %v1940_v8 = vpop.xlane.xlu0 %1939  ;;  %v3053_v40 = vsub.f32 %v9325_v15, %v9920_v9  ;;  %v2552_v6 = vmul.f32 %v10025_v33, %v10025_v33  ;;  %v10067_v56 = vmul.f32 0.03125, %v9838_v38  ;;  %v3051_v49 = vsub.f32 %v9307_v5, %v9902_v55 }
 0x233   :  { %17795 = vst [vmem:[#allocation81_spill] sm:$0xff] %v10050_v13  ;;  %1583 = vadd.xlane.f32.xlu0 %v1582_v26  ;;  %v2424_v26 = vmul.f32 0.03125, %v1940_v8  ;;  %v2798_v60 = vadd.f32 1e-05, %v2670_v30  ;;  %v1588_v1 = vsel %vm1386_vm1, %v10022_v3, 0.0  ;;  %v10077_v15 = vcombine.high %v9964_v61, %v17743_v21 }
 0x234   :  { %1592 = vadd.xlane.f32.xlu1 %v1591_v58  ;;  %v1005_v38 = vcombine.high %v9651_v48, %v17743_v21  ;;  %v1087_v9 = vcombine.high %v9999_v45, %v10016_v43  ;;  %v10086_v5 = vrot.slane %v1086_v20, %v9284_v51  ;;  %v1597_v30 = vsel %vm1386_vm1, %v10050_v13, 0.0 }
 0x235   :  { %v8572_v16 = vpop.eup %8571  ;;  %v10073_v18 = vpop.xlane.xlu1 %1472  ;;  %17797 = vst [vmem:[#allocation83_spill] sm:$0xff] %v10077_v15  ;;  %v2680_v8 = vsub.f32 %v2424_v26, %v2552_v6  ;;  %8579 = vrsqrt.f32 %v2798_v60  ;;  %v1020_v48 = vcombine.low %v10044_v4, %v10054_v29  ;;  %v2554_v45 = vmul.f32 %v10067_v56, %v10067_v56 }
 0x236   :  { %17796 = vst [vmem:[#allocation82_spill] sm:$0xff] %v10073_v18  ;;  %v10083_v58 = vmul.f32 %v8572_v16, %v3053_v40  ;;  %17798 = vst [vmem:[#allocation84_spill] sm:$0xff] %v10086_v5  ;;  %v1946_v55 = vpop.xlane.xlu0 %1945  ;;  %v10090_v18 = vmul.f32 %v8570_v24, %v3051_v49  ;;  %v1056_v20 = vcombine.high %v9255_v34, %v17743_v21  ;;  %v1618_v60 = vsel %vm1386_vm1, %v10077_v15, 0.0 }
 0x237   :  { %1589 = vadd.xlane.f32.xlu0 %v1588_v1  ;;  %v2808_v43 = vadd.f32 1e-05, %v2680_v8  ;;  %v2426_v1 = vmul.f32 0.03125, %v1946_v55  ;;  %v10104_v24 = vcombine.high %v9987_v57, %v17743_v21  ;;  %v990_v26 = vcombine.high %v9259_v35, %v17743_v21 }
 0x238   :  { %1598 = vadd.xlane.f32.xlu1 %v1597_v30  ;;  %v10111_v16 = vmul.f32 0.03125, %v9827_v12  ;;  %v10114_v49 = vrot.slane %v1005_v38, %v9281_v47  ;;  %v1071_v8 = vcombine.high %v9624_v39, %v17743_v21  ;;  %v10119_v55 = vrot.slane %v1087_v9, %v9284_v51 }
 0x239   :  { %v10100_v40 = vpop.xlane.xlu1 %1478  ;;  %17800 = vst [vmem:[#allocation86_spill] sm:$0xff] %v10104_v24  ;;  %8581 = vrsqrt.f32 %v2808_v43  ;;  %v2682_v34 = vsub.f32 %v2426_v1, %v2554_v45  ;;  %v1651_v35 = vsel %vm1386_vm1, %v10086_v5, 0.0  ;;  %v8574_v6 = vpop.eup %8573  ;;  %v1021_v12 = vcombine.high %v10044_v4, %v10054_v29 }
 0x23a   :  { %17799 = vst [vmem:[#allocation85_spill] sm:$0xff] %v10100_v40  ;;  %17801 = vst [vmem:[#allocation87_spill] sm:$0xff] %v10119_v55  ;;  %v10121_v30 = vpop.xlane.xlu0 %1439  ;;  %v10128_v45 = vrot.slane %v1020_v48, %v9284_v51  ;;  %v10132_v39 = vcombine.high %v10012_v63, %v17743_v21  ;;  %v3063_v43 = vsub.f32 %v9322_v14, %v9930_v0  ;;  %v1624_v4 = vsel %vm1386_vm1, %v10104_v24, 0.0 }
 0x23b   :  { %1619 = vadd.xlane.f32.xlu0 %v1618_v60  ;;  %v2810_v38 = vadd.f32 1e-05, %v2682_v34  ;;  %v3065_v1 = vsub.f32 %v9354_v44, %v9956_v62  ;;  %v3052_v60 = vsub.f32 %v9399_v10, %v9971_v59  ;;  %v2543_v48 = vmul.f32 %v10111_v16, %v10111_v16 }
 0x23c   :  { %17802 = vst [vmem:[#allocation88_spill] sm:$0xff] %v10128_v45  ;;  %1652 = vadd.xlane.f32.xlu1 %v1651_v35  ;;  %17803 = vst [vmem:[#allocation89_spill] sm:$0xff] %v10132_v39  ;;  %v10145_v34 = vmul.f32 0.03125, %v9849_v42  ;;  %v1085_v0 = vrot.slane %v1071_v8, %v9281_v47  ;;  %v1657_v10 = vsel %vm1386_vm1, %v10119_v55, 0.0  ;;  %v10152_v59 = vmul.f32 %v8574_v6, %v3063_v43 }
 0x23d   :  { %v8576_v9 = vpop.eup %8575  ;;  %v1913_v29 = vpop.xlane.xlu1 %1912  ;;  %8583 = vrsqrt.f32 %v2810_v38  ;;  %v1070_v40 = vrot.slane %v1056_v20, %v9281_v47  ;;  %v10158_v42 = vrot.slane %v990_v26, %v9281_v47  ;;  %v1594_v8 = vsel %vm1386_vm1, %v10132_v39, 0.0 }
 0x23e   :  { %v2415_v35 = vmul.f32 0.03125, %v1913_v29  ;;  %v8578_v14 = vpop.eup %8577  ;;  %v10148_v44 = vpop.xlane.xlu0 %1445  ;;  %v10154_v62 = vmul.f32 %v8576_v9, %v3065_v1  ;;  %v10161_v29 = vrot.slane %v1021_v12, %v9284_v51  ;;  %v10167_v6 = vcombine.high %v10050_v13, %v17743_v21 }
 0x23f   :  { %1625 = vadd.xlane.f32.xlu0 %v1624_v4  ;;  %v3180_v4 = vmul.f32 %v8578_v14, %v3052_v60  ;;  %v2545_v26 = vmul.f32 %v10145_v34, %v10145_v34  ;;  %v10174_v9 = vmul.f32 0.03125, %v9870_v11  ;;  %v1036_v1 = vcombine.low %v10158_v42, %v10114_v49 }
 0x240   :  { %v2671_v38 = vsub.f32 %v2415_v35, %v2543_v48  ;;  %1658 = vadd.xlane.f32.xlu1 %v1657_v10  ;;  %17804 = vst [vmem:[#allocation90_spill] sm:$0xff] %v10161_v29  ;;  %17805 = vst [vmem:[#allocation91_spill] sm:$0xff] %v10167_v6  ;;  %v1102_v60 = vcombine.low %v1070_v40, %v1085_v0  ;;  %v3054_v48 = vsub.f32 %v9390_v2, %v10002_v46 }
 0x241   :  { %v1919_v24 = vpop.xlane.xlu1 %1918  ;;  %v1627_v14 = vsel %vm1386_vm1, %v10128_v45, 0.0  ;;  %v1037_v11 = vcombine.high %v10158_v42, %v10114_v49  ;;  %v1103_v20 = vcombine.high %v1070_v40, %v1085_v0  ;;  %v10192_v46 = vcombine.high %v10086_v5, %v17743_v21 }
 0x242   :  { %v2799_v43 = vadd.f32 1e-05, %v2671_v38  ;;  %v2417_v12 = vmul.f32 0.03125, %v1919_v24  ;;  %v10180_v35 = vpop.xlane.xlu0 %1475  ;;  %v8580_v10 = vpop.eup %8579  ;;  %v3064_v24 = vsub.f32 %v9405_v17, %v10025_v33  ;;  %v2563_v15 = vmul.f32 %v10174_v9, %v10174_v9 }
 0x243   :  { %1595 = vadd.xlane.f32.xlu0 %v1594_v8  ;;  %17806 = vst [vmem:[#allocation92_spill] sm:$0xff] %v10180_v35  ;;  %v1600_v8 = vsel %vm1386_vm1, %v10167_v6, 0.0  ;;  %17807 = vst [vmem:[#allocation93_spill] sm:$0xff] %v10192_v46  ;;  %v3182_v35 = vmul.f32 %v8580_v10, %v3054_v48  ;;  %v10197_v40 = vmul.f32 0.03125, %v9893_v28  ;;  %v10200_v17 = vrot.slane %v1102_v60, %v9284_v51 }
 0x244   :  { %8585 = vrsqrt.f32 %v2799_v43  ;;  %v2673_v38 = vsub.f32 %v2417_v12, %v2545_v26  ;;  %1628 = vadd.xlane.f32.xlu1 %v1627_v14  ;;  %v10203_v33 = vmul.f32 0.03125, %v9907_v32  ;;  %v1633_v43 = vsel %vm1386_vm1, %v10161_v29, 0.0 }
 0x245   :  { %v1973_v2 = vpop.xlane.xlu1 %1972  ;;  %17808 = vst [vmem:[#allocation94_spill] sm:$0xff] %v10200_v17  ;;  %v3315_v12 = vcombine.low %v3180_v4, %v3182_v35  ;;  %v10210_v48 = vrot.slane %v1103_v20, %v9284_v51  ;;  %v1654_v60 = vsel %vm1386_vm1, %v10192_v46, 0.0  ;;  %v10216_v32 = vcombine.high %v10119_v55, %v17743_v21 }
 0x246   :  { %v2801_v49 = vadd.f32 1e-05, %v2673_v38  ;;  %v2435_v0 = vmul.f32 0.03125, %v1973_v2  ;;  %v8582_v42 = vpop.eup %8581  ;;  %v10205_v26 = vpop.xlane.xlu0 %1481  ;;  %v17812_v38 = vcombine.low %v10090_v18, %v10083_v58  ;;  %v2565_v35 = vmul.f32 %v10197_v40, %v10197_v40 }
 0x247   :  { %1601 = vadd.xlane.f32.xlu0 %v1600_v8  ;;  %17809 = vst [vmem:[#allocation95_spill] sm:$0xff] %v10205_v26  ;;  %17810 = vst [vmem:[#allocation96_spill] sm:$0xff] %v10210_v48  ;;  %v3192_v14 = vmul.f32 %v8582_v42, %v3064_v24  ;;  %v10225_v20 = vrot.slane %v3315_v12, %v9281_v47  ;;  %v1663_v18 = vsel %vm1386_vm1, %v10200_v17, 0.0 }
 0x248   :  { %8587 = vrsqrt.f32 %v2801_v49  ;;  %v2691_v28 = vsub.f32 %v2435_v0, %v2563_v15  ;;  %1634 = vadd.xlane.f32.xlu1 %v1633_v43  ;;  %17811 = vst [vmem:[#allocation97_spill] sm:$0xff] %v10216_v32  ;;  %v10222_v4 = vrot.slane %v17812_v38, %v9281_v47  ;;  %v3066_v15 = vsub.f32 %v9418_v41, %v10067_v56 }
 0x249   :  { %v1979_v10 = vpop.xlane.xlu1 %1978  ;;  %v2544_v49 = vmul.f32 %v10203_v33, %v10203_v33  ;;  %v10237_v58 = vcombine.high %v10128_v45, %v17743_v21  ;;  %v10243_v12 = vrot.slane %v9263_v36, %v9281_v47  ;;  %v17817_v41 = vcombine.low %v10152_v59, %v10154_v62 }
 0x24a   :  { %v2819_v24 = vadd.f32 1e-05, %v2691_v28  ;;  %v2437_v8 = vmul.f32 0.03125, %v1979_v10  ;;  %v8584_v2 = vpop.eup %8583  ;;  %v1916_v0 = vpop.xlane.xlu0 %1915  ;;  %v10246_v28 = vrot.slane %v1036_v1, %v9284_v51  ;;  %v1660_v10 = vsel %vm1386_vm1, %v10216_v32, 0.0 }
 0x24b   :  { %1655 = vadd.xlane.f32.xlu0 %v1654_v60  ;;  %17813 = vst [vmem:[#allocation98_spill] sm:$0xff] %v10237_v58  ;;  %v2416_v42 = vmul.f32 0.03125, %v1916_v0  ;;  %v3194_v43 = vmul.f32 %v8584_v2, %v3066_v15  ;;  %v10249_v60 = vmul.f32 0.03125, %v9925_v19  ;;  %v10260_v2 = vrot.slane %v1037_v11, %v9284_v51 }
 0x24c   :  { %8589 = vrsqrt.f32 %v2819_v24  ;;  %v2693_v56 = vsub.f32 %v2437_v8, %v2565_v35  ;;  %1664 = vadd.xlane.f32.xlu1 %v1663_v18  ;;  %17814 = vst [vmem:[#allocation99_spill] sm:$0xff] %v10246_v28  ;;  %v10257_v35 = vrot.slane %v9647_v27, %v9281_v47  ;;  %v1669_v19 = vsel %vm1386_vm1, %v10210_v48, 0.0 }
 0x24d   :  { %v10253_v38 = vpop.xlane.xlu1 %1448  ;;  %v2672_v24 = vsub.f32 %v2416_v42, %v2544_v49  ;;  %v3381_v8 = vcombine.low %v3192_v14, %v3194_v43  ;;  %17815 = vst [vmem:[#allocation100_spill] sm:$0xff] %v10260_v2  ;;  %v1630_v0 = vsel %vm1386_vm1, %v10237_v58, 0.0  ;;  %v10268_v18 = vcombine.high %v10161_v29, %v17743_v21 }
 0x24e   :  { %v2821_v15 = vadd.f32 1e-05, %v2693_v56  ;;  %v1922_v1 = vpop.xlane.xlu0 %1921  ;;  %v3055_v56 = vsub.f32 %v9414_v23, %v10111_v16  ;;  %v10273_v49 = vmul.f32 0.03125, %v9943_v53  ;;  %v2546_v42 = vmul.f32 %v10249_v60, %v10249_v60  ;;  %v17818_v53 = vld [vmem:[#allocation43_spill] sm:$0xff] }
 0x24f   :  { %1661 = vadd.xlane.f32.xlu0 %v1660_v10  ;;  %17816 = vst [vmem:[#allocation101_spill] sm:$0xff] %v10268_v18  ;;  %v2800_v11 = vadd.f32 1e-05, %v2672_v24  ;;  %v2418_v43 = vmul.f32 0.03125, %v1922_v1  ;;  %v3380_v26 = vrot.slane %v17817_v41, %v9281_v47  ;;  %v3388_v23 = vrot.slane %v3381_v8, %v9281_v47  ;;  %v17820_v41 = vld [vmem:[#allocation16_spill] sm:$0xff] }
 0x250   :  { %8591 = vrsqrt.f32 %v2821_v15  ;;  %1670 = vadd.xlane.f32.xlu1 %v1669_v19  ;;  %v10286_v16 = vrot.slane %v17818_v53, %v9281_v47  ;;  %v1218_v15 = vcombine.low %v10243_v12, %v10257_v35  ;;  %v1639_v32 = vsel %vm1386_vm1, %v10246_v28, 0.0 }
 0x251   :  { %v8586_v14 = vpop.eup %8585  ;;  %v10277_v10 = vpop.xlane.xlu1 %1454  ;;  %8593 = vrsqrt.f32 %v2800_v11  ;;  %v2674_v1 = vsub.f32 %v2418_v43, %v2546_v42  ;;  %v10296_v59 = vcombine.high %v10200_v17, %v17743_v21  ;;  %v3397_v62 = vcombine.low %v3380_v26, %v3388_v23 }
 0x252   :  { %v10290_v24 = vmul.f32 %v8586_v14, %v3055_v56  ;;  %v1976_v19 = vpop.xlane.xlu0 %1975  ;;  %v3057_v8 = vsub.f32 %v17820_v41, %v10145_v34  ;;  %v2564_v46 = vmul.f32 %v10273_v49, %v10273_v49  ;;  %v1636_v42 = vsel %vm1386_vm1, %v10268_v18, 0.0 }
 0x253   :  { %1631 = vadd.xlane.f32.xlu0 %v1630_v0  ;;  %17819 = vst [vmem:[#allocation43_spill] sm:$0xff] %v10296_v59  ;;  %v10303_v0 = vmul.f32 0.03125, %v9966_v37  ;;  %v2436_v56 = vmul.f32 0.03125, %v1976_v19  ;;  %v2802_v14 = vadd.f32 1e-05, %v2674_v1  ;;  %v17822_v26 = vcombine.low %v10037_v52, %v10040_v7 }
 0x254   :  { %1640 = vadd.xlane.f32.xlu1 %v1639_v32  ;;  %v10316_v23 = vrot.slane %v3397_v62, %v9284_v51  ;;  %v1219_v37 = vcombine.high %v10243_v12, %v10257_v35  ;;  %v10321_v32 = vrot.slane %v1218_v15, %v9284_v51  ;;  %v1645_v52 = vsel %vm1386_vm1, %v10260_v2, 0.0  ;;  %v17826_v12 = vld [vmem:[#allocation17_spill] sm:$0xff] }
 0x255   :  { %v8588_v11 = vpop.eup %8587  ;;  %v10307_v43 = vpop.xlane.xlu1 %1508  ;;  %v10313_v34 = vrot.slane %v17822_v26, %v9284_v51  ;;  %v2692_v1 = vsub.f32 %v2436_v56, %v2564_v46  ;;  %8595 = vrsqrt.f32 %v2802_v14  ;;  %v3075_v35 = vsub.f32 %v17826_v12, %v10174_v9 }
 0x256   :  { %17821 = vst [vmem:[#allocation16_spill] sm:$0xff] %v10307_v43  ;;  %17824 = vst [vmem:[#allocation103_spill] sm:$0xff] %v10316_v23  ;;  %v10323_v19 = vmul.f32 %v8588_v11, %v3057_v8  ;;  %v1982_v41 = vpop.xlane.xlu0 %1981  ;;  %v2566_v46 = vmul.f32 %v10303_v0, %v10303_v0  ;;  %v17827_v11 = vld [vmem:[#allocation11_spill] sm:$0xff]  ;;  %v10343_v62 = vcombine.high %v10210_v48, %v17743_v21  ;;  %v1699_v9 = vsel %vm1386_vm1, %v10321_v32, 0.0 }
 0x257   :  { %17823 = vst [vmem:[#allocation102_spill] sm:$0xff] %v10313_v34  ;;  %17825 = vst [vmem:[#allocation104_spill] sm:$0xff] %v10321_v32  ;;  %1637 = vadd.xlane.f32.xlu0 %v1636_v42  ;;  %v2820_v15 = vadd.f32 1e-05, %v2692_v1  ;;  %v2438_v8 = vmul.f32 0.03125, %v1982_v41  ;;  %v1129_v14 = vrot.slane %v17827_v11, %v9281_v47  ;;  %v1666_v42 = vsel %vm1386_vm1, %v10296_v59, 0.0 }
 0x258   :  { %1646 = vadd.xlane.f32.xlu1 %v1645_v52  ;;  %17829 = vst [vmem:[#allocation11_spill] sm:$0xff] %v10343_v62  ;;  %v10348_v1 = vmul.f32 0.03125, %v10006_v31  ;;  %v1203_v7 = vcombine.high %v9647_v27, %v17743_v21  ;;  %v10356_v23 = vrot.slane %v1219_v37, %v9284_v51  ;;  %v1188_v31 = vcombine.high %v9263_v36, %v17743_v21  ;;  %v17832_v27 = vld [vmem:[#allocation19_spill] sm:$0xff] }
 0x259   :  { %v8590_v56 = vpop.eup %8589  ;;  %v10339_v26 = vpop.xlane.xlu1 %1514  ;;  %8597 = vrsqrt.f32 %v2820_v15  ;;  %v2694_v41 = vsub.f32 %v2438_v8, %v2566_v46  ;;  %v1152_v12 = vcombine.low %v1129_v14, %v10286_v16  ;;  %v1153_v46 = vcombine.high %v1129_v14, %v10286_v16  ;;  %v17831_v8 = vld [vmem:[#allocation18_spill] sm:$0xff] }
 0x25a   :  { %17828 = vst [vmem:[#allocation17_spill] sm:$0xff] %v10339_v26  ;;  %v10350_v52 = vmul.f32 %v8590_v56, %v3075_v35  ;;  %17830 = vst [vmem:[#allocation105_spill] sm:$0xff] %v10356_v23  ;;  %v10358_v34 = vpop.xlane.xlu0 %1451  ;;  %v3077_v56 = vsub.f32 %v17831_v8, %v10197_v40  ;;  %v3056_v37 = vsub.f32 %v17832_v27, %v10203_v33  ;;  %v10378_v16 = vmul.f32 0.03125, %v10031_v22 }
 0x25b   :  { %1667 = vadd.xlane.f32.xlu0 %v1666_v42  ;;  %v2822_v35 = vadd.f32 1e-05, %v2694_v41  ;;  %v1672_v42 = vsel %vm1386_vm1, %v10343_v62, 0.0  ;;  %v10373_v43 = vcombine.high %v10246_v28, %v17743_v21  ;;  %v2555_v36 = vmul.f32 %v10348_v1, %v10348_v1 }
 0x25c   :  { %1700 = vadd.xlane.f32.xlu1 %v1699_v9  ;;  %v10381_v33 = vrot.slane %v1152_v12, %v9284_v51  ;;  %v1217_v9 = vrot.slane %v1203_v7, %v9281_v47  ;;  %v1705_v8 = vsel %vm1386_vm1, %v10356_v23, 0.0  ;;  %v10395_v12 = vcombine.high %v10260_v2, %v17743_v21 }
 0x25d   :  { %v8592_v15 = vpop.eup %8591  ;;  %v1949_v26 = vpop.xlane.xlu1 %1948  ;;  %17833 = vst [vmem:[#allocation18_spill] sm:$0xff] %v10373_v43  ;;  %8599 = vrsqrt.f32 %v2822_v35  ;;  %v1202_v35 = vrot.slane %v1188_v31, %v9281_v47 }
 0x25e   :  { %v2427_v40 = vmul.f32 0.03125, %v1949_v26  ;;  %v8594_v14 = vpop.eup %8593  ;;  %17834 = vst [vmem:[#allocation19_spill] sm:$0xff] %v10381_v33  ;;  %v10384_v41 = vpop.xlane.xlu0 %1457  ;;  %v10388_v27 = vmul.f32 %v8592_v15, %v3077_v56  ;;  %v1642_v26 = vsel %vm1386_vm1, %v10373_v43, 0.0  ;;  %17835 = vst [vmem:[#allocation106_spill] sm:$0xff] %v10395_v12  ;;  %v1137_v15 = vcombine.high %v17818_v53, %v17743_v21 }
 0x25f   :  { %1673 = vadd.xlane.f32.xlu0 %v1672_v42  ;;  %v3184_v22 = vmul.f32 %v8594_v14, %v3056_v37  ;;  %v2557_v56 = vmul.f32 %v10378_v16, %v10378_v16  ;;  %v17837_v14 = vld [vmem:[#allocation20_spill] sm:$0xff]  ;;  %v1675_v7 = vsel %vm1386_vm1, %v10381_v33, 0.0  ;;  %v1122_v53 = vcombine.high %v17827_v11, %v17743_v21 }
 0x260   :  { %v2683_v62 = vsub.f32 %v2427_v40, %v2555_v36  ;;  %1706 = vadd.xlane.f32.xlu1 %v1705_v8  ;;  %v10404_v36 = vrot.slane %v1153_v46, %v9284_v51  ;;  %v1234_v40 = vcombine.low %v1202_v35, %v1217_v9  ;;  %v3058_v8 = vsub.f32 %v17837_v14, %v10249_v60 }
 0x261   :  { %v1955_v42 = vpop.xlane.xlu1 %1954  ;;  %v1648_v46 = vsel %vm1386_vm1, %v10395_v12, 0.0  ;;  %v10420_v60 = vcombine.high %v10321_v32, %v17743_v21  ;;  %v10423_v14 = vrot.slane %v1137_v15, %v9281_v47  ;;  %v10436_v15 = vmul.f32 0.03125, %v10121_v30 }
 0x262   :  { %v2811_v37 = vadd.f32 1e-05, %v2683_v62  ;;  %v2429_v31 = vmul.f32 0.03125, %v1955_v42  ;;  %17836 = vst [vmem:[#allocation107_spill] sm:$0xff] %v10404_v36  ;;  %v10408_v59 = vpop.xlane.xlu0 %1511  ;;  %v8596_v48 = vpop.eup %8595 }
 0x263   :  { %1643 = vadd.xlane.f32.xlu0 %v1642_v26  ;;  %17838 = vst [vmem:[#allocation20_spill] sm:$0xff] %v10408_v59  ;;  %17840 = vst [vmem:[#allocation109_spill] sm:$0xff] %v10420_v60  ;;  %v3186_v42 = vmul.f32 %v8596_v48, %v3058_v8  ;;  %v1235_v59 = vcombine.high %v1202_v35, %v1217_v9  ;;  %v1136_v48 = vrot.slane %v1122_v53, %v9281_v47  ;;  %v17847_v53 = vld [vmem:[#allocation22_spill] sm:$0xff] }
 0x264   :  { %8601 = vrsqrt.f32 %v2811_v37  ;;  %v2685_v62 = vsub.f32 %v2429_v31, %v2557_v56  ;;  %1676 = vadd.xlane.f32.xlu1 %v1675_v7  ;;  %v10426_v56 = vrot.slane %v1234_v40, %v9284_v51  ;;  %v17842_v7 = vld [vmem:[#allocation21_spill] sm:$0xff]  ;;  %v10440_v9 = vcombine.high %v10356_v23, %v17743_v21 }
 0x265   :  { %v10416_v26 = vpop.xlane.xlu1 %1484  ;;  %v3076_v37 = vsub.f32 %v17842_v7, %v10273_v49  ;;  %v3331_v32 = vcombine.low %v3184_v22, %v3186_v42  ;;  %v1702_v49 = vsel %vm1386_vm1, %v10420_v60, 0.0  ;;  %v17846_v22 = vcombine.low %v10290_v24, %v10323_v19 }
 0x266   :  { %17839 = vst [vmem:[#allocation108_spill] sm:$0xff] %v10416_v26  ;;  %v2813_v17 = vadd.f32 1e-05, %v2685_v62  ;;  %v8598_v11 = vpop.eup %8597  ;;  %17841 = vst [vmem:[#allocation110_spill] sm:$0xff] %v10426_v56  ;;  %v10430_v31 = vpop.xlane.xlu0 %1517  ;;  %v1681_v26 = vsel %vm1386_vm1, %v10404_v36, 0.0  ;;  %v3078_v62 = vsub.f32 %v17847_v53, %v10303_v0  ;;  %v10459_v7 = vrot.slane %v1235_v59, %v9284_v51 }
 0x267   :  { %1649 = vadd.xlane.f32.xlu0 %v1648_v46  ;;  %17843 = vst [vmem:[#allocation21_spill] sm:$0xff] %v10430_v31  ;;  %17844 = vst [vmem:[#allocation111_spill] sm:$0xff] %v10440_v9  ;;  %v3330_v40 = vrot.slane %v17846_v22, %v9281_v47  ;;  %v3338_v8 = vrot.slane %v3331_v32, %v9281_v47  ;;  %v3204_v30 = vmul.f32 %v8598_v11, %v3076_v37 }
 0x268   :  { %8603 = vrsqrt.f32 %v2813_v17  ;;  %1682 = vadd.xlane.f32.xlu1 %v1681_v26  ;;  %v1168_v17 = vcombine.low %v1136_v48, %v10423_v14  ;;  %v17848_v26 = vld [vmem:[#allocation12_spill] sm:$0xff]  ;;  %17849 = vst [vmem:[#allocation22_spill] sm:$0xff] %v10459_v7  ;;  %v1711_v24 = vsel %vm1386_vm1, %v10426_v56, 0.0  ;;  %v2556_v19 = vmul.f32 %v10436_v15, %v10436_v15 }
 0x269   :  { %v10444_v35 = vpop.xlane.xlu1 %1490  ;;  %v10456_v42 = vrot.slane %v17848_v26, %v9281_v47  ;;  %v3347_v32 = vcombine.low %v3330_v40, %v3338_v8  ;;  %v10466_v11 = vmul.f32 0.03125, %v10148_v44  ;;  %v10474_v59 = vcombine.high %v10381_v33, %v17743_v21 }
 0x26a   :  { %17845 = vst [vmem:[#allocation112_spill] sm:$0xff] %v10444_v35  ;;  %v8600_v46 = vpop.eup %8599  ;;  %v1952_v35 = vpop.xlane.xlu0 %1951  ;;  %v17852_v40 = vcombine.low %v10222_v4, %v10225_v20  ;;  %v10487_v53 = vrot.slane %v1168_v17, %v9284_v51  ;;  %v1717_v4 = vsel %vm1386_vm1, %v10459_v7, 0.0 }
 0x26b   :  { %1703 = vadd.xlane.f32.xlu0 %v1702_v49  ;;  %v2428_v0 = vmul.f32 0.03125, %v1952_v35  ;;  %v3206_v37 = vmul.f32 %v8600_v46, %v3078_v62  ;;  %v1708_v49 = vsel %vm1386_vm1, %v10440_v9, 0.0  ;;  %17851 = vst [vmem:[#allocation113_spill] sm:$0xff] %v10474_v59  ;;  %v10483_v44 = vrot.slane %v3347_v32, %v9284_v51 }
 0x26c   :  { %1712 = vadd.xlane.f32.xlu1 %v1711_v24  ;;  %v10480_v8 = vrot.slane %v17852_v40, %v9284_v51  ;;  %v1169_v35 = vcombine.high %v1136_v48, %v10423_v14  ;;  %17855 = vst [vmem:[#allocation116_spill] sm:$0xff] %v10487_v53  ;;  %v17856_v24 = vld [vmem:[#allocation42_spill] sm:$0xff]  ;;  %v17857_v14 = vld [vmem:[#allocation23_spill] sm:$0xff]  ;;  %v2558_v17 = vmul.f32 %v10466_v11, %v10466_v11 }
 0x26d   :  { %v10470_v22 = vpop.xlane.xlu1 %1520  ;;  %17854 = vst [vmem:[#allocation115_spill] sm:$0xff] %v10483_v44  ;;  %v2684_v62 = vsub.f32 %v2428_v0, %v2556_v19  ;;  %v3465_v46 = vcombine.low %v3204_v30, %v3206_v37  ;;  %v3067_v48 = vsub.f32 %v17857_v14, %v10348_v1  ;;  %v1678_v37 = vsel %vm1386_vm1, %v10474_v59, 0.0 }
 0x26e   :  { %17850 = vst [vmem:[#allocation12_spill] sm:$0xff] %v10470_v22  ;;  %17853 = vst [vmem:[#allocation114_spill] sm:$0xff] %v10480_v8  ;;  %v1342_v22 = vrot.slane %v17856_v24, %v9281_v47  ;;  %v1958_v31 = vpop.xlane.xlu0 %1957  ;;  %v10507_v40 = vcombine.high %v10404_v36, %v17743_v21  ;;  %v17860_v1 = vcombine.low %v10350_v52, %v10388_v27  ;;  %v1687_v52 = vsel %vm1386_vm1, %v10487_v53, 0.0 }
 0x26f   :  { %1709 = vadd.xlane.f32.xlu0 %v1708_v49  ;;  %v2812_v30 = vadd.f32 1e-05, %v2684_v62  ;;  %v2430_v19 = vmul.f32 0.03125, %v1958_v31  ;;  %v10516_v62 = vrot.slane %v3465_v46, %v9281_v47  ;;  %v10519_v31 = vmul.f32 0.03125, %v10253_v38 }
 0x270   :  { %1718 = vadd.xlane.f32.xlu1 %v1717_v4  ;;  %17859 = vst [vmem:[#allocation23_spill] sm:$0xff] %v10507_v40  ;;  %v10513_v14 = vrot.slane %v17860_v1, %v9281_v47  ;;  %v10524_v20 = vrot.slane %v1169_v35, %v9284_v51  ;;  %v1350_v44 = vcombine.low %v10456_v42, %v1342_v22 }
 0x271   :  { %v8602_v0 = vpop.eup %8601  ;;  %v10503_v49 = vpop.xlane.xlu1 %1526  ;;  %17862 = vst [vmem:[#allocation118_spill] sm:$0xff] %v10516_v62  ;;  %8605 = vrsqrt.f32 %v2812_v30  ;;  %v2686_v4 = vsub.f32 %v2430_v19, %v2558_v17  ;;  %v17865_v17 = vld [vmem:[#allocation46_spill] sm:$0xff]  ;;  %v17866_v30 = vld [vmem:[#allocation24_spill] sm:$0xff]  ;;  %v1684_v19 = vsel %vm1386_vm1, %v10507_v40, 0.0  ;;  %v2559_v1 = vmul.f32 %v10519_v31, %v10519_v31 }
 0x272   :  { %17858 = vst [vmem:[#allocation42_spill] sm:$0xff] %v10503_v49  ;;  %17861 = vst [vmem:[#allocation117_spill] sm:$0xff] %v10513_v14  ;;  %v10521_v32 = vmul.f32 %v8602_v0, %v3067_v48  ;;  %v10527_v8 = vpop.xlane.xlu0 %1487  ;;  %v1276_v48 = vrot.slane %v17865_v17, %v9281_v47  ;;  %v3069_v35 = vsub.f32 %v17866_v30, %v10378_v16  ;;  %v1693_v62 = vsel %vm1386_vm1, %v10524_v20, 0.0 }
 0x273   :  { %1679 = vadd.xlane.f32.xlu0 %v1678_v37  ;;  %17863 = vst [vmem:[#allocation119_spill] sm:$0xff] %v10524_v20  ;;  %17864 = vst [vmem:[#allocation120_spill] sm:$0xff] %v10527_v8  ;;  %v2814_v38 = vadd.f32 1e-05, %v2686_v4  ;;  %v10541_v37 = vcombine.high %v10426_v56, %v17743_v21  ;;  %v10546_v4 = vmul.f32 0.03125, %v10277_v10  ;;  %v1351_v27 = vcombine.high %v10456_v42, %v1342_v22  ;;  %v17870_v10 = vld [vmem:[#allocation13_spill] sm:$0xff] }
 0x274   :  { %1688 = vadd.xlane.f32.xlu1 %v1687_v52  ;;  %v10550_v16 = vrot.slane %v1350_v44, %v9284_v51  ;;  %v1261_v49 = vrot.slane %v17870_v10, %v9281_v47  ;;  %v10564_v42 = vcombine.high %v10459_v7, %v17743_v21 }
 0x275   :  { %v8604_v46 = vpop.eup %8603  ;;  %v1961_v0 = vpop.xlane.xlu1 %1960  ;;  %17867 = vst [vmem:[#allocation46_spill] sm:$0xff] %v10541_v37  ;;  %8607 = vrsqrt.f32 %v2814_v38  ;;  %v1714_v38 = vsel %vm1386_vm1, %v10541_v37, 0.0  ;;  %v2561_v44 = vmul.f32 %v10546_v4, %v10546_v4 }
 0x276   :  { %v2431_v52 = vmul.f32 0.03125, %v1961_v0  ;;  %17868 = vst [vmem:[#allocation24_spill] sm:$0xff] %v10550_v16  ;;  %v10552_v30 = vpop.xlane.xlu0 %1493  ;;  %v10556_v14 = vmul.f32 %v8604_v46, %v3069_v35  ;;  %17871 = vst [vmem:[#allocation13_spill] sm:$0xff] %v10564_v42  ;;  %v1284_v35 = vcombine.low %v1261_v49, %v1276_v48  ;;  %v1335_v0 = vcombine.high %v17856_v24, %v17743_v21 }
 0x277   :  { %1685 = vadd.xlane.f32.xlu0 %v1684_v19  ;;  %17869 = vst [vmem:[#allocation121_spill] sm:$0xff] %v10552_v30  ;;  %v1747_v30 = vsel %vm1386_vm1, %v10550_v16, 0.0  ;;  %v10587_v24 = vcombine.high %v10487_v53, %v17743_v21 }
 0x278   :  { %v2687_v8 = vsub.f32 %v2431_v52, %v2559_v1  ;;  %1694 = vadd.xlane.f32.xlu1 %v1693_v62  ;;  %v10573_v1 = vrot.slane %v1351_v27, %v9284_v51  ;;  %v1285_v27 = vcombine.high %v1261_v49, %v1276_v48 }
 0x279   :  { %v1967_v19 = vpop.xlane.xlu1 %1966  ;;  %17875 = vst [vmem:[#allocation125_spill] sm:$0xff] %v10587_v24  ;;  %v1690_v48 = vsel %vm1386_vm1, %v10587_v24, 0.0 }
 0x27a   :  { %v2815_v46 = vadd.f32 1e-05, %v2687_v8  ;;  %v2433_v62 = vmul.f32 0.03125, %v1967_v19  ;;  %17872 = vst [vmem:[#allocation122_spill] sm:$0xff] %v10573_v1  ;;  %v10575_v52 = vpop.xlane.xlu0 %1523  ;;  %v1320_v8 = vcombine.high %v17848_v26, %v17743_v21  ;;  %v17877_v26 = vld [vmem:[#allocation27_spill] sm:$0xff] }
 0x27b   :  { %1715 = vadd.xlane.f32.xlu0 %v1714_v38  ;;  %17873 = vst [vmem:[#allocation123_spill] sm:$0xff] %v10575_v52  ;;  %v1720_v38 = vsel %vm1386_vm1, %v10564_v42, 0.0  ;;  %v10600_v42 = vmul.f32 0.03125, %v10358_v34  ;;  %v17881_v34 = vld [vmem:[#allocation28_spill] sm:$0xff] }
 0x27c   :  { %8609 = vrsqrt.f32 %v2815_v46  ;;  %v2689_v22 = vsub.f32 %v2433_v62, %v2561_v44  ;;  %1748 = vadd.xlane.f32.xlu1 %v1747_v30  ;;  %v10590_v46 = vrot.slane %v1284_v35, %v9284_v51  ;;  %v1349_v30 = vrot.slane %v1335_v0, %v9281_v47 }
 0x27d   :  { %v10583_v19 = vpop.xlane.xlu1 %1496  ;;  %v3068_v44 = vsub.f32 %v17877_v26, %v10436_v15  ;;  %v1334_v49 = vrot.slane %v1320_v8, %v9281_v47  ;;  %v10609_v15 = vcombine.high %v10524_v20, %v17743_v21  ;;  %v1254_v0 = vcombine.high %v17870_v10, %v17743_v21 }
 0x27e   :  { %17874 = vst [vmem:[#allocation124_spill] sm:$0xff] %v10583_v19  ;;  %v2817_v52 = vadd.f32 1e-05, %v2689_v22  ;;  %v8606_v37 = vpop.eup %8605  ;;  %17876 = vst [vmem:[#allocation126_spill] sm:$0xff] %v10590_v46  ;;  %v10595_v62 = vpop.xlane.xlu0 %1529  ;;  %v1753_v19 = vsel %vm1386_vm1, %v10573_v1, 0.0  ;;  %v1269_v8 = vcombine.high %v17865_v17, %v17743_v21  ;;  %v10625_v10 = vmul.f32 0.03125, %v10384_v41 }
 0x27f   :  { %1721 = vadd.xlane.f32.xlu0 %v1720_v38  ;;  %17878 = vst [vmem:[#allocation27_spill] sm:$0xff] %v10595_v62  ;;  %17880 = vst [vmem:[#allocation128_spill] sm:$0xff] %v10609_v15  ;;  %v3196_v35 = vmul.f32 %v8606_v37, %v3068_v44  ;;  %v3070_v38 = vsub.f32 %v17881_v34, %v10466_v11  ;;  %v1366_v26 = vcombine.low %v1334_v49, %v1349_v30 }
 0x280   :  { %8611 = vrsqrt.f32 %v2817_v52  ;;  %1754 = vadd.xlane.f32.xlu1 %v1753_v19  ;;  %v10618_v19 = vrot.slane %v1285_v27, %v9284_v51  ;;  %v1723_v62 = vsel %vm1386_vm1, %v10590_v46, 0.0  ;;  %v2560_v37 = vmul.f32 %v10600_v42, %v10600_v42 }
 0x281   :  { %v10605_v22 = vpop.xlane.xlu1 %1502  ;;  %v1696_v17 = vsel %vm1386_vm1, %v10609_v15, 0.0  ;;  %v10633_v27 = vcombine.high %v10550_v16, %v17743_v21  ;;  %v1268_v34 = vrot.slane %v1254_v0, %v9281_v47  ;;  %v1283_v41 = vrot.slane %v1269_v8, %v9281_v47 }
 0x282   :  { %17879 = vst [vmem:[#allocation127_spill] sm:$0xff] %v10605_v22  ;;  %v8608_v52 = vpop.eup %8607  ;;  %17882 = vst [vmem:[#allocation28_spill] sm:$0xff] %v10618_v19  ;;  %v1964_v22 = vpop.xlane.xlu0 %1963  ;;  %v1367_v7 = vcombine.high %v1334_v49, %v1349_v30  ;;  %v2562_v16 = vmul.f32 %v10625_v10, %v10625_v10  ;;  %v10652_v8 = vcombine.high %v10573_v1, %v17743_v21 }
 0x283   :  { %1691 = vadd.xlane.f32.xlu0 %v1690_v48  ;;  %v2432_v11 = vmul.f32 0.03125, %v1964_v22  ;;  %v3198_v44 = vmul.f32 %v8608_v52, %v3070_v38  ;;  %17884 = vst [vmem:[#allocation130_spill] sm:$0xff] %v10633_v27  ;;  %v1729_v38 = vsel %vm1386_vm1, %v10618_v19, 0.0  ;;  %v17886_v52 = vld [vmem:[#allocation31_spill] sm:$0xff]  ;;  %v1750_v30 = vsel %vm1386_vm1, %v10633_v27, 0.0 }
 0x284   :  { %1724 = vadd.xlane.f32.xlu1 %v1723_v62  ;;  %v10638_v62 = vrot.slane %v1366_v26, %v9284_v51  ;;  %17888 = vst [vmem:[#allocation132_spill] sm:$0xff] %v10652_v8 }
 0x285   :  { %v10629_v48 = vpop.xlane.xlu1 %1556  ;;  %v2688_v9 = vsub.f32 %v2432_v11, %v2560_v37  ;;  %v3415_v60 = vcombine.low %v3196_v35, %v3198_v44 }
 0x286   :  { %17883 = vst [vmem:[#allocation129_spill] sm:$0xff] %v10629_v48  ;;  %17885 = vst [vmem:[#allocation131_spill] sm:$0xff] %v10638_v62  ;;  %v1970_v22 = vpop.xlane.xlu0 %1969  ;;  %v3071_v48 = vsub.f32 %v17886_v52, %v10519_v31  ;;  %v17889_v31 = vcombine.low %v10521_v32, %v10556_v14  ;;  %v1759_v52 = vsel %vm1386_vm1, %v10638_v62, 0.0 }
 0x287   :  { %1697 = vadd.xlane.f32.xlu0 %v1696_v17  ;;  %v2816_v0 = vadd.f32 1e-05, %v2688_v9  ;;  %v2434_v37 = vmul.f32 0.03125, %v1970_v22  ;;  %v10661_v9 = vrot.slane %v3415_v60, %v9281_v47  ;;  %v1300_v17 = vcombine.low %v1268_v34, %v1283_v41 }
 0x288   :  { %1730 = vadd.xlane.f32.xlu1 %v1729_v38  ;;  %v10658_v26 = vrot.slane %v17889_v31, %v9281_v47  ;;  %v10664_v22 = vrot.slane %v1367_v7, %v9284_v51  ;;  %v10680_v7 = vcombine.high %v10590_v46, %v17743_v21 }
 0x289   :  { %v8610_v35 = vpop.eup %8609  ;;  %v10648_v49 = vpop.xlane.xlu1 %1562  ;;  %8613 = vrsqrt.f32 %v2816_v0  ;;  %v2690_v11 = vsub.f32 %v2434_v37, %v2562_v16  ;;  %v17892_v0 = vld [vmem:[#allocation32_spill] sm:$0xff] }
 0x28a   :  { %17887 = vst [vmem:[#allocation31_spill] sm:$0xff] %v10648_v49  ;;  %v3199_v44 = vmul.f32 %v8610_v35, %v3071_v48  ;;  %17890 = vst [vmem:[#allocation133_spill] sm:$0xff] %v10664_v22  ;;  %v3073_v16 = vsub.f32 %v17892_v0, %v10546_v4  ;;  %v1756_v48 = vsel %vm1386_vm1, %v10652_v8, 0.0  ;;  %v1301_v35 = vcombine.high %v1268_v34, %v1283_v41 }
 0x28b   :  { %1751 = vadd.xlane.f32.xlu0 %v1750_v30  ;;  %v2818_v14 = vadd.f32 1e-05, %v2690_v11  ;;  %17894 = vst [vmem:[#allocation135_spill] sm:$0xff] %v10680_v7  ;;  %v10683_v30 = vrot.slane %v1300_v17, %v9284_v51  ;;  %v1765_v4 = vsel %vm1386_vm1, %v10664_v22, 0.0 }
 0x28c   :  { %v10666_v38 = vpop.xlane.xlu0 %1499  ;;  %1760 = vadd.xlane.f32.xlu1 %v1759_v52  ;;  %v1726_v52 = vsel %vm1386_vm1, %v10680_v7, 0.0  ;;  %v10698_v41 = vrot.slane %v1301_v35, %v9284_v51 }
 0x28d   :  { %17891 = vst [vmem:[#allocation134_spill] sm:$0xff] %v10666_v38  ;;  %v8612_v60 = vpop.eup %8611  ;;  %v10676_v37 = vpop.xlane.xlu1 %1532  ;;  %8615 = vrsqrt.f32 %v2818_v14  ;;  %17895 = vst [vmem:[#allocation136_spill] sm:$0xff] %v10683_v30  ;;  %v10695_v14 = vcombine.high %v10618_v19, %v17743_v21 }
 0x28e   :  { %17893 = vst [vmem:[#allocation32_spill] sm:$0xff] %v10676_v37  ;;  %v3201_v11 = vmul.f32 %v8612_v60, %v3073_v16  ;;  %17899 = vst [vmem:[#allocation140_spill] sm:$0xff] %v10698_v41  ;;  %v1735_v60 = vsel %vm1386_vm1, %v10683_v30, 0.0  ;;  %v1741_v32 = vsel %vm1386_vm1, %v10698_v41, 0.0 }
 0x28f   :  { %1757 = vadd.xlane.f32.xlu0 %v1756_v48  ;;  %17898 = vst [vmem:[#allocation139_spill] sm:$0xff] %v10695_v14  ;;  %v1732_v16 = vsel %vm1386_vm1, %v10695_v14, 0.0 }
 0x290   :  { %v10685_v31 = vpop.xlane.xlu0 %1505  ;;  %1766 = vadd.xlane.f32.xlu1 %v1765_v4  ;;  %v3423_v34 = vcombine.low %v3199_v44, %v3201_v11  ;;  %v10710_v4 = vcombine.high %v10638_v62, %v17743_v21  ;;  %v17903_v44 = vld [vmem:[#allocation35_spill] sm:$0xff] }
 0x291   :  { %17896 = vst [vmem:[#allocation137_spill] sm:$0xff] %v10685_v31  ;;  %v10691_v0 = vpop.xlane.xlu1 %1538  ;;  %v3072_v11 = vsub.f32 %v17903_v44, %v10600_v42  ;;  %v10726_v42 = vcombine.high %v10664_v22, %v17743_v21 }
 0x292   :  { %17897 = vst [vmem:[#allocation138_spill] sm:$0xff] %v10691_v0  ;;  %17902 = vst [vmem:[#allocation143_spill] sm:$0xff] %v10710_v4 }
 0x293   :  { %1727 = vadd.xlane.f32.xlu0 %v1726_v52  ;;  %17907 = vst [vmem:[#allocation145_spill] sm:$0xff] %v10726_v42 }
 0x294   :  { %v10700_v17 = vpop.xlane.xlu0 %1559  ;;  %1736 = vadd.xlane.f32.xlu1 %v1735_v60  ;;  %v17905_v60 = vld [vmem:[#allocation25_spill] sm:$0xff] }
 0x295   :  { %17900 = vst [vmem:[#allocation141_spill] sm:$0xff] %v10700_v17  ;;  %v10706_v48 = vpop.xlane.xlu1 %1568  ;;  %v1799_v17 = vmul.f32 %v17905_v60, %v17905_v60  ;;  %v10741_v60 = vcombine.high %v10683_v30, %v17743_v21 }
 0x296   :  { %17901 = vst [vmem:[#allocation142_spill] sm:$0xff] %v10706_v48  ;;  %v8614_v35 = vpop.eup %8613  ;;  %v1762_v48 = vsel %vm1386_vm1, %v10710_v4, 0.0 }
 0x297   :  { %1733 = vadd.xlane.f32.xlu0 %v1732_v16  ;;  %v3200_v0 = vmul.f32 %v8614_v35, %v3072_v11  ;;  %v17908_v16 = vld [vmem:[#allocation36_spill] sm:$0xff]  ;;  %v1983_v38 = vsel %vm1386_vm1, %v1799_v17, 0.0  ;;  %17912 = vst [vmem:[#allocation146_spill] sm:$0xff] %v10741_v60 }
 0x298   :  { %v10714_v52 = vpop.xlane.xlu0 %1565  ;;  %1742 = vadd.xlane.f32.xlu1 %v1741_v32  ;;  %v3074_v44 = vsub.f32 %v17908_v16, %v10625_v10  ;;  %v17910_v32 = vld [vmem:[#allocation26_spill] sm:$0xff] }
 0x299   :  { %17904 = vst [vmem:[#allocation35_spill] sm:$0xff] %v10714_v52  ;;  %v10722_v31 = vpop.xlane.xlu1 %1574  ;;  %v1801_v11 = vmul.f32 %v17910_v32, %v17910_v32  ;;  %v17914_v16 = vld [vmem:[#allocation38_spill] sm:$0xff] }
 0x29a   :  { %17906 = vst [vmem:[#allocation144_spill] sm:$0xff] %v10722_v31  ;;  %v8616_v52 = vpop.eup %8615  ;;  %v1768_v31 = vsel %vm1386_vm1, %v10726_v42, 0.0 }
 0x29b   :  { %1763 = vadd.xlane.f32.xlu0 %v1762_v48  ;;  %v3202_v35 = vmul.f32 %v8616_v52, %v3074_v44  ;;  %v1989_v17 = vsel %vm1386_vm1, %v1801_v11, 0.0  ;;  %v1738_v44 = vsel %vm1386_vm1, %v10741_v60, 0.0 }
 0x29c   :  { %v10730_v37 = vpop.xlane.xlu0 %1535  ;;  %1984 = vadd.xlane.f32.xlu1 %v1983_v38  ;;  %v3430_v38 = vrot.slane %v3423_v34, %v9281_v47 }
 0x29d   :  { %17909 = vst [vmem:[#allocation36_spill] sm:$0xff] %v10730_v37  ;;  %v10737_v49 = vpop.xlane.xlu1 %1544  ;;  %v3431_v10 = vcombine.low %v3200_v0, %v3202_v35  ;;  %v1803_v37 = vmul.f32 %v17914_v16, %v17914_v16 }
 0x29e   :  { %17911 = vst [vmem:[#allocation26_spill] sm:$0xff] %v10737_v49 }
 0x29f   :  { %1769 = vadd.xlane.f32.xlu0 %v1768_v31  ;;  %v3438_v52 = vrot.slane %v3431_v10, %v9281_v47  ;;  %v10756_v31 = vcombine.high %v10698_v41, %v17743_v21  ;;  %v1995_v35 = vsel %vm1386_vm1, %v1803_v37, 0.0  ;;  %v17919_v10 = vcombine.low %v10658_v26, %v10661_v9  ;;  %v17925_v9 = vld [vmem:[#allocation49_spill] sm:$0xff] }
 0x2a0   :  { %v10743_v48 = vpop.xlane.xlu0 %1541  ;;  %1990 = vadd.xlane.f32.xlu1 %v1989_v17  ;;  %v17918_v17 = vld [vmem:[#allocation40_spill] sm:$0xff] }
 0x2a1   :  { %17913 = vst [vmem:[#allocation147_spill] sm:$0xff] %v10743_v48  ;;  %v10752_v49 = vpop.xlane.xlu1 %1550  ;;  %17916 = vst [vmem:[#allocation149_spill] sm:$0xff] %v10756_v31  ;;  %v3447_v0 = vcombine.low %v3430_v38, %v3438_v52  ;;  %v1805_v34 = vmul.f32 %v17918_v17, %v17918_v17  ;;  %v10767_v47 = vrot.slane %v17919_v10, %v9284_v51  ;;  %v1744_v38 = vsel %vm1386_vm1, %v10756_v31, 0.0  ;;  %v17927_v48 = vld [vmem:[#allocation30_spill] sm:$0xff] }
 0x2a2   :  { %17915 = vst [vmem:[#allocation148_spill] sm:$0xff] %v10752_v49 }
 0x2a3   :  { %1739 = vadd.xlane.f32.xlu0 %v1738_v44  ;;  %17920 = vst [vmem:[#allocation151_spill] sm:$0xff] %v10767_v47  ;;  %v10770_v49 = vrot.slane %v3447_v0, %v9284_v51  ;;  %v17923_v44 = vld [vmem:[#allocation29_spill] sm:$0xff]  ;;  %v2001_v26 = vsel %vm1386_vm1, %v1805_v34, 0.0  ;;  %v1807_v0 = vmul.f32 %v17925_v9, %v17925_v9  ;;  %v17929_v34 = vld [vmem:[#allocation51_spill] sm:$0xff] }
 0x2a4   :  { %v10758_v11 = vpop.xlane.xlu0 %1571  ;;  %1996 = vadd.xlane.f32.xlu1 %v1995_v35  ;;  %v1800_v37 = vmul.f32 %v17923_v44, %v17923_v44  ;;  %v1809_v51 = vmul.f32 %v17929_v34, %v17929_v34  ;;  %v17933_v47 = vld [vmem:[#allocation33_spill] sm:$0xff]  ;;  %v17937_v34 = vld [vmem:[#allocation34_spill] sm:$0xff] }
 0x2a5   :  { %17917 = vst [vmem:[#allocation150_spill] sm:$0xff] %v10758_v11  ;;  %17921 = vst [vmem:[#allocation152_spill] sm:$0xff] %v10770_v49  ;;  %v10774_v52 = vpop.xlane.xlu1 %1604 }
 0x2a6   :  { %17922 = vst [vmem:[#allocation153_spill] sm:$0xff] %v10774_v52  ;;  %v1986_v52 = vsel %vm1386_vm1, %v1800_v37, 0.0 }
 0x2a7   :  { %1745 = vadd.xlane.f32.xlu0 %v1744_v38  ;;  %v1802_v38 = vmul.f32 %v17927_v48, %v17927_v48  ;;  %v18086_v48 = vld [vmem:[#allocation127_spill] sm:$0xff] }
 0x2a8   :  { %v10780_v21 = vpop.xlane.xlu0 %1577  ;;  %2002 = vadd.xlane.f32.xlu1 %v2001_v26  ;;  %v17931_v26 = vld [vmem:[#allocation45_spill] sm:$0xff] }
 0x2a9   :  { %17924 = vst [vmem:[#allocation154_spill] sm:$0xff] %v10780_v21  ;;  %v10788_v11 = vpop.xlane.xlu1 %1610  ;;  %v2007_v21 = vsel %vm1386_vm1, %v1807_v0, 0.0  ;;  %v1992_v9 = vsel %vm1386_vm1, %v1802_v38, 0.0  ;;  %v1804_v37 = vmul.f32 %v17931_v26, %v17931_v26 }
 0x2aa   :  { %17926 = vst [vmem:[#allocation155_spill] sm:$0xff] %v10788_v11 }
 0x2ab   :  { %1987 = vadd.xlane.f32.xlu0 %v1986_v52  ;;  %v2013_v52 = vsel %vm1386_vm1, %v1809_v51, 0.0  ;;  %v1998_v0 = vsel %vm1386_vm1, %v1804_v37, 0.0 }
 0x2ac   :  { %v10792_v35 = vpop.xlane.xlu0 %1547  ;;  %2008 = vadd.xlane.f32.xlu1 %v2007_v21  ;;  %v17935_v21 = vld [vmem:[#allocation47_spill] sm:$0xff] }
 0x2ad   :  { %17928 = vst [vmem:[#allocation156_spill] sm:$0xff] %v10792_v35  ;;  %v10798_v10 = vpop.xlane.xlu1 %1580  ;;  %v1811_v35 = vmul.f32 %v17933_v47, %v17933_v47  ;;  %v1806_v38 = vmul.f32 %v17935_v21, %v17935_v21  ;;  %v17941_v21 = vld [vmem:[#allocation41_spill] sm:$0xff] }
 0x2ae   :  { %17930 = vst [vmem:[#allocation157_spill] sm:$0xff] %v10798_v10 }
 0x2af   :  { %1993 = vadd.xlane.f32.xlu0 %v1992_v9  ;;  %v2019_v9 = vsel %vm1386_vm1, %v1811_v35, 0.0  ;;  %v2004_v51 = vsel %vm1386_vm1, %v1806_v38, 0.0 }
 0x2b0   :  { %v10802_v49 = vpop.xlane.xlu0 %1553  ;;  %2014 = vadd.xlane.f32.xlu1 %v2013_v52  ;;  %v17939_v52 = vld [vmem:[#allocation54_spill] sm:$0xff] }
 0x2b1   :  { %17932 = vst [vmem:[#allocation158_spill] sm:$0xff] %v10802_v49  ;;  %v10808_v11 = vpop.xlane.xlu1 %1586  ;;  %v1813_v49 = vmul.f32 %v17937_v34, %v17937_v34  ;;  %v1808_v37 = vmul.f32 %v17939_v52, %v17939_v52  ;;  %v18073_v34 = vld [vmem:[#allocation121_spill] sm:$0xff] }
 0x2b2   :  { %17934 = vst [vmem:[#allocation159_spill] sm:$0xff] %v10808_v11 }
 0x2b3   :  { %1999 = vadd.xlane.f32.xlu0 %v1998_v0  ;;  %v2025_v0 = vsel %vm1386_vm1, %v1813_v49, 0.0  ;;  %v2010_v35 = vsel %vm1386_vm1, %v1808_v37, 0.0 }
 0x2b4   :  { %v10812_v10 = vpop.xlane.xlu0 %1607  ;;  %2020 = vadd.xlane.f32.xlu1 %v2019_v9  ;;  %v17943_v9 = vld [vmem:[#allocation56_spill] sm:$0xff] }
 0x2b5   :  { %17936 = vst [vmem:[#allocation160_spill] sm:$0xff] %v10812_v10  ;;  %v10818_v26 = vpop.xlane.xlu1 %1616  ;;  %v1815_v10 = vmul.f32 %v17941_v21, %v17941_v21  ;;  %v1810_v38 = vmul.f32 %v17943_v9, %v17943_v9  ;;  %v4254_v9 = vld [vmem:[#allocation5 + $0x68] sm:$0xff] }
 0x2b6   :  { %17938 = vst [vmem:[#allocation161_spill] sm:$0xff] %v10818_v26  ;;  %v4256_v26 = vld [vmem:[#allocation5 + $0x78] sm:$0xff] }
 0x2b7   :  { %2005 = vadd.xlane.f32.xlu0 %v2004_v51  ;;  %v2031_v51 = vsel %vm1386_vm1, %v1815_v10, 0.0  ;;  %8511 = vmatprep.subr.mxu1 %v4256_v26 }
 0x2b8   :  { %v10822_v11 = vpop.xlane.xlu0 %1613  ;;  %2026 = vadd.xlane.f32.xlu1 %v2025_v0  ;;  %8512 = vmatpush3.msra.mxu1 %v4256_v26  ;;  %v2016_v0 = vsel %vm1386_vm1, %v1810_v38, 0.0 }
 0x2b9   :  { %17940 = vst [vmem:[#allocation162_spill] sm:$0xff] %v10822_v11  ;;  %v10828_v17 = vpop.xlane.xlu1 %1622  ;;  %v17945_v11 = vld [vmem:[#allocation44_spill] sm:$0xff] }
 0x2ba   :  { %17942 = vst [vmem:[#allocation163_spill] sm:$0xff] %v10828_v17  ;;  %v1817_v49 = vmul.f32 %v17945_v11, %v17945_v11  ;;  %v17947_v17 = vld [vmem:[#allocation37_spill] sm:$0xff] }
 0x2bb   :  { %2011 = vadd.xlane.f32.xlu0 %v2010_v35  ;;  %v1812_v52 = vmul.f32 %v17947_v17, %v17947_v17  ;;  %v4255_v35 = vld [vmem:[#allocation5 + $0x70] sm:$0xff] }
 0x2bc   :  { %v10832_v16 = vpop.xlane.xlu0 %1583  ;;  %2032 = vadd.xlane.f32.xlu1 %v2031_v51  ;;  %v2037_v10 = vsel %vm1386_vm1, %v1817_v49, 0.0  ;;  %8513 = vmatprep.subr.mxu1 %v4255_v35  ;;  %v17951_v51 = vld [vmem:[#allocation39_spill] sm:$0xff] }
 0x2bd   :  { %17944 = vst [vmem:[#allocation164_spill] sm:$0xff] %v10832_v16  ;;  %v10838_v37 = vpop.xlane.xlu1 %1592  ;;  %v17949_v16 = vld [vmem:[#allocation55_spill] sm:$0xff]  ;;  %8514 = vmatpush3.msra.mxu1 %v4255_v35  ;;  %v2022_v26 = vsel %vm1386_vm1, %v1812_v52, 0.0 }
 0x2be   :  { %17946 = vst [vmem:[#allocation165_spill] sm:$0xff] %v10838_v37  ;;  %v1819_v11 = vmul.f32 %v17949_v16, %v17949_v16  ;;  %v1814_v37 = vmul.f32 %v17951_v51, %v17951_v51  ;;  %8515 = vmatprep.subr.mxu1 %v4254_v9  ;;  %v17953_v16 = vld [vmem:[#allocation57_spill] sm:$0xff] }
 0x2bf   :  { %2017 = vadd.xlane.f32.xlu0 %v2016_v0  ;;  %8516 = vmatpush3.msra.mxu1 %v4254_v9  ;;  %v4253_v0 = vld [vmem:[#allocation5 + $0x60] sm:$0xff]  ;;  %v4251_v9 = vld [vmem:[#allocation5 + $0x50] sm:$0xff] }
 0x2c0   :  { %v10842_v21 = vpop.xlane.xlu0 %1589  ;;  %2038 = vadd.xlane.f32.xlu1 %v2037_v10  ;;  %v2043_v49 = vsel %vm1386_vm1, %v1819_v11, 0.0  ;;  %v1821_v10 = vmul.f32 %v17953_v16, %v17953_v16  ;;  %8517 = vmatprep.subr.mxu1 %v4253_v0  ;;  %v2028_v52 = vsel %vm1386_vm1, %v1814_v37, 0.0 }
 0x2c1   :  { %17948 = vst [vmem:[#allocation166_spill] sm:$0xff] %v10842_v21  ;;  %v10848_v38 = vpop.xlane.xlu1 %1598  ;;  %v4252_v21 = vld [vmem:[#allocation5 + $0x58] sm:$0xff]  ;;  %8518 = vmatpush3.msra.mxu1 %v4253_v0 }
 0x2c2   :  { %17950 = vst [vmem:[#allocation167_spill] sm:$0xff] %v10848_v38  ;;  %v17955_v38 = vld [vmem:[#allocation48_spill] sm:$0xff]  ;;  %8519 = vmatprep.subr.mxu1 %v4252_v21  ;;  %v2049_v11 = vsel %vm1386_vm1, %v1821_v10, 0.0 }
 0x2c3   :  { %2023 = vadd.xlane.f32.xlu0 %v2022_v26  ;;  %v1816_v26 = vmul.f32 %v17955_v38, %v17955_v38  ;;  %8520 = vmatpush3.msra.mxu1 %v4252_v21  ;;  %v4249_v21 = vld [vmem:[#allocation5 + $0x40] sm:$0xff]  ;;  %v18115_v38 = vld [vmem:[#allocation141_spill] sm:$0xff] }
 0x2c4   :  { %v10852_v17 = vpop.xlane.xlu0 %1619  ;;  %2044 = vadd.xlane.f32.xlu1 %v2043_v49  ;;  %v1823_v49 = vmul.f32 %v9834_v25, %v9834_v25  ;;  %8521 = vmatprep.subr.mxu1 %v4251_v9  ;;  %v1825_v25 = vmul.f32 %v9856_v50, %v9856_v50  ;;  %v17965_v50 = vld [vmem:[#allocation64_spill] sm:$0xff] }
 0x2c5   :  { %17952 = vst [vmem:[#allocation168_spill] sm:$0xff] %v10852_v17  ;;  %v10858_v35 = vpop.xlane.xlu1 %1652  ;;  %v4250_v17 = vld [vmem:[#allocation5 + $0x48] sm:$0xff]  ;;  %8522 = vmatpush3.msra.mxu1 %v4251_v9  ;;  %v2034_v37 = vsel %vm1386_vm1, %v1816_v26, 0.0 }
 0x2c6   :  { %17954 = vst [vmem:[#allocation169_spill] sm:$0xff] %v10858_v35  ;;  %v17958_v35 = vld [vmem:[#allocation50_spill] sm:$0xff]  ;;  %8523 = vmatprep.subr.mxu1 %v4250_v17  ;;  %v2055_v10 = vsel %vm1386_vm1, %v1823_v49, 0.0 }
 0x2c7   :  { %2029 = vadd.xlane.f32.xlu0 %v2028_v52  ;;  %v1818_v52 = vmul.f32 %v17958_v35, %v17958_v35  ;;  %8524 = vmatpush3.msra.mxu1 %v4250_v17  ;;  %v9074_v17 = vld [vmem:[#allocation2 + $0x10] sm:$0xff]  ;;  %v11519_v35 = vmul.f32 0.03125, %v18115_v38  ;;  %v18132_v38 = vld [vmem:[#allocation26_spill] sm:$0xff] }
 0x2c8   :  { %v10862_v51 = vpop.xlane.xlu0 %1625  ;;  %2050 = vadd.xlane.f32.xlu1 %v2049_v11  ;;  %8525 = vmatprep.subr.mxu1 %v4249_v21  ;;  %v17961_v11 = vld [vmem:[#allocation62_spill] sm:$0xff] }
 0x2c9   :  { %17956 = vst [vmem:[#allocation170_spill] sm:$0xff] %v10862_v51  ;;  %v10868_v0 = vpop.xlane.xlu1 %1658  ;;  %8526 = vmatpush3.msra.mxu1 %v4249_v21  ;;  %v2040_v26 = vsel %vm1386_vm1, %v1818_v52, 0.0  ;;  %18116 = vst [vmem:[#allocation141_spill] sm:$0xff] %v11519_v35 }
 0x2ca   :  { %17957 = vst [vmem:[#allocation171_spill] sm:$0xff] %v10868_v0  ;;  %v1820_v0 = vmul.f32 %v17961_v11, %v17961_v11  ;;  %v1822_v11 = vmul.f32 %v17965_v50, %v17965_v50  ;;  %v1824_v50 = vmul.f32 %v9915_v54, %v9915_v54  ;;  %v17972_v54 = vld [vmem:[#allocation72_spill] sm:$0xff] }
 0x2cb   :  { %2035 = vadd.xlane.f32.xlu0 %v2034_v37  ;;  %v9073_v37 = vld [vmem:[#allocation2 + $0x8] sm:$0xff]  ;;  %v1826_v16 = vmul.f32 %v17972_v54, %v17972_v54  ;;  %v17976_v54 = vld [vmem:[#allocation58_spill] sm:$0xff] }
 0x2cc   :  { %v10872_v51 = vpop.xlane.xlu0 %1595  ;;  %2056 = vadd.xlane.f32.xlu1 %v2055_v10  ;;  %8528 = vmatmul.mubr.msk.f32.vlgmr.msra.gmra.mxu1 %vm72_vm0, %v9073_v37  ;;  %v17963_v10 = vld [vmem:[#allocation52_spill] sm:$0xff]  ;;  %v2046_v52 = vsel %vm1386_vm1, %v1820_v0, 0.0  ;;  %v9075_v37 = vld [vmem:[#allocation2 + $0x18] sm:$0xff]  ;;  %v2052_v0 = vsel %vm1386_vm1, %v1822_v11, 0.0  ;;  %v2058_v11 = vsel %vm1386_vm1, %v1824_v50, 0.0 }
 0x2cd   :  { %17959 = vst [vmem:[#allocation172_spill] sm:$0xff] %v10872_v51  ;;  %v10878_v9 = vpop.xlane.xlu1 %1628  ;;  %8530 = vmatprep.mubr.msk.f32.mxu1 %vm72_vm0, %v9074_v17  ;;  %v2061_v51 = vsel %vm1386_vm1, %v1825_v25, 0.0  ;;  %v1827_v21 = vmul.f32 %v17963_v10, %v17963_v10  ;;  %v2064_v50 = vsel %vm1386_vm1, %v1826_v16, 0.0  ;;  %v18154_v10 = vld [vmem:[#allocation154_spill] sm:$0xff] }
 0x2ce   :  { %17960 = vst [vmem:[#allocation173_spill] sm:$0xff] %v10878_v9 }
 0x2cf   :  { %2041 = vadd.xlane.f32.xlu0 %v2040_v26  ;;  %v9076_v26 = vld [vmem:[#allocation2 + $0x20] sm:$0xff]  ;;  %v2067_v25 = vsel %vm1386_vm1, %v1827_v21, 0.0 }
 0x2d0   :  { %v10884_v49 = vpop.xlane.xlu0 %1601  ;;  %2062 = vadd.xlane.f32.xlu1 %v2061_v51  ;;  %8531 = vmatmul.mubr.msk.f32.gmra.mxu1 %vm72_vm0, %v9075_v37  ;;  %v9077_v37 = vld [vmem:[#allocation2 + $0x28] sm:$0xff] }
 0x2d1   :  { %17962 = vst [vmem:[#allocation174_spill] sm:$0xff] %v10884_v49  ;;  %v10890_v9 = vpop.xlane.xlu1 %1634  ;;  %8533 = vmatprep.mubr.msk.f32.mxu1 %vm72_vm0, %v9076_v26  ;;  %v17967_v49 = vld [vmem:[#allocation53_spill] sm:$0xff] }
 0x2d2   :  { %17964 = vst [vmem:[#allocation175_spill] sm:$0xff] %v10890_v9  ;;  %v1829_v51 = vmul.f32 %v17967_v49, %v17967_v49  ;;  %v18159_v49 = vld [vmem:[#allocation155_spill] sm:$0xff] }
 0x2d3   :  { %2047 = vadd.xlane.f32.xlu0 %v2046_v52  ;;  %v9078_v52 = vld [vmem:[#allocation2 + $0x30] sm:$0xff] }
 0x2d4   :  { %v10896_v17 = vpop.xlane.xlu0 %1655  ;;  %2068 = vadd.xlane.f32.xlu1 %v2067_v25  ;;  %8534 = vmatmul.mubr.msk.f32.gmra.mxu1 %vm72_vm0, %v9077_v37  ;;  %v2073_v21 = vsel %vm1386_vm1, %v1829_v51, 0.0  ;;  %v9079_v37 = vld [vmem:[#allocation2 + $0x38] sm:$0xff] }
 0x2d5   :  { %17966 = vst [vmem:[#allocation176_spill] sm:$0xff] %v10896_v17  ;;  %v10902_v9 = vpop.xlane.xlu1 %1664  ;;  %8536 = vmatprep.mubr.msk.f32.mxu1 %vm72_vm0, %v9078_v52  ;;  %v17970_v17 = vld [vmem:[#allocation59_spill] sm:$0xff] }
 0x2d6   :  { %17968 = vst [vmem:[#allocation177_spill] sm:$0xff] %v10902_v9  ;;  %v1831_v25 = vmul.f32 %v17970_v17, %v17970_v17  ;;  %v1828_v17 = vmul.f32 %v17976_v54, %v17976_v54 }
 0x2d7   :  { %2053 = vadd.xlane.f32.xlu0 %v2052_v0  ;;  %v9080_v0 = vld [vmem:[#allocation2 + $0x40] sm:$0xff] }
 0x2d8   :  { %v10908_v26 = vpop.xlane.xlu0 %1661  ;;  %2074 = vadd.xlane.f32.xlu1 %v2073_v21  ;;  %8537 = vmatmul.mubr.msk.f32.gmra.mxu1 %vm72_vm0, %v9079_v37  ;;  %v2079_v51 = vsel %vm1386_vm1, %v1831_v25, 0.0  ;;  %v9081_v37 = vld [vmem:[#allocation2 + $0x48] sm:$0xff]  ;;  %v2070_v16 = vsel %vm1386_vm1, %v1828_v17, 0.0 }
 0x2d9   :  { %17969 = vst [vmem:[#allocation178_spill] sm:$0xff] %v10908_v26  ;;  %v10914_v9 = vpop.xlane.xlu1 %1670  ;;  %8539 = vmatprep.mubr.msk.f32.mxu1 %vm72_vm0, %v9080_v0  ;;  %v17974_v26 = vld [vmem:[#allocation61_spill] sm:$0xff] }
 0x2da   :  { %17971 = vst [vmem:[#allocation179_spill] sm:$0xff] %v10914_v9  ;;  %v1833_v21 = vmul.f32 %v17974_v26, %v17974_v26  ;;  %v17980_v26 = vld [vmem:[#allocation60_spill] sm:$0xff] }
 0x2db   :  { %2059 = vadd.xlane.f32.xlu0 %v2058_v11  ;;  %v9082_v11 = vld [vmem:[#allocation2 + $0x50] sm:$0xff]  ;;  %v1830_v54 = vmul.f32 %v17980_v26, %v17980_v26 }
 0x2dc   :  { %v10920_v52 = vpop.xlane.xlu0 %1631  ;;  %2080 = vadd.xlane.f32.xlu1 %v2079_v51  ;;  %8540 = vmatmul.mubr.msk.f32.gmra.mxu1 %vm72_vm0, %v9081_v37  ;;  %v2085_v25 = vsel %vm1386_vm1, %v1833_v21, 0.0  ;;  %v9083_v37 = vld [vmem:[#allocation2 + $0x58] sm:$0xff] }
 0x2dd   :  { %17973 = vst [vmem:[#allocation180_spill] sm:$0xff] %v10920_v52  ;;  %v10926_v9 = vpop.xlane.xlu1 %1640  ;;  %8542 = vmatprep.mubr.msk.f32.mxu1 %vm72_vm0, %v9082_v11  ;;  %v17978_v52 = vld [vmem:[#allocation71_spill] sm:$0xff]  ;;  %v2076_v17 = vsel %vm1386_vm1, %v1830_v54, 0.0 }
 0x2de   :  { %17975 = vst [vmem:[#allocation181_spill] sm:$0xff] %v10926_v9  ;;  %v1835_v51 = vmul.f32 %v17978_v52, %v17978_v52  ;;  %v17984_v52 = vld [vmem:[#allocation66_spill] sm:$0xff] }
 0x2df   :  { %2065 = vadd.xlane.f32.xlu0 %v2064_v50  ;;  %v9084_v50 = vld [vmem:[#allocation2 + $0x60] sm:$0xff]  ;;  %v1832_v26 = vmul.f32 %v17984_v52, %v17984_v52  ;;  %v17999_v52 = vld [vmem:[#allocation86_spill] sm:$0xff] }
 0x2e0   :  { %v10932_v0 = vpop.xlane.xlu0 %1637  ;;  %2086 = vadd.xlane.f32.xlu1 %v2085_v25  ;;  %8543 = vmatmul.mubr.msk.f32.gmra.mxu1 %vm72_vm0, %v9083_v37  ;;  %v2091_v21 = vsel %vm1386_vm1, %v1835_v51, 0.0  ;;  %v9085_v37 = vld [vmem:[#allocation2 + $0x68] sm:$0xff] }
 0x2e1   :  { %17977 = vst [vmem:[#allocation182_spill] sm:$0xff] %v10932_v0  ;;  %v10938_v9 = vpop.xlane.xlu1 %1646  ;;  %8545 = vmatprep.mubr.msk.f32.mxu1 %vm72_vm0, %v9084_v50  ;;  %v17982_v0 = vld [vmem:[#allocation73_spill] sm:$0xff]  ;;  %v2082_v54 = vsel %vm1386_vm1, %v1832_v26, 0.0 }
 0x2e2   :  { %17979 = vst [vmem:[#allocation183_spill] sm:$0xff] %v10938_v9  ;;  %v1837_v25 = vmul.f32 %v17982_v0, %v17982_v0 }
 0x2e3   :  { %2071 = vadd.xlane.f32.xlu0 %v2070_v16  ;;  %v9086_v16 = vld [vmem:[#allocation2 + $0x70] sm:$0xff] }
 0x2e4   :  { %v10944_v11 = vpop.xlane.xlu0 %1667  ;;  %2092 = vadd.xlane.f32.xlu1 %v2091_v21  ;;  %8546 = vmatmul.mubr.msk.f32.gmra.mxu1 %vm72_vm0, %v9085_v37  ;;  %v2097_v51 = vsel %vm1386_vm1, %v1837_v25, 0.0  ;;  %v1839_v21 = vmul.f32 %v10012_v63, %v10012_v63  ;;  %v9087_v37 = vld [vmem:[#allocation2 + $0x78] sm:$0xff]  ;;  %v1841_v25 = vmul.f32 %v10050_v13, %v10050_v13  ;;  %v17991_v63 = vld [vmem:[#allocation67_spill] sm:$0xff]  ;;  %v17993_v13 = vld [vmem:[#allocation69_spill] sm:$0xff] }
 0x2e5   :  { %17981 = vst [vmem:[#allocation184_spill] sm:$0xff] %v10944_v11  ;;  %v10950_v9 = vpop.xlane.xlu1 %1700  ;;  %8548 = vmatprep.mubr.msk.f32.mxu1 %vm72_vm0, %v9086_v16  ;;  %v17987_v11 = vld [vmem:[#allocation68_spill] sm:$0xff] }
 0x2e6   :  { %17983 = vst [vmem:[#allocation185_spill] sm:$0xff] %v10950_v9  ;;  %v1834_v0 = vmul.f32 %v17987_v11, %v17987_v11  ;;  %v2103_v16 = vsel %vm1386_vm1, %v1839_v21, 0.0  ;;  %v1838_v21 = vmul.f32 %v10022_v3, %v10022_v3  ;;  %v17995_v3 = vld [vmem:[#allocation74_spill] sm:$0xff] }
 0x2e7   :  { %2077 = vadd.xlane.f32.xlu0 %v2076_v17 }
 0x2e8   :  { %v10956_v50 = vpop.xlane.xlu0 %1673  ;;  %2098 = vadd.xlane.f32.xlu1 %v2097_v51  ;;  %8549 = vmatmul.mubr.msk.f32.gmra.mxu1 %vm72_vm0, %v9087_v37  ;;  %v2088_v51 = vsel %vm1386_vm1, %v1834_v0, 0.0  ;;  %v1843_v37 = vmul.f32 %v17991_v63, %v17991_v63  ;;  %v1840_v0 = vmul.f32 %v10132_v39, %v10132_v39  ;;  %v1851_v39 = vmul.f32 %v10128_v45, %v10128_v45 }
 0x2e9   :  { %17985 = vst [vmem:[#allocation186_spill] sm:$0xff] %v10956_v50  ;;  %v10962_v9 = vpop.xlane.xlu1 %1706 }
 0x2ea   :  { %17986 = vst [vmem:[#allocation187_spill] sm:$0xff] %v10962_v9  ;;  %v17990_v9 = vld [vmem:[#allocation78_spill] sm:$0xff]  ;;  %v2106_v45 = vsel %vm1386_vm1, %v1840_v0, 0.0  ;;  %v1857_v0 = vmul.f32 %v10260_v2, %v10260_v2 }
 0x2eb   :  { %2083 = vadd.xlane.f32.xlu0 %v2082_v54  ;;  %v1836_v50 = vmul.f32 %v17990_v9, %v17990_v9  ;;  %v18002_v2 = vld [vmem:[#allocation94_spill] sm:$0xff] }
 0x2ec   :  { %v10967_v17 = vpop.xlane.xlu0 %1643  ;;  %2104 = vadd.xlane.f32.xlu1 %v2103_v16  ;;  %v1845_v16 = vmul.f32 %v17993_v13, %v17993_v13  ;;  %v1844_v13 = vmul.f32 %v17995_v3, %v17995_v3 }
 0x2ed   :  { %17988 = vst [vmem:[#allocation188_spill] sm:$0xff] %v10967_v17  ;;  %v10973_v26 = vpop.xlane.xlu1 %1676  ;;  %v2109_v17 = vsel %vm1386_vm1, %v1841_v25, 0.0  ;;  %v2094_v25 = vsel %vm1386_vm1, %v1836_v50, 0.0 }
 0x2ee   :  { %17989 = vst [vmem:[#allocation189_spill] sm:$0xff] %v10973_v26  ;;  %v1842_v26 = vmul.f32 %v10167_v6, %v10167_v6  ;;  %v1853_v6 = vmul.f32 %v10161_v29, %v10161_v29  ;;  %v2121_v3 = vsel %vm1386_vm1, %v1845_v16, 0.0  ;;  %v11026_v16 = vsel %vm1386_vm1, %v1851_v39, 0.0 }
 0x2ef   :  { %2089 = vadd.xlane.f32.xlu0 %v2088_v51  ;;  %v1847_v51 = vmul.f32 %v9964_v61, %v9964_v61  ;;  %v17996_v61 = vld [vmem:[#allocation76_spill] sm:$0xff] }
 0x2f0   :  { %v10979_v54 = vpop.xlane.xlu0 %1649  ;;  %2110 = vadd.xlane.f32.xlu1 %v2109_v17  ;;  %v2115_v17 = vsel %vm1386_vm1, %v1843_v37, 0.0  ;;  %v1846_v11 = vmul.f32 %v17996_v61, %v17996_v61  ;;  %v1855_v37 = vmul.f32 %v10246_v28, %v10246_v28  ;;  %v2112_v61 = vsel %vm1386_vm1, %v1842_v26, 0.0 }
 0x2f1   :  { %17992 = vst [vmem:[#allocation190_spill] sm:$0xff] %v10979_v54  ;;  %v1849_v54 = vmul.f32 %v9987_v57, %v9987_v57  ;;  %v10995_v9 = vpop.xlane.xlu1 %1682  ;;  %v17997_v57 = vld [vmem:[#allocation83_spill] sm:$0xff]  ;;  %v1863_v28 = vmul.f32 %v18002_v2, %v18002_v2  ;;  %v1867_v2 = vmul.f32 %v10381_v33, %v10381_v33 }
 0x2f2   :  { %17994 = vst [vmem:[#allocation191_spill] sm:$0xff] %v10995_v9  ;;  %v1848_v50 = vmul.f32 %v17997_v57, %v17997_v57  ;;  %v2100_v9 = vsel %vm1386_vm1, %v1838_v21, 0.0  ;;  %v1850_v57 = vmul.f32 %v17999_v52, %v17999_v52  ;;  %v11023_v21 = vsel %vm1386_vm1, %v1844_v13, 0.0  ;;  %v18006_v52 = vld [vmem:[#allocation97_spill] sm:$0xff] }
 0x2f3   :  { %2095 = vadd.xlane.f32.xlu0 %v2094_v25  ;;  %v2127_v25 = vsel %vm1386_vm1, %v1847_v51, 0.0  ;;  %v2133_v29 = vsel %vm1386_vm1, %v1849_v54, 0.0  ;;  %v1852_v51 = vmul.f32 %v10237_v58, %v10237_v58  ;;  %v11033_v26 = vsel %vm1386_vm1, %v1846_v11, 0.0 }
 0x2f4   :  { %v11008_v63 = vpop.xlane.xlu0 %1703  ;;  %2116 = vadd.xlane.f32.xlu1 %v2115_v17  ;;  %v11036_v54 = vsel %vm1386_vm1, %v1853_v6, 0.0  ;;  %v11039_v17 = vsel %vm1386_vm1, %v1848_v50, 0.0  ;;  %v1859_v13 = vmul.f32 %v10086_v5, %v10086_v5  ;;  %v1861_v11 = vmul.f32 %v10119_v55, %v10119_v55 }
 0x2f5   :  { %17998 = vst [vmem:[#allocation192_spill] sm:$0xff] %v11008_v63  ;;  %v11020_v63 = vpop.xlane.xlu1 %1712  ;;  %v1856_v6 = vmul.f32 %v10373_v43, %v10373_v43  ;;  %v11055_v50 = vsel %vm1386_vm1, %v1850_v57, 0.0  ;;  %v11066_v55 = vsel %vm1386_vm1, %v1857_v0, 0.0  ;;  %v11069_v43 = vsel %vm1386_vm1, %v1852_v51, 0.0 }
 0x2f6   :  { %18000 = vst [vmem:[#allocation193_spill] sm:$0xff] %v11020_v63  ;;  %v11046_v63 = vsel %vm1386_vm1, %v1855_v37, 0.0  ;;  %v1858_v37 = vmul.f32 %v10395_v12, %v10395_v12  ;;  %v11076_v12 = vsel %vm1386_vm1, %v1859_v13, 0.0  ;;  %v1869_v0 = vmul.f32 %v10404_v36, %v10404_v36 }
 0x2f7   :  { %2101 = vadd.xlane.f32.xlu0 %v2100_v9  ;;  %v1854_v9 = vmul.f32 %v10268_v18, %v10268_v18  ;;  %v11090_v33 = vsel %vm1386_vm1, %v1861_v11, 0.0  ;;  %v1871_v13 = vmul.f32 %v10487_v53, %v10487_v53  ;;  %v11098_v36 = vsel %vm1386_vm1, %v1863_v28, 0.0 }
 0x2f8   :  { %v11043_v39 = vpop.xlane.xlu0 %1709  ;;  %2122 = vadd.xlane.f32.xlu1 %v2121_v3  ;;  %v18005_v3 = vld [vmem:[#allocation93_spill] sm:$0xff]  ;;  %v11114_v53 = vsel %vm1386_vm1, %v1867_v2, 0.0  ;;  %v1873_v28 = vmul.f32 %v10524_v20, %v10524_v20 }
 0x2f9   :  { %18001 = vst [vmem:[#allocation194_spill] sm:$0xff] %v11043_v39  ;;  %v18003_v39 = vld [vmem:[#allocation96_spill] sm:$0xff]  ;;  %v11063_v18 = vpop.xlane.xlu1 %1718  ;;  %v1860_v57 = vmul.f32 %v18005_v3, %v18005_v3  ;;  %v11087_v3 = vsel %vm1386_vm1, %v1854_v9, 0.0  ;;  %v18009_v9 = vld [vmem:[#allocation11_spill] sm:$0xff]  ;;  %v11134_v20 = vsel %vm1386_vm1, %v1871_v13, 0.0  ;;  %v1874_v13 = vmul.f32 %v10609_v15, %v10609_v15 }
 0x2fa   :  { %v1865_v58 = vmul.f32 %v18003_v39, %v18003_v39  ;;  %18004 = vst [vmem:[#allocation195_spill] sm:$0xff] %v11063_v18  ;;  %v1862_v39 = vmul.f32 %v18006_v52, %v18006_v52  ;;  %v18007_v18 = vld [vmem:[#allocation43_spill] sm:$0xff]  ;;  %v1866_v11 = vmul.f32 %v18009_v9, %v18009_v9 }
 0x2fb   :  { %2107 = vadd.xlane.f32.xlu0 %v2106_v45  ;;  %v1864_v51 = vmul.f32 %v18007_v18, %v18007_v18  ;;  %v11093_v45 = vsel %vm1386_vm1, %v1856_v6, 0.0  ;;  %v11101_v18 = vsel %vm1386_vm1, %v1858_v37, 0.0  ;;  %v11111_v6 = vsel %vm1386_vm1, %v1860_v57, 0.0  ;;  %v18011_v57 = vld [vmem:[#allocation104_spill] sm:$0xff] }
 0x2fc   :  { %v11084_v5 = vpop.xlane.xlu0 %1679  ;;  %2128 = vadd.xlane.f32.xlu1 %v2127_v25  ;;  %v1868_v25 = vmul.f32 %v10474_v59, %v10474_v59  ;;  %v11124_v37 = vsel %vm1386_vm1, %v1869_v0, 0.0  ;;  %v1875_v2 = vmul.f32 %v18011_v57, %v18011_v57  ;;  %v1872_v0 = vmul.f32 %v10587_v24, %v10587_v24 }
 0x2fd   :  { %18008 = vst [vmem:[#allocation196_spill] sm:$0xff] %v11084_v5  ;;  %v11104_v5 = vsel %vm1386_vm1, %v1865_v58, 0.0  ;;  %v11108_v52 = vpop.xlane.xlu1 %1688  ;;  %v11121_v58 = vsel %vm1386_vm1, %v1862_v39, 0.0  ;;  %v1877_v39 = vmul.f32 %v10356_v23, %v10356_v23  ;;  %v1879_v59 = vmul.f32 %v10426_v56, %v10426_v56 }
 0x2fe   :  { %18010 = vst [vmem:[#allocation197_spill] sm:$0xff] %v11108_v52  ;;  %v11127_v52 = vsel %vm1386_vm1, %v1864_v51, 0.0  ;;  %v11143_v51 = vsel %vm1386_vm1, %v1866_v11, 0.0  ;;  %v11154_v23 = vsel %vm1386_vm1, %v1873_v28, 0.0  ;;  %v11157_v24 = vsel %vm1386_vm1, %v1868_v25, 0.0 }
 0x2ff   :  { %2113 = vadd.xlane.f32.xlu0 %v2112_v61  ;;  %v1870_v61 = vmul.f32 %v10507_v40, %v10507_v40  ;;  %18015 = vst [vmem:[#allocation200_spill] sm:$0xff] %v11154_v23  ;;  %18016 = vst [vmem:[#allocation201_spill] sm:$0xff] %v11157_v24  ;;  %v1883_v56 = vmul.f32 %v10590_v46, %v10590_v46  ;;  %v11165_v15 = vsel %vm1386_vm1, %v1875_v2, 0.0  ;;  %v18019_v23 = vld [vmem:[#allocation46_spill] sm:$0xff]  ;;  %v11179_v46 = vsel %vm1386_vm1, %v1877_v39, 0.0 }
 0x300   :  { %v11131_v9 = vpop.xlane.xlu0 %1685  ;;  %2134 = vadd.xlane.f32.xlu1 %v2133_v29  ;;  %v18017_v29 = vld [vmem:[#allocation109_spill] sm:$0xff]  ;;  %v1885_v28 = vmul.f32 %v10618_v19, %v10618_v19  ;;  %v1880_v25 = vmul.f32 %v18019_v23, %v18019_v23  ;;  %v1887_v2 = vmul.f32 %v10683_v30, %v10683_v30  ;;  %v11188_v19 = vsel %vm1386_vm1, %v1879_v59, 0.0 }
 0x301   :  { %18012 = vst [vmem:[#allocation198_spill] sm:$0xff] %v11131_v9  ;;  %v18013_v9 = vld [vmem:[#allocation22_spill] sm:$0xff]  ;;  %v11151_v40 = vpop.xlane.xlu1 %1694  ;;  %v1876_v11 = vmul.f32 %v18017_v29, %v18017_v29  ;;  %v11176_v29 = vsel %vm1386_vm1, %v1870_v61, 0.0  ;;  %v11191_v23 = vsel %vm1386_vm1, %v1874_v13, 0.0  ;;  %v11204_v30 = vsel %vm1386_vm1, %v1883_v56, 0.0 }
 0x302   :  { %v1881_v57 = vmul.f32 %v18013_v9, %v18013_v9  ;;  %18014 = vst [vmem:[#allocation199_spill] sm:$0xff] %v11151_v40  ;;  %v18018_v9 = vld [vmem:[#allocation111_spill] sm:$0xff]  ;;  %v1889_v59 = vmul.f32 %v10698_v41, %v10698_v41  ;;  %v11215_v13 = vsel %vm1386_vm1, %v1885_v28, 0.0  ;;  %v11225_v41 = vsel %vm1386_vm1, %v1887_v2, 0.0 }
 0x303   :  { %2119 = vadd.xlane.f32.xlu0 %v11023_v21  ;;  %v1878_v40 = vmul.f32 %v18018_v9, %v18018_v9  ;;  %v11182_v21 = vsel %vm1386_vm1, %v1872_v0, 0.0  ;;  %v11201_v0 = vsel %vm1386_vm1, %v1876_v11, 0.0  ;;  %v11218_v11 = vsel %vm1386_vm1, %v1880_v25, 0.0  ;;  %18025 = vst [vmem:[#allocation205_spill] sm:$0xff] %v11225_v41 }
 0x304   :  { %v11173_v24 = vpop.xlane.xlu0 %1715  ;;  %2140 = vadd.xlane.f32.xlu1 %v11026_v16  ;;  %v11194_v61 = vsel %vm1386_vm1, %v1881_v57, 0.0  ;;  %v1884_v16 = vmul.f32 %v10680_v7, %v10680_v7  ;;  %v1888_v28 = vmul.f32 %v10741_v60, %v10741_v60  ;;  %v1895_v7 = vmul.f32 %v10638_v62, %v10638_v62  ;;  %v18030_v62 = vld [vmem:[#allocation82_spill] sm:$0xff] }
 0x305   :  { %18020 = vst [vmem:[#allocation202_spill] sm:$0xff] %v11173_v24  ;;  %v18021_v24 = vld [vmem:[#allocation13_spill] sm:$0xff]  ;;  %v11198_v9 = vpop.xlane.xlu1 %1748  ;;  %v11212_v57 = vsel %vm1386_vm1, %v1878_v40, 0.0  ;;  %v1893_v40 = vmul.f32 %v10573_v1, %v10573_v1  ;;  %v1890_v2 = vmul.f32 %v10756_v31, %v10756_v31  ;;  %v11246_v1 = vsel %vm1386_vm1, %v1889_v59, 0.0 }
 0x306   :  { %v1882_v39 = vmul.f32 %v18021_v24, %v18021_v24  ;;  %18022 = vst [vmem:[#allocation203_spill] sm:$0xff] %v11198_v9  ;;  %v18023_v24 = vld [vmem:[#allocation24_spill] sm:$0xff]  ;;  %18028 = vst [vmem:[#allocation208_spill] sm:$0xff] %v11246_v1  ;;  %v11249_v60 = vsel %vm1386_vm1, %v1884_v16, 0.0  ;;  %v1896_v59 = vmul.f32 %v10710_v4, %v10710_v4  ;;  %v1898_v16 = vmul.f32 %v10726_v42, %v10726_v42  ;;  %v18032_v31 = vld [vmem:[#allocation85_spill] sm:$0xff] }
 0x307   :  { %2125 = vadd.xlane.f32.xlu0 %v11033_v26  ;;  %v1891_v56 = vmul.f32 %v18023_v24, %v18023_v24  ;;  %v1886_v26 = vmul.f32 %v10695_v14, %v10695_v14  ;;  %v1897_v14 = vmul.f32 %v10664_v22, %v10664_v22  ;;  %18029 = vst [vmem:[#allocation209_spill] sm:$0xff] %v11249_v60  ;;  %v11285_v42 = vsel %vm1386_vm1, %v1895_v7, 0.0  ;;  %v18042_v4 = vld [vmem:[#allocation95_spill] sm:$0xff]  ;;  %v18076_v60 = vld [vmem:[#allocation40_spill] sm:$0xff] }
 0x308   :  { %v11222_v9 = vpop.xlane.xlu0 %1721  ;;  %2146 = vadd.xlane.f32.xlu1 %v11036_v54  ;;  %v11235_v25 = vsel %vm1386_vm1, %v1882_v39, 0.0  ;;  %v1892_v54 = vmul.f32 %v10633_v27, %v10633_v27  ;;  %v1894_v39 = vmul.f32 %v10652_v8, %v10652_v8  ;;  %18039 = vst [vmem:[#allocation213_spill] sm:$0xff] %v11285_v42  ;;  %v18062_v42 = vld [vmem:[#allocation12_spill] sm:$0xff]  ;;  %v11399_v1 = vmul.f32 0.03125, %v18073_v34 }
 0x309   :  { %18024 = vst [vmem:[#allocation204_spill] sm:$0xff] %v11222_v9  ;;  %18026 = vst [vmem:[#allocation206_spill] sm:$0xff] %v11235_v25  ;;  %v11243_v24 = vpop.xlane.xlu1 %1754  ;;  %v11256_v9 = vmul.f32 0.03125, %v18030_v62  ;;  %v11260_v22 = vsel %vm1386_vm1, %v1891_v56, 0.0  ;;  %v11272_v8 = vsel %vm1386_vm1, %v1886_v26, 0.0  ;;  %v11275_v62 = vsel %vm1386_vm1, %v1893_v40, 0.0 }
 0x30a   :  { %18027 = vst [vmem:[#allocation207_spill] sm:$0xff] %v11243_v24  ;;  %18031 = vst [vmem:[#allocation82_spill] sm:$0xff] %v11260_v22  ;;  %v11267_v24 = vmul.f32 0.03125, %v18032_v31  ;;  %v18037_v56 = vld [vmem:[#allocation92_spill] sm:$0xff]  ;;  %v11288_v31 = vsel %vm1386_vm1, %v1890_v2, 0.0  ;;  %v11291_v26 = vsel %vm1386_vm1, %v1897_v14, 0.0 }
 0x30b   :  { %2131 = vadd.xlane.f32.xlu0 %v11039_v17  ;;  %18034 = vst [vmem:[#allocation210_spill] sm:$0xff] %v11272_v8  ;;  %18035 = vst [vmem:[#allocation211_spill] sm:$0xff] %v11275_v62  ;;  %v11278_v17 = vsel %vm1386_vm1, %v1888_v28, 0.0  ;;  %v11281_v22 = vmul.f32 0.03125, %v18037_v56  ;;  %v11294_v40 = vmul.f32 0.03125, %v18042_v4  ;;  %v11302_v56 = vsel %vm1386_vm1, %v1892_v54, 0.0 }
 0x30c   :  { %v11269_v27 = vpop.xlane.xlu0 %1691  ;;  %18036 = vst [vmem:[#allocation212_spill] sm:$0xff] %v11278_v17  ;;  %2152 = vadd.xlane.f32.xlu1 %v11046_v63  ;;  %18040 = vst [vmem:[#allocation214_spill] sm:$0xff] %v11288_v31  ;;  %v11305_v63 = vsel %vm1386_vm1, %v1894_v39, 0.0  ;;  %v11309_v7 = vmul.f32 %v11256_v9, %v11256_v9  ;;  %v18049_v14 = vld [vmem:[#allocation17_spill] sm:$0xff]  ;;  %v11319_v4 = vsel %vm1386_vm1, %v1898_v16, 0.0  ;;  %v11325_v39 = vmul.f32 %v11267_v24, %v11267_v24  ;;  %v18077_v25 = vld [vmem:[#allocation123_spill] sm:$0xff] }
 0x30d   :  { %18033 = vst [vmem:[#allocation85_spill] sm:$0xff] %v11269_v27  ;;  %18038 = vst [vmem:[#allocation92_spill] sm:$0xff] %v11281_v22  ;;  %v18044_v27 = vld [vmem:[#allocation16_spill] sm:$0xff]  ;;  %v11299_v17 = vpop.xlane.xlu1 %1724  ;;  %v11312_v2 = vmul.f32 0.03125, %v18049_v14  ;;  %v18053_v54 = vld [vmem:[#allocation25_spill] sm:$0xff]  ;;  %v11339_v16 = vmul.f32 %v11281_v22, %v11281_v22  ;;  %v11369_v62 = vmul.f32 0.03125, %v18062_v42 }
 0x30e   :  { %18041 = vst [vmem:[#allocation215_spill] sm:$0xff] %v11291_v26  ;;  %18043 = vst [vmem:[#allocation95_spill] sm:$0xff] %v11294_v40  ;;  %v11297_v28 = vmul.f32 0.03125, %v18044_v27  ;;  %v11316_v27 = vsel %vm1386_vm1, %v1896_v59, 0.0  ;;  %v18056_v14 = vld [vmem:[#allocation108_spill] sm:$0xff]  ;;  %v11435_v22 = vmul.f32 0.03125, %v18086_v48 }
 0x30f   :  { %18046 = vst [vmem:[#allocation216_spill] sm:$0xff] %v11299_v17  ;;  %18047 = vst [vmem:[#allocation217_spill] sm:$0xff] %v11302_v56  ;;  %2137 = vadd.xlane.f32.xlu0 %v11055_v50  ;;  %v11331_v26 = vmul.f32 0.03125, %v18056_v14  ;;  %v18064_v14 = vld [vmem:[#allocation42_spill] sm:$0xff]  ;;  %v11417_v34 = vmul.f32 %v11369_v62, %v11369_v62  ;;  %v18094_v48 = vld [vmem:[#allocation129_spill] sm:$0xff] }
 0x310   :  { %18045 = vst [vmem:[#allocation16_spill] sm:$0xff] %v11297_v28  ;;  %18048 = vst [vmem:[#allocation218_spill] sm:$0xff] %v11305_v63  ;;  %v18054_v63 = vld [vmem:[#allocation20_spill] sm:$0xff]  ;;  %v11333_v50 = vpop.xlane.xlu0 %1697  ;;  %2158 = vadd.xlane.f32.xlu1 %v11066_v55  ;;  %v11355_v59 = vmul.f32 %v11297_v28, %v11297_v28  ;;  %v11366_v55 = vmul.f32 %v11312_v2, %v11312_v2  ;;  %v11372_v8 = vmul.f32 0.03125, %v18064_v14  ;;  %v18069_v14 = vld [vmem:[#allocation38_spill] sm:$0xff] }
 0x311   :  { %18050 = vst [vmem:[#allocation17_spill] sm:$0xff] %v11312_v2  ;;  %18051 = vst [vmem:[#allocation219_spill] sm:$0xff] %v11316_v27  ;;  %v11328_v56 = vmul.f32 0.03125, %v18054_v63  ;;  %v11349_v63 = vmul.f32 %v11294_v40, %v11294_v40  ;;  %v11360_v17 = vpop.xlane.xlu1 %1730  ;;  %v11385_v47 = vmul.f32 %v11331_v26, %v11331_v26 }
 0x312   :  { %18052 = vst [vmem:[#allocation220_spill] sm:$0xff] %v11319_v4  ;;  %18057 = vst [vmem:[#allocation20_spill] sm:$0xff] %v11333_v50  ;;  %v18058_v4 = vld [vmem:[#allocation21_spill] sm:$0xff]  ;;  %v18060_v50 = vld [vmem:[#allocation112_spill] sm:$0xff] }
 0x313   :  { %18055 = vst [vmem:[#allocation25_spill] sm:$0xff] %v11328_v56  ;;  %v11344_v27 = vmul.f32 0.03125, %v18058_v4  ;;  %v11358_v31 = vmul.f32 0.03125, %v18060_v50  ;;  %18061 = vst [vmem:[#allocation21_spill] sm:$0xff] %v11360_v17  ;;  %2143 = vadd.xlane.f32.xlu0 %v11069_v43  ;;  %v11379_v17 = vmul.f32 %v11328_v56, %v11328_v56  ;;  %v18071_v50 = vld [vmem:[#allocation120_spill] sm:$0xff]  ;;  %v11423_v56 = vmul.f32 %v11372_v8, %v11372_v8  ;;  %v18098_v4 = vld [vmem:[#allocation31_spill] sm:$0xff] }
 0x314   :  { %18063 = vst [vmem:[#allocation112_spill] sm:$0xff] %v11369_v62  ;;  %18065 = vst [vmem:[#allocation12_spill] sm:$0xff] %v11372_v8  ;;  %v11387_v42 = vpop.xlane.xlu0 %1751  ;;  %v11396_v2 = vmul.f32 0.03125, %v18071_v50  ;;  %2164 = vadd.xlane.f32.xlu1 %v11076_v12  ;;  %v18089_v62 = vld [vmem:[#allocation117_spill] sm:$0xff]  ;;  %v18090_v12 = vld [vmem:[#allocation118_spill] sm:$0xff]  ;;  %v11456_v8 = vmul.f32 0.03125, %v18094_v48 }
 0x315   :  { %18059 = vst [vmem:[#allocation108_spill] sm:$0xff] %v11344_v27  ;;  %18066 = vst [vmem:[#allocation42_spill] sm:$0xff] %v11379_v17  ;;  %v11393_v43 = vmul.f32 %v11344_v27, %v11344_v27  ;;  %v11413_v50 = vpop.xlane.xlu1 %1760  ;;  %v18082_v27 = vld [vmem:[#allocation124_spill] sm:$0xff]  ;;  %v18088_v17 = vld [vmem:[#allocation15_spill] sm:$0xff]  ;;  %v18091_v41 = vcombine.low %v18089_v62, %v18090_v12 }
 0x316   :  { %18068 = vst [vmem:[#allocation221_spill] sm:$0xff] %v11387_v42  ;;  %18072 = vst [vmem:[#allocation120_spill] sm:$0xff] %v11396_v2  ;;  %v11406_v42 = vmul.f32 %v11358_v31, %v11358_v31  ;;  %v11426_v28 = vmul.f32 0.03125, %v18082_v27  ;;  %v18104_v62 = vld [vmem:[#allocation32_spill] sm:$0xff] }
 0x317   :  { %18070 = vst [vmem:[#allocation38_spill] sm:$0xff] %v11393_v43  ;;  %18074 = vst [vmem:[#allocation121_spill] sm:$0xff] %v11399_v1  ;;  %v11411_v43 = vmul.f32 0.03125, %v18077_v25  ;;  %2149 = vadd.xlane.f32.xlu0 %v11087_v3  ;;  %v11447_v3 = vmul.f32 %v11396_v2, %v11396_v2  ;;  %v11468_v25 = vmul.f32 0.03125, %v18098_v4  ;;  %v18117_v2 = vld [vmem:[#allocation142_spill] sm:$0xff] }
 0x318   :  { %18079 = vst [vmem:[#allocation123_spill] sm:$0xff] %v11413_v50  ;;  %18081 = vst [vmem:[#allocation222_spill] sm:$0xff] %v11423_v56  ;;  %v18084_v50 = vld [vmem:[#allocation27_spill] sm:$0xff]  ;;  %v11437_v44 = vpop.xlane.xlu0 %1757  ;;  %v11443_v56 = vrot.slane %v18091_v41, %v18088_v17  ;;  %2170 = vadd.xlane.f32.xlu1 %v11090_v33  ;;  %v11474_v48 = vmul.f32 %v11426_v28, %v11426_v28  ;;  %v18101_v33 = vld [vmem:[#allocation49_spill] sm:$0xff] }
 0x319   :  { %18078 = vst [vmem:[#allocation40_spill] sm:$0xff] %v11411_v43  ;;  %v11432_v40 = vmul.f32 0.03125, %v18084_v50  ;;  %18087 = vst [vmem:[#allocation27_spill] sm:$0xff] %v11437_v44  ;;  %v11453_v50 = vmul.f32 %v11399_v1, %v11399_v1  ;;  %v11463_v12 = vmul.f32 %v11411_v43, %v11411_v43  ;;  %v18102_v41 = vld [vmem:[#allocation134_spill] sm:$0xff]  ;;  %v18107_v17 = vld [vmem:[#allocation137_spill] sm:$0xff] }
 0x31a   :  { %18092 = vst [vmem:[#allocation127_spill] sm:$0xff] %v11443_v56  ;;  %18095 = vst [vmem:[#allocation117_spill] sm:$0xff] %v11456_v8  ;;  %v11470_v56 = vpop.xlane.xlu1 %1766  ;;  %v11479_v1 = vmul.f32 0.03125, %v18102_v41  ;;  %v11496_v43 = vmul.f32 0.03125, %v18107_v17  ;;  %v18112_v44 = vld [vmem:[#allocation138_spill] sm:$0xff]  ;;  %v11514_v17 = vmul.f32 %v11468_v25, %v11468_v25 }
 0x31b   :  { %18085 = vst [vmem:[#allocation124_spill] sm:$0xff] %v11432_v40  ;;  %18097 = vst [vmem:[#allocation118_spill] sm:$0xff] %v11463_v12  ;;  %v11482_v12 = vmul.f32 0.03125, %v18104_v62  ;;  %2155 = vadd.xlane.f32.xlu0 %v11093_v45  ;;  %v11487_v4 = vmul.f32 %v11432_v40, %v11432_v40  ;;  %v18110_v62 = vld [vmem:[#allocation51_spill] sm:$0xff]  ;;  %v11504_v45 = vmul.f32 %v11456_v8, %v11456_v8  ;;  %v11509_v40 = vmul.f32 0.03125, %v18112_v44 }
 0x31c   :  { %18099 = vst [vmem:[#allocation129_spill] sm:$0xff] %v11468_v25  ;;  %18100 = vst [vmem:[#allocation31_spill] sm:$0xff] %v11470_v56  ;;  %v11493_v56 = vmul.f32 %v11435_v22, %v11435_v22  ;;  %v11498_v41 = vpop.xlane.xlu0 %1727  ;;  %2176 = vadd.xlane.f32.xlu1 %v11098_v36  ;;  %v11528_v44 = vmul.f32 %v11479_v1, %v11479_v1  ;;  %v18137_v36 = vld [vmem:[#allocation147_spill] sm:$0xff] }
 0x31d   :  { %18103 = vst [vmem:[#allocation49_spill] sm:$0xff] %v11479_v1  ;;  %18105 = vst [vmem:[#allocation134_spill] sm:$0xff] %v11482_v12  ;;  %v11534_v8 = vmul.f32 %v11482_v12, %v11482_v12 }
 0x31e   :  { %18106 = vst [vmem:[#allocation32_spill] sm:$0xff] %v11487_v4  ;;  %18108 = vst [vmem:[#allocation137_spill] sm:$0xff] %v11496_v43  ;;  %v11524_v27 = vpop.xlane.xlu1 %1736  ;;  %v18126_v4 = vld [vmem:[#allocation144_spill] sm:$0xff] }
 0x31f   :  { %18109 = vst [vmem:[#allocation223_spill] sm:$0xff] %v11498_v41  ;;  %18111 = vst [vmem:[#allocation51_spill] sm:$0xff] %v11504_v45  ;;  %v11522_v45 = vmul.f32 0.03125, %v18117_v2  ;;  %v18122_v41 = vld [vmem:[#allocation35_spill] sm:$0xff]  ;;  %2161 = vadd.xlane.f32.xlu0 %v11101_v18  ;;  %v18130_v2 = vld [vmem:[#allocation36_spill] sm:$0xff] }
 0x320   :  { %18113 = vst [vmem:[#allocation138_spill] sm:$0xff] %v11509_v40  ;;  %18114 = vst [vmem:[#allocation224_spill] sm:$0xff] %v11514_v17  ;;  %v11537_v25 = vmul.f32 0.03125, %v18122_v41  ;;  %v11549_v17 = vmul.f32 0.03125, %v18126_v4  ;;  %v11551_v1 = vpop.xlane.xlu0 %1733  ;;  %v11555_v41 = vmul.f32 %v11509_v40, %v11509_v40  ;;  %v11560_v12 = vmul.f32 0.03125, %v18130_v2  ;;  %2182 = vadd.xlane.f32.xlu1 %v11104_v5  ;;  %v18147_v18 = vld [vmem:[#allocation150_spill] sm:$0xff] }
 0x321   :  { %18118 = vst [vmem:[#allocation142_spill] sm:$0xff] %v11522_v45  ;;  %18119 = vst [vmem:[#allocation225_spill] sm:$0xff] %v11524_v27  ;;  %v11544_v27 = vmul.f32 %v11496_v43, %v11496_v43  ;;  %v11568_v4 = vmul.f32 %v11519_v35, %v11519_v35  ;;  %v11574_v43 = vmul.f32 %v11522_v45, %v11522_v45  ;;  %v11577_v40 = vmul.f32 0.03125, %v18137_v36 }
 0x322   :  { %18121 = vst [vmem:[#allocation226_spill] sm:$0xff] %v11534_v8  ;;  %18123 = vst [vmem:[#allocation35_spill] sm:$0xff] %v11537_v25  ;;  %v11563_v8 = vmul.f32 0.03125, %v18132_v38  ;;  %v11579_v2 = vpop.xlane.xlu1 %1742  ;;  %v11585_v5 = vmul.f32 %v11537_v25, %v11537_v25  ;;  %v11595_v36 = vmul.f32 %v11549_v17, %v11549_v17  ;;  %v11600_v45 = vmul.f32 0.03125, %v18147_v18  ;;  %v18149_v38 = vld [vmem:[#allocation153_spill] sm:$0xff] }
 0x323   :  { %18127 = vst [vmem:[#allocation144_spill] sm:$0xff] %v11549_v17  ;;  %18128 = vst [vmem:[#allocation227_spill] sm:$0xff] %v11551_v1  ;;  %v18143_v1 = vld [vmem:[#allocation148_spill] sm:$0xff]  ;;  %2167 = vadd.xlane.f32.xlu0 %v11111_v6  ;;  %v18167_v18 = vld [vmem:[#allocation157_spill] sm:$0xff] }
 0x324   :  { %18131 = vst [vmem:[#allocation36_spill] sm:$0xff] %v11560_v12  ;;  %18133 = vst [vmem:[#allocation26_spill] sm:$0xff] %v11563_v8  ;;  %v11590_v35 = vmul.f32 0.03125, %v18143_v1  ;;  %v11609_v1 = vmul.f32 %v11560_v12, %v11560_v12  ;;  %v11615_v25 = vmul.f32 %v11563_v8, %v11563_v8  ;;  %2188 = vadd.xlane.f32.xlu1 %v11114_v53  ;;  %v11630_v12 = vmul.f32 0.03125, %v18159_v49  ;;  %v18161_v53 = vld [vmem:[#allocation65_spill] sm:$0xff]  ;;  %v18176_v49 = vld [vmem:[#allocation159_spill] sm:$0xff] }
 0x325   :  { %18134 = vst [vmem:[#allocation228_spill] sm:$0xff] %v11568_v4  ;;  %18136 = vst [vmem:[#allocation229_spill] sm:$0xff] %v11574_v43  ;;  %v11605_v43 = vpop.xlane.xlu0 %1763  ;;  %v11618_v4 = vmul.f32 0.03125, %v18154_v10 }
 0x326   :  { %18138 = vst [vmem:[#allocation147_spill] sm:$0xff] %v11577_v40  ;;  %18139 = vst [vmem:[#allocation230_spill] sm:$0xff] %v11579_v2  ;;  %v1985_v6 = vpop.xlane.xlu1 %1984  ;;  %v11634_v10 = vmul.f32 %v11590_v35, %v11590_v35  ;;  %v11644_v2 = vmul.f32 %v11600_v45, %v11600_v45 }
 0x327   :  { %18141 = vst [vmem:[#allocation231_spill] sm:$0xff] %v11585_v5  ;;  %18144 = vst [vmem:[#allocation148_spill] sm:$0xff] %v11590_v35  ;;  %v11603_v5 = vmul.f32 0.03125, %v18149_v38  ;;  %2173 = vadd.xlane.f32.xlu0 %v11121_v58  ;;  %v2439_v8 = vmul.f32 0.03125, %v1985_v6  ;;  %v11661_v6 = vmul.f32 %v11618_v4, %v11618_v4  ;;  %v11675_v58 = vmul.f32 0.03125, %v18176_v49 }
 0x328   :  { %18145 = vst [vmem:[#allocation232_spill] sm:$0xff] %v11595_v36  ;;  %18148 = vst [vmem:[#allocation150_spill] sm:$0xff] %v11600_v45  ;;  %2194 = vadd.xlane.f32.xlu1 %v11124_v37  ;;  %v18183_v45 = vld [vmem:[#allocation161_spill] sm:$0xff] }
 0x329   :  { %18150 = vst [vmem:[#allocation153_spill] sm:$0xff] %v11603_v5  ;;  %18151 = vst [vmem:[#allocation233_spill] sm:$0xff] %v11605_v43  ;;  %v11625_v43 = vmul.f32 %v11577_v40, %v11577_v40  ;;  %v11650_v17 = vmul.f32 %v11603_v5, %v11603_v5  ;;  %v11655_v36 = vpop.xlane.xlu0 %1769  ;;  %v2695_v40 = vsub.f32 %v2439_v8, %v11309_v7  ;;  %v18178_v5 = vld [vmem:[#allocation160_spill] sm:$0xff]  ;;  %v18187_v7 = vld [vmem:[#allocation162_spill] sm:$0xff] }
 0x32a   :  { %18152 = vst [vmem:[#allocation234_spill] sm:$0xff] %v11609_v1  ;;  %18155 = vst [vmem:[#allocation154_spill] sm:$0xff] %v11618_v4  ;;  %v18162_v1 = vld [vmem:[#allocation156_spill] sm:$0xff] }
 0x32b   :  { %18157 = vst [vmem:[#allocation235_spill] sm:$0xff] %v11625_v43  ;;  %18160 = vst [vmem:[#allocation155_spill] sm:$0xff] %v11630_v12  ;;  %v11639_v38 = vmul.f32 0.03125, %v18162_v1  ;;  %v11653_v43 = vmul.f32 0.03125, %v18167_v18  ;;  %v11678_v1 = vmul.f32 0.03125, %v18178_v5  ;;  %2179 = vadd.xlane.f32.xlu0 %v11127_v52 }
 0x32c   :  { %18164 = vst [vmem:[#allocation156_spill] sm:$0xff] %v11644_v2  ;;  %18166 = vst [vmem:[#allocation236_spill] sm:$0xff] %v11650_v17  ;;  %v18172_v2 = vld [vmem:[#allocation158_spill] sm:$0xff]  ;;  %v1991_v17 = vpop.xlane.xlu1 %1990  ;;  %2200 = vadd.xlane.f32.xlu1 %v11134_v20 }
 0x32d   :  { %18163 = vst [vmem:[#allocation65_spill] sm:$0xff] %v11639_v38  ;;  %18168 = vst [vmem:[#allocation157_spill] sm:$0xff] %v11653_v43  ;;  %v11664_v35 = vmul.f32 0.03125, %v18172_v2  ;;  %v11684_v8 = vmul.f32 %v11639_v38, %v11639_v38  ;;  %v2441_v18 = vmul.f32 0.03125, %v1991_v17  ;;  %v11691_v49 = vmul.f32 %v11653_v43, %v11653_v43  ;;  %v18192_v43 = vld [vmem:[#allocation163_spill] sm:$0xff] }
 0x32e   :  { %18169 = vst [vmem:[#allocation237_spill] sm:$0xff] %v11655_v36  ;;  %18171 = vst [vmem:[#allocation238_spill] sm:$0xff] %v11661_v6  ;;  %v11672_v36 = vmul.f32 %v11630_v12, %v11630_v12  ;;  %v2823_v6 = vadd.f32 1e-05, %v2695_v40  ;;  %v11698_v12 = vpop.xlane.xlu0 %1739  ;;  %v11707_v38 = vmul.f32 0.03125, %v18187_v7  ;;  %v11722_v17 = vmul.f32 0.03125, %v18192_v43 }
 0x32f   :  { %18173 = vst [vmem:[#allocation158_spill] sm:$0xff] %v11664_v35  ;;  %18177 = vst [vmem:[#allocation159_spill] sm:$0xff] %v11675_v58  ;;  %v11702_v2 = vmul.f32 %v11664_v35, %v11664_v35  ;;  %v2697_v37 = vsub.f32 %v2441_v18, %v11325_v39  ;;  %v18195_v18 = vld [vmem:[#allocation164_spill] sm:$0xff]  ;;  %2185 = vadd.xlane.f32.xlu0 %v11143_v51  ;;  %v18200_v43 = vld [vmem:[#allocation166_spill] sm:$0xff] }
 0x330   :  { %18175 = vst [vmem:[#allocation239_spill] sm:$0xff] %v11672_v36  ;;  %18179 = vst [vmem:[#allocation160_spill] sm:$0xff] %v11678_v1  ;;  %v11696_v36 = vmul.f32 0.03125, %v18183_v45  ;;  %v11713_v45 = vmul.f32 %v11675_v58, %v11675_v58  ;;  %v1997_v7 = vpop.xlane.xlu1 %1996  ;;  %v11727_v20 = vmul.f32 0.03125, %v18195_v18  ;;  %v18198_v58 = vld [vmem:[#allocation165_spill] sm:$0xff]  ;;  %v11738_v40 = vmul.f32 0.03125, %v18200_v43 }
 0x331   :  { %18185 = vst [vmem:[#allocation240_spill] sm:$0xff] %v11698_v12  ;;  %18188 = vst [vmem:[#allocation162_spill] sm:$0xff] %v11707_v38  ;;  %v11719_v12 = vmul.f32 %v11678_v1, %v11678_v1  ;;  %v2825_v35 = vadd.f32 1e-05, %v2697_v37  ;;  %v2443_v52 = vmul.f32 0.03125, %v1997_v7  ;;  %8617 = vrsqrt.f32 %v2823_v6  ;;  %v18205_v7 = vld [vmem:[#allocation200_spill] sm:$0xff] }
 0x332   :  { %18184 = vst [vmem:[#allocation161_spill] sm:$0xff] %v11696_v36  ;;  %18189 = vst [vmem:[#allocation241_spill] sm:$0xff] %v11713_v45  ;;  %v11732_v4 = vmul.f32 %v11696_v36, %v11696_v36  ;;  %v11740_v45 = vpop.xlane.xlu0 %1745  ;;  %v11746_v51 = vmul.f32 %v11707_v38, %v11707_v38  ;;  %2206 = vadd.xlane.f32.xlu1 %v18205_v7  ;;  %v11754_v6 = vmul.f32 %v11722_v17, %v11722_v17  ;;  %v18208_v43 = vld [vmem:[#allocation167_spill] sm:$0xff]  ;;  %v18210_v39 = vld [vmem:[#allocation168_spill] sm:$0xff] }
 0x333   :  { %18191 = vst [vmem:[#allocation242_spill] sm:$0xff] %v11719_v12  ;;  %18193 = vst [vmem:[#allocation163_spill] sm:$0xff] %v11722_v17  ;;  %v11735_v12 = vmul.f32 0.03125, %v18198_v58  ;;  %8619 = vrsqrt.f32 %v2825_v35  ;;  %v2699_v37 = vsub.f32 %v2443_v52, %v11385_v47  ;;  %v11760_v5 = vmul.f32 0.03125, %v18210_v39  ;;  %v18214_v1 = vld [vmem:[#allocation201_spill] sm:$0xff] }
 0x334   :  { %18196 = vst [vmem:[#allocation164_spill] sm:$0xff] %v11727_v20  ;;  %18197 = vst [vmem:[#allocation243_spill] sm:$0xff] %v11732_v4  ;;  %v2003_v36 = vpop.xlane.xlu1 %2002  ;;  %v11766_v47 = vmul.f32 %v11727_v20, %v11727_v20  ;;  %2191 = vadd.xlane.f32.xlu0 %v18214_v1  ;;  %v11779_v18 = vmul.f32 %v11738_v40, %v11738_v40  ;;  %v18217_v7 = vld [vmem:[#allocation169_spill] sm:$0xff] }
 0x335   :  { %18199 = vst [vmem:[#allocation165_spill] sm:$0xff] %v11735_v12  ;;  %18201 = vst [vmem:[#allocation166_spill] sm:$0xff] %v11738_v40  ;;  %v2445_v38 = vmul.f32 0.03125, %v2003_v36  ;;  %v2827_v17 = vadd.f32 1e-05, %v2699_v37  ;;  %v11784_v20 = vmul.f32 0.03125, %v18217_v7  ;;  %v11796_v37 = vmul.f32 %v11760_v5, %v11760_v5 }
 0x336   :  { %18202 = vst [vmem:[#allocation244_spill] sm:$0xff] %v11740_v45  ;;  %18204 = vst [vmem:[#allocation245_spill] sm:$0xff] %v11746_v51  ;;  %v11757_v45 = vmul.f32 0.03125, %v18208_v43  ;;  %v11773_v43 = vmul.f32 %v11735_v12, %v11735_v12  ;;  %v1988_v35 = vpop.xlane.xlu0 %1987  ;;  %2212 = vadd.xlane.f32.xlu1 %v11165_v15  ;;  %v18223_v51 = vld [vmem:[#allocation171_spill] sm:$0xff] }
 0x337   :  { %18207 = vst [vmem:[#allocation200_spill] sm:$0xff] %v11754_v6  ;;  %18211 = vst [vmem:[#allocation168_spill] sm:$0xff] %v11760_v5  ;;  %v2701_v36 = vsub.f32 %v2445_v38, %v11406_v42  ;;  %v2440_v1 = vmul.f32 0.03125, %v1988_v35  ;;  %v18221_v6 = vld [vmem:[#allocation170_spill] sm:$0xff]  ;;  %v11802_v42 = vmul.f32 0.03125, %v18223_v51  ;;  %8621 = vrsqrt.f32 %v2827_v17 }
 0x338   :  { %18209 = vst [vmem:[#allocation167_spill] sm:$0xff] %v11757_v45  ;;  %18218 = vst [vmem:[#allocation201_spill] sm:$0xff] %v11784_v20  ;;  %v11790_v58 = vmul.f32 %v11757_v45, %v11757_v45  ;;  %v11799_v40 = vmul.f32 0.03125, %v18221_v6  ;;  %v2009_v7 = vpop.xlane.xlu1 %2008  ;;  %2197 = vadd.xlane.f32.xlu0 %v11176_v29  ;;  %v18226_v45 = vld [vmem:[#allocation172_spill] sm:$0xff]  ;;  %v11816_v51 = vmul.f32 %v11784_v20, %v11784_v20 }
 0x339   :  { %18220 = vst [vmem:[#allocation169_spill] sm:$0xff] %v11796_v37  ;;  %18224 = vst [vmem:[#allocation171_spill] sm:$0xff] %v11802_v42  ;;  %v2829_v38 = vadd.f32 1e-05, %v2701_v36  ;;  %v2696_v15 = vsub.f32 %v2440_v1, %v11339_v16  ;;  %v2447_v35 = vmul.f32 0.03125, %v2009_v7  ;;  %v11809_v52 = vmul.f32 0.03125, %v18226_v45 }
 0x33a   :  { %18222 = vst [vmem:[#allocation170_spill] sm:$0xff] %v11799_v40  ;;  %v18227_v37 = vld [vmem:[#allocation173_spill] sm:$0xff]  ;;  %v1994_v6 = vpop.xlane.xlu0 %1993  ;;  %18228 = vst [vmem:[#allocation172_spill] sm:$0xff] %v11816_v51  ;;  %2218 = vadd.xlane.f32.xlu1 %v11179_v46  ;;  %v11824_v45 = vmul.f32 %v11799_v40, %v11799_v40 }
 0x33b   :  { %v11812_v4 = vmul.f32 0.03125, %v18227_v37  ;;  %8623 = vrsqrt.f32 %v2829_v38  ;;  %v2703_v16 = vsub.f32 %v2447_v35, %v11474_v48  ;;  %v2442_v29 = vmul.f32 0.03125, %v1994_v6  ;;  %v18233_v37 = vld [vmem:[#allocation89_spill] sm:$0xff]  ;;  %v18234_v35 = vld [vmem:[#allocation88_spill] sm:$0xff]  ;;  %v18235_v48 = vld [vmem:[#allocation174_spill] sm:$0xff] }
 0x33c   :  { %v2824_v7 = vadd.f32 1e-05, %v2696_v15  ;;  %v2015_v12 = vpop.xlane.xlu1 %2014  ;;  %v11830_v38 = vmul.f32 %v11802_v42, %v11802_v42  ;;  %2203 = vadd.xlane.f32.xlu0 %v11182_v21  ;;  %v11838_v1 = vmul.f32 %v11809_v52, %v11809_v52  ;;  %v11851_v5 = vmul.f32 0.03125, %v18235_v48  ;;  %v18236_v15 = vld [vmem:[#allocation175_spill] sm:$0xff] }
 0x33d   :  { %v2698_v46 = vsub.f32 %v2442_v29, %v11349_v63  ;;  %v2449_v6 = vmul.f32 0.03125, %v2015_v12  ;;  %v11844_v20 = vmul.f32 %v11812_v4, %v11812_v4  ;;  %v2831_v36 = vadd.f32 1e-05, %v2703_v16 }
 0x33e   :  { %18231 = vst [vmem:[#allocation173_spill] sm:$0xff] %v11830_v38  ;;  %v2000_v40 = vpop.xlane.xlu0 %1999  ;;  %v8618_v17 = vpop.eup %8617  ;;  %2224 = vadd.xlane.f32.xlu1 %v11188_v19  ;;  %v11854_v39 = vmul.f32 0.03125, %v18236_v15  ;;  %v18237_v38 = vld [vmem:[#allocation176_spill] sm:$0xff]  ;;  %8625 = vrsqrt.f32 %v2824_v7  ;;  %v18239_v19 = vld [vmem:[#allocation177_spill] sm:$0xff]  ;;  %v18242_v7 = vsub.f32 %v17910_v32, %v11267_v24 }
 0x33f   :  { %v2826_v29 = vadd.f32 1e-05, %v2698_v46  ;;  %v2705_v21 = vsub.f32 %v2449_v6, %v11493_v56  ;;  %v2444_v12 = vmul.f32 0.03125, %v2000_v40  ;;  %v11857_v16 = vmul.f32 0.03125, %v18237_v38 }
 0x340   :  { %v8620_v42 = vpop.eup %8619  ;;  %v2021_v51 = vpop.xlane.xlu1 %2020  ;;  %2209 = vadd.xlane.f32.xlu0 %v11191_v23  ;;  %v11862_v40 = vmul.f32 0.03125, %v18239_v19  ;;  %v18241_v6 = vsub.f32 %v18053_v54, %v11256_v9  ;;  %v18243_v9 = vld [vmem:[#allocation91_spill] sm:$0xff] }
 0x341   :  { %18238 = vst [vmem:[#allocation89_spill] sm:$0xff] %v11857_v16  ;;  %8627 = vrsqrt.f32 %v2826_v29  ;;  %v2833_v63 = vadd.f32 1e-05, %v2705_v21  ;;  %v2700_v46 = vsub.f32 %v2444_v12, %v11447_v3  ;;  %v2451_v56 = vmul.f32 0.03125, %v2021_v51  ;;  %v18267_v12 = vld [vmem:[#allocation205_spill] sm:$0xff] }
 0x342   :  { %18240 = vst [vmem:[#allocation88_spill] sm:$0xff] %v11862_v40  ;;  %8629 = vrsqrt.f32 %v2831_v36  ;;  %v2006_v48 = vpop.xlane.xlu0 %2005  ;;  %v11867_v15 = vmul.f32 %v8618_v17, %v18241_v6  ;;  %v11872_v38 = vmul.f32 %v8620_v42, %v18242_v7  ;;  %2230 = vadd.xlane.f32.xlu1 %v11194_v61  ;;  %v11878_v36 = vmul.f32 %v11851_v5, %v11851_v5  ;;  %v18250_v42 = vld [vmem:[#allocation179_spill] sm:$0xff] }
 0x343   :  { %8631 = vrsqrt.f32 %v2833_v63  ;;  %v2828_v3 = vadd.f32 1e-05, %v2700_v46  ;;  %v2707_v23 = vsub.f32 %v2451_v56, %v11355_v59  ;;  %v2446_v51 = vmul.f32 0.03125, %v2006_v48  ;;  %v18244_v59 = vld [vmem:[#allocation90_spill] sm:$0xff]  ;;  %v18270_v46 = vld [vmem:[#allocation29_spill] sm:$0xff] }
 0x344   :  { %v11884_v17 = vmul.f32 %v11854_v39, %v11854_v39  ;;  %v2027_v24 = vpop.xlane.xlu1 %2026  ;;  %2215 = vadd.xlane.f32.xlu0 %v11201_v0  ;;  %v11894_v21 = vmul.f32 %v11857_v16, %v11857_v16  ;;  %v18247_v56 = vld [vmem:[#allocation178_spill] sm:$0xff]  ;;  %v8622_v6 = vpop.eup %8621  ;;  %v11903_v7 = vmul.f32 %v11862_v40, %v11862_v40 }
 0x345   :  { %v2835_v63 = vadd.f32 1e-05, %v2707_v23  ;;  %v2702_v61 = vsub.f32 %v2446_v51, %v11453_v50  ;;  %v2453_v29 = vmul.f32 0.03125, %v2027_v24  ;;  %v11899_v19 = vmul.f32 0.03125, %v18247_v56 }
 0x346   :  { %18245 = vst [vmem:[#allocation174_spill] sm:$0xff] %v11894_v21  ;;  %8633 = vrsqrt.f32 %v2828_v3  ;;  %v2012_v48 = vpop.xlane.xlu0 %2011  ;;  %2236 = vadd.xlane.f32.xlu1 %v11204_v30  ;;  %v11910_v56 = vmul.f32 0.03125, %v18250_v42  ;;  %v18252_v3 = vld [vmem:[#allocation180_spill] sm:$0xff] }
 0x347   :  { %18248 = vst [vmem:[#allocation175_spill] sm:$0xff] %v11899_v19  ;;  %v2830_v50 = vadd.f32 1e-05, %v2702_v61  ;;  %v2709_v0 = vsub.f32 %v2453_v29, %v11366_v55  ;;  %v2448_v23 = vmul.f32 0.03125, %v2012_v48  ;;  %v11913_v54 = vmul.f32 0.03125, %v18252_v3  ;;  %v18255_v29 = vld [vmem:[#allocation181_spill] sm:$0xff] }
 0x348   :  { %v8624_v51 = vpop.eup %8623  ;;  %18251 = vst [vmem:[#allocation176_spill] sm:$0xff] %v11910_v56  ;;  %8635 = vrsqrt.f32 %v2835_v63  ;;  %v2033_v32 = vpop.xlane.xlu1 %2032  ;;  %2221 = vadd.xlane.f32.xlu0 %v11212_v57  ;;  %v11919_v30 = vmul.f32 %v11899_v19, %v11899_v19  ;;  %v11922_v48 = vmul.f32 0.03125, %v18255_v29  ;;  %v18257_v3 = vsub.f32 %v18069_v14, %v11331_v26  ;;  %v18259_v57 = vld [vmem:[#allocation182_spill] sm:$0xff] }
 0x349   :  { %18253 = vst [vmem:[#allocation177_spill] sm:$0xff] %v11913_v54  ;;  %8637 = vrsqrt.f32 %v2830_v50  ;;  %v2837_v16 = vadd.f32 1e-05, %v2709_v0  ;;  %v2704_v61 = vsub.f32 %v2448_v23, %v11528_v44  ;;  %v2455_v55 = vmul.f32 0.03125, %v2033_v32 }
 0x34a   :  { %18254 = vst [vmem:[#allocation91_spill] sm:$0xff] %v11919_v30  ;;  %18256 = vst [vmem:[#allocation90_spill] sm:$0xff] %v11922_v48  ;;  %v2018_v42 = vpop.xlane.xlu0 %2017  ;;  %v11927_v63 = vmul.f32 %v8622_v6, %v18257_v3  ;;  %v18258_v50 = vsub.f32 %v18076_v60, %v11358_v31  ;;  %v11935_v32 = vmul.f32 0.03125, %v18259_v57  ;;  %2242 = vadd.xlane.f32.xlu1 %v11215_v13  ;;  %v18274_v30 = vld [vmem:[#allocation95_spill] sm:$0xff] }
 0x34b   :  { %8639 = vrsqrt.f32 %v2837_v16  ;;  %v2711_v0 = vsub.f32 %v2455_v55, %v11417_v34  ;;  %v2450_v23 = vmul.f32 0.03125, %v2018_v42  ;;  %v11943_v26 = vmul.f32 %v11910_v56, %v11910_v56  ;;  %v8626_v6 = vpop.eup %8625  ;;  %v18268_v56 = vld [vmem:[#allocation183_spill] sm:$0xff] }
 0x34c   :  { %v11932_v44 = vmul.f32 %v8624_v51, %v18258_v50  ;;  %18260 = vst [vmem:[#allocation178_spill] sm:$0xff] %v11935_v32  ;;  %v2832_v14 = vadd.f32 1e-05, %v2704_v61  ;;  %v2039_v60 = vpop.xlane.xlu1 %2038  ;;  %v11951_v34 = vmul.f32 %v11913_v54, %v11913_v54  ;;  %2227 = vadd.xlane.f32.xlu0 %v11218_v11  ;;  %v11959_v50 = vmul.f32 %v11922_v48, %v11922_v48  ;;  %v18273_v61 = vld [vmem:[#allocation30_spill] sm:$0xff] }
 0x34d   :  { %18262 = vst [vmem:[#allocation179_spill] sm:$0xff] %v11943_v26  ;;  %v2706_v13 = vsub.f32 %v2450_v23, %v11544_v27  ;;  %v2457_v55 = vmul.f32 0.03125, %v2039_v60  ;;  %v2839_v51 = vadd.f32 1e-05, %v2711_v0  ;;  %v11965_v27 = vmul.f32 %v11935_v32, %v11935_v32  ;;  %v18266_v23 = vld [vmem:[#allocation222_spill] sm:$0xff]  ;;  %v18271_v0 = vld [vmem:[#allocation92_spill] sm:$0xff] }
 0x34e   :  { %v8628_v42 = vpop.eup %8627  ;;  %v2024_v31 = vpop.xlane.xlu0 %2023  ;;  %2248 = vadd.xlane.f32.xlu1 %v18267_v12  ;;  %v11970_v16 = vmul.f32 0.03125, %v18268_v56  ;;  %8641 = vrsqrt.f32 %v2832_v14  ;;  %v18272_v24 = vsub.f32 %v18270_v46, %v18271_v0  ;;  %v18275_v48 = vsub.f32 %v18273_v61, %v18274_v30  ;;  %v18306_v32 = vld [vmem:[#allocation34_spill] sm:$0xff] }
 0x34f   :  { %v8630_v19 = vpop.eup %8629  ;;  %v2834_v11 = vadd.f32 1e-05, %v2706_v13  ;;  %v2713_v60 = vsub.f32 %v2457_v55, %v18266_v23  ;;  %v2452_v29 = vmul.f32 0.03125, %v2024_v31  ;;  %v18276_v55 = vld [vmem:[#allocation42_spill] sm:$0xff]  ;;  %v18278_v14 = vsub.f32 %v18101_v33, %v11426_v28 }
 0x350   :  { %v8632_v3 = vpop.eup %8631  ;;  %18269 = vst [vmem:[#allocation180_spill] sm:$0xff] %v11970_v16  ;;  %v2045_v40 = vpop.xlane.xlu1 %2044  ;;  %v3208_v54 = vmul.f32 %v8626_v6, %v18272_v24  ;;  %v3210_v57 = vmul.f32 %v8628_v42, %v18275_v48  ;;  %v18277_v23 = vld [vmem:[#allocation206_spill] sm:$0xff]  ;;  %v18279_v46 = vsub.f32 %v18110_v62, %v11435_v22  ;;  %v18284_v33 = vcombine.low %v11867_v15, %v11872_v38  ;;  %v18289_v38 = vld [vmem:[#allocation185_spill] sm:$0xff]  ;;  %v18298_v62 = vld [vmem:[#allocation16_spill] sm:$0xff] }
 0x351   :  { %8643 = vrsqrt.f32 %v2834_v11  ;;  %v2841_v13 = vadd.f32 1e-05, %v2713_v60  ;;  %v2708_v31 = vsub.f32 %v2452_v29, %v18276_v55  ;;  %2233 = vadd.xlane.f32.xlu0 %v18277_v23  ;;  %v2459_v12 = vmul.f32 0.03125, %v2045_v40  ;;  %v18280_v29 = vld [vmem:[#allocation226_spill] sm:$0xff]  ;;  %v18281_v40 = vld [vmem:[#allocation208_spill] sm:$0xff] }
 0x352   :  { %8645 = vrsqrt.f32 %v2839_v51  ;;  %v2030_v56 = vpop.xlane.xlu0 %2029  ;;  %v3481_v21 = vcombine.low %v3208_v54, %v3210_v57  ;;  %v11983_v26 = vmul.f32 %v8630_v19, %v18278_v14  ;;  %v11988_v24 = vmul.f32 %v8632_v3, %v18279_v46  ;;  %2254 = vadd.xlane.f32.xlu1 %v18281_v40  ;;  %v18283_v28 = vld [vmem:[#allocation14_spill] sm:$0xff]  ;;  %v18287_v23 = vld [vmem:[#allocation184_spill] sm:$0xff]  ;;  %v18291_v14 = vld [vmem:[#allocation45_spill] sm:$0xff] }
 0x353   :  { %v8634_v30 = vpop.eup %8633  ;;  %8647 = vrsqrt.f32 %v2841_v13  ;;  %v2836_v48 = vadd.f32 1e-05, %v2708_v31  ;;  %v2715_v6 = vsub.f32 %v2459_v12, %v18280_v29  ;;  %v2454_v42 = vmul.f32 0.03125, %v2030_v56  ;;  %v18285_v60 = vld [vmem:[#allocation38_spill] sm:$0xff]  ;;  %v18286_v13 = vld [vmem:[#allocation209_spill] sm:$0xff]  ;;  %v18292_v46 = vld [vmem:[#allocation120_spill] sm:$0xff] }
 0x354   :  { %v2051_v61 = vpop.xlane.xlu1 %2050  ;;  %v3480_v19 = vrot.slane %v18284_v33, %v18283_v28  ;;  %v3488_v22 = vrot.slane %v3481_v21, %v18283_v28  ;;  %v12003_v57 = vmul.f32 %v11970_v16, %v11970_v16  ;;  %v12008_v15 = vmul.f32 0.03125, %v18287_v23  ;;  %v18295_v23 = vld [vmem:[#allocation15_spill] sm:$0xff]  ;;  %v18307_v54 = vld [vmem:[#allocation17_spill] sm:$0xff] }
 0x355   :  { %v8636_v3 = vpop.eup %8635  ;;  %v2843_v11 = vadd.f32 1e-05, %v2715_v6  ;;  %v2710_v0 = vsub.f32 %v2454_v42, %v18285_v60  ;;  %2239 = vadd.xlane.f32.xlu0 %v18286_v13  ;;  %v2461_v55 = vmul.f32 0.03125, %v2051_v61  ;;  %v12011_v21 = vmul.f32 0.03125, %v18289_v38  ;;  %v18294_v60 = vld [vmem:[#allocation82_spill] sm:$0xff]  ;;  %v18297_v38 = vld [vmem:[#allocation33_spill] sm:$0xff] }
 0x356   :  { %v8638_v31 = vpop.eup %8637  ;;  %18288 = vst [vmem:[#allocation181_spill] sm:$0xff] %v12008_v15  ;;  %v2036_v12 = vpop.xlane.xlu0 %2035  ;;  %v3497_v56 = vcombine.low %v3480_v19, %v3488_v22  ;;  %v18293_v29 = vsub.f32 %v18291_v14, %v18292_v46  ;;  %8649 = vrsqrt.f32 %v2836_v48  ;;  %2260 = vadd.xlane.f32.xlu1 %v18294_v60  ;;  %v18299_v19 = vsub.f32 %v18297_v38, %v18298_v62  ;;  %v18300_v14 = vld [vmem:[#allocation47_spill] sm:$0xff]  ;;  %v18304_v46 = vld [vmem:[#allocation210_spill] sm:$0xff] }
 0x357   :  { %18290 = vst [vmem:[#allocation182_spill] sm:$0xff] %v12011_v21  ;;  %v2838_v6 = vadd.f32 1e-05, %v2710_v0  ;;  %v2717_v42 = vsub.f32 %v2461_v55, %v11555_v41  ;;  %v2456_v33 = vmul.f32 0.03125, %v2036_v12  ;;  %8651 = vrsqrt.f32 %v2843_v11  ;;  %v18303_v55 = vld [vmem:[#allocation118_spill] sm:$0xff] }
 0x358   :  { %v3212_v40 = vmul.f32 %v8634_v30, %v18293_v29  ;;  %v8640_v61 = vpop.eup %8639  ;;  %v2057_v13 = vpop.xlane.xlu1 %2056  ;;  %v12019_v51 = vrot.slane %v3497_v56, %v18295_v23  ;;  %v12024_v22 = vmul.f32 %v8636_v3, %v18299_v19  ;;  %v18301_v30 = vld [vmem:[#allocation121_spill] sm:$0xff]  ;;  %v18305_v56 = vld [vmem:[#allocation127_spill] sm:$0xff]  ;;  %v18308_v62 = vsub.f32 %v18306_v32, %v18307_v54 }
 0x359   :  { %v18302_v48 = vsub.f32 %v18300_v14, %v18301_v30  ;;  %8653 = vrsqrt.f32 %v2838_v6  ;;  %v2845_v41 = vadd.f32 1e-05, %v2717_v42  ;;  %v2712_v12 = vsub.f32 %v2456_v33, %v18303_v55  ;;  %2245 = vadd.xlane.f32.xlu0 %v18304_v46  ;;  %v18309_v6 = vld [vmem:[#allocation186_spill] sm:$0xff]  ;;  %v18311_v19 = vld [vmem:[#allocation211_spill] sm:$0xff]  ;;  %v18315_v55 = vld [vmem:[#allocation32_spill] sm:$0xff] }
 0x35a   :  { %18296 = vst [vmem:[#allocation222_spill] sm:$0xff] %v12019_v51  ;;  %v2463_v11 = vmul.f32 0.03125, %v2057_v13  ;;  %v2042_v29 = vpop.xlane.xlu0 %2041  ;;  %v12036_v3 = vmul.f32 %v8640_v61, %v18308_v62  ;;  %v12041_v42 = vmul.f32 0.03125, %v18309_v6  ;;  %2266 = vadd.xlane.f32.xlu1 %v18311_v19  ;;  %v18312_v54 = vcombine.low %v11927_v63, %v11932_v44  ;;  %v18316_v46 = vld [vmem:[#allocation212_spill] sm:$0xff] }
 0x35b   :  { %v3214_v0 = vmul.f32 %v8638_v31, %v18302_v48  ;;  %8655 = vrsqrt.f32 %v2845_v41  ;;  %v2458_v13 = vmul.f32 0.03125, %v2042_v29  ;;  %v2840_v14 = vadd.f32 1e-05, %v2712_v12  ;;  %v8642_v48 = vpop.eup %8641  ;;  %v18325_v62 = vld [vmem:[#allocation56_spill] sm:$0xff] }
 0x35c   :  { %18310 = vst [vmem:[#allocation205_spill] sm:$0xff] %v12041_v42  ;;  %v2719_v33 = vsub.f32 %v2463_v11, %v11615_v25  ;;  %v2063_v30 = vpop.xlane.xlu1 %2062  ;;  %v12056_v25 = vmul.f32 %v12008_v15, %v12008_v15  ;;  %v12064_v44 = vmul.f32 %v12011_v21, %v12011_v21  ;;  %v12072_v63 = vmul.f32 %v12041_v42, %v12041_v42  ;;  %v18323_v15 = vld [vmem:[#allocation49_spill] sm:$0xff] }
 0x35d   :  { %v3515_v38 = vcombine.low %v3212_v40, %v3214_v0  ;;  %v3514_v40 = vrot.slane %v18312_v54, %v18283_v28  ;;  %v2714_v12 = vsub.f32 %v2458_v13, %v18315_v55  ;;  %2251 = vadd.xlane.f32.xlu0 %v18316_v46  ;;  %v2465_v11 = vmul.f32 0.03125, %v2063_v30  ;;  %v18320_v30 = vld [vmem:[#allocation213_spill] sm:$0xff] }
 0x35e   :  { %18314 = vst [vmem:[#allocation183_spill] sm:$0xff] %v12056_v25  ;;  %v8644_v29 = vpop.eup %8643  ;;  %18318 = vst [vmem:[#allocation29_spill] sm:$0xff] %v12064_v44  ;;  %v2048_v6 = vpop.xlane.xlu0 %2047  ;;  %2272 = vadd.xlane.f32.xlu1 %v18320_v30  ;;  %8657 = vrsqrt.f32 %v2840_v14  ;;  %v18326_v44 = vld [vmem:[#allocation137_spill] sm:$0xff]  ;;  %v18329_v30 = vld [vmem:[#allocation214_spill] sm:$0xff] }
 0x35f   :  { %v3522_v61 = vrot.slane %v3515_v38, %v18283_v28  ;;  %v2847_v38 = vadd.f32 1e-05, %v2719_v33  ;;  %v8646_v54 = vpop.eup %8645  ;;  %v2842_v60 = vadd.f32 1e-05, %v2714_v12  ;;  %v2721_v13 = vsub.f32 %v2465_v11, %v11634_v10  ;;  %18321 = vst [vmem:[#allocation92_spill] sm:$0xff] %v12072_v63  ;;  %v18322_v33 = vld [vmem:[#allocation54_spill] sm:$0xff] }
 0x360   :  { %v2460_v55 = vmul.f32 0.03125, %v2048_v6  ;;  %v8648_v46 = vpop.eup %8647  ;;  %v2069_v32 = vpop.xlane.xlu1 %2068  ;;  %v18327_v41 = vsub.f32 %v18325_v62, %v18326_v44  ;;  %v18328_v11 = vld [vmem:[#allocation234_spill] sm:$0xff]  ;;  %v18330_v63 = vld [vmem:[#allocation41_spill] sm:$0xff]  ;;  %v18331_v14 = vld [vmem:[#allocation112_spill] sm:$0xff] }
 0x361   :  { %v3539_v19 = vcombine.low %v3514_v40, %v3522_v61  ;;  %v18324_v40 = vsub.f32 %v18322_v33, %v18323_v15  ;;  %8659 = vrsqrt.f32 %v2842_v60  ;;  %v2849_v10 = vadd.f32 1e-05, %v2721_v13  ;;  %2257 = vadd.xlane.f32.xlu0 %v18329_v30  ;;  %v18333_v15 = vld [vmem:[#allocation44_spill] sm:$0xff]  ;;  %v18337_v13 = vld [vmem:[#allocation215_spill] sm:$0xff]  ;;  %v18343_v30 = vld [vmem:[#allocation217_spill] sm:$0xff] }
 0x362   :  { %v3218_v12 = vmul.f32 %v8644_v29, %v18327_v41  ;;  %v2716_v6 = vsub.f32 %v2460_v55, %v18328_v11  ;;  %v2467_v21 = vmul.f32 0.03125, %v2069_v32  ;;  %8661 = vrsqrt.f32 %v2847_v38  ;;  %v2054_v31 = vpop.xlane.xlu0 %2053  ;;  %v18336_v29 = vld [vmem:[#allocation51_spill] sm:$0xff]  ;;  %2278 = vadd.xlane.f32.xlu1 %v18337_v13  ;;  %v18347_v13 = vld [vmem:[#allocation224_spill] sm:$0xff]  ;;  %v18349_v55 = vld [vmem:[#allocation25_spill] sm:$0xff] }
 0x363   :  { %v3216_v61 = vmul.f32 %v8642_v48, %v18324_v40  ;;  %v18332_v25 = vsub.f32 %v18330_v63, %v18331_v14  ;;  %v18334_v48 = vld [vmem:[#allocation12_spill] sm:$0xff]  ;;  %8663 = vrsqrt.f32 %v2849_v10  ;;  %v2462_v44 = vmul.f32 0.03125, %v2054_v31  ;;  %v8650_v32 = vpop.eup %8649  ;;  %v18342_v11 = vld [vmem:[#allocation235_spill] sm:$0xff] }
 0x364   :  { %v18335_v33 = vsub.f32 %v18333_v15, %v18334_v48  ;;  %v2844_v60 = vadd.f32 1e-05, %v2716_v6  ;;  %v2723_v62 = vsub.f32 %v2467_v21, %v18336_v29  ;;  %v2075_v63 = vpop.xlane.xlu1 %2074  ;;  %v18340_v21 = vld [vmem:[#allocation187_spill] sm:$0xff]  ;;  %v18344_v48 = vld [vmem:[#allocation188_spill] sm:$0xff] }
 0x365   :  { %v12085_v16 = vmul.f32 %v8646_v54, %v18332_v25  ;;  %v3531_v41 = vcombine.low %v3216_v61, %v3218_v12  ;;  %v18339_v54 = vcombine.low %v11983_v26, %v11988_v24  ;;  %v8652_v12 = vpop.eup %8651  ;;  %v12104_v31 = vmul.f32 0.03125, %v18340_v21  ;;  %2263 = vadd.xlane.f32.xlu0 %v18343_v30  ;;  %v18351_v25 = vld [vmem:[#allocation39_spill] sm:$0xff] }
 0x366   :  { %v12090_v40 = vmul.f32 %v8648_v46, %v18335_v33  ;;  %v2851_v10 = vadd.f32 1e-05, %v2723_v62  ;;  %v2718_v6 = vsub.f32 %v2462_v44, %v18342_v11  ;;  %v2469_v14 = vmul.f32 0.03125, %v2075_v63  ;;  %v8654_v15 = vpop.eup %8653  ;;  %v2060_v29 = vpop.xlane.xlu0 %2059  ;;  %v18348_v62 = vld [vmem:[#allocation37_spill] sm:$0xff] }
 0x367   :  { %v3530_v46 = vrot.slane %v18339_v54, %v18283_v28  ;;  %v3538_v61 = vrot.slane %v3531_v41, %v18283_v28  ;;  %18341 = vst [vmem:[#allocation30_spill] sm:$0xff] %v12104_v31  ;;  %v12109_v33 = vmul.f32 0.03125, %v18344_v48  ;;  %8665 = vrsqrt.f32 %v2844_v60  ;;  %v18352_v48 = vld [vmem:[#allocation108_spill] sm:$0xff] }
 0x368   :  { %v12112_v26 = vrot.slane %v3539_v19, %v18295_v23  ;;  %v2846_v41 = vadd.f32 1e-05, %v2718_v6  ;;  %v2725_v54 = vsub.f32 %v2469_v14, %v18347_v13  ;;  %v2464_v21 = vmul.f32 0.03125, %v2060_v29  ;;  %v8656_v30 = vpop.eup %8655  ;;  %v2081_v63 = vpop.xlane.xlu1 %2080  ;;  %v18355_v19 = vld [vmem:[#allocation55_spill] sm:$0xff] }
 0x369   :  { %18345 = vst [vmem:[#allocation95_spill] sm:$0xff] %v12109_v33  ;;  %v3547_v24 = vcombine.low %v3530_v46, %v3538_v61  ;;  %v18350_v44 = vsub.f32 %v18348_v62, %v18349_v55  ;;  %8667 = vrsqrt.f32 %v2851_v10  ;;  %v18353_v42 = vsub.f32 %v18351_v25, %v18352_v48  ;;  %v18356_v46 = vld [vmem:[#allocation134_spill] sm:$0xff]  ;;  %v18359_v25 = vld [vmem:[#allocation57_spill] sm:$0xff] }
 0x36a   :  { %18346 = vst [vmem:[#allocation42_spill] sm:$0xff] %v12112_v26  ;;  %v18357_v61 = vsub.f32 %v18355_v19, %v18356_v46  ;;  %8669 = vrsqrt.f32 %v2846_v41  ;;  %v2853_v14 = vadd.f32 1e-05, %v2725_v54  ;;  %v2720_v55 = vsub.f32 %v2464_v21, %v11684_v8  ;;  %v2066_v29 = vpop.xlane.xlu0 %2065  ;;  %v18362_v41 = vld [vmem:[#allocation189_spill] sm:$0xff] }
 0x36b   :  { %v3220_v11 = vmul.f32 %v8650_v32, %v18350_v44  ;;  %v3222_v60 = vmul.f32 %v8654_v15, %v18353_v42  ;;  %v12122_v38 = vrot.slane %v3547_v24, %v18295_v23  ;;  %v18358_v32 = vld [vmem:[#allocation218_spill] sm:$0xff]  ;;  %v2471_v10 = vmul.f32 0.03125, %v2081_v63  ;;  %v18364_v8 = vld [vmem:[#allocation229_spill] sm:$0xff]  ;;  %v8658_v46 = vpop.eup %8657 }
 0x36c   :  { %v12127_v6 = vmul.f32 %v8652_v12, %v18357_v61  ;;  %2269 = vadd.xlane.f32.xlu0 %v18358_v32  ;;  %v18360_v15 = vld [vmem:[#allocation138_spill] sm:$0xff]  ;;  %v12141_v54 = vmul.f32 0.03125, %v18362_v41  ;;  %8671 = vrsqrt.f32 %v2853_v14  ;;  %v2466_v44 = vmul.f32 0.03125, %v2066_v29 }
 0x36d   :  { %18354 = vst [vmem:[#allocation206_spill] sm:$0xff] %v12122_v38  ;;  %v3565_v13 = vcombine.low %v3220_v11, %v3222_v60  ;;  %v18361_v24 = vsub.f32 %v18359_v25, %v18360_v15  ;;  %v2727_v21 = vsub.f32 %v2471_v10, %v18364_v8  ;;  %v2848_v63 = vadd.f32 1e-05, %v2720_v55  ;;  %v2087_v11 = vpop.xlane.xlu1 %2086  ;;  %v18368_v10 = vld [vmem:[#allocation219_spill] sm:$0xff]  ;;  %v18374_v25 = vld [vmem:[#allocation40_spill] sm:$0xff] }
 0x36e   :  { %18363 = vst [vmem:[#allocation226_spill] sm:$0xff] %v12141_v54  ;;  %v18365_v48 = vcombine.low %v12024_v22, %v12036_v3  ;;  %v12153_v61 = vmul.f32 %v12104_v31, %v12104_v31  ;;  %v2722_v55 = vsub.f32 %v2466_v44, %v11702_v2  ;;  %v2473_v29 = vmul.f32 0.03125, %v2087_v11  ;;  %v8660_v22 = vpop.eup %8659  ;;  %v18371_v44 = vld [vmem:[#allocation232_spill] sm:$0xff] }
 0x36f   :  { %v12136_v62 = vmul.f32 %v8656_v30, %v18361_v24  ;;  %v3572_v30 = vrot.slane %v3565_v13, %v18283_v28  ;;  %v12161_v3 = vmul.f32 %v12109_v33, %v12109_v33  ;;  %v2855_v15 = vadd.f32 1e-05, %v2727_v21  ;;  %v2072_v24 = vpop.xlane.xlu0 %2071  ;;  %v8662_v8 = vpop.eup %8661  ;;  %v18373_v31 = vld [vmem:[#allocation48_spill] sm:$0xff] }
 0x370   :  { %v3564_v60 = vrot.slane %v18365_v48, %v18283_v28  ;;  %18366 = vst [vmem:[#allocation208_spill] sm:$0xff] %v12153_v61  ;;  %2275 = vadd.xlane.f32.xlu0 %v18368_v10  ;;  %v12167_v48 = vmul.f32 %v12141_v54, %v12141_v54  ;;  %v2850_v2 = vadd.f32 1e-05, %v2722_v55  ;;  %v2729_v10 = vsub.f32 %v2473_v29, %v18371_v44  ;;  %v8664_v12 = vpop.eup %8663  ;;  %v18379_v55 = vld [vmem:[#allocation228_spill] sm:$0xff]  ;;  %v18382_v54 = vld [vmem:[#allocation26_spill] sm:$0xff] }
 0x371   :  { %v2468_v11 = vmul.f32 0.03125, %v2072_v24  ;;  %8673 = vrsqrt.f32 %v2848_v63  ;;  %v2093_v19 = vpop.xlane.xlu1 %2092  ;;  %v18375_v21 = vsub.f32 %v18373_v31, %v18374_v25  ;;  %v18380_v29 = vld [vmem:[#allocation220_spill] sm:$0xff]  ;;  %v18381_v63 = vld [vmem:[#allocation63_spill] sm:$0xff] }
 0x372   :  { %v3589_v41 = vcombine.low %v3564_v60, %v3572_v30  ;;  %18370 = vst [vmem:[#allocation38_spill] sm:$0xff] %v12167_v48  ;;  %v18376_v60 = vld [vmem:[#allocation50_spill] sm:$0xff]  ;;  %v18377_v30 = vld [vmem:[#allocation124_spill] sm:$0xff]  ;;  %8675 = vrsqrt.f32 %v2850_v2  ;;  %v2857_v13 = vadd.f32 1e-05, %v2729_v10  ;;  %v2475_v24 = vmul.f32 0.03125, %v2093_v19 }
 0x373   :  { %v3224_v14 = vmul.f32 %v8658_v46, %v18375_v21  ;;  %v18378_v61 = vsub.f32 %v18376_v60, %v18377_v30  ;;  %v2724_v48 = vsub.f32 %v2468_v11, %v18379_v55  ;;  %8677 = vrsqrt.f32 %v2855_v15  ;;  %v2078_v44 = vpop.xlane.xlu0 %2077  ;;  %v18384_v31 = vld [vmem:[#allocation148_spill] sm:$0xff]  ;;  %v18386_v19 = vld [vmem:[#allocation190_spill] sm:$0xff]  ;;  %v18392_v60 = vld [vmem:[#allocation231_spill] sm:$0xff] }
 0x374   :  { %2281 = vadd.xlane.f32.xlu0 %v18380_v29  ;;  %v18383_v32 = vsub.f32 %v18381_v63, %v18382_v54  ;;  %v18385_v46 = vsub.f32 %v18161_v53, %v18384_v31  ;;  %8679 = vrsqrt.f32 %v2857_v13  ;;  %v2731_v2 = vsub.f32 %v2475_v24, %v11691_v49  ;;  %v18388_v54 = vld [vmem:[#allocation115_spill] sm:$0xff]  ;;  %v18393_v24 = vld [vmem:[#allocation192_spill] sm:$0xff] }
 0x375   :  { %v3226_v33 = vmul.f32 %v8660_v22, %v18378_v61  ;;  %v8666_v61 = vpop.eup %8665  ;;  %v2852_v22 = vadd.f32 1e-05, %v2724_v48  ;;  %v2470_v10 = vmul.f32 0.03125, %v2078_v44  ;;  %v12192_v15 = vmul.f32 0.03125, %v18386_v19  ;;  %v18391_v48 = vld [vmem:[#allocation191_spill] sm:$0xff]  ;;  %v18397_v31 = vld [vmem:[#allocation36_spill] sm:$0xff] }
 0x376   :  { %v12183_v0 = vmul.f32 %v8662_v8, %v18383_v32  ;;  %v12188_v25 = vmul.f32 %v8664_v12, %v18385_v46  ;;  %v2099_v32 = vpop.xlane.xlu1 %2098  ;;  %v18390_v53 = vcombine.low %v12085_v16, %v12090_v40  ;;  %v8668_v8 = vpop.eup %8667  ;;  %v12206_v11 = vmul.f32 0.03125, %v18391_v48 }
 0x377   :  { %v3581_v42 = vcombine.low %v3224_v14, %v3226_v33  ;;  %v18387_v33 = vld [vmem:[#allocation114_spill] sm:$0xff]  ;;  %v2859_v21 = vadd.f32 1e-05, %v2731_v2  ;;  %v2726_v30 = vsub.f32 %v2470_v10, %v18392_v60  ;;  %v2477_v55 = vmul.f32 0.03125, %v2099_v32  ;;  %v8670_v29 = vpop.eup %8669  ;;  %v2084_v63 = vpop.xlane.xlu0 %2083  ;;  %v18400_v32 = vld [vmem:[#allocation151_spill] sm:$0xff]  ;;  %v18401_v60 = vld [vmem:[#allocation152_spill] sm:$0xff] }
 0x378   :  { %v18389_v14 = vcombine.high %v18387_v33, %v18388_v54  ;;  %v3580_v12 = vrot.slane %v18390_v53, %v18283_v28  ;;  %v12210_v44 = vmul.f32 0.03125, %v18393_v24  ;;  %v12213_v16 = vrot.slane %v3589_v41, %v18295_v23  ;;  %v18399_v53 = vld [vmem:[#allocation241_spill] sm:$0xff] }
 0x379   :  { %v3588_v13 = vrot.slane %v3581_v42, %v18283_v28  ;;  %v18396_v42 = vld [vmem:[#allocation62_spill] sm:$0xff]  ;;  %8681 = vrsqrt.f32 %v2852_v22  ;;  %v2733_v2 = vsub.f32 %v2477_v55, %v18399_v53  ;;  %v2472_v48 = vmul.f32 0.03125, %v2084_v63  ;;  %v8672_v10 = vpop.eup %8671  ;;  %v18407_v22 = vld [vmem:[#allocation52_spill] sm:$0xff]  ;;  %v18412_v54 = vld [vmem:[#allocation129_spill] sm:$0xff] }
 0x37a   :  { %4123 = vrot.lane.b32.xlu1 %v18389_v14, %s9164_s1  ;;  %18394 = vst [vmem:[#allocation209_spill] sm:$0xff] %v12210_v44  ;;  %18395 = vst [vmem:[#allocation184_spill] sm:$0xff] %v12213_v16  ;;  %v18398_v46 = vsub.f32 %v18396_v42, %v18397_v31  ;;  %v2854_v14 = vadd.f32 1e-05, %v2726_v30  ;;  %8683 = vrsqrt.f32 %v2859_v21  ;;  %v18402_v24 = vcombine.high %v18400_v32, %v18401_v60  ;;  %v2105_v49 = vpop.xlane.xlu1 %2104  ;;  %v18408_v30 = vld [vmem:[#allocation117_spill] sm:$0xff]  ;;  %v18410_v63 = vld [vmem:[#allocation156_spill] sm:$0xff] }
 0x37b   :  { %v3597_v40 = vcombine.low %v3580_v12, %v3588_v13  ;;  %v18404_v12 = vld [vmem:[#allocation64_spill] sm:$0xff]  ;;  %v18405_v13 = vld [vmem:[#allocation147_spill] sm:$0xff]  ;;  %v18409_v31 = vsub.f32 %v18407_v22, %v18408_v30  ;;  %v2861_v21 = vadd.f32 1e-05, %v2733_v2  ;;  %v2479_v53 = vmul.f32 0.03125, %v2105_v49  ;;  %v2090_v60 = vpop.xlane.xlu0 %2089  ;;  %v18411_v32 = vld [vmem:[#allocation53_spill] sm:$0xff] }
 0x37c   :  { %v3228_v19 = vmul.f32 %v8666_v61, %v18398_v46  ;;  %v18406_v42 = vsub.f32 %v18404_v12, %v18405_v13  ;;  %8685 = vrsqrt.f32 %v2854_v14  ;;  %v2728_v46 = vsub.f32 %v2472_v48, %v18410_v63 }
 0x37d   :  { %v12224_v41 = vrot.slane %v3597_v40, %v18295_v23  ;;  %v12232_v55 = vmul.f32 %v8668_v8, %v18409_v31  ;;  %v18413_v33 = vsub.f32 %v18411_v32, %v18412_v54  ;;  %v12246_v8 = vmul.f32 %v12192_v15, %v12192_v15 }
 0x37e   :  { %4127 = vrot.lane.b32.xlu1 %v18402_v24, %s9164_s1  ;;  %v3230_v61 = vmul.f32 %v8670_v29, %v18406_v42  ;;  %8687 = vrsqrt.f32 %v2861_v21  ;;  %v2735_v49 = vsub.f32 %v2479_v53, %v11773_v43  ;;  %v2474_v14 = vmul.f32 0.03125, %v2090_v60  ;;  %v2111_v48 = vpop.xlane.xlu1 %2110  ;;  %v8674_v13 = vpop.eup %8673  ;;  %v18416_v43 = vld [vmem:[#allocation106_spill] sm:$0xff] }
 0x37f   :  { %18403 = vst [vmem:[#allocation185_spill] sm:$0xff] %v12224_v41  ;;  %v3606_v24 = vcombine.high %v12213_v16, %v12224_v41  ;;  %v12240_v12 = vmul.f32 %v8672_v10, %v18413_v33  ;;  %v2856_v2 = vadd.f32 1e-05, %v2728_v46  ;;  %v18415_v33 = vcombine.low %v12127_v6, %v12136_v62  ;;  %v8676_v31 = vpop.eup %8675  ;;  %v18418_v6 = vld [vmem:[#allocation107_spill] sm:$0xff]  ;;  %v2096_v46 = vpop.xlane.xlu0 %2095  ;;  %v18423_v41 = vld [vmem:[#allocation70_spill] sm:$0xff] }
 0x380   :  { %v3615_v40 = vcombine.low %v3228_v19, %v3230_v61  ;;  %v18414_v19 = vcombine.high %v18305_v56, %v12019_v51  ;;  %v12264_v42 = vmul.f32 %v12206_v11, %v12206_v11  ;;  %v18417_v61 = vld [vmem:[#allocation238_spill] sm:$0xff]  ;;  %v2481_v30 = vmul.f32 0.03125, %v2111_v48 }
 0x381   :  { %v3614_v54 = vrot.slane %v18415_v33, %v18283_v28  ;;  %v2730_v22 = vsub.f32 %v2474_v14, %v18417_v61  ;;  %v12271_v21 = vmul.f32 %v12210_v44, %v12210_v44  ;;  %v2863_v63 = vadd.f32 1e-05, %v2735_v49  ;;  %v18421_v61 = vld [vmem:[#allocation193_spill] sm:$0xff]  ;;  %v18427_v51 = vld [vmem:[#allocation158_spill] sm:$0xff] }
 0x382   :  { %4129 = vrot.lane.b32.xlu1 %v18414_v19, %s9164_s1  ;;  %v3622_v10 = vrot.slane %v3615_v40, %v18283_v28  ;;  %v8678_v40 = vpop.eup %8677  ;;  %v2737_v60 = vsub.f32 %v2481_v30, %v11790_v58  ;;  %v2476_v14 = vmul.f32 0.03125, %v2096_v46  ;;  %v12277_v32 = vmul.f32 0.03125, %v18421_v61  ;;  %v2117_v62 = vpop.xlane.xlu1 %2116  ;;  %v18424_v49 = vld [vmem:[#allocation65_spill] sm:$0xff]  ;;  %v18430_v44 = vld [vmem:[#allocation142_spill] sm:$0xff] }
 0x383   :  { %18419 = vst [vmem:[#allocation45_spill] sm:$0xff] %v12271_v21  ;;  %v2858_v29 = vadd.f32 1e-05, %v2730_v22  ;;  %v8680_v48 = vpop.eup %8679  ;;  %8689 = vrsqrt.f32 %v2856_v2  ;;  %v18425_v16 = vsub.f32 %v18423_v41, %v18424_v49  ;;  %v2483_v30 = vmul.f32 0.03125, %v2117_v62  ;;  %v2102_v46 = vpop.xlane.xlu0 %2101  ;;  %v18429_v2 = vld [vmem:[#allocation59_spill] sm:$0xff]  ;;  %v18432_v21 = vld [vmem:[#allocation61_spill] sm:$0xff] }
 0x384   :  { %v3639_v53 = vcombine.low %v3614_v54, %v3622_v10  ;;  %18422 = vst [vmem:[#allocation120_spill] sm:$0xff] %v12277_v32  ;;  %v18426_v10 = vld [vmem:[#allocation72_spill] sm:$0xff]  ;;  %v2865_v22 = vadd.f32 1e-05, %v2737_v60  ;;  %v2732_v58 = vsub.f32 %v2476_v14, %v11766_v47  ;;  %v18431_v19 = vsub.f32 %v18429_v2, %v18430_v44 }
 0x385   :  { %v3232_v54 = vmul.f32 %v8674_v13, %v18425_v16  ;;  %v18428_v56 = vsub.f32 %v18426_v10, %v18427_v51  ;;  %8691 = vrsqrt.f32 %v2858_v29  ;;  %v18433_v41 = vld [vmem:[#allocation144_spill] sm:$0xff]  ;;  %v2478_v60 = vmul.f32 0.03125, %v2102_v46 }
 0x386   :  { %4133 = vrot.lane.b32.xlu1 %v3606_v24, %s9164_s1  ;;  %8693 = vrsqrt.f32 %v2863_v63  ;;  %v12290_v24 = vmul.f32 %v8678_v40, %v18431_v19  ;;  %v18434_v16 = vsub.f32 %v18432_v21, %v18433_v41  ;;  %v2860_v51 = vadd.f32 1e-05, %v2732_v58  ;;  %v8682_v47 = vpop.eup %8681  ;;  %v2123_v62 = vpop.xlane.xlu1 %2122 }
 0x387   :  { %v3234_v33 = vmul.f32 %v8676_v31, %v18428_v56  ;;  %8695 = vrsqrt.f32 %v2865_v22  ;;  %v18435_v56 = vld [vmem:[#allocation236_spill] sm:$0xff]  ;;  %v12300_v31 = vmul.f32 %v12277_v32, %v12277_v32  ;;  %v18436_v44 = vcombine.low %v12183_v0, %v12188_v25  ;;  %v8684_v19 = vpop.eup %8683  ;;  %v18439_v22 = vld [vmem:[#allocation195_spill] sm:$0xff]  ;;  %v2108_v0 = vpop.xlane.xlu0 %2107  ;;  %v18477_v32 = vld [vmem:[#allocation81_spill] sm:$0xff] }
 0x388   :  { %v12295_v13 = vmul.f32 %v8680_v48, %v18434_v16  ;;  %v2739_v29 = vsub.f32 %v2483_v30, %v18435_v56  ;;  %v2734_v49 = vsub.f32 %v2478_v60, %v11779_v18  ;;  %v12314_v58 = vmul.f32 0.03125, %v18439_v22  ;;  %v18443_v16 = vld [vmem:[#allocation102_spill] sm:$0xff]  ;;  %v18444_v56 = vld [vmem:[#allocation103_spill] sm:$0xff]  ;;  %v18447_v60 = vld [vmem:[#allocation141_spill] sm:$0xff] }
 0x389   :  { %v3631_v61 = vcombine.low %v3232_v54, %v3234_v33  ;;  %v3630_v63 = vrot.slane %v18436_v44, %v18283_v28  ;;  %v18437_v33 = vld [vmem:[#allocation194_spill] sm:$0xff]  ;;  %v2485_v54 = vmul.f32 0.03125, %v2123_v62  ;;  %v8686_v10 = vpop.eup %8685  ;;  %8697 = vrsqrt.f32 %v2860_v51  ;;  %v18453_v22 = vld [vmem:[#allocation71_spill] sm:$0xff] }
 0x38a   :  { %v12310_v14 = vmul.f32 0.03125, %v18437_v33  ;;  %v2867_v48 = vadd.f32 1e-05, %v2739_v29  ;;  %18440 = vst [vmem:[#allocation33_spill] sm:$0xff] %v12314_v58  ;;  %v12317_v25 = vrot.slane %v3639_v53, %v18295_v23  ;;  %v2862_v46 = vadd.f32 1e-05, %v2734_v49  ;;  %v2129_v51 = vpop.xlane.xlu1 %2128 }
 0x38b   :  { %v3638_v21 = vrot.slane %v3631_v61, %v18283_v28  ;;  %v18442_v61 = vld [vmem:[#allocation239_spill] sm:$0xff]  ;;  %v2480_v41 = vmul.f32 0.03125, %v2108_v0  ;;  %v18445_v29 = vcombine.high %v18443_v16, %v18444_v56  ;;  %v18446_v18 = vld [vmem:[#allocation58_spill] sm:$0xff]  ;;  %v8688_v33 = vpop.eup %8687  ;;  %v18454_v0 = vld [vmem:[#allocation157_spill] sm:$0xff] }
 0x38c   :  { %18438 = vst [vmem:[#allocation82_spill] sm:$0xff] %v12310_v14  ;;  %18441 = vst [vmem:[#allocation16_spill] sm:$0xff] %v12317_v25  ;;  %v2741_v2 = vsub.f32 %v2485_v54, %v18442_v61  ;;  %v18448_v62 = vsub.f32 %v18446_v18, %v18447_v60  ;;  %8699 = vrsqrt.f32 %v2867_v48  ;;  %v18455_v61 = vsub.f32 %v18453_v22, %v18454_v0  ;;  %v2114_v60 = vpop.xlane.xlu0 %2113  ;;  %v18457_v56 = vld [vmem:[#allocation159_spill] sm:$0xff]  ;;  %v18463_v22 = vld [vmem:[#allocation110_spill] sm:$0xff] }
 0x38d   :  { %v3647_v30 = vcombine.low %v3630_v63, %v3638_v21  ;;  %4125 = vrot.lane.b32.xlu0 %v18445_v29, %s9164_s1  ;;  %v18450_v63 = vld [vmem:[#allocation60_spill] sm:$0xff]  ;;  %v18451_v21 = vld [vmem:[#allocation35_spill] sm:$0xff]  ;;  %8701 = vrsqrt.f32 %v2862_v46  ;;  %v2736_v18 = vsub.f32 %v2480_v41, %v11838_v1  ;;  %v18461_v41 = vcombine.high %v12112_v26, %v12122_v38  ;;  %v18471_v38 = vld [vmem:[#allocation154_spill] sm:$0xff] }
 0x38e   :  { %v3236_v44 = vmul.f32 %v8682_v47, %v18448_v62  ;;  %v18452_v49 = vsub.f32 %v18450_v63, %v18451_v21  ;;  %v12336_v40 = vmul.f32 %v8684_v19, %v18455_v61  ;;  %v2869_v29 = vadd.f32 1e-05, %v2741_v2  ;;  %v18456_v62 = vld [vmem:[#allocation73_spill] sm:$0xff]  ;;  %v18459_v19 = vld [vmem:[#allocation196_spill] sm:$0xff]  ;;  %v18460_v46 = vld [vmem:[#allocation243_spill] sm:$0xff] }
 0x38f   :  { %v12328_v53 = vrot.slane %v3647_v30, %v18295_v23  ;;  %v2487_v47 = vmul.f32 0.03125, %v2129_v51  ;;  %v18458_v16 = vsub.f32 %v18456_v62, %v18457_v56  ;;  %v12349_v21 = vmul.f32 0.03125, %v18459_v19  ;;  %v2135_v51 = vpop.xlane.xlu1 %2134  ;;  %v18466_v0 = vld [vmem:[#allocation200_spill] sm:$0xff] }
 0x390   :  { %v3238_v54 = vmul.f32 %v8686_v10, %v18452_v49  ;;  %8703 = vrsqrt.f32 %v2869_v29  ;;  %v2482_v2 = vmul.f32 0.03125, %v2114_v60  ;;  %v12367_v61 = vmul.f32 %v12310_v14, %v12310_v14  ;;  %v2120_v62 = vpop.xlane.xlu0 %2119 }
 0x391   :  { %18449 = vst [vmem:[#allocation47_spill] sm:$0xff] %v12328_v53  ;;  %v3656_v48 = vcombine.high %v12317_v25, %v12328_v53  ;;  %v12344_v63 = vmul.f32 %v8688_v33, %v18458_v16  ;;  %v2743_v1 = vsub.f32 %v2487_v47, %v18460_v46  ;;  %4131 = vrot.lane.b32.xlu0 %v18461_v41, %s9164_s1  ;;  %v18468_v53 = vld [vmem:[#allocation150_spill] sm:$0xff]  ;;  %v18470_v25 = vld [vmem:[#allocation68_spill] sm:$0xff] }
 0x392   :  { %v3665_v30 = vcombine.low %v3236_v44, %v3238_v54  ;;  %v2864_v44 = vadd.f32 1e-05, %v2736_v18  ;;  %v18462_v16 = vcombine.low %v12232_v55, %v12240_v12  ;;  %v8690_v54 = vpop.eup %8689  ;;  %v2738_v29 = vsub.f32 %v2482_v2, %v11878_v36  ;;  %v18474_v55 = vld [vmem:[#allocation79_spill] sm:$0xff] }
 0x393   :  { %v2489_v18 = vmul.f32 0.03125, %v2135_v51  ;;  %v8692_v47 = vpop.eup %8691  ;;  %v12374_v60 = vmul.f32 %v12314_v58, %v12314_v58  ;;  %v2484_v36 = vmul.f32 0.03125, %v2120_v62  ;;  %v12382_v51 = vmul.f32 %v12349_v21, %v12349_v21  ;;  %v2141_v12 = vpop.xlane.xlu1 %2140  ;;  %v18475_v58 = vld [vmem:[#allocation165_spill] sm:$0xff] }
 0x394   :  { %v3664_v56 = vrot.slane %v18462_v16, %v18283_v28  ;;  %v3672_v33 = vrot.slane %v3665_v30, %v18283_v28  ;;  %v2871_v30 = vadd.f32 1e-05, %v2743_v1  ;;  %v8694_v46 = vpop.eup %8693  ;;  %v2866_v10 = vadd.f32 1e-05, %v2738_v29  ;;  %v18467_v1 = vld [vmem:[#allocation66_spill] sm:$0xff]  ;;  %v2126_v26 = vpop.xlane.xlu0 %2125 }
 0x395   :  { %v2745_v49 = vsub.f32 %v2489_v18, %v18466_v0  ;;  %4135 = vrot.lane.b32.xlu0 %v3656_v48, %s9164_s1  ;;  %v8696_v2 = vpop.eup %8695  ;;  %8705 = vrsqrt.f32 %v2864_v44  ;;  %v18472_v16 = vsub.f32 %v18470_v25, %v18471_v38  ;;  %v18473_v18 = vld [vmem:[#allocation242_spill] sm:$0xff]  ;;  %v2491_v48 = vmul.f32 0.03125, %v2141_v12 }
 0x396   :  { %v3689_v19 = vcombine.low %v3664_v56, %v3672_v33  ;;  %v18469_v56 = vsub.f32 %v18467_v1, %v18468_v53  ;;  %8707 = vrsqrt.f32 %v2866_v10  ;;  %v2740_v62 = vsub.f32 %v2484_v36, %v18473_v18  ;;  %v18478_v53 = vld [vmem:[#allocation167_spill] sm:$0xff]  ;;  %v8698_v38 = vpop.eup %8697  ;;  %v18482_v36 = vld [vmem:[#allocation197_spill] sm:$0xff] }
 0x397   :  { %v3242_v29 = vmul.f32 %v8692_v47, %v18472_v16  ;;  %v2873_v0 = vadd.f32 1e-05, %v2745_v49  ;;  %8709 = vrsqrt.f32 %v2871_v30  ;;  %v18476_v44 = vsub.f32 %v18474_v55, %v18475_v58  ;;  %v18480_v47 = vld [vmem:[#allocation113_spill] sm:$0xff]  ;;  %v2147_v30 = vpop.xlane.xlu1 %2146 }
 0x398   :  { %v3240_v33 = vmul.f32 %v8690_v54, %v18469_v56  ;;  %v18479_v54 = vsub.f32 %v18477_v32, %v18478_v53  ;;  %v2868_v25 = vadd.f32 1e-05, %v2740_v62  ;;  %v2747_v10 = vsub.f32 %v2491_v48, %v11844_v20  ;;  %v2132_v62 = vpop.xlane.xlu0 %2131  ;;  %v18487_v48 = vld [vmem:[#allocation164_spill] sm:$0xff] }
 0x399   :  { %v12394_v41 = vmul.f32 %v8694_v46, %v18476_v44  ;;  %8711 = vrsqrt.f32 %v2873_v0  ;;  %v2486_v49 = vmul.f32 0.03125, %v2126_v26  ;;  %v18481_v58 = vcombine.low %v12290_v24, %v12295_v13  ;;  %v8700_v16 = vpop.eup %8699  ;;  %v18483_v26 = vld [vmem:[#allocation245_spill] sm:$0xff]  ;;  %v18484_v0 = vld [vmem:[#allocation198_spill] sm:$0xff] }
 0x39a   :  { %v3681_v14 = vcombine.low %v3240_v33, %v3242_v29  ;;  %v12399_v1 = vmul.f32 %v8696_v2, %v18479_v54  ;;  %v12412_v2 = vmul.f32 0.03125, %v18482_v36  ;;  %v2875_v20 = vadd.f32 1e-05, %v2747_v10  ;;  %v8702_v29 = vpop.eup %8701 }
 0x39b   :  { %v3680_v55 = vrot.slane %v18481_v58, %v18283_v28  ;;  %v2742_v56 = vsub.f32 %v2486_v49, %v18483_v26  ;;  %v2493_v33 = vmul.f32 0.03125, %v2147_v30  ;;  %v12416_v18 = vmul.f32 0.03125, %v18484_v0  ;;  %v2153_v30 = vpop.xlane.xlu1 %2152  ;;  %v18490_v26 = vld [vmem:[#allocation80_spill] sm:$0xff]  ;;  %v18491_v0 = vld [vmem:[#allocation166_spill] sm:$0xff] }
 0x39c   :  { %v3688_v46 = vrot.slane %v3681_v14, %v18283_v28  ;;  %v12419_v24 = vrot.slane %v3689_v19, %v18295_v23  ;;  %v18486_v14 = vld [vmem:[#allocation78_spill] sm:$0xff]  ;;  %8713 = vrsqrt.f32 %v2868_v25  ;;  %v2488_v58 = vmul.f32 0.03125, %v2132_v62  ;;  %v18496_v25 = vld [vmem:[#allocation169_spill] sm:$0xff] }
 0x39d   :  { %v18488_v44 = vsub.f32 %v18486_v14, %v18487_v48  ;;  %v2870_v54 = vadd.f32 1e-05, %v2742_v56  ;;  %v2749_v10 = vsub.f32 %v2493_v33, %v11884_v17  ;;  %v8704_v49 = vpop.eup %8703  ;;  %8715 = vrsqrt.f32 %v2875_v20  ;;  %v2138_v33 = vpop.xlane.xlu0 %2137  ;;  %v18498_v48 = vld [vmem:[#allocation155_spill] sm:$0xff] }
 0x39e   :  { %18485 = vst [vmem:[#allocation121_spill] sm:$0xff] %v12419_v24  ;;  %v3697_v13 = vcombine.low %v3680_v55, %v3688_v46  ;;  %v18492_v19 = vsub.f32 %v18490_v26, %v18491_v0  ;;  %v18493_v55 = vld [vmem:[#allocation67_spill] sm:$0xff]  ;;  %v18494_v46 = vld [vmem:[#allocation153_spill] sm:$0xff]  ;;  %v2744_v17 = vsub.f32 %v2488_v58, %v18496_v25  ;;  %v2495_v56 = vmul.f32 0.03125, %v2153_v30 }
 0x39f   :  { %v3244_v53 = vmul.f32 %v8698_v38, %v18488_v44  ;;  %v18495_v32 = vsub.f32 %v18493_v55, %v18494_v46  ;;  %8717 = vrsqrt.f32 %v2870_v54  ;;  %v2877_v38 = vadd.f32 1e-05, %v2749_v10  ;;  %v2159_v30 = vpop.xlane.xlu1 %2158  ;;  %v18509_v0 = vld [vmem:[#allocation161_spill] sm:$0xff] }
 0x3a0   :  { %v12426_v36 = vrot.slane %v3697_v13, %v18295_v23  ;;  %v3246_v12 = vmul.f32 %v8702_v29, %v18492_v19  ;;  %v18497_v13 = vld [vmem:[#allocation69_spill] sm:$0xff]  ;;  %v2751_v54 = vsub.f32 %v2495_v56, %v11959_v50  ;;  %v2490_v10 = vmul.f32 0.03125, %v2138_v33  ;;  %v18502_v50 = vld [vmem:[#allocation116_spill] sm:$0xff] }
 0x3a1   :  { %v12434_v14 = vmul.f32 %v8700_v16, %v18495_v32  ;;  %v18499_v44 = vsub.f32 %v18497_v13, %v18498_v48  ;;  %v18500_v32 = vld [vmem:[#allocation199_spill] sm:$0xff]  ;;  %8719 = vrsqrt.f32 %v2877_v38  ;;  %v2872_v58 = vadd.f32 1e-05, %v2744_v17 }
 0x3a2   :  { %18489 = vst [vmem:[#allocation118_spill] sm:$0xff] %v12426_v36  ;;  %v3706_v20 = vcombine.high %v12419_v24, %v12426_v36  ;;  %v3715_v62 = vcombine.low %v3244_v53, %v3246_v12  ;;  %v12447_v16 = vmul.f32 0.03125, %v18500_v32  ;;  %v18501_v12 = vcombine.low %v12336_v40, %v12344_v63  ;;  %v8706_v19 = vpop.eup %8705  ;;  %v18503_v63 = vld [vmem:[#allocation23_spill] sm:$0xff]  ;;  %v18511_v24 = vld [vmem:[#allocation77_spill] sm:$0xff] }
 0x3a3   :  { %v12442_v26 = vmul.f32 %v8704_v49, %v18499_v44  ;;  %v12460_v55 = vmul.f32 %v12412_v2, %v12412_v2  ;;  %v2746_v38 = vsub.f32 %v2490_v10, %v11824_v45  ;;  %v2497_v25 = vmul.f32 0.03125, %v2159_v30  ;;  %v8708_v17 = vpop.eup %8707  ;;  %v18504_v30 = vld [vmem:[#allocation202_spill] sm:$0xff]  ;;  %v2165_v29 = vpop.xlane.xlu1 %2164 }
 0x3a4   :  { %4137 = vrot.lane.b32.xlu1 %v3706_v20, %s9164_s1  ;;  %v3714_v53 = vrot.slane %v18501_v12, %v18283_v28  ;;  %v3722_v49 = vrot.slane %v3715_v62, %v18283_v28  ;;  %v12467_v40 = vmul.f32 %v12416_v18, %v12416_v18  ;;  %v2879_v33 = vadd.f32 1e-05, %v2751_v54  ;;  %v2144_v20 = vpop.xlane.xlu0 %2143  ;;  %v8710_v13 = vpop.eup %8709 }
 0x3a5   :  { %v12473_v48 = vmul.f32 %v12447_v16, %v12447_v16  ;;  %v2874_v44 = vadd.f32 1e-05, %v2746_v38  ;;  %v2753_v45 = vsub.f32 %v2497_v25, %v12003_v57  ;;  %v2492_v32 = vmul.f32 0.03125, %v2144_v20 }
 0x3a6   :  { %v3739_v62 = vcombine.low %v3714_v53, %v3722_v49  ;;  %v8712_v10 = vpop.eup %8711  ;;  %v12477_v12 = vmul.f32 0.03125, %v18504_v30  ;;  %8721 = vrsqrt.f32 %v2872_v58  ;;  %v18506_v54 = vsub.f32 %v18233_v37, %v11809_v52  ;;  %v18508_v30 = vld [vmem:[#allocation75_spill] sm:$0xff] }
 0x3a7   :  { %v18507_v53 = vsub.f32 %v18243_v9, %v11851_v5  ;;  %8723 = vrsqrt.f32 %v2874_v44  ;;  %v2881_v46 = vadd.f32 1e-05, %v2753_v45  ;;  %v2748_v38 = vsub.f32 %v2492_v32, %v11951_v34  ;;  %v18512_v52 = vld [vmem:[#allocation163_spill] sm:$0xff]  ;;  %v18514_v9 = vld [vmem:[#allocation172_spill] sm:$0xff] }
 0x3a8   :  { %18505 = vst [vmem:[#allocation210_spill] sm:$0xff] %v12477_v12  ;;  %v3248_v56 = vmul.f32 %v8706_v19, %v18506_v54  ;;  %v2499_v57 = vmul.f32 0.03125, %v2165_v29  ;;  %8725 = vrsqrt.f32 %v2879_v33  ;;  %v2150_v25 = vpop.xlane.xlu0 %2149  ;;  %v18510_v58 = vsub.f32 %v18508_v30, %v18509_v0  ;;  %v18515_v29 = vld [vmem:[#allocation119_spill] sm:$0xff]  ;;  %v18528_v33 = vld [vmem:[#allocation162_spill] sm:$0xff] }
 0x3a9   :  { %v3250_v49 = vmul.f32 %v8708_v17, %v18507_v53  ;;  %v18513_v37 = vsub.f32 %v18511_v24, %v18512_v52  ;;  %8727 = vrsqrt.f32 %v2881_v46  ;;  %v2876_v5 = vadd.f32 1e-05, %v2748_v38  ;;  %v8714_v34 = vpop.eup %8713  ;;  %v18517_v38 = vld [vmem:[#allocation203_spill] sm:$0xff] }
 0x3aa   :  { %v12489_v36 = vmul.f32 %v8710_v13, %v18510_v58  ;;  %v2755_v17 = vsub.f32 %v2499_v57, %v18514_v9  ;;  %v2494_v44 = vmul.f32 0.03125, %v2150_v25  ;;  %v18516_v0 = vcombine.low %v12394_v41, %v12399_v1  ;;  %v8716_v46 = vpop.eup %8715  ;;  %v18519_v41 = vld [vmem:[#allocation204_spill] sm:$0xff]  ;;  %v18521_v58 = vld [vmem:[#allocation173_spill] sm:$0xff] }
 0x3ab   :  { %v3731_v20 = vcombine.low %v3248_v56, %v3250_v49  ;;  %v12494_v19 = vmul.f32 %v8712_v10, %v18513_v37  ;;  %v2171_v56 = vpop.xlane.xlu1 %2170  ;;  %v12508_v32 = vmul.f32 %v12477_v12, %v12477_v12  ;;  %v12512_v57 = vmul.f32 0.03125, %v18517_v38  ;;  %v18550_v12 = vld [vmem:[#allocation100_spill] sm:$0xff] }
 0x3ac   :  { %v3730_v13 = vrot.slane %v18516_v0, %v18283_v28  ;;  %v2883_v10 = vadd.f32 1e-05, %v2755_v17  ;;  %v2750_v54 = vsub.f32 %v2494_v44, %v11965_v27  ;;  %v2501_v53 = vmul.f32 0.03125, %v2171_v56  ;;  %v8718_v49 = vpop.eup %8717  ;;  %v2156_v25 = vpop.xlane.xlu0 %2155  ;;  %v18524_v56 = vld [vmem:[#allocation74_spill] sm:$0xff]  ;;  %v18525_v0 = vld [vmem:[#allocation160_spill] sm:$0xff] }
 0x3ad   :  { %v3738_v45 = vrot.slane %v3731_v20, %v18283_v28  ;;  %18518 = vst [vmem:[#allocation34_spill] sm:$0xff] %v12512_v57  ;;  %v12515_v1 = vmul.f32 0.03125, %v18519_v41  ;;  %8729 = vrsqrt.f32 %v2876_v5  ;;  %v2496_v37 = vmul.f32 0.03125, %v2156_v25  ;;  %v18527_v5 = vld [vmem:[#allocation76_spill] sm:$0xff] }
 0x3ae   :  { %v2878_v30 = vadd.f32 1e-05, %v2750_v54  ;;  %v2757_v52 = vsub.f32 %v2501_v53, %v18521_v58  ;;  %v12519_v9 = vrot.slane %v3739_v62, %v18295_v23  ;;  %v8720_v17 = vpop.eup %8719  ;;  %8731 = vrsqrt.f32 %v2883_v10 }
 0x3af   :  { %18520 = vst [vmem:[#allocation17_spill] sm:$0xff] %v12515_v1  ;;  %v3747_v20 = vcombine.low %v3730_v13, %v3738_v45  ;;  %v2177_v27 = vpop.xlane.xlu1 %2176  ;;  %v18526_v38 = vsub.f32 %v18524_v56, %v18525_v0  ;;  %v18529_v13 = vsub.f32 %v18527_v5, %v18528_v33  ;;  %v2752_v53 = vsub.f32 %v2496_v37, %v12161_v3 }
 0x3b0   :  { %18522 = vst [vmem:[#allocation186_spill] sm:$0xff] %v12519_v9  ;;  %8733 = vrsqrt.f32 %v2878_v30  ;;  %v2885_v54 = vadd.f32 1e-05, %v2757_v52  ;;  %v2503_v62 = vmul.f32 0.03125, %v2177_v27  ;;  %v2162_v25 = vpop.xlane.xlu0 %2161  ;;  %v12566_v5 = vmul.f32 %v12515_v1, %v12515_v1  ;;  %v18548_v1 = vld [vmem:[#allocation90_spill] sm:$0xff] }
 0x3b1   :  { %v12522_v44 = vrot.slane %v3747_v20, %v18295_v23  ;;  %v3252_v41 = vmul.f32 %v8714_v34, %v18526_v38  ;;  %v3254_v45 = vmul.f32 %v8718_v49, %v18529_v13  ;;  %v18530_v20 = vsub.f32 %v18234_v35, %v11812_v4  ;;  %v18532_v49 = vld [vmem:[#allocation207_spill] sm:$0xff] }
 0x3b2   :  { %v18531_v34 = vsub.f32 %v18244_v59, %v11854_v39  ;;  %v12544_v30 = vmul.f32 0.03125, %v18532_v49  ;;  %8735 = vrsqrt.f32 %v2885_v54  ;;  %v2759_v3 = vsub.f32 %v2503_v62, %v11903_v7 }
 0x3b3   :  { %18523 = vst [vmem:[#allocation211_spill] sm:$0xff] %v12522_v44  ;;  %v3756_v10 = vcombine.high %v12519_v9, %v12522_v44  ;;  %v3765_v58 = vcombine.low %v3252_v41, %v3254_v45  ;;  %v12536_v24 = vmul.f32 %v8716_v46, %v18530_v20  ;;  %v2498_v52 = vmul.f32 0.03125, %v2162_v25  ;;  %v2183_v27 = vpop.xlane.xlu1 %2182  ;;  %v8722_v46 = vpop.eup %8721  ;;  %v18546_v25 = vld [vmem:[#allocation174_spill] sm:$0xff] }
 0x3b4   :  { %v12541_v33 = vmul.f32 %v8720_v17, %v18531_v34  ;;  %18533 = vst [vmem:[#allocation32_spill] sm:$0xff] %v12544_v30  ;;  %v2880_v37 = vadd.f32 1e-05, %v2752_v53  ;;  %v18534_v4 = vcombine.low %v12434_v14, %v12442_v26  ;;  %v12559_v7 = vmul.f32 %v12512_v57, %v12512_v57  ;;  %v8724_v41 = vpop.eup %8723  ;;  %v2168_v45 = vpop.xlane.xlu0 %2167  ;;  %v18547_v14 = vld [vmem:[#allocation99_spill] sm:$0xff] }
 0x3b5   :  { %4139 = vrot.lane.b32.xlu0 %v3756_v10, %s9164_s1  ;;  %v3772_v39 = vrot.slane %v3765_v58, %v18283_v28  ;;  %v2754_v0 = vsub.f32 %v2498_v52, %v12246_v8  ;;  %v2505_v38 = vmul.f32 0.03125, %v2183_v27  ;;  %v2887_v13 = vadd.f32 1e-05, %v2759_v3  ;;  %v8726_v53 = vpop.eup %8725  ;;  %v18538_v58 = vld [vmem:[#allocation179_spill] sm:$0xff] }
 0x3b6   :  { %v3764_v35 = vrot.slane %v18534_v4, %v18283_v28  ;;  %v2500_v8 = vmul.f32 0.03125, %v2168_v45  ;;  %v8728_v34 = vpop.eup %8727  ;;  %v12573_v49 = vmul.f32 %v12544_v30, %v12544_v30  ;;  %8737 = vrsqrt.f32 %v2880_v37  ;;  %v18540_v27 = vld [vmem:[#allocation83_spill] sm:$0xff]  ;;  %v18541_v4 = vld [vmem:[#allocation168_spill] sm:$0xff] }
 0x3b7   :  { %v2882_v10 = vadd.f32 1e-05, %v2754_v0  ;;  %v2761_v20 = vsub.f32 %v2505_v38, %v18538_v58  ;;  %v2189_v52 = vpop.xlane.xlu1 %2188  ;;  %v18542_v3 = vsub.f32 %v18540_v27, %v18541_v4  ;;  %v18549_v37 = vsub.f32 %v18547_v14, %v18548_v1  ;;  %v18551_v27 = vld [vmem:[#allocation180_spill] sm:$0xff] }
 0x3b8   :  { %v3789_v54 = vcombine.low %v3764_v35, %v3772_v39  ;;  %18539 = vst [vmem:[#allocation212_spill] sm:$0xff] %v12573_v49  ;;  %v18543_v35 = vld [vmem:[#allocation86_spill] sm:$0xff]  ;;  %v2756_v38 = vsub.f32 %v2500_v8, %v18546_v25  ;;  %v2507_v45 = vmul.f32 0.03125, %v2189_v52  ;;  %v2174_v58 = vpop.xlane.xlu0 %2173  ;;  %v18555_v1 = vcombine.low %v12489_v36, %v12494_v19  ;;  %v18556_v8 = vld [vmem:[#allocation85_spill] sm:$0xff] }
 0x3b9   :  { %v3256_v26 = vmul.f32 %v8722_v46, %v18542_v3  ;;  %v18544_v39 = vld [vmem:[#allocation170_spill] sm:$0xff]  ;;  %8739 = vrsqrt.f32 %v2882_v10  ;;  %v2889_v0 = vadd.f32 1e-05, %v2761_v20  ;;  %v12585_v62 = vmul.f32 %v8726_v53, %v18549_v37 }
 0x3ba   :  { %v18545_v56 = vsub.f32 %v18543_v35, %v18544_v39  ;;  %8741 = vrsqrt.f32 %v2887_v13  ;;  %v18552_v46 = vsub.f32 %v18550_v12, %v18551_v27  ;;  %v8730_v3 = vpop.eup %8729  ;;  %v2502_v25 = vmul.f32 0.03125, %v2174_v58  ;;  %v18557_v35 = vld [vmem:[#allocation91_spill] sm:$0xff]  ;;  %v18561_v27 = vld [vmem:[#allocation177_spill] sm:$0xff]  ;;  %v18564_v20 = vld [vmem:[#allocation178_spill] sm:$0xff] }
 0x3bb   :  { %8743 = vrsqrt.f32 %v2889_v0  ;;  %v3780_v14 = vrot.slane %v18555_v1, %v18283_v28  ;;  %v8732_v53 = vpop.eup %8731  ;;  %v12610_v36 = vrot.slane %v3789_v54, %v18295_v23  ;;  %v18583_v13 = vld [vmem:[#allocation94_spill] sm:$0xff] }
 0x3bc   :  { %v3258_v59 = vmul.f32 %v8724_v41, %v18545_v56  ;;  %v12590_v4 = vmul.f32 %v8728_v34, %v18552_v46  ;;  %v2884_v56 = vadd.f32 1e-05, %v2756_v38  ;;  %v18553_v41 = vld [vmem:[#allocation38_spill] sm:$0xff]  ;;  %v12603_v34 = vmul.f32 0.03125, %v18556_v8  ;;  %v2180_v37 = vpop.xlane.xlu0 %2179 }
 0x3bd   :  { %v2763_v10 = vsub.f32 %v2507_v45, %v18553_v41  ;;  %v2758_v39 = vsub.f32 %v2502_v25, %v18557_v35  ;;  %v8734_v38 = vpop.eup %8733  ;;  %v18558_v45 = vld [vmem:[#allocation216_spill] sm:$0xff]  ;;  %v2504_v8 = vmul.f32 0.03125, %v2180_v37 }
 0x3be   :  { %v3781_v57 = vcombine.low %v3256_v26, %v3258_v59  ;;  %v2195_v59 = vpop.xlane.xlu1 %2194  ;;  %v12607_v58 = vmul.f32 0.03125, %v18558_v45  ;;  %8745 = vrsqrt.f32 %v2884_v56  ;;  %v18563_v45 = vld [vmem:[#allocation101_spill] sm:$0xff]  ;;  %v18569_v56 = vld [vmem:[#allocation183_spill] sm:$0xff] }
 0x3bf   :  { %v2891_v52 = vadd.f32 1e-05, %v2763_v10  ;;  %v2509_v0 = vmul.f32 0.03125, %v2195_v59  ;;  %v2886_v1 = vadd.f32 1e-05, %v2758_v39  ;;  %v8736_v25 = vpop.eup %8735  ;;  %v18565_v54 = vsub.f32 %v18563_v45, %v18564_v20  ;;  %v18579_v45 = vld [vmem:[#allocation18_spill] sm:$0xff] }
 0x3c0   :  { %v3788_v26 = vrot.slane %v3781_v57, %v18283_v28  ;;  %18559 = vst [vmem:[#allocation213_spill] sm:$0xff] %v12607_v58  ;;  %v18560_v57 = vld [vmem:[#allocation98_spill] sm:$0xff] }
 0x3c1   :  { %v18562_v46 = vsub.f32 %v18560_v57, %v18561_v27  ;;  %v2765_v10 = vsub.f32 %v2509_v0, %v12264_v42  ;;  %8747 = vrsqrt.f32 %v2891_v52  ;;  %v3262_v12 = vmul.f32 %v8734_v38, %v18565_v54  ;;  %v2186_v0 = vpop.xlane.xlu0 %2185  ;;  %v18571_v27 = vld [vmem:[#allocation171_spill] sm:$0xff]  ;;  %v18584_v38 = vld [vmem:[#allocation88_spill] sm:$0xff] }
 0x3c2   :  { %v3797_v19 = vcombine.low %v3780_v14, %v3788_v26  ;;  %v2201_v59 = vpop.xlane.xlu1 %2200  ;;  %v18566_v14 = vld [vmem:[#allocation84_spill] sm:$0xff]  ;;  %v18567_v26 = vld [vmem:[#allocation201_spill] sm:$0xff]  ;;  %8749 = vrsqrt.f32 %v2886_v1  ;;  %v2760_v42 = vsub.f32 %v2504_v8, %v18569_v56 }
 0x3c3   :  { %v3260_v41 = vmul.f32 %v8730_v3, %v18562_v46  ;;  %v18568_v30 = vsub.f32 %v18566_v14, %v18567_v26  ;;  %v2893_v3 = vadd.f32 1e-05, %v2765_v10  ;;  %v2511_v39 = vmul.f32 0.03125, %v2201_v59  ;;  %v8738_v54 = vpop.eup %8737 }
 0x3c4   :  { %v12617_v35 = vrot.slane %v3797_v19, %v18295_v23  ;;  %v18570_v19 = vld [vmem:[#allocation87_spill] sm:$0xff]  ;;  %v2506_v10 = vmul.f32 0.03125, %v2186_v0  ;;  %v2888_v8 = vadd.f32 1e-05, %v2760_v42  ;;  %v12651_v14 = vmul.f32 %v12603_v34, %v12603_v34 }
 0x3c5   :  { %v12625_v57 = vmul.f32 %v8732_v53, %v18568_v30  ;;  %v3815_v37 = vcombine.low %v3260_v41, %v3262_v12  ;;  %v18572_v46 = vsub.f32 %v18570_v19, %v18571_v27  ;;  %v18573_v30 = vld [vmem:[#allocation20_spill] sm:$0xff]  ;;  %8751 = vrsqrt.f32 %v2893_v3  ;;  %v18580_v0 = vld [vmem:[#allocation95_spill] sm:$0xff] }
 0x3c6   :  { %v3806_v52 = vcombine.high %v12610_v36, %v12617_v35  ;;  %v12638_v53 = vmul.f32 0.03125, %v18573_v30  ;;  %v2767_v1 = vsub.f32 %v2511_v39, %v12460_v55  ;;  %v2207_v59 = vpop.xlane.xlu1 %2206  ;;  %v18574_v12 = vcombine.low %v12536_v24, %v12541_v33  ;;  %v18575_v55 = vld [vmem:[#allocation125_spill] sm:$0xff]  ;;  %v18576_v3 = vld [vmem:[#allocation92_spill] sm:$0xff]  ;;  %v8740_v39 = vpop.eup %8739 }
 0x3c7   :  { %v12633_v20 = vmul.f32 %v8736_v25, %v18572_v46  ;;  %v3822_v25 = vrot.slane %v3815_v37, %v18283_v28  ;;  %v2762_v56 = vsub.f32 %v2506_v10, %v18576_v3  ;;  %v2513_v42 = vmul.f32 0.03125, %v2207_v59  ;;  %v2192_v37 = vpop.xlane.xlu0 %2191  ;;  %v8742_v27 = vpop.eup %8741  ;;  %v18578_v3 = vld [vmem:[#allocation128_spill] sm:$0xff] }
 0x3c8   :  { %4141 = vrot.lane.b32.xlu1 %v3806_v52, %s9164_s1  ;;  %v3814_v41 = vrot.slane %v18574_v12, %v18283_v28  ;;  %v12658_v24 = vmul.f32 %v12607_v58, %v12607_v58  ;;  %v2895_v52 = vadd.f32 1e-05, %v2767_v1  ;;  %v12664_v46 = vmul.f32 %v12638_v53, %v12638_v53  ;;  %v8744_v12 = vpop.eup %8743  ;;  %v18586_v58 = vld [vmem:[#allocation96_spill] sm:$0xff] }
 0x3c9   :  { %v2890_v30 = vadd.f32 1e-05, %v2762_v56  ;;  %v2769_v10 = vsub.f32 %v2513_v42, %v12473_v48  ;;  %v2508_v59 = vmul.f32 0.03125, %v2192_v37  ;;  %8753 = vrsqrt.f32 %v2888_v8 }
 0x3ca   :  { %v3839_v19 = vcombine.low %v3814_v41, %v3822_v25  ;;  %v2213_v26 = vpop.xlane.xlu1 %2212  ;;  %v18581_v1 = vsub.f32 %v18579_v45, %v18580_v0  ;;  %v18582_v41 = vsub.f32 %v18416_v43, %v12192_v15  ;;  %v18585_v8 = vsub.f32 %v18583_v13, %v18584_v38  ;;  %v18587_v45 = vld [vmem:[#allocation176_spill] sm:$0xff]  ;;  %v18589_v43 = vld [vmem:[#allocation29_spill] sm:$0xff] }
 0x3cb   :  { %8755 = vrsqrt.f32 %v2890_v30  ;;  %v2897_v9 = vadd.f32 1e-05, %v2769_v10  ;;  %v2764_v56 = vsub.f32 %v2508_v59, %v12382_v51  ;;  %v2515_v48 = vmul.f32 0.03125, %v2213_v26  ;;  %v2198_v42 = vpop.xlane.xlu0 %2197  ;;  %v8746_v51 = vpop.eup %8745  ;;  %v18590_v26 = vld [vmem:[#allocation21_spill] sm:$0xff] }
 0x3cc   :  { %v3264_v44 = vmul.f32 %v8738_v54, %v18581_v1  ;;  %v3266_v25 = vmul.f32 %v8740_v39, %v18582_v41  ;;  %8757 = vrsqrt.f32 %v2895_v52  ;;  %v12679_v17 = vmul.f32 %v8742_v27, %v18585_v8  ;;  %v18592_v10 = vld [vmem:[#allocation221_spill] sm:$0xff] }
 0x3cd   :  { %v18588_v54 = vsub.f32 %v18586_v58, %v18587_v45  ;;  %8759 = vrsqrt.f32 %v2897_v9  ;;  %v2892_v15 = vadd.f32 1e-05, %v2764_v56  ;;  %v2771_v39 = vsub.f32 %v2515_v48, %v18589_v43  ;;  %v18593_v56 = vld [vmem:[#allocation27_spill] sm:$0xff]  ;;  %v18596_v45 = vld [vmem:[#allocation208_spill] sm:$0xff]  ;;  %v18604_v58 = vld [vmem:[#allocation226_spill] sm:$0xff] }
 0x3ce   :  { %v3831_v37 = vcombine.low %v3264_v44, %v3266_v25  ;;  %v2510_v30 = vmul.f32 0.03125, %v2198_v42  ;;  %v12688_v52 = vmul.f32 0.03125, %v18590_v26  ;;  %v2219_v44 = vpop.xlane.xlu1 %2218  ;;  %v18591_v13 = vcombine.low %v12585_v62, %v12590_v4  ;;  %v8748_v9 = vpop.eup %8747  ;;  %v18595_v42 = vld [vmem:[#allocation123_spill] sm:$0xff] }
 0x3cf   :  { %v12684_v0 = vmul.f32 %v8744_v12, %v18588_v54  ;;  %v12698_v59 = vmul.f32 0.03125, %v18592_v10  ;;  %v2899_v12 = vadd.f32 1e-05, %v2771_v39  ;;  %v2517_v41 = vmul.f32 0.03125, %v2219_v44  ;;  %v8750_v25 = vpop.eup %8749  ;;  %v2204_v4 = vpop.xlane.xlu0 %2203  ;;  %v18597_v44 = vld [vmem:[#allocation93_spill] sm:$0xff] }
 0x3d0   :  { %v3830_v38 = vrot.slane %v18591_v13, %v18283_v28  ;;  %v3838_v27 = vrot.slane %v3831_v37, %v18283_v28  ;;  %v2766_v1 = vsub.f32 %v2510_v30, %v12467_v40  ;;  %v12702_v48 = vmul.f32 0.03125, %v18593_v56  ;;  %v18598_v13 = vld [vmem:[#allocation89_spill] sm:$0xff] }
 0x3d1   :  { %v12705_v62 = vmul.f32 0.03125, %v18595_v42  ;;  %8761 = vrsqrt.f32 %v2892_v15  ;;  %v2773_v54 = vsub.f32 %v2517_v41, %v18596_v45  ;;  %v2512_v43 = vmul.f32 0.03125, %v2204_v4  ;;  %v18600_v15 = vld [vmem:[#allocation97_spill] sm:$0xff]  ;;  %v18601_v42 = vld [vmem:[#allocation175_spill] sm:$0xff] }
 0x3d2   :  { %18594 = vst [vmem:[#allocation54_spill] sm:$0xff] %v12702_v48  ;;  %v3847_v37 = vcombine.low %v3830_v38, %v3838_v27  ;;  %v2894_v8 = vadd.f32 1e-05, %v2766_v1  ;;  %v12709_v26 = vrot.slane %v3839_v19, %v18295_v23  ;;  %v8752_v39 = vpop.eup %8751  ;;  %8763 = vrsqrt.f32 %v2899_v12  ;;  %v2225_v40 = vpop.xlane.xlu1 %2224 }
 0x3d3   :  { %v18599_v10 = vsub.f32 %v18597_v44, %v18598_v13  ;;  %v18602_v38 = vsub.f32 %v18600_v15, %v18601_v42  ;;  %v2901_v1 = vadd.f32 1e-05, %v2773_v54  ;;  %v2768_v41 = vsub.f32 %v2512_v43, %v12651_v14  ;;  %v2210_v4 = vpop.xlane.xlu0 %2209 }
 0x3d4   :  { %v12712_v30 = vrot.slane %v3847_v37, %v18295_v23  ;;  %8765 = vrsqrt.f32 %v2894_v8  ;;  %v2519_v19 = vmul.f32 0.03125, %v2225_v40  ;;  %v18603_v37 = vld [vmem:[#allocation19_spill] sm:$0xff]  ;;  %v2514_v8 = vmul.f32 0.03125, %v2210_v4 }
 0x3d5   :  { %v3268_v56 = vmul.f32 %v8746_v51, %v18599_v10  ;;  %v3270_v27 = vmul.f32 %v8750_v25, %v18602_v38  ;;  %v18605_v33 = vsub.f32 %v18603_v37, %v18604_v58  ;;  %v18606_v51 = vsub.f32 %v18418_v6, %v12206_v11  ;;  %v18614_v40 = vld [vmem:[#allocation11_spill] sm:$0xff] }
 0x3d6   :  { %v3856_v12 = vcombine.high %v12709_v26, %v12712_v30  ;;  %v12735_v25 = vmul.f32 %v12688_v52, %v12688_v52  ;;  %8767 = vrsqrt.f32 %v2901_v1  ;;  %v2775_v14 = vsub.f32 %v2519_v19, %v12300_v31  ;;  %v2231_v43 = vpop.xlane.xlu1 %2230  ;;  %v18608_v31 = vld [vmem:[#allocation28_spill] sm:$0xff]  ;;  %v18609_v1 = vld [vmem:[#allocation223_spill] sm:$0xff] }
 0x3d7   :  { %v3865_v45 = vcombine.low %v3268_v56, %v3270_v27  ;;  %v12726_v49 = vmul.f32 %v8748_v9, %v18605_v33  ;;  %v12731_v44 = vmul.f32 %v8752_v39, %v18606_v51  ;;  %v2896_v54 = vadd.f32 1e-05, %v2768_v41  ;;  %v8754_v9 = vpop.eup %8753  ;;  %v2216_v42 = vpop.xlane.xlu0 %2215 }
 0x3d8   :  { %4143 = vrot.lane.b32.xlu0 %v3856_v12, %s9164_s1  ;;  %v18607_v33 = vcombine.low %v12625_v57, %v12633_v20  ;;  %v12748_v39 = vmul.f32 %v12698_v59, %v12698_v59  ;;  %v2770_v13 = vsub.f32 %v2514_v8, %v12664_v46  ;;  %v2521_v10 = vmul.f32 0.03125, %v2231_v43  ;;  %v8756_v56 = vpop.eup %8755  ;;  %v18611_v8 = vld [vmem:[#allocation43_spill] sm:$0xff]  ;;  %v18612_v43 = vld [vmem:[#allocation181_spill] sm:$0xff] }
 0x3d9   :  { %v3872_v11 = vrot.slane %v3865_v45, %v18283_v28  ;;  %v12755_v57 = vmul.f32 %v12702_v48, %v12702_v48  ;;  %v12759_v20 = vmul.f32 %v12705_v62, %v12705_v62  ;;  %v2903_v15 = vadd.f32 1e-05, %v2775_v14  ;;  %v8758_v27 = vpop.eup %8757  ;;  %v18610_v45 = vld [vmem:[#allocation225_spill] sm:$0xff] }
 0x3da   :  { %v3864_v58 = vrot.slane %v18607_v33, %v18283_v28  ;;  %v12762_v41 = vmul.f32 0.03125, %v18609_v1  ;;  %v2898_v19 = vadd.f32 1e-05, %v2770_v13  ;;  %v2777_v46 = vsub.f32 %v2521_v10, %v12374_v60  ;;  %v8760_v12 = vpop.eup %8759  ;;  %v2237_v51 = vpop.xlane.xlu1 %2236  ;;  %v18617_v13 = vld [vmem:[#allocation45_spill] sm:$0xff] }
 0x3db   :  { %v2516_v4 = vmul.f32 0.03125, %v2216_v42  ;;  %v12766_v37 = vmul.f32 0.03125, %v18610_v45  ;;  %8769 = vrsqrt.f32 %v2896_v54  ;;  %v18613_v33 = vsub.f32 %v18611_v8, %v18612_v43  ;;  %v2222_v10 = vpop.xlane.xlu0 %2221 }
 0x3dc   :  { %v3889_v38 = vcombine.low %v3864_v58, %v3872_v11  ;;  %v18615_v58 = vld [vmem:[#allocation205_spill] sm:$0xff]  ;;  %8771 = vrsqrt.f32 %v2898_v19  ;;  %v2905_v1 = vadd.f32 1e-05, %v2777_v46  ;;  %v2523_v60 = vmul.f32 0.03125, %v2237_v51 }
 0x3dd   :  { %v3272_v14 = vmul.f32 %v8754_v9, %v18613_v33  ;;  %v18616_v11 = vsub.f32 %v18614_v40, %v18615_v58  ;;  %v2772_v48 = vsub.f32 %v2516_v4, %v18617_v13  ;;  %8773 = vrsqrt.f32 %v2903_v15  ;;  %v18620_v4 = vld [vmem:[#allocation227_spill] sm:$0xff]  ;;  %v18622_v33 = vld [vmem:[#allocation230_spill] sm:$0xff] }
 0x3de   :  { %v18618_v54 = vsub.f32 %v18502_v50, %v12412_v2  ;;  %v18619_v9 = vsub.f32 %v18515_v29, %v12447_v16  ;;  %v8762_v40 = vpop.eup %8761  ;;  %8775 = vrsqrt.f32 %v2905_v1  ;;  %v2779_v19 = vsub.f32 %v2523_v60, %v12658_v24 }
 0x3df   :  { %v3274_v6 = vmul.f32 %v8756_v56, %v18616_v11  ;;  %v2900_v56 = vadd.f32 1e-05, %v2772_v48  ;;  %v2518_v46 = vmul.f32 0.03125, %v2222_v10  ;;  %v12787_v15 = vmul.f32 0.03125, %v18620_v4  ;;  %v8764_v29 = vpop.eup %8763  ;;  %v2228_v58 = vpop.xlane.xlu0 %2227 }
 0x3e0   :  { %v12778_v45 = vmul.f32 %v8758_v27, %v18618_v54  ;;  %v12783_v8 = vmul.f32 %v8760_v12, %v18619_v9  ;;  %v18621_v2 = vcombine.low %v12679_v17, %v12684_v0  ;;  %v2655_v48 = vmul.f32 %v12766_v37, %v12766_v37 }
 0x3e1   :  { %v3881_v42 = vcombine.low %v3272_v14, %v3274_v6  ;;  %v2243_v6 = vpop.xlane.xlu1 %2242  ;;  %v2907_v24 = vadd.f32 1e-05, %v2779_v19  ;;  %v2774_v12 = vsub.f32 %v2518_v46, %v12367_v61  ;;  %v8766_v43 = vpop.eup %8765  ;;  %v12800_v14 = vmul.f32 0.03125, %v18622_v33  ;;  %v18625_v19 = vld [vmem:[#allocation104_spill] sm:$0xff]  ;;  %v18626_v46 = vld [vmem:[#allocation182_spill] sm:$0xff] }
 0x3e2   :  { %v3880_v50 = vrot.slane %v18621_v2, %v18283_v28  ;;  %v3923_v16 = vcombine.low %v12778_v45, %v12783_v8  ;;  %v2525_v51 = vmul.f32 0.03125, %v2243_v6  ;;  %v12803_v17 = vrot.slane %v3889_v38, %v18295_v23 }
 0x3e3   :  { %v3888_v27 = vrot.slane %v3881_v42, %v18283_v28  ;;  %v18623_v11 = vsub.f32 %v18480_v47, %v12349_v21  ;;  %8777 = vrsqrt.f32 %v2900_v56  ;;  %v2902_v13 = vadd.f32 1e-05, %v2774_v12  ;;  %v8768_v61 = vpop.eup %8767  ;;  %v2234_v56 = vpop.xlane.xlu0 %2233 }
 0x3e4   :  { %v2781_v60 = vsub.f32 %v2525_v51, %v12735_v25  ;;  %v2520_v10 = vmul.f32 0.03125, %v2228_v58  ;;  %8779 = vrsqrt.f32 %v2907_v24  ;;  %v18624_v38 = vsub.f32 %v18503_v63, %v12416_v18 }
 0x3e5   :  { %v3897_v0 = vcombine.low %v3880_v50, %v3888_v27  ;;  %v3276_v1 = vmul.f32 %v8762_v40, %v18623_v11  ;;  %v2249_v42 = vpop.xlane.xlu1 %2248  ;;  %v18627_v4 = vsub.f32 %v18625_v19, %v18626_v46  ;;  %8781 = vrsqrt.f32 %v2902_v13  ;;  %v18628_v50 = vld [vmem:[#allocation105_spill] sm:$0xff]  ;;  %v18629_v27 = vld [vmem:[#allocation30_spill] sm:$0xff]  ;;  %v18632_v46 = vld [vmem:[#allocation240_spill] sm:$0xff] }
 0x3e6   :  { %v3278_v9 = vmul.f32 %v8766_v43, %v18624_v38  ;;  %v2909_v47 = vadd.f32 1e-05, %v2781_v60  ;;  %v2776_v25 = vsub.f32 %v2520_v10, %v12508_v32  ;;  %v2527_v40 = vmul.f32 0.03125, %v2249_v42 }
 0x3e7   :  { %v12810_v54 = vrot.slane %v3897_v0, %v18295_v23  ;;  %v12818_v21 = vmul.f32 %v8764_v29, %v18627_v4  ;;  %v18630_v24 = vsub.f32 %v18628_v50, %v18629_v27  ;;  %v3805_v63 = vcombine.low %v12610_v36, %v12617_v35  ;;  %v2240_v42 = vpop.xlane.xlu0 %2239 }
 0x3e8   :  { %v3915_v2 = vcombine.low %v3276_v1, %v3278_v9  ;;  %8783 = vrsqrt.f32 %v2909_v47  ;;  %v2783_v29 = vsub.f32 %v2527_v40, %v2655_v48  ;;  %v2522_v12 = vmul.f32 0.03125, %v2234_v56  ;;  %v8770_v1 = vpop.eup %8769 }
 0x3e9   :  { %v3906_v6 = vcombine.high %v12803_v17, %v12810_v54  ;;  %v12826_v18 = vmul.f32 %v8768_v61, %v18630_v24  ;;  %v18631_v32 = vcombine.low %v12726_v49, %v12731_v44  ;;  %v2904_v43 = vadd.f32 1e-05, %v2776_v25  ;;  %v2255_v33 = vpop.xlane.xlu1 %2254  ;;  %v8772_v60 = vpop.eup %8771 }
 0x3ea   :  { %v3922_v58 = vrot.slane %v3915_v2, %v18283_v28  ;;  %v3855_v11 = vcombine.low %v12709_v26, %v12712_v30  ;;  %v2652_v48 = vmul.f32 %v12762_v41, %v12762_v41  ;;  %v2657_v49 = vmul.f32 %v12800_v14, %v12800_v14  ;;  %v8774_v19 = vpop.eup %8773 }
 0x3eb   :  { %v3914_v51 = vrot.slane %v18631_v32, %v18283_v28  ;;  %4145 = vrot.lane.b32.xlu1 %v3906_v6, %s9164_s1  ;;  %v3957_v0 = vcombine.low %v12818_v21, %v12826_v18  ;;  %v2778_v44 = vsub.f32 %v2522_v12, %v12566_v5  ;;  %v2529_v13 = vmul.f32 0.03125, %v2255_v33  ;;  %v8776_v56 = vpop.eup %8775  ;;  %v18633_v5 = vld [vmem:[#allocation244_spill] sm:$0xff]  ;;  %v2246_v33 = vpop.xlane.xlu0 %2245 }
 0x3ec   :  { %v2654_v10 = vmul.f32 %v12787_v15, %v12787_v15  ;;  %v2911_v61 = vadd.f32 1e-05, %v2783_v29  ;;  %v3905_v9 = vcombine.low %v12803_v17, %v12810_v54  ;;  %v12850_v4 = vmul.f32 0.03125, %v18632_v46 }
 0x3ed   :  { %v3939_v38 = vcombine.low %v3914_v51, %v3922_v58  ;;  %v2906_v47 = vadd.f32 1e-05, %v2778_v44  ;;  %v2785_v25 = vsub.f32 %v2529_v13, %v2657_v49  ;;  %v2524_v40 = vmul.f32 0.03125, %v2240_v42  ;;  %v2261_v2 = vpop.xlane.xlu1 %2260  ;;  %v18636_v49 = vld [vmem:[#allocation120_spill] sm:$0xff]  ;;  %v18638_v13 = vld [vmem:[#allocation22_spill] sm:$0xff]  ;;  %v18639_v42 = vld [vmem:[#allocation33_spill] sm:$0xff] }
 0x3ee   :  { %v12853_v6 = vmul.f32 0.03125, %v18633_v5  ;;  %8785 = vrsqrt.f32 %v2904_v43  ;;  %v18634_v50 = vsub.f32 %v18575_v55, %v12603_v34  ;;  %v18635_v24 = vsub.f32 %v18578_v3, %v12638_v53 }
 0x3ef   :  { %8787 = vrsqrt.f32 %v2906_v47  ;;  %v2913_v12 = vadd.f32 1e-05, %v2785_v25  ;;  %v2780_v32 = vsub.f32 %v2524_v40, %v2652_v48  ;;  %v2531_v51 = vmul.f32 0.03125, %v2261_v2 }
 0x3f0   :  { %v3280_v27 = vmul.f32 %v8770_v1, %v18634_v50  ;;  %v3282_v29 = vmul.f32 %v8772_v60, %v18635_v24  ;;  %8789 = vrsqrt.f32 %v2911_v61  ;;  %v18637_v44 = vsub.f32 %v18463_v22, %v18636_v49  ;;  %v8778_v48 = vpop.eup %8777  ;;  %v18641_v60 = vld [vmem:[#allocation31_spill] sm:$0xff]  ;;  %v18642_v24 = vld [vmem:[#allocation212_spill] sm:$0xff] }
 0x3f1   :  { %v18640_v34 = vsub.f32 %v18638_v13, %v18639_v42  ;;  %8791 = vrsqrt.f32 %v2913_v12  ;;  %v2908_v53 = vadd.f32 1e-05, %v2780_v32  ;;  %v2787_v3 = vsub.f32 %v2531_v51, %v12559_v7  ;;  %v2267_v46 = vpop.xlane.xlu1 %2266  ;;  %v8780_v25 = vpop.eup %8779  ;;  %v18643_v32 = vld [vmem:[#allocation109_spill] sm:$0xff]  ;;  %v18646_v13 = vld [vmem:[#allocation111_spill] sm:$0xff]  ;;  %v18647_v42 = vld [vmem:[#allocation82_spill] sm:$0xff] }
 0x3f2   :  { %v3931_v58 = vcombine.low %v3280_v27, %v3282_v29  ;;  %v12864_v43 = vmul.f32 %v8774_v19, %v18637_v44  ;;  %v2526_v1 = vmul.f32 0.03125, %v2246_v33  ;;  %v12873_v61 = vmul.f32 0.03125, %v18641_v60  ;;  %v8782_v2 = vpop.eup %8781  ;;  %v2252_v27 = vpop.xlane.xlu0 %2251  ;;  %v18644_v51 = vld [vmem:[#allocation209_spill] sm:$0xff] }
 0x3f3   :  { %v12869_v55 = vmul.f32 %v8776_v56, %v18640_v34  ;;  %v3930_v22 = vrot.slane %v3923_v16, %v18283_v28  ;;  %v2656_v7 = vmul.f32 %v12850_v4, %v12850_v4  ;;  %v2915_v40 = vadd.f32 1e-05, %v2787_v3  ;;  %v18650_v3 = vld [vmem:[#allocation213_spill] sm:$0xff] }
 0x3f4   :  { %v3938_v19 = vrot.slane %v3931_v58, %v18283_v28  ;;  %v2782_v56 = vsub.f32 %v2526_v1, %v2654_v10  ;;  %v2533_v5 = vmul.f32 0.03125, %v2267_v46  ;;  %v2658_v50 = vmul.f32 %v12853_v6, %v12853_v6 }
 0x3f5   :  { %v3973_v47 = vcombine.low %v12864_v43, %v12869_v55  ;;  %8793 = vrsqrt.f32 %v2908_v53  ;;  %v12887_v45 = vrot.slane %v3939_v38, %v18295_v23  ;;  %v2528_v12 = vmul.f32 0.03125, %v2252_v27  ;;  %v8784_v10 = vpop.eup %8783  ;;  %v2273_v49 = vpop.xlane.xlu1 %2272  ;;  %v18649_v53 = vld [vmem:[#allocation126_spill] sm:$0xff] }
 0x3f6   :  { %v3947_v8 = vcombine.low %v3930_v22, %v3938_v19  ;;  %v2910_v16 = vadd.f32 1e-05, %v2782_v56  ;;  %v2789_v29 = vsub.f32 %v2533_v5, %v18642_v24  ;;  %v18645_v33 = vsub.f32 %v18643_v32, %v18644_v51 }
 0x3f7   :  { %8795 = vrsqrt.f32 %v2915_v40  ;;  %v18648_v34 = vsub.f32 %v18646_v13, %v18647_v42  ;;  %v18651_v1 = vsub.f32 %v18649_v53, %v18650_v3  ;;  %v2784_v22 = vsub.f32 %v2528_v12, %v2656_v7  ;;  %v18653_v12 = vld [vmem:[#allocation136_spill] sm:$0xff]  ;;  %v12942_v3 = vld [vmem:[%s17033_s2] ss:$0 sm:$0xff] }
 0x3f8   :  { %v3284_v58 = vmul.f32 %v8778_v48, %v18645_v33  ;;  %v12894_v44 = vrot.slane %v3947_v8, %v18295_v23  ;;  %8797 = vrsqrt.f32 %v2910_v16  ;;  %v2917_v46 = vadd.f32 1e-05, %v2789_v29  ;;  %v2258_v48 = vpop.xlane.xlu0 %2257 }
 0x3f9   :  { %v3286_v38 = vmul.f32 %v8782_v2, %v18648_v34  ;;  %v12902_v60 = vmul.f32 %v8780_v25, %v18651_v1  ;;  %v2535_v19 = vmul.f32 0.03125, %v2273_v49  ;;  %v18652_v5 = vsub.f32 %v18608_v31, %v12688_v52  ;;  %v2279_v24 = vpop.xlane.xlu1 %2278  ;;  %v18654_v49 = vld [vmem:[#allocation233_spill] sm:$0xff]  ;;  %v18655_v34 = vld [vmem:[#allocation140_spill] sm:$0xff] }
 0x3fa   :  { %v3956_v40 = vcombine.high %v12887_v45, %v12894_v44  ;;  %v3955_v2 = vcombine.low %v12887_v45, %v12894_v44  ;;  %8799 = vrsqrt.f32 %v2917_v46  ;;  %v2912_v25 = vadd.f32 1e-05, %v2784_v22  ;;  %v18656_v46 = vld [vmem:[#allocation237_spill] sm:$0xff] }
 0x3fb   :  { %v3965_v56 = vcombine.low %v3284_v58, %v3286_v38  ;;  %v12909_v27 = vmul.f32 %v8784_v10, %v18652_v5  ;;  %v2791_v8 = vsub.f32 %v2535_v19, %v12759_v20  ;;  %v2530_v16 = vmul.f32 0.03125, %v2258_v48  ;;  %v8786_v20 = vpop.eup %8785  ;;  %v18657_v48 = vld [vmem:[#allocation46_spill] sm:$0xff] }
 0x3fc   :  { %v2665_v7 = vmul.f32 %v12873_v61, %v12873_v61  ;;  %4147 = vrot.lane.b32.xlu0 %v3956_v40, %s9164_s1  ;;  %v12921_v52 = vrot.slane %v3957_v0, %v18283_v28  ;;  %v3167_v32 = vsub.f32 %v18653_v12, %v12766_v37  ;;  %v2537_v58 = vmul.f32 0.03125, %v2279_v24  ;;  %v8788_v10 = vpop.eup %8787  ;;  %v2264_v21 = vpop.xlane.xlu0 %2263  ;;  %v18658_v40 = vld [vmem:[#allocation210_spill] sm:$0xff]  ;;  %v18664_v12 = vld [vmem:[#allocation115_spill] sm:$0xff] }
 0x3fd   :  { %v12924_v31 = vrot.slane %v3965_v56, %v18283_v28  ;;  %v4007_v29 = vcombine.low %v12902_v60, %v12909_v27  ;;  %v2919_v51 = vadd.f32 1e-05, %v2791_v8  ;;  %v2786_v33 = vsub.f32 %v2530_v16, %v2658_v50  ;;  %v12935_v0 = vpop.f32.mrf.mxu1  ;;  %v8790_v42 = vpop.eup %8789 }
 0x3fe   :  { %v12931_v13 = vmul.f32 0.03125, %v18654_v49  ;;  %8801 = vrsqrt.f32 %v2912_v25  ;;  %v3169_v38 = vsub.f32 %v18655_v34, %v12800_v14  ;;  %v2793_v53 = vsub.f32 %v2537_v58, %v2665_v7  ;;  %v8792_v1 = vpop.eup %8791  ;;  %v4124_v19 = vpop.permute.xlu1 %4123  ;;  %v18660_v25 = vld [vmem:[#allocation13_spill] sm:$0xff] }
 0x3ff   :  { %v3989_v18 = vcombine.low %v12921_v52, %v12924_v31  ;;  %v2914_v37 = vadd.f32 1e-05, %v2786_v33  ;;  %v2532_v50 = vmul.f32 0.03125, %v2264_v21  ;;  %v12945_v22 = vmul.f32 0.03125, %v18656_v46  ;;  %v18661_v14 = vld [vmem:[#allocation17_spill] sm:$0xff]  ;;  %v18663_v31 = vld [vmem:[#allocation114_spill] sm:$0xff]  ;;  %v12968_v34 = vpop.f32.mrf.mxu1 }
 0x400   :  { %8803 = vrsqrt.f32 %v2919_v51  ;;  %v18659_v56 = vsub.f32 %v18657_v48, %v18658_v40  ;;  %v18662_v8 = vsub.f32 %v18660_v25, %v18661_v14  ;;  %v2921_v7 = vadd.f32 1e-05, %v2793_v53  ;;  %v12957_v52 = vld [vmem:[%s17034_s3] ss:$0 sm:$0xff]  ;;  %v2270_v58 = vpop.xlane.xlu0 %2269 }
 0x401   :  { %8805 = vrsqrt.f32 %v2914_v37  ;;  %v2788_v24 = vsub.f32 %v2532_v50, %v12748_v39  ;;  %v18665_v51 = vcombine.low %v18663_v31, %v18664_v12  ;;  %v12964_v21 = vmul.f32 %v8790_v42, %v3167_v32  ;;  %v18666_v37 = vld [vmem:[#allocation135_spill] sm:$0xff] }
 0x402   :  { %v3288_v5 = vmul.f32 %v8786_v20, %v18659_v56  ;;  %v3290_v16 = vmul.f32 %v8788_v10, %v18662_v8  ;;  %v12966_v10 = vmul.f32 %v8792_v1, %v3169_v38  ;;  %v8794_v39 = vpop.eup %8793  ;;  %v3164_v53 = vsub.f32 %v18666_v37, %v12762_v41  ;;  %v12980_v1 = vpop.f32.mrf.mxu1  ;;  %v18667_v41 = vld [vmem:[#allocation139_spill] sm:$0xff]  ;;  %v18669_v8 = vld [vmem:[#allocation152_spill] sm:$0xff] }
 0x403   :  { %v4172_v33 = vsel %vm4171_vm2, %v18665_v51, %v4124_v19  ;;  %8807 = vrsqrt.f32 %v2921_v7  ;;  %v2916_v50 = vadd.f32 1e-05, %v2788_v24  ;;  %v2534_v46 = vmul.f32 0.03125, %v2270_v58  ;;  %v4128_v19 = vpop.permute.xlu1 %4127  ;;  %v18668_v14 = vld [vmem:[#allocation151_spill] sm:$0xff] }
 0x404   :  { %v4194_v20 = vmul.f32 %v12942_v3, %v4172_v33  ;;  %v3981_v49 = vcombine.low %v3288_v5, %v3290_v16  ;;  %v3980_v32 = vrot.slane %v3973_v47, %v18283_v28  ;;  %v4023_v38 = vcombine.low %v12964_v21, %v12966_v10  ;;  %v8796_v40 = vpop.eup %8795  ;;  %v2276_v24 = vpop.xlane.xlu0 %2275 }
 0x405   :  { %v3166_v56 = vsub.f32 %v18667_v41, %v12787_v15  ;;  %v2664_v5 = vmul.f32 %v12931_v13, %v12931_v13  ;;  %v2790_v25 = vsub.f32 %v2534_v46, %v12755_v57  ;;  %v18670_v43 = vcombine.low %v18668_v14, %v18669_v8  ;;  %v8798_v47 = vpop.eup %8797  ;;  %v13002_v46 = vpop.f32.mrf.mxu1 }
 0x406   :  { %v4216_v48 = vadd.f32 %v12957_v52, %v4194_v20  ;;  %v3988_v42 = vrot.slane %v3981_v49, %v18283_v28  ;;  %v2666_v16 = vmul.f32 %v12945_v22, %v12945_v22  ;;  %v3292_v31 = vmul.f32 %v8794_v39, %v3164_v53 }
 0x407   :  { %v4174_v55 = vsel %vm4171_vm2, %v18670_v43, %v4128_v19  ;;  %8809 = vrsqrt.f32 %v2916_v50  ;;  %v2918_v12 = vadd.f32 1e-05, %v2790_v25  ;;  %v2536_v51 = vmul.f32 0.03125, %v2276_v24  ;;  %v8800_v33 = vpop.eup %8799  ;;  %v4130_v58 = vpop.permute.xlu1 %4129  ;;  %v18672_v19 = vld [vmem:[#allocation34_spill] sm:$0xff]  ;;  %v18674_v50 = vld [vmem:[#allocation127_spill] sm:$0xff] }
 0x408   :  { %4232 = vst.msk [vmem:[#allocation7] sm:$0xff] %vm72_vm0, %v4216_v48  ;;  %v4196_v7 = vmul.f32 %v12942_v3, %v4174_v55  ;;  %v3997_v15 = vcombine.low %v3980_v32, %v3988_v42  ;;  %v3294_v57 = vmul.f32 %v8798_v47, %v3166_v56  ;;  %v12997_v49 = vrot.slane %v3989_v18, %v18295_v23  ;;  %v18671_v48 = vld [vmem:[#allocation24_spill] sm:$0xff]  ;;  %v18675_v42 = vld [vmem:[#allocation222_spill] sm:$0xff]  ;;  %v2282_v14 = vpop.xlane.xlu0 %2281 }
 0x409   :  { %v18673_v32 = vsub.f32 %v18671_v48, %v18672_v19  ;;  %8811 = vrsqrt.f32 %v2918_v12  ;;  %v2792_v53 = vsub.f32 %v2536_v51, %v2664_v5  ;;  %v18676_v41 = vcombine.low %v18674_v50, %v18675_v42  ;;  %v18677_v43 = vld [vmem:[#allocation122_spill] sm:$0xff]  ;;  %v18678_v55 = vld [vmem:[#allocation32_spill] sm:$0xff] }
 0x40a   :  { %v4218_v20 = vadd.f32 %v12957_v52, %v4196_v7  ;;  %v13000_v37 = vrot.slane %v3997_v15, %v18295_v23  ;;  %v4015_v25 = vcombine.low %v3292_v31, %v3294_v57  ;;  %v2538_v15 = vmul.f32 0.03125, %v2282_v14  ;;  %v18680_v51 = vld [vmem:[#allocation146_spill] sm:$0xff] }
 0x40b   :  { %v13007_v39 = vmul.f32 %v8796_v40, %v18673_v32  ;;  %v4175_v56 = vsel %vm4171_vm2, %v18676_v41, %v4130_v58  ;;  %v18679_v40 = vsub.f32 %v18677_v43, %v18678_v55  ;;  %v8802_v7 = vpop.eup %8801  ;;  %v2920_v24 = vadd.f32 1e-05, %v2792_v53  ;;  %v13033_v58 = vpop.f32.mrf.mxu1  ;;  %v18681_v32 = vld [vmem:[#allocation149_spill] sm:$0xff]  ;;  %v18687_v43 = vld [vmem:[#allocation102_spill] sm:$0xff]  ;;  %v18688_v55 = vld [vmem:[#allocation103_spill] sm:$0xff] }
 0x40c   :  { %4234 = vst.msk [vmem:[#allocation7 + $0x20] sm:$0xff] %vm72_vm0, %v4218_v20  ;;  %v4197_v18 = vmul.f32 %v12942_v3, %v4175_v56  ;;  %v4006_v8 = vcombine.high %v12997_v49, %v13000_v37  ;;  %v4005_v5 = vcombine.low %v12997_v49, %v13000_v37  ;;  %v4014_v31 = vrot.slane %v4007_v29, %v18283_v28  ;;  %v18682_v29 = vld [vmem:[#allocation184_spill] sm:$0xff]  ;;  %v18683_v53 = vld [vmem:[#allocation185_spill] sm:$0xff]  ;;  %v18685_v56 = vld [vmem:[#allocation131_spill] sm:$0xff] }
 0x40d   :  { %v13020_v47 = vmul.f32 %v8800_v33, %v18679_v40  ;;  %v4022_v12 = vrot.slane %v4015_v25, %v18283_v28  ;;  %v3168_v57 = vsub.f32 %v18680_v51, %v12850_v4  ;;  %v4134_v33 = vpop.permute.xlu1 %4133  ;;  %v8804_v19 = vpop.eup %8803  ;;  %v3170_v60 = vsub.f32 %v18681_v32, %v12853_v6  ;;  %v18691_v32 = vld [vmem:[#allocation206_spill] sm:$0xff] }
 0x40e   :  { %v4219_v20 = vadd.f32 %v12957_v52, %v4197_v18  ;;  %4149 = vrot.lane.b32.xlu1 %v4006_v8, %s9164_s1  ;;  %v2794_v27 = vsub.f32 %v2538_v15, %v2666_v16  ;;  %v18684_v50 = vcombine.low %v18682_v29, %v18683_v53  ;;  %v8806_v41 = vpop.eup %8805  ;;  %v3175_v25 = vsub.f32 %v18685_v56, %v12705_v62  ;;  %v18686_v18 = vld [vmem:[#allocation133_spill] sm:$0xff]  ;;  %v4126_v8 = vpop.permute.xlu0 %4125  ;;  %v18693_v56 = vld [vmem:[#allocation130_spill] sm:$0xff] }
 0x40f   :  { %v4057_v48 = vcombine.low %v13007_v39, %v13020_v47  ;;  %v4039_v42 = vcombine.low %v4014_v31, %v4022_v12  ;;  %v3177_v14 = vsub.f32 %v18686_v18, %v12873_v61  ;;  %v3296_v6 = vmul.f32 %v8802_v7, %v3168_v57  ;;  %v13055_v61 = vpop.f32.mrf.mxu1  ;;  %v18690_v57 = vld [vmem:[#allocation42_spill] sm:$0xff] }
 0x410   :  { %v4177_v4 = vsel %vm4171_vm2, %v18684_v50, %v4134_v33  ;;  %4235 = vst.msk [vmem:[#allocation7 + $0x30] sm:$0xff] %vm72_vm0, %v4219_v20  ;;  %8813 = vrsqrt.f32 %v2920_v24  ;;  %v2922_v16 = vadd.f32 1e-05, %v2794_v27  ;;  %v18689_v40 = vcombine.low %v18687_v43, %v18688_v55  ;;  %v8808_v31 = vpop.eup %8807  ;;  %v18694_v18 = vld [vmem:[#allocation54_spill] sm:$0xff]  ;;  %v18697_v43 = vld [vmem:[#allocation47_spill] sm:$0xff] }
 0x411   :  { %v4199_v39 = vmul.f32 %v12942_v3, %v4177_v4  ;;  %v3298_v15 = vmul.f32 %v8806_v41, %v3170_v60  ;;  %v3303_v20 = vmul.f32 %v8804_v19, %v3175_v25  ;;  %v3305_v33 = vmul.f32 %v8808_v31, %v3177_v14  ;;  %v13070_v41 = vpop.f32.mrf.mxu1  ;;  %v18695_v14 = vld [vmem:[#allocation132_spill] sm:$0xff] }
 0x412   :  { %v4173_v47 = vsel %vm4171_vm2, %v18689_v40, %v4126_v8  ;;  %8815 = vrsqrt.f32 %v2922_v16  ;;  %v4132_v24 = vpop.permute.xlu0 %4131  ;;  %v18692_v27 = vcombine.low %v18690_v57, %v18691_v32  ;;  %v4030_v29 = vrot.slane %v4023_v38, %v18283_v28  ;;  %v18696_v16 = vld [vmem:[#allocation16_spill] sm:$0xff]  ;;  %v18699_v32 = vld [vmem:[#allocation143_spill] sm:$0xff] }
 0x413   :  { %v4221_v62 = vadd.f32 %v12957_v52, %v4199_v39  ;;  %v4195_v12 = vmul.f32 %v12942_v3, %v4173_v47  ;;  %v4031_v51 = vcombine.low %v3296_v6, %v3298_v15  ;;  %v4073_v50 = vcombine.low %v3303_v20, %v3305_v33 }
 0x414   :  { %v4176_v60 = vsel %vm4171_vm2, %v18692_v27, %v4132_v24  ;;  %v8810_v19 = vpop.eup %8809  ;;  %v3172_v25 = vsub.f32 %v18693_v56, %v12698_v59  ;;  %v3174_v39 = vsub.f32 %v18695_v14, %v18694_v18  ;;  %v13078_v38 = vrot.slane %v4039_v42, %v18295_v23  ;;  %v18701_v56 = vld [vmem:[#allocation121_spill] sm:$0xff] }
 0x415   :  { %4237 = vst.msk [vmem:[#allocation7 + $0x50] sm:$0xff] %vm72_vm0, %v4221_v62  ;;  %v4217_v7 = vadd.f32 %v12957_v52, %v4195_v12  ;;  %v4038_v53 = vrot.slane %v4031_v51, %v18283_v28  ;;  %v4198_v4 = vmul.f32 %v12942_v3, %v4176_v60  ;;  %v18698_v55 = vcombine.low %v18696_v16, %v18697_v43  ;;  %v13089_v62 = vpop.f32.mrf.mxu1  ;;  %v18700_v60 = vld [vmem:[#allocation145_spill] sm:$0xff] }
 0x416   :  { %v8812_v6 = vpop.eup %8811  ;;  %v4136_v10 = vpop.permute.xlu0 %4135  ;;  %v3300_v59 = vmul.f32 %v8810_v19, %v3172_v25  ;;  %v4064_v33 = vrot.slane %v4057_v48, %v18283_v28  ;;  %v3176_v27 = vsub.f32 %v18699_v32, %v12931_v13  ;;  %v18702_v25 = vld [vmem:[#allocation118_spill] sm:$0xff] }
 0x417   :  { %4233 = vst.msk [vmem:[#allocation7 + $0x10] sm:$0xff] %vm72_vm0, %v4217_v7  ;;  %v4047_v8 = vcombine.low %v4030_v29, %v4038_v53  ;;  %v4220_v21 = vadd.f32 %v12957_v52, %v4198_v4  ;;  %v4178_v40 = vsel %vm4171_vm2, %v18698_v55, %v4136_v10  ;;  %v3302_v15 = vmul.f32 %v8812_v6, %v3174_v39  ;;  %v13100_v57 = vpop.f32.mrf.mxu1  ;;  %v4138_v4 = vpop.permute.xlu1 %4137 }
 0x418   :  { %v4200_v31 = vmul.f32 %v12942_v3, %v4178_v40  ;;  %v3178_v29 = vsub.f32 %v18700_v60, %v12945_v22  ;;  %v18703_v18 = vcombine.low %v18701_v56, %v18702_v25 }
 0x419   :  { %v13085_v47 = vrot.slane %v4047_v8, %v18295_v23  ;;  %4236 = vst.msk [vmem:[#allocation7 + $0x40] sm:$0xff] %vm72_vm0, %v4220_v21  ;;  %v4065_v12 = vcombine.low %v3300_v59, %v3302_v15  ;;  %v13113_v6 = vpop.f32.mrf.mxu1  ;;  %v4080_v21 = vrot.slane %v4073_v50, %v18283_v28 }
 0x41a   :  { %v4222_v20 = vadd.f32 %v12957_v52, %v4200_v31  ;;  %v4179_v48 = vsel %vm4171_vm2, %v18703_v18, %v4138_v4 }
 0x41b   :  { %v4056_v42 = vcombine.high %v13078_v38, %v13085_v47  ;;  %v4055_v51 = vcombine.low %v13078_v38, %v13085_v47  ;;  %v4072_v7 = vrot.slane %v4065_v12, %v18283_v28  ;;  %v4201_v8 = vmul.f32 %v12942_v3, %v4179_v48  ;;  %v13121_v16 = vpop.f32.mrf.mxu1  ;;  %v18704_v12 = vld [vmem:[#allocation186_spill] sm:$0xff] }
 0x41c   :  { %4238 = vst.msk [vmem:[#allocation7 + $0x60] sm:$0xff] %vm72_vm0, %v4222_v20  ;;  %v18705_v20 = vld [vmem:[#allocation211_spill] sm:$0xff] }
 0x41d   :  { %4151 = vrot.lane.b32.xlu0 %v4056_v42, %s9164_s1  ;;  %v8814_v24 = vpop.eup %8813  ;;  %v4089_v53 = vcombine.low %v4064_v33, %v4072_v7  ;;  %v4223_v22 = vadd.f32 %v12957_v52, %v4201_v8  ;;  %v13131_v59 = vpop.f32.mrf.mxu1  ;;  %v18706_v33 = vcombine.low %v18704_v12, %v18705_v20 }
 0x41e   :  { %v3304_v14 = vmul.f32 %v8814_v24, %v3176_v27 }
 0x41f   :  { %v8816_v19 = vpop.eup %8815  ;;  %4239 = vst.msk [vmem:[#allocation7 + $0x70] sm:$0xff] %vm72_vm0, %v4223_v22  ;;  %v13126_v55 = vrot.slane %v4089_v53, %v18295_v23  ;;  %v13140_v31 = vpop.f32.mrf.mxu1  ;;  %v18707_v22 = vmov 0.0  }
 0x420   :  { %v3306_v39 = vmul.f32 %v8816_v19, %v3178_v29 }
 0x421   :  { %4418 = vrot.lane.b32.xlu0 %v12968_v34, %s9160_s0  ;;  %v13151_v32 = vpop.f32.mrf.mxu1 }
 0x422   :  { %v4081_v13 = vcombine.low %v3304_v14, %v3306_v39 }
 0x423   :  { %v13159_v60 = vpop.f32.mrf.mxu1 }
 0x424   :  { %v4088_v10 = vrot.slane %v4081_v13, %v18283_v28 }
 0x425   :  { %4422 = vrot.lane.b32.xlu0 %v13002_v46, %s9160_s0  ;;  %v13165_v29 = vpop.f32.mrf.mxu1 }
 0x426   :  { %v4097_v43 = vcombine.low %v4080_v21, %v4088_v10  ;;  %v4466_v21 = vcombine.high %v12968_v34, %v18707_v22 }
 0x427   :  { %v4140_v42 = vpop.permute.xlu0 %4139 }
 0x428   :  { %v13129_v40 = vrot.slane %v4097_v43, %v18295_v23  ;;  %v4180_v7 = vsel %vm4171_vm2, %v18706_v33, %v4140_v42  ;;  %v4480_v38 = vrot.slane %v4466_v21, %v18283_v28 }
 0x429   :  { %4426 = vrot.lane.b32.xlu0 %v13055_v61, %s9160_s0  ;;  %v4202_v24 = vmul.f32 %v12942_v3, %v4180_v7 }
 0x42a   :  { %v4106_v50 = vcombine.high %v13126_v55, %v13129_v40  ;;  %v4105_v15 = vcombine.low %v13126_v55, %v13129_v40 }
 0x42b   :  { %v4224_v27 = vadd.f32 %v12957_v52, %v4202_v24 }
 0x42c   :  { %4153 = vrot.lane.b32.xlu1 %v4106_v50, %s9164_s1 }
 0x42d   :  { %4430 = vrot.lane.b32.xlu0 %v13089_v62, %s9160_s0  ;;  %4240 = vst.msk [vmem:[#allocation7 + $0x80] sm:$0xff] %vm72_vm0, %v4224_v27 }
 0x430   :  { %4420 = vrot.lane.b32.xlu1 %v12935_v0, %s9160_s0 }
 0x431   :  { %4434 = vrot.lane.b32.xlu0 %v13113_v6, %s9160_s0 }
 0x434   :  { %4424 = vrot.lane.b32.xlu1 %v12980_v1, %s9160_s0 }
 0x435   :  { %4438 = vrot.lane.b32.xlu0 %v13131_v59, %s9160_s0 }
 0x438   :  { %4428 = vrot.lane.b32.xlu1 %v13033_v58, %s9160_s0 }
 0x439   :  { %4442 = vrot.lane.b32.xlu0 %v13151_v32, %s9160_s0 }
 0x43a   :  { %v4142_v53 = vpop.permute.xlu1 %4141 }
 0x43b   :  { %v4181_v19 = vsel %vm4171_vm2, %v3805_v63, %v4142_v53 }
 0x43c   :  { %4432 = vrot.lane.b32.xlu1 %v13070_v41, %s9160_s0  ;;  %v4203_v4 = vmul.f32 %v12942_v3, %v4181_v19 }
 0x43d   :  { %4446 = vrot.lane.b32.xlu0 %v13165_v29, %s9160_s0 }
 0x43e   :  { %v4225_v56 = vadd.f32 %v12957_v52, %v4203_v4 }
 0x440   :  { %4436 = vrot.lane.b32.xlu1 %v13100_v57, %s9160_s0  ;;  %4241 = vst.msk [vmem:[#allocation7 + $0x90] sm:$0xff] %vm72_vm0, %v4225_v56 }
 0x444   :  { %4440 = vrot.lane.b32.xlu1 %v13121_v16, %s9160_s0 }
 0x448   :  { %4444 = vrot.lane.b32.xlu1 %v13140_v31, %s9160_s0 }
 0x44a   :  { %v4144_v36 = vpop.permute.xlu0 %4143 }
 0x44b   :  { %v4182_v35 = vsel %vm4171_vm2, %v3855_v11, %v4144_v36 }
 0x44c   :  { %4448 = vrot.lane.b32.xlu1 %v13159_v60, %s9160_s0  ;;  %v4204_v63 = vmul.f32 %v12942_v3, %v4182_v35 }
 0x44e   :  { %v4226_v25 = vadd.f32 %v12957_v52, %v4204_v63 }
 0x450   :  { %4242 = vst.msk [vmem:[#allocation7 + $0xa0] sm:$0xff] %vm72_vm0, %v4226_v25 }
 0x45d   :  { %v4146_v18 = vpop.permute.xlu1 %4145 }
 0x45e   :  { %v4183_v48 = vsel %vm4171_vm2, %v3905_v9, %v4146_v18 }
 0x45f   :  { %v4205_v14 = vmul.f32 %v12942_v3, %v4183_v48 }
 0x461   :  { %v4227_v39 = vadd.f32 %v12957_v52, %v4205_v14  ;;  %v4539_v14 = vrot.slane %v12935_v0, %v18283_v28 }
 0x463   :  { %4243 = vst.msk [vmem:[#allocation7 + $0xb0] sm:$0xff] %vm72_vm0, %v4227_v39 }
 0x46e   :  { %v4148_v26 = vpop.permute.xlu0 %4147 }
 0x46f   :  { %v4184_v30 = vsel %vm4171_vm2, %v3955_v2, %v4148_v26 }
 0x470   :  { %v4206_v11 = vmul.f32 %v12942_v3, %v4184_v30 }
 0x472   :  { %v4228_v8 = vadd.f32 %v12957_v52, %v4206_v11 }
 0x474   :  { %4244 = vst.msk [vmem:[#allocation7 + $0xc0] sm:$0xff] %vm72_vm0, %v4228_v8  ;;  %v4532_v8 = vcombine.high %v12935_v0, %v18707_v22 }
 0x480   :  { %v4150_v17 = vpop.permute.xlu1 %4149 }
 0x481   :  { %v4185_v54 = vsel %vm4171_vm2, %v4005_v5, %v4150_v17  ;;  %v4473_v5 = vrot.slane %v12968_v34, %v18283_v28 }
 0x482   :  { %v4207_v9 = vmul.f32 %v12942_v3, %v4185_v54 }
 0x484   :  { %v4229_v13 = vadd.f32 %v12957_v52, %v4207_v9 }
 0x486   :  { %4245 = vst.msk [vmem:[#allocation7 + $0xd0] sm:$0xff] %vm72_vm0, %v4229_v13  ;;  %v4546_v13 = vrot.slane %v4532_v8, %v18283_v28 }
 0x48f   :  { %v4152_v45 = vpop.permute.xlu0 %4151 }
 0x490   :  { %v4186_v44 = vsel %vm4171_vm2, %v4055_v51, %v4152_v45 }
 0x491   :  { %v4208_v2 = vmul.f32 %v12942_v3, %v4186_v44 }
 0x493   :  { %v4230_v49 = vadd.f32 %v12957_v52, %v4208_v2  ;;  %v4419_v37 = vpop.permute.xlu0 %4418 }
 0x494   :  { %v4481_v10 = vcombine.high %v4419_v37, %v18707_v22  ;;  %v4488_v43 = vrot.slane %v4419_v37, %v18283_v28 }
 0x495   :  { %4246 = vst.msk [vmem:[#allocation7 + $0xe0] sm:$0xff] %vm72_vm0, %v4230_v49 }
 0x496   :  { %v4495_v47 = vrot.slane %v4481_v10, %v18283_v28  ;;  %v4496_v51 = vcombine.low %v4473_v5, %v4488_v43  ;;  %v4497_v50 = vcombine.high %v4473_v5, %v4488_v43 }
 0x497   :  { %v4423_v21 = vpop.permute.xlu0 %4422 }
 0x498   :  { %v13230_v42 = vrot.slane %v4496_v51, %v18295_v23  ;;  %v4512_v12 = vcombine.low %v4480_v38, %v4495_v47  ;;  %v13233_v20 = vrot.slane %v4497_v50, %v18295_v23  ;;  %v4513_v7 = vcombine.high %v4480_v38, %v4495_v47 }
 0x499   :  { %v4620_v10 = vrot.slane %v4423_v21, %v18283_v28  ;;  %v4605_v38 = vrot.slane %v13002_v46, %v18283_v28  ;;  %v4613_v50 = vcombine.high %v4423_v21, %v18707_v22 }
 0x49a   :  { %v5522_v34 = vsel %vm1386_vm1, %v13230_v42, 0.0  ;;  %v13239_v33 = vcombine.high %v13230_v42, %v18707_v22  ;;  %v13242_v24 = vrot.slane %v4512_v12, %v18295_v23  ;;  %v5528_v53 = vsel %vm1386_vm1, %v13233_v20, 0.0 }
 0x49b   :  { %5523 = vadd.xlane.f32.xlu0 %v5522_v34  ;;  %v13250_v19 = vcombine.high %v13233_v20, %v18707_v22  ;;  %v13253_v56 = vrot.slane %v4513_v7, %v18295_v23  ;;  %v4628_v12 = vcombine.low %v4605_v38, %v4620_v10  ;;  %v4598_v34 = vcombine.high %v13002_v46, %v18707_v22 }
 0x49c   :  { %v5525_v27 = vsel %vm1386_vm1, %v13239_v33, 0.0  ;;  %v5534_v36 = vsel %vm1386_vm1, %v13242_v24, 0.0  ;;  %v13266_v18 = vcombine.high %v13242_v24, %v18707_v22 }
 0x49d   :  { %5526 = vadd.xlane.f32.xlu1 %v5525_v27  ;;  %v5531_v25 = vsel %vm1386_vm1, %v13250_v19, 0.0  ;;  %v5540_v40 = vsel %vm1386_vm1, %v13253_v56, 0.0  ;;  %v13279_v26 = vcombine.high %v13253_v56, %v18707_v22  ;;  %v4612_v46 = vrot.slane %v4598_v34, %v18283_v28 }
 0x49e   :  { %v4154_v4 = vpop.permute.xlu1 %4153 }
 0x49f   :  { %5529 = vadd.xlane.f32.xlu0 %v5528_v53  ;;  %v4187_v35 = vsel %vm4171_vm2, %v4105_v15, %v4154_v4  ;;  %v5537_v15 = vsel %vm1386_vm1, %v13266_v18, 0.0  ;;  %18708 = vst [vmem:[#allocation49_spill] sm:$0xff] %v13279_v26  ;;  %v4627_v4 = vrot.slane %v4613_v50, %v18283_v28 }
 0x4a0   :  { %v4209_v63 = vmul.f32 %v12942_v3, %v4187_v35  ;;  %v13332_v35 = vrot.slane %v4628_v12, %v18295_v23 }
 0x4a1   :  { %5535 = vadd.xlane.f32.xlu1 %v5534_v36  ;;  %v4629_v36 = vcombine.high %v4605_v38, %v4620_v10 }
 0x4a2   :  { %v4421_v48 = vpop.permute.xlu1 %4420  ;;  %v4231_v39 = vadd.f32 %v12957_v52, %v4209_v63  ;;  %v5543_v52 = vsel %vm1386_vm1, %v13279_v26, 0.0  ;;  %18716 = vst [vmem:[#allocation12_spill] sm:$0xff] %v13332_v35 }
 0x4a3   :  { %5532 = vadd.xlane.f32.xlu0 %v5531_v25  ;;  %v4554_v55 = vrot.slane %v4421_v48, %v18283_v28  ;;  %v4547_v11 = vcombine.high %v4421_v48, %v18707_v22  ;;  %v13342_v48 = vrot.slane %v4629_v36, %v18295_v23 }
 0x4a4   :  { %4247 = vst.msk [vmem:[#allocation7 + $0xf0] sm:$0xff] %vm72_vm0, %v4231_v39  ;;  %v5570_v39 = vsel %vm1386_vm1, %v13332_v35, 0.0 }
 0x4a5   :  { %5541 = vadd.xlane.f32.xlu1 %v5540_v40  ;;  %v4562_v3 = vcombine.low %v4539_v14, %v4554_v55  ;;  %v4563_v17 = vcombine.high %v4539_v14, %v4554_v55  ;;  %v4561_v9 = vrot.slane %v4547_v11, %v18283_v28  ;;  %18718 = vst [vmem:[#allocation215_spill] sm:$0xff] %v13342_v48  ;;  %v5576_v8 = vsel %vm1386_vm1, %v13342_v48, 0.0 }
 0x4a6   :  { %v4644_v14 = vcombine.low %v4612_v46, %v4627_v4  ;;  %v4425_v55 = vpop.permute.xlu1 %4424 }
 0x4a7   :  { %5538 = vadd.xlane.f32.xlu0 %v5537_v15  ;;  %v13282_v30 = vrot.slane %v4562_v3, %v18295_v23  ;;  %v13294_v45 = vrot.slane %v4563_v17, %v18295_v23  ;;  %v4578_v44 = vcombine.low %v4546_v13, %v4561_v9  ;;  %v4579_v37 = vcombine.high %v4546_v13, %v4561_v9 }
 0x4a8   :  { %v13350_v3 = vcombine.high %v13332_v35, %v18707_v22  ;;  %v4645_v15 = vcombine.high %v4612_v46, %v4627_v4  ;;  %v4686_v11 = vrot.slane %v4425_v55, %v18283_v28  ;;  %v4671_v17 = vrot.slane %v12980_v1, %v18283_v28  ;;  %v4427_v46 = vpop.permute.xlu0 %4426 }
 0x4a9   :  { %18709 = vst [vmem:[#allocation56_spill] sm:$0xff] %v13282_v30  ;;  %v5546_v54 = vsel %vm1386_vm1, %v13282_v30, 0.0  ;;  %18710 = vst [vmem:[#allocation137_spill] sm:$0xff] %v13294_v45  ;;  %v5552_v2 = vsel %vm1386_vm1, %v13294_v45, 0.0  ;;  %v13300_v0 = vcombine.high %v13282_v30, %v18707_v22  ;;  %v13303_v49 = vrot.slane %v4578_v44, %v18295_v23 }
 0x4aa   :  { %5547 = vadd.xlane.f32.xlu1 %v5546_v54  ;;  %v13314_v47 = vcombine.high %v13294_v45, %v18707_v22  ;;  %v13317_v51 = vrot.slane %v4579_v37, %v18295_v23  ;;  %18719 = vst [vmem:[#allocation187_spill] sm:$0xff] %v13350_v3  ;;  %v5573_v54 = vsel %vm1386_vm1, %v13350_v3, 0.0  ;;  %v13364_v9 = vcombine.high %v13342_v48, %v18707_v22 }
 0x4ab   :  { %5544 = vadd.xlane.f32.xlu0 %v5543_v52  ;;  %18711 = vst [vmem:[#allocation234_spill] sm:$0xff] %v13300_v0  ;;  %18712 = vst [vmem:[#allocation214_spill] sm:$0xff] %v13303_v49  ;;  %v5549_v5 = vsel %vm1386_vm1, %v13300_v0, 0.0  ;;  %v5558_v43 = vsel %vm1386_vm1, %v13303_v49, 0.0  ;;  %v13328_v53 = vcombine.high %v13303_v49, %v18707_v22  ;;  %v13353_v52 = vrot.slane %v4644_v14, %v18295_v23 }
 0x4ac   :  { %18713 = vst [vmem:[#allocation41_spill] sm:$0xff] %v13314_v47  ;;  %18714 = vst [vmem:[#allocation112_spill] sm:$0xff] %v13317_v51  ;;  %v5555_v7 = vsel %vm1386_vm1, %v13314_v47, 0.0  ;;  %v5564_v27 = vsel %vm1386_vm1, %v13317_v51, 0.0  ;;  %v13339_v25 = vcombine.high %v13317_v51, %v18707_v22  ;;  %v13367_v13 = vrot.slane %v4645_v15, %v18295_v23 }
 0x4ad   :  { %18715 = vst [vmem:[#allocation44_spill] sm:$0xff] %v13328_v53  ;;  %v5561_v63 = vsel %vm1386_vm1, %v13328_v53, 0.0  ;;  %18720 = vst [vmem:[#allocation235_spill] sm:$0xff] %v13353_v52  ;;  %v4679_v44 = vcombine.high %v4425_v55, %v18707_v22  ;;  %v5582_v21 = vsel %vm1386_vm1, %v13353_v52, 0.0  ;;  %v4664_v37 = vcombine.high %v12980_v1, %v18707_v22 }
 0x4ae   :  { %5553 = vadd.xlane.f32.xlu1 %v5552_v2  ;;  %18717 = vst [vmem:[#allocation51_spill] sm:$0xff] %v13339_v25  ;;  %v5567_v40 = vsel %vm1386_vm1, %v13339_v25, 0.0  ;;  %18721 = vst [vmem:[#allocation217_spill] sm:$0xff] %v13364_v9  ;;  %v4694_v2 = vcombine.low %v4671_v17, %v4686_v11  ;;  %v13378_v10 = vcombine.high %v13353_v52, %v18707_v22  ;;  %v5588_v12 = vsel %vm1386_vm1, %v13367_v13, 0.0 }
 0x4af   :  { %5550 = vadd.xlane.f32.xlu0 %v5549_v5  ;;  %18722 = vst [vmem:[#allocation188_spill] sm:$0xff] %v13367_v13  ;;  %v5579_v5 = vsel %vm1386_vm1, %v13364_v9, 0.0  ;;  %v4695_v38 = vcombine.high %v4671_v17, %v4686_v11  ;;  %v4678_v1 = vrot.slane %v4664_v37, %v18283_v28  ;;  %v4737_v11 = vrot.slane %v13055_v61, %v18283_v28 }
 0x4b0   :  { %18723 = vst [vmem:[#allocation224_spill] sm:$0xff] %v13378_v10  ;;  %v13382_v50 = vrot.slane %v4694_v2, %v18295_v23  ;;  %v5585_v34 = vsel %vm1386_vm1, %v13378_v10, 0.0  ;;  %v4730_v37 = vcombine.high %v13055_v61, %v18707_v22 }
 0x4b2   :  { %5559 = vadd.xlane.f32.xlu1 %v5558_v43  ;;  %v4693_v43 = vrot.slane %v4679_v44, %v18283_v28  ;;  %18724 = vst [vmem:[#allocation37_spill] sm:$0xff] %v13382_v50  ;;  %v5594_v36 = vsel %vm1386_vm1, %v13382_v50, 0.0  ;;  %v13402_v14 = vcombine.high %v13382_v50, %v18707_v22  ;;  %v4744_v61 = vrot.slane %v4730_v37, %v18283_v28 }
 0x4b3   :  { %5556 = vadd.xlane.f32.xlu0 %v5555_v7  ;;  %v13391_v7 = vcombine.high %v13367_v13, %v18707_v22  ;;  %v4803_v37 = vrot.slane %v13033_v58, %v18283_v28 }
 0x4b4   :  { %v4710_v4 = vcombine.low %v4678_v1, %v4693_v43  ;;  %18727 = vst [vmem:[#allocation108_spill] sm:$0xff] %v13402_v14  ;;  %v4711_v55 = vcombine.high %v4678_v1, %v4693_v43 }
 0x4b5   :  { %18725 = vst [vmem:[#allocation25_spill] sm:$0xff] %v13391_v7 }
 0x4b6   :  { %5565 = vadd.xlane.f32.xlu1 %v5564_v27  ;;  %v13394_v27 = vrot.slane %v4695_v38, %v18295_v23  ;;  %v13420_v2 = vrot.slane %v4711_v55, %v18295_v23  ;;  %v4429_v55 = vpop.permute.xlu1 %4428 }
 0x4b7   :  { %5562 = vadd.xlane.f32.xlu0 %v5561_v63  ;;  %v5591_v63 = vsel %vm1386_vm1, %v13391_v7, 0.0 }
 0x4b8   :  { %18726 = vst [vmem:[#allocation39_spill] sm:$0xff] %v13394_v27  ;;  %v5600_v15 = vsel %vm1386_vm1, %v13394_v27, 0.0  ;;  %v13416_v17 = vcombine.high %v13394_v27, %v18707_v22  ;;  %18730 = vst [vmem:[#allocation218_spill] sm:$0xff] %v13420_v2 }
 0x4ba   :  { %5571 = vadd.xlane.f32.xlu1 %v5570_v39  ;;  %v4752_v39 = vrot.slane %v4427_v46, %v18283_v28  ;;  %18729 = vst [vmem:[#allocation134_spill] sm:$0xff] %v13416_v17 }
 0x4bb   :  { %5568 = vadd.xlane.f32.xlu0 %v5567_v40  ;;  %v13406_v40 = vrot.slane %v4710_v4, %v18295_v23 }
 0x4bc   :  { %v4760_v44 = vcombine.low %v4737_v11, %v4752_v39 }
 0x4bd   :  { %18728 = vst [vmem:[#allocation55_spill] sm:$0xff] %v13406_v40  ;;  %v13430_v43 = vcombine.high %v13406_v40, %v18707_v22 }
 0x4be   :  { %5577 = vadd.xlane.f32.xlu1 %v5576_v8  ;;  %v5597_v8 = vsel %vm1386_vm1, %v13402_v14, 0.0  ;;  %v13434_v1 = vrot.slane %v4760_v44, %v18295_v23  ;;  %v4818_v44 = vrot.slane %v4429_v55, %v18283_v28 }
 0x4bf   :  { %5574 = vadd.xlane.f32.xlu0 %v5573_v54  ;;  %v4745_v54 = vcombine.high %v4427_v46, %v18707_v22  ;;  %18731 = vst [vmem:[#allocation57_spill] sm:$0xff] %v13430_v43  ;;  %v5609_v4 = vsel %vm1386_vm1, %v13430_v43, 0.0 }
 0x4c0   :  { %18732 = vst [vmem:[#allocation138_spill] sm:$0xff] %v13434_v1 }
 0x4c1   :  { %v4759_v38 = vrot.slane %v4745_v54, %v18283_v28 }
 0x4c2   :  { %5583 = vadd.xlane.f32.xlu1 %v5582_v21  ;;  %v5606_v21 = vsel %vm1386_vm1, %v13406_v40, 0.0 }
 0x4c3   :  { %5580 = vadd.xlane.f32.xlu0 %v5579_v5  ;;  %v5603_v5 = vsel %vm1386_vm1, %v13416_v17, 0.0 }
 0x4c6   :  { %5589 = vadd.xlane.f32.xlu1 %v5588_v12  ;;  %v4761_v12 = vcombine.high %v4737_v11, %v4752_v39  ;;  %v5618_v39 = vsel %vm1386_vm1, %v13434_v1, 0.0  ;;  %v13454_v11 = vcombine.high %v13434_v1, %v18707_v22 }
 0x4c7   :  { %5586 = vadd.xlane.f32.xlu0 %v5585_v34  ;;  %v5612_v34 = vsel %vm1386_vm1, %v13420_v2, 0.0 }
 0x4c8   :  { %v13446_v46 = vrot.slane %v4761_v12, %v18295_v23  ;;  %18735 = vst [vmem:[#allocation219_spill] sm:$0xff] %v13454_v11 }
 0x4ca   :  { %5595 = vadd.xlane.f32.xlu1 %v5594_v36  ;;  %v13443_v36 = vcombine.high %v13420_v2, %v18707_v22  ;;  %18734 = vst [vmem:[#allocation229_spill] sm:$0xff] %v13446_v46  ;;  %v13468_v12 = vcombine.high %v13446_v46, %v18707_v22 }
 0x4cb   :  { %5592 = vadd.xlane.f32.xlu0 %v5591_v63  ;;  %v4776_v63 = vcombine.low %v4744_v61, %v4759_v38 }
 0x4cc   :  { %18733 = vst [vmem:[#allocation189_spill] sm:$0xff] %v13443_v36  ;;  %18737 = vst [vmem:[#allocation48_spill] sm:$0xff] %v13468_v12 }
 0x4cd   :  { %v13457_v54 = vrot.slane %v4776_v63, %v18295_v23  ;;  %v4796_v63 = vcombine.high %v13033_v58, %v18707_v22 }
 0x4ce   :  { %5601 = vadd.xlane.f32.xlu1 %v5600_v15  ;;  %v5615_v15 = vsel %vm1386_vm1, %v13443_v36, 0.0 }
 0x4cf   :  { %5598 = vadd.xlane.f32.xlu0 %v5597_v8  ;;  %v4777_v8 = vcombine.high %v4744_v61, %v4759_v38  ;;  %18736 = vst [vmem:[#allocation232_spill] sm:$0xff] %v13457_v54  ;;  %v4826_v61 = vcombine.low %v4803_v37, %v4818_v44  ;;  %v4810_v58 = vrot.slane %v4796_v63, %v18283_v28 }
 0x4d1   :  { %v13471_v38 = vrot.slane %v4777_v8, %v18295_v23 }
 0x4d2   :  { %5607 = vadd.xlane.f32.xlu1 %v5606_v21  ;;  %v5624_v21 = vsel %vm1386_vm1, %v13446_v46, 0.0 }
 0x4d3   :  { %5604 = vadd.xlane.f32.xlu0 %v5603_v5  ;;  %v5621_v5 = vsel %vm1386_vm1, %v13454_v11, 0.0  ;;  %18738 = vst [vmem:[#allocation40_spill] sm:$0xff] %v13471_v38 }
 0x4d6   :  { %5613 = vadd.xlane.f32.xlu1 %v5612_v34  ;;  %v4811_v34 = vcombine.high %v4429_v55, %v18707_v22  ;;  %v13486_v55 = vrot.slane %v4826_v61, %v18295_v23  ;;  %v4431_v61 = vpop.permute.xlu0 %4430 }
 0x4d7   :  { %5610 = vadd.xlane.f32.xlu0 %v5609_v4  ;;  %v5630_v4 = vsel %vm1386_vm1, %v13457_v54, 0.0 }
 0x4d8   :  { %v4825_v8 = vrot.slane %v4811_v34, %v18283_v28  ;;  %18740 = vst [vmem:[#allocation124_spill] sm:$0xff] %v13486_v55 }
 0x4da   :  { %5619 = vadd.xlane.f32.xlu1 %v5618_v39  ;;  %v5627_v39 = vsel %vm1386_vm1, %v13468_v12, 0.0  ;;  %v13495_v12 = vcombine.high %v13471_v38, %v18707_v22 }
 0x4db   :  { %5616 = vadd.xlane.f32.xlu0 %v5615_v15  ;;  %v13482_v15 = vcombine.high %v13457_v54, %v18707_v22 }
 0x4dc   :  { %18741 = vst [vmem:[#allocation228_spill] sm:$0xff] %v13495_v12  ;;  %v5639_v63 = vsel %vm1386_vm1, %v13495_v12, 0.0 }
 0x4dd   :  { %18739 = vst [vmem:[#allocation50_spill] sm:$0xff] %v13482_v15 }
 0x4de   :  { %5625 = vadd.xlane.f32.xlu1 %v5624_v21  ;;  %v4827_v21 = vcombine.high %v4803_v37, %v4818_v44  ;;  %v4842_v44 = vcombine.low %v4810_v58, %v4825_v8  ;;  %v5642_v37 = vsel %vm1386_vm1, %v13486_v55, 0.0 }
 0x4df   :  { %5622 = vadd.xlane.f32.xlu0 %v5621_v5  ;;  %v5636_v5 = vsel %vm1386_vm1, %v13471_v38, 0.0 }
 0x4e0   :  { %v13498_v34 = vrot.slane %v4827_v21, %v18295_v23  ;;  %v13510_v21 = vrot.slane %v4842_v44, %v18295_v23 }
 0x4e2   :  { %5631 = vadd.xlane.f32.xlu1 %v5630_v4  ;;  %v5633_v4 = vsel %vm1386_vm1, %v13482_v15, 0.0  ;;  %18742 = vst [vmem:[#allocation220_spill] sm:$0xff] %v13498_v34  ;;  %18744 = vst [vmem:[#allocation26_spill] sm:$0xff] %v13510_v21  ;;  %v5648_v15 = vsel %vm1386_vm1, %v13498_v34, 0.0 }
 0x4e3   :  { %5628 = vadd.xlane.f32.xlu0 %v5627_v39  ;;  %v13506_v39 = vcombine.high %v13486_v55, %v18707_v22  ;;  %v13520_v55 = vcombine.high %v13498_v34, %v18707_v22  ;;  %v13534_v34 = vcombine.high %v13510_v21, %v18707_v22 }
 0x4e5   :  { %18743 = vst [vmem:[#allocation63_spill] sm:$0xff] %v13506_v39  ;;  %v5645_v12 = vsel %vm1386_vm1, %v13506_v39, 0.0  ;;  %18745 = vst [vmem:[#allocation148_spill] sm:$0xff] %v13520_v55  ;;  %v5651_v39 = vsel %vm1386_vm1, %v13520_v55, 0.0  ;;  %v5657_v55 = vsel %vm1386_vm1, %v13534_v34, 0.0 }
 0x4e6   :  { %5637 = vadd.xlane.f32.xlu1 %v5636_v5  ;;  %v4884_v5 = vrot.slane %v4431_v61, %v18283_v28  ;;  %18747 = vst [vmem:[#allocation191_spill] sm:$0xff] %v13534_v34 }
 0x4e7   :  { %5634 = vadd.xlane.f32.xlu0 %v5633_v4  ;;  %v4843_v4 = vcombine.high %v4810_v58, %v4825_v8  ;;  %v4877_v8 = vcombine.high %v4431_v61, %v18707_v22 }
 0x4e9   :  { %v13524_v44 = vrot.slane %v4843_v4, %v18295_v23 }
 0x4ea   :  { %5643 = vadd.xlane.f32.xlu1 %v5642_v37  ;;  %v4869_v37 = vrot.slane %v13089_v62, %v18283_v28 }
 0x4eb   :  { %5640 = vadd.xlane.f32.xlu0 %v5639_v63  ;;  %18746 = vst [vmem:[#allocation190_spill] sm:$0xff] %v13524_v44  ;;  %v4862_v63 = vcombine.high %v13089_v62, %v18707_v22 }
 0x4ec   :  { %v4892_v58 = vcombine.low %v4869_v37, %v4884_v5  ;;  %v4893_v61 = vcombine.high %v4869_v37, %v4884_v5 }
 0x4ed   :  { %v4876_v62 = vrot.slane %v4862_v63, %v18283_v28 }
 0x4ee   :  { %5649 = vadd.xlane.f32.xlu1 %v5648_v15  ;;  %v5654_v15 = vsel %vm1386_vm1, %v13510_v21, 0.0  ;;  %v13538_v4 = vrot.slane %v4892_v58, %v18295_v23  ;;  %v13547_v21 = vcombine.high %v13524_v44, %v18707_v22 }
 0x4ef   :  { %5646 = vadd.xlane.f32.xlu0 %v5645_v12  ;;  %v4891_v12 = vrot.slane %v4877_v8, %v18283_v28  ;;  %v4433_v8 = vpop.permute.xlu1 %4432 }
 0x4f0   :  { %18748 = vst [vmem:[#allocation231_spill] sm:$0xff] %v13538_v4  ;;  %18749 = vst [vmem:[#allocation192_spill] sm:$0xff] %v13547_v21  ;;  %v5666_v37 = vsel %vm1386_vm1, %v13538_v4, 0.0  ;;  %v5663_v58 = vsel %vm1386_vm1, %v13547_v21, 0.0  ;;  %v13558_v63 = vcombine.high %v13538_v4, %v18707_v22 }
 0x4f1   :  { %v4908_v5 = vcombine.low %v4876_v62, %v4891_v12 }
 0x4f2   :  { %5655 = vadd.xlane.f32.xlu1 %v5654_v15  ;;  %v5660_v15 = vsel %vm1386_vm1, %v13524_v44, 0.0  ;;  %18751 = vst [vmem:[#allocation36_spill] sm:$0xff] %v13558_v63  ;;  %v5669_v21 = vsel %vm1386_vm1, %v13558_v63, 0.0  ;;  %v4435_v44 = vpop.permute.xlu0 %4434 }
 0x4f3   :  { %5652 = vadd.xlane.f32.xlu0 %v5651_v39  ;;  %v13550_v39 = vrot.slane %v4893_v61, %v18295_v23  ;;  %v4950_v61 = vrot.slane %v4433_v8, %v18283_v28  ;;  %v13594_v38 = vpop.permute.xlu1 %4436 }
 0x4f5   :  { %18750 = vst [vmem:[#allocation62_spill] sm:$0xff] %v13550_v39  ;;  %v5672_v34 = vsel %vm1386_vm1, %v13550_v39, 0.0  ;;  %v13572_v4 = vcombine.high %v13550_v39, %v18707_v22 }
 0x4f6   :  { %5661 = vadd.xlane.f32.xlu1 %v5660_v15  ;;  %v4909_v15 = vcombine.high %v4876_v62, %v4891_v12  ;;  %v4943_v62 = vcombine.high %v4433_v8, %v18707_v22 }
 0x4f7   :  { %5658 = vadd.xlane.f32.xlu0 %v5657_v55  ;;  %v13561_v55 = vrot.slane %v4908_v5, %v18295_v23  ;;  %18753 = vst [vmem:[#allocation64_spill] sm:$0xff] %v13572_v4  ;;  %v5675_v63 = vsel %vm1386_vm1, %v13572_v4, 0.0 }
 0x4f8   :  { %v13575_v12 = vrot.slane %v4909_v15, %v18295_v23  ;;  %v4957_v15 = vrot.slane %v4943_v62, %v18283_v28 }
 0x4f9   :  { %18752 = vst [vmem:[#allocation241_spill] sm:$0xff] %v13561_v55 }
 0x4fa   :  { %5667 = vadd.xlane.f32.xlu1 %v5666_v37  ;;  %v4935_v37 = vrot.slane %v13070_v41, %v18283_v28  ;;  %18754 = vst [vmem:[#allocation147_spill] sm:$0xff] %v13575_v12 }
 0x4fb   :  { %5664 = vadd.xlane.f32.xlu0 %v5663_v58  ;;  %v4928_v58 = vcombine.high %v13070_v41, %v18707_v22 }
 0x4fc   :  { %v4958_v5 = vcombine.low %v4935_v37, %v4950_v61  ;;  %v4959_v8 = vcombine.high %v4935_v37, %v4950_v61  ;;  %v13603_v61 = vpop.permute.xlu0 %4438 }
 0x4fd   :  { %v4942_v41 = vrot.slane %v4928_v58, %v18283_v28 }
 0x4fe   :  { %5673 = vadd.xlane.f32.xlu1 %v5672_v34  ;;  %v5678_v34 = vsel %vm1386_vm1, %v13561_v55, 0.0  ;;  %v13590_v39 = vrot.slane %v4958_v5, %v18295_v23  ;;  %v13606_v37 = vrot.slane %v4959_v8, %v18295_v23 }
 0x4ff   :  { %5670 = vadd.xlane.f32.xlu0 %v5669_v21  ;;  %v13586_v21 = vcombine.high %v13561_v55, %v18707_v22  ;;  %v4974_v62 = vcombine.low %v4942_v41, %v4957_v15 }
 0x500   :  { %18756 = vst [vmem:[#allocation117_spill] sm:$0xff] %v13590_v39  ;;  %18758 = vst [vmem:[#allocation53_spill] sm:$0xff] %v13606_v37  ;;  %v5690_v5 = vsel %vm1386_vm1, %v13590_v39, 0.0  ;;  %v5696_v55 = vsel %vm1386_vm1, %v13606_v37, 0.0 }
 0x501   :  { %18755 = vst [vmem:[#allocation52_spill] sm:$0xff] %v13586_v21  ;;  %v5681_v4 = vsel %vm1386_vm1, %v13586_v21, 0.0  ;;  %v13616_v21 = vpop.permute.xlu1 %4440  ;;  %v13620_v8 = vrot.slane %v4974_v62, %v18295_v23 }
 0x502   :  { %5679 = vadd.xlane.f32.xlu1 %v5678_v34  ;;  %v5684_v34 = vsel %vm1386_vm1, %v13575_v12, 0.0 }
 0x503   :  { %5676 = vadd.xlane.f32.xlu0 %v5675_v63  ;;  %v13601_v63 = vcombine.high %v13575_v12, %v18707_v22  ;;  %v4975_v12 = vcombine.high %v4942_v41, %v4957_v15  ;;  %18760 = vst [vmem:[#allocation106_spill] sm:$0xff] %v13620_v8  ;;  %v5009_v15 = vcombine.high %v4435_v44, %v18707_v22 }
 0x505   :  { %18757 = vst [vmem:[#allocation156_spill] sm:$0xff] %v13601_v63  ;;  %v5687_v58 = vsel %vm1386_vm1, %v13601_v63, 0.0  ;;  %v13626_v63 = vpop.permute.xlu0 %4442  ;;  %v13636_v62 = vrot.slane %v4975_v12, %v18295_v23  ;;  %v13640_v54 = vpop.permute.xlu1 %4444 }
 0x506   :  { %5685 = vadd.xlane.f32.xlu1 %v5684_v34  ;;  %v13614_v34 = vcombine.high %v13590_v39, %v18707_v22 }
 0x507   :  { %5682 = vadd.xlane.f32.xlu0 %v5681_v4  ;;  %v5016_v4 = vrot.slane %v4435_v44, %v18283_v28  ;;  %18762 = vst [vmem:[#allocation107_spill] sm:$0xff] %v13636_v62  ;;  %v5023_v44 = vrot.slane %v5009_v15, %v18283_v28 }
 0x508   :  { %18759 = vst [vmem:[#allocation129_spill] sm:$0xff] %v13614_v34  ;;  %v5693_v39 = vsel %vm1386_vm1, %v13614_v34, 0.0  ;;  %v4994_v34 = vcombine.high %v13113_v6, %v18707_v22 }
 0x509   :  { %v13654_v46 = vpop.permute.xlu0 %4446  ;;  %v13665_v15 = vpop.permute.xlu1 %4448 }
 0x50a   :  { %5691 = vadd.xlane.f32.xlu1 %v5690_v5  ;;  %v5001_v5 = vrot.slane %v13113_v6, %v18283_v28  ;;  %v5008_v6 = vrot.slane %v4994_v34, %v18283_v28 }
 0x50b   :  { %5688 = vadd.xlane.f32.xlu0 %v5687_v58  ;;  %v13632_v58 = vcombine.high %v13606_v37, %v18707_v22 }
 0x50c   :  { %v5024_v41 = vcombine.low %v5001_v5, %v5016_v4  ;;  %v5025_v12 = vcombine.high %v5001_v5, %v5016_v4  ;;  %v5040_v5 = vcombine.low %v5008_v6, %v5023_v44 }
 0x50d   :  { %18761 = vst [vmem:[#allocation238_spill] sm:$0xff] %v13632_v58  ;;  %v5699_v37 = vsel %vm1386_vm1, %v13632_v58, 0.0 }
 0x50e   :  { %5697 = vadd.xlane.f32.xlu1 %v5696_v55  ;;  %v5702_v55 = vsel %vm1386_vm1, %v13620_v8, 0.0  ;;  %v13652_v11 = vrot.slane %v5024_v41, %v18295_v23  ;;  %v13668_v4 = vrot.slane %v5025_v12, %v18295_v23  ;;  %v13683_v12 = vrot.slane %v5040_v5, %v18295_v23 }
 0x50f   :  { %5694 = vadd.xlane.f32.xlu0 %v5693_v39  ;;  %v13648_v39 = vcombine.high %v13620_v8, %v18707_v22  ;;  %v5082_v8 = vrot.slane %v13594_v38, %v18283_v28  ;;  %v5075_v5 = vcombine.high %v13594_v38, %v18707_v22 }
 0x510   :  { %18764 = vst [vmem:[#allocation70_spill] sm:$0xff] %v13652_v11  ;;  %18766 = vst [vmem:[#allocation72_spill] sm:$0xff] %v13668_v4  ;;  %v5714_v41 = vsel %vm1386_vm1, %v13652_v11, 0.0 }
 0x511   :  { %18763 = vst [vmem:[#allocation193_spill] sm:$0xff] %v13648_v39  ;;  %v5705_v58 = vsel %vm1386_vm1, %v13648_v39, 0.0  ;;  %v13678_v39 = vcombine.high %v13652_v11, %v18707_v22  ;;  %18770 = vst [vmem:[#allocation61_spill] sm:$0xff] %v13683_v12  ;;  %v5089_v38 = vrot.slane %v5075_v5, %v18283_v28 }
 0x512   :  { %5703 = vadd.xlane.f32.xlu1 %v5702_v55  ;;  %v5708_v55 = vsel %vm1386_vm1, %v13636_v62, 0.0 }
 0x513   :  { %5700 = vadd.xlane.f32.xlu0 %v5699_v37  ;;  %v13663_v37 = vcombine.high %v13636_v62, %v18707_v22  ;;  %18768 = vst [vmem:[#allocation59_spill] sm:$0xff] %v13678_v39 }
 0x515   :  { %18765 = vst [vmem:[#allocation65_spill] sm:$0xff] %v13663_v37  ;;  %v5711_v34 = vsel %vm1386_vm1, %v13663_v37, 0.0  ;;  %v5717_v37 = vsel %vm1386_vm1, %v13678_v39, 0.0  ;;  %v5060_v39 = vcombine.high %v13100_v57, %v18707_v22 }
 0x516   :  { %5709 = vadd.xlane.f32.xlu1 %v5708_v55 }
 0x517   :  { %5706 = vadd.xlane.f32.xlu0 %v5705_v58  ;;  %v5041_v58 = vcombine.high %v5008_v6, %v5023_v44 }
 0x519   :  { %v13700_v6 = vrot.slane %v5041_v58, %v18295_v23 }
 0x51a   :  { %5715 = vadd.xlane.f32.xlu1 %v5714_v41  ;;  %v5720_v41 = vsel %vm1386_vm1, %v13668_v4, 0.0 }
 0x51b   :  { %5712 = vadd.xlane.f32.xlu0 %v5711_v34  ;;  %v13695_v34 = vcombine.high %v13668_v4, %v18707_v22  ;;  %18773 = vst [vmem:[#allocation194_spill] sm:$0xff] %v13700_v6 }
 0x51d   :  { %18771 = vst [vmem:[#allocation144_spill] sm:$0xff] %v13695_v34 }
 0x51e   :  { %5721 = vadd.xlane.f32.xlu1 %v5720_v41 }
 0x51f   :  { %5718 = vadd.xlane.f32.xlu0 %v5717_v37  ;;  %v13714_v37 = vcombine.high %v13683_v12, %v18707_v22 }
 0x521   :  { %18775 = vst [vmem:[#allocation239_spill] sm:$0xff] %v13714_v37 }
 0x524   :  { %v13672_v55 = vpop.xlane.xlu0 %5523 }
 0x525   :  { %18767 = vst [vmem:[#allocation158_spill] sm:$0xff] %v13672_v55  ;;  %v5067_v55 = vrot.slane %v13100_v57, %v18283_v28  ;;  %v5074_v57 = vrot.slane %v5060_v39, %v18283_v28 }
 0x526   :  { %v13680_v62 = vpop.xlane.xlu1 %5526 }
 0x527   :  { %18769 = vst [vmem:[#allocation142_spill] sm:$0xff] %v13680_v62  ;;  %v5090_v41 = vcombine.low %v5067_v55, %v5082_v8  ;;  %v5726_v62 = vsel %vm1386_vm1, %v13683_v12, 0.0  ;;  %v5091_v58 = vcombine.high %v5067_v55, %v5082_v8  ;;  %v5106_v5 = vcombine.low %v5074_v57, %v5089_v38 }
 0x528   :  { %v13697_v44 = vpop.xlane.xlu0 %5529  ;;  %5727 = vadd.xlane.f32.xlu1 %v5726_v62  ;;  %v5732_v62 = vsel %vm1386_vm1, %v13700_v6, 0.0 }
 0x529   :  { %18772 = vst [vmem:[#allocation236_spill] sm:$0xff] %v13697_v44  ;;  %v5723_v44 = vsel %vm1386_vm1, %v13695_v34, 0.0  ;;  %v13718_v4 = vrot.slane %v5090_v41, %v18295_v23  ;;  %v5729_v34 = vsel %vm1386_vm1, %v13714_v37, 0.0  ;;  %v13734_v55 = vrot.slane %v5091_v58, %v18295_v23 }
 0x52a   :  { %v13706_v11 = vpop.xlane.xlu1 %5535  ;;  %5724 = vadd.xlane.f32.xlu0 %v5723_v44  ;;  %v13729_v44 = vcombine.high %v13700_v6, %v18707_v22  ;;  %v5148_v58 = vrot.slane %v13603_v61, %v18283_v28  ;;  %v13751_v37 = vrot.slane %v5106_v5, %v18295_v23 }
 0x52b   :  { %18774 = vst [vmem:[#allocation195_spill] sm:$0xff] %v13706_v11  ;;  %18776 = vst [vmem:[#allocation58_spill] sm:$0xff] %v13718_v4  ;;  %v5738_v41 = vsel %vm1386_vm1, %v13718_v4, 0.0 }
 0x52c   :  { %v13722_v11 = vpop.xlane.xlu0 %5532  ;;  %5733 = vadd.xlane.f32.xlu1 %v5732_v62  ;;  %18778 = vst [vmem:[#allocation60_spill] sm:$0xff] %v13729_v44  ;;  %18780 = vst [vmem:[#allocation71_spill] sm:$0xff] %v13734_v55  ;;  %v5735_v39 = vsel %vm1386_vm1, %v13729_v44, 0.0  ;;  %v13742_v62 = vcombine.high %v13718_v4, %v18707_v22  ;;  %v5133_v44 = vrot.slane %v13131_v59, %v18283_v28 }
 0x52d   :  { %18777 = vst [vmem:[#allocation141_spill] sm:$0xff] %v13722_v11  ;;  %18784 = vst [vmem:[#allocation196_spill] sm:$0xff] %v13751_v37 }
 0x52e   :  { %5730 = vadd.xlane.f32.xlu0 %v5729_v34  ;;  %v13731_v8 = vpop.xlane.xlu1 %5541  ;;  %18781 = vst [vmem:[#allocation157_spill] sm:$0xff] %v13742_v62 }
 0x52f   :  { %18779 = vst [vmem:[#allocation35_spill] sm:$0xff] %v13731_v8  ;;  %v5107_v8 = vcombine.high %v5074_v57, %v5089_v38  ;;  %v5141_v38 = vcombine.high %v13603_v61, %v18707_v22  ;;  %v5156_v57 = vcombine.low %v5133_v44, %v5148_v58  ;;  %v13780_v61 = vcombine.high %v13751_v37, %v18707_v22 }
 0x530   :  { %5739 = vadd.xlane.f32.xlu1 %v5738_v41  ;;  %v13744_v11 = vpop.xlane.xlu0 %5538  ;;  %v5744_v41 = vsel %vm1386_vm1, %v13734_v55, 0.0 }
 0x531   :  { %18782 = vst [vmem:[#allocation73_spill] sm:$0xff] %v13744_v11  ;;  %v5741_v11 = vsel %vm1386_vm1, %v13742_v62, 0.0  ;;  %v13766_v5 = vrot.slane %v5107_v8, %v18295_v23  ;;  %v5126_v62 = vcombine.high %v13131_v59, %v18707_v22  ;;  %18789 = vst [vmem:[#allocation150_spill] sm:$0xff] %v13780_v61  ;;  %v5155_v8 = vrot.slane %v5141_v38, %v18283_v28 }
 0x532   :  { %5736 = vadd.xlane.f32.xlu0 %v5735_v39  ;;  %v13761_v39 = vcombine.high %v13734_v55, %v18707_v22  ;;  %v5157_v55 = vcombine.high %v5133_v44, %v5148_v58  ;;  %v13784_v6 = vrot.slane %v5156_v57, %v18295_v23 }
 0x533   :  { %v13746_v34 = vpop.xlane.xlu1 %5547  ;;  %18786 = vst [vmem:[#allocation110_spill] sm:$0xff] %v13766_v5  ;;  %v5140_v59 = vrot.slane %v5126_v62, %v18283_v28 }
 0x534   :  { %18783 = vst [vmem:[#allocation159_spill] sm:$0xff] %v13746_v34  ;;  %5745 = vadd.xlane.f32.xlu1 %v5744_v41  ;;  %18785 = vst [vmem:[#allocation243_spill] sm:$0xff] %v13761_v39  ;;  %v5750_v41 = vsel %vm1386_vm1, %v13751_v37, 0.0  ;;  %v13770_v34 = vpop.xlane.xlu0 %5544  ;;  %v13800_v58 = vrot.slane %v5157_v55, %v18295_v23  ;;  %v5762_v57 = vsel %vm1386_vm1, %v13784_v6, 0.0  ;;  %v5214_v55 = vrot.slane %v13616_v21, %v18283_v28 }
 0x535   :  { %18787 = vst [vmem:[#allocation200_spill] sm:$0xff] %v13770_v34  ;;  %18790 = vst [vmem:[#allocation68_spill] sm:$0xff] %v13784_v6  ;;  %v5172_v38 = vcombine.low %v5140_v59, %v5155_v8 }
 0x536   :  { %5742 = vadd.xlane.f32.xlu0 %v5741_v11  ;;  %v5747_v11 = vsel %vm1386_vm1, %v13761_v39, 0.0  ;;  %18794 = vst [vmem:[#allocation165_spill] sm:$0xff] %v13800_v58 }
 0x537   :  { %v13772_v4 = vpop.xlane.xlu1 %5553 }
 0x538   :  { %5751 = vadd.xlane.f32.xlu1 %v5750_v41  ;;  %18788 = vst [vmem:[#allocation66_spill] sm:$0xff] %v13772_v4  ;;  %v5756_v41 = vsel %vm1386_vm1, %v13766_v5, 0.0  ;;  %v5753_v4 = vsel %vm1386_vm1, %v13780_v61, 0.0  ;;  %v13791_v34 = vpop.xlane.xlu0 %5550 }
 0x539   :  { %18791 = vst [vmem:[#allocation154_spill] sm:$0xff] %v13791_v34  ;;  %v5173_v34 = vcombine.high %v5140_v59, %v5155_v8  ;;  %v13827_v59 = vcombine.high %v13800_v58, %v18707_v22 }
 0x53a   :  { %5748 = vadd.xlane.f32.xlu0 %v5747_v11  ;;  %v13795_v11 = vcombine.high %v13766_v5, %v18707_v22 }
 0x53b   :  { %v13797_v44 = vpop.xlane.xlu1 %5559  ;;  %18799 = vst [vmem:[#allocation245_spill] sm:$0xff] %v13827_v59 }
 0x53c   :  { %5757 = vadd.xlane.f32.xlu1 %v5756_v41  ;;  %18792 = vst [vmem:[#allocation242_spill] sm:$0xff] %v13795_v11  ;;  %18793 = vst [vmem:[#allocation79_spill] sm:$0xff] %v13797_v44  ;;  %v5759_v62 = vsel %vm1386_vm1, %v13795_v11, 0.0  ;;  %v13808_v41 = vcombine.high %v13784_v6, %v18707_v22  ;;  %v13815_v44 = vpop.xlane.xlu0 %5556  ;;  %v5199_v11 = vrot.slane %v13121_v16, %v18283_v28 }
 0x53d   :  { %18797 = vst [vmem:[#allocation113_spill] sm:$0xff] %v13815_v44 }
 0x53e   :  { %5754 = vadd.xlane.f32.xlu0 %v5753_v4  ;;  %18795 = vst [vmem:[#allocation81_spill] sm:$0xff] %v13808_v41  ;;  %v13811_v4 = vrot.slane %v5172_v38, %v18295_v23  ;;  %v5765_v8 = vsel %vm1386_vm1, %v13808_v41, 0.0  ;;  %v13830_v38 = vrot.slane %v5173_v34, %v18295_v23  ;;  %v5192_v41 = vcombine.high %v13121_v16, %v18707_v22 }
 0x53f   :  { %v13819_v61 = vpop.xlane.xlu1 %5565 }
 0x540   :  { %5763 = vadd.xlane.f32.xlu1 %v5762_v57  ;;  %18796 = vst [vmem:[#allocation167_spill] sm:$0xff] %v13811_v4  ;;  %v5768_v57 = vsel %vm1386_vm1, %v13800_v58, 0.0  ;;  %18798 = vst [vmem:[#allocation197_spill] sm:$0xff] %v13819_v61  ;;  %v13834_v44 = vpop.xlane.xlu0 %5562  ;;  %v5774_v61 = vsel %vm1386_vm1, %v13811_v4, 0.0  ;;  %v5771_v58 = vsel %vm1386_vm1, %v13827_v59, 0.0  ;;  %v13846_v34 = vcombine.high %v13811_v4, %v18707_v22 }
 0x541   :  { %18800 = vst [vmem:[#allocation198_spill] sm:$0xff] %v13830_v38  ;;  %18801 = vst [vmem:[#allocation78_spill] sm:$0xff] %v13834_v44  ;;  %v5223_v44 = vcombine.high %v5199_v11, %v5214_v55  ;;  %v5780_v16 = vsel %vm1386_vm1, %v13830_v38, 0.0  ;;  %v5206_v59 = vrot.slane %v5192_v41, %v18283_v28 }
 0x542   :  { %5760 = vadd.xlane.f32.xlu0 %v5759_v62  ;;  %v5207_v62 = vcombine.high %v13616_v21, %v18707_v22  ;;  %18803 = vst [vmem:[#allocation80_spill] sm:$0xff] %v13846_v34 }
 0x544   :  { %5769 = vadd.xlane.f32.xlu1 %v5768_v57  ;;  %v5222_v57 = vcombine.low %v5199_v11, %v5214_v55  ;;  %v5221_v21 = vrot.slane %v5207_v62, %v18283_v28  ;;  %v13866_v11 = vrot.slane %v5223_v44, %v18295_v23  ;;  %v5280_v44 = vrot.slane %v13626_v63, %v18283_v28 }
 0x546   :  { %5766 = vadd.xlane.f32.xlu0 %v5765_v8  ;;  %v13842_v8 = vpop.xlane.xlu1 %5571  ;;  %v13850_v6 = vrot.slane %v5222_v57, %v18295_v23  ;;  %18808 = vst [vmem:[#allocation69_spill] sm:$0xff] %v13866_v11  ;;  %v5238_v55 = vcombine.low %v5206_v59, %v5221_v21 }
 0x547   :  { %18802 = vst [vmem:[#allocation164_spill] sm:$0xff] %v13842_v8  ;;  %v5777_v8 = vsel %vm1386_vm1, %v13846_v34, 0.0 }
 0x548   :  { %5775 = vadd.xlane.f32.xlu1 %v5774_v61  ;;  %18804 = vst [vmem:[#allocation166_spill] sm:$0xff] %v13850_v6  ;;  %v13852_v61 = vpop.xlane.xlu0 %5568  ;;  %v5786_v57 = vsel %vm1386_vm1, %v13850_v6, 0.0 }
 0x549   :  { %18805 = vst [vmem:[#allocation67_spill] sm:$0xff] %v13852_v61 }
 0x54a   :  { %5772 = vadd.xlane.f32.xlu0 %v5771_v58  ;;  %v13859_v4 = vpop.xlane.xlu1 %5577  ;;  %v13863_v58 = vcombine.high %v13830_v38, %v18707_v22 }
 0x54b   :  { %18806 = vst [vmem:[#allocation153_spill] sm:$0xff] %v13859_v4  ;;  %v13878_v4 = vcombine.high %v13850_v6, %v18707_v22 }
 0x54c   :  { %5781 = vadd.xlane.f32.xlu1 %v5780_v16  ;;  %18807 = vst [vmem:[#allocation169_spill] sm:$0xff] %v13863_v58  ;;  %v13868_v62 = vpop.xlane.xlu0 %5574  ;;  %v5783_v41 = vsel %vm1386_vm1, %v13863_v58, 0.0 }
 0x54d   :  { %18809 = vst [vmem:[#allocation155_spill] sm:$0xff] %v13868_v62  ;;  %18811 = vst [vmem:[#allocation116_spill] sm:$0xff] %v13878_v4  ;;  %v13883_v62 = vrot.slane %v5238_v55, %v18295_v23  ;;  %v5789_v58 = vsel %vm1386_vm1, %v13878_v4, 0.0 }
 0x54e   :  { %5778 = vadd.xlane.f32.xlu0 %v5777_v8  ;;  %v13874_v16 = vpop.xlane.xlu1 %5583  ;;  %v5239_v8 = vcombine.high %v5206_v59, %v5221_v21  ;;  %v13897_v59 = vcombine.high %v13866_v11, %v18707_v22  ;;  %v5273_v21 = vcombine.high %v13626_v63, %v18707_v22 }
 0x54f   :  { %18810 = vst [vmem:[#allocation199_spill] sm:$0xff] %v13874_v16  ;;  %18812 = vst [vmem:[#allocation23_spill] sm:$0xff] %v13883_v62  ;;  %v5265_v16 = vrot.slane %v13151_v32, %v18283_v28  ;;  %v5798_v6 = vsel %vm1386_vm1, %v13883_v62, 0.0  ;;  %v13916_v63 = vcombine.high %v13883_v62, %v18707_v22 }
 0x550   :  { %5787 = vadd.xlane.f32.xlu1 %v5786_v57  ;;  %v13885_v61 = vpop.xlane.xlu0 %5580  ;;  %v5792_v57 = vsel %vm1386_vm1, %v13866_v11, 0.0  ;;  %18815 = vst [vmem:[#allocation161_spill] sm:$0xff] %v13897_v59  ;;  %v5795_v4 = vsel %vm1386_vm1, %v13897_v59, 0.0 }
 0x551   :  { %18813 = vst [vmem:[#allocation202_spill] sm:$0xff] %v13885_v61  ;;  %v5288_v55 = vcombine.low %v5265_v16, %v5280_v44  ;;  %v13902_v61 = vrot.slane %v5239_v8, %v18295_v23  ;;  %18819 = vst [vmem:[#allocation119_spill] sm:$0xff] %v13916_v63  ;;  %v5287_v8 = vrot.slane %v5273_v21, %v18283_v28 }
 0x552   :  { %5784 = vadd.xlane.f32.xlu0 %v5783_v41  ;;  %v13893_v41 = vpop.xlane.xlu1 %5589 }
 0x553   :  { %18814 = vst [vmem:[#allocation75_spill] sm:$0xff] %v13893_v41  ;;  %18816 = vst [vmem:[#allocation77_spill] sm:$0xff] %v13902_v61  ;;  %v5258_v41 = vcombine.high %v13151_v32, %v18707_v22  ;;  %v13920_v11 = vrot.slane %v5288_v55, %v18295_v23  ;;  %v5804_v32 = vsel %vm1386_vm1, %v13902_v61, 0.0 }
 0x554   :  { %5793 = vadd.xlane.f32.xlu1 %v5792_v57  ;;  %v13904_v57 = vpop.xlane.xlu0 %5586 }
 0x555   :  { %18817 = vst [vmem:[#allocation163_spill] sm:$0xff] %v13904_v57  ;;  %v5289_v57 = vcombine.high %v5265_v16, %v5280_v44  ;;  %18820 = vst [vmem:[#allocation203_spill] sm:$0xff] %v13920_v11  ;;  %v5272_v59 = vrot.slane %v5258_v41, %v18283_v28  ;;  %v5810_v55 = vsel %vm1386_vm1, %v13920_v11, 0.0 }
 0x556   :  { %5790 = vadd.xlane.f32.xlu0 %v5789_v58  ;;  %v13912_v58 = vpop.xlane.xlu1 %5595 }
 0x557   :  { %18818 = vst [vmem:[#allocation172_spill] sm:$0xff] %v13912_v58  ;;  %v5801_v58 = vsel %vm1386_vm1, %v13916_v63, 0.0  ;;  %v13936_v16 = vrot.slane %v5289_v57, %v18295_v23  ;;  %v5304_v44 = vcombine.low %v5272_v59, %v5287_v8 }
 0x558   :  { %5799 = vadd.xlane.f32.xlu1 %v5798_v6  ;;  %v13922_v6 = vpop.xlane.xlu0 %5592 }
 0x559   :  { %18821 = vst [vmem:[#allocation204_spill] sm:$0xff] %v13922_v6  ;;  %18824 = vst [vmem:[#allocation160_spill] sm:$0xff] %v13936_v16  ;;  %v13951_v57 = vrot.slane %v5304_v44, %v18295_v23  ;;  %v5339_v44 = vcombine.high %v13640_v54, %v18707_v22 }
 0x55a   :  { %5796 = vadd.xlane.f32.xlu0 %v5795_v4  ;;  %v13929_v62 = vpop.xlane.xlu1 %5601  ;;  %v13933_v4 = vcombine.high %v13902_v61, %v18707_v22 }
 0x55b   :  { %18822 = vst [vmem:[#allocation173_spill] sm:$0xff] %v13929_v62  ;;  %v13948_v62 = vcombine.high %v13920_v11, %v18707_v22  ;;  %18828 = vst [vmem:[#allocation179_spill] sm:$0xff] %v13951_v57  ;;  %v5822_v11 = vsel %vm1386_vm1, %v13951_v57, 0.0 }
 0x55c   :  { %5805 = vadd.xlane.f32.xlu1 %v5804_v32  ;;  %18823 = vst [vmem:[#allocation74_spill] sm:$0xff] %v13933_v4  ;;  %v13938_v21 = vpop.xlane.xlu0 %5598  ;;  %v5807_v41 = vsel %vm1386_vm1, %v13933_v4, 0.0 }
 0x55d   :  { %18825 = vst [vmem:[#allocation76_spill] sm:$0xff] %v13938_v21  ;;  %18827 = vst [vmem:[#allocation207_spill] sm:$0xff] %v13948_v62  ;;  %v5346_v21 = vrot.slane %v13640_v54, %v18283_v28  ;;  %v5813_v4 = vsel %vm1386_vm1, %v13948_v62, 0.0  ;;  %v5353_v54 = vrot.slane %v5339_v44, %v18283_v28 }
 0x55e   :  { %5802 = vadd.xlane.f32.xlu0 %v5801_v58  ;;  %v13944_v32 = vpop.xlane.xlu1 %5607  ;;  %v5305_v58 = vcombine.high %v5272_v59, %v5287_v8  ;;  %v13967_v59 = vcombine.high %v13936_v16, %v18707_v22 }
 0x55f   :  { %18826 = vst [vmem:[#allocation162_spill] sm:$0xff] %v13944_v32  ;;  %v5331_v32 = vrot.slane %v13140_v31, %v18283_v28 }
 0x560   :  { %5811 = vadd.xlane.f32.xlu1 %v5810_v55  ;;  %v13955_v6 = vpop.xlane.xlu0 %5604  ;;  %v5816_v55 = vsel %vm1386_vm1, %v13936_v16, 0.0  ;;  %18831 = vst [vmem:[#allocation86_spill] sm:$0xff] %v13967_v59  ;;  %v13970_v8 = vrot.slane %v5305_v58, %v18295_v23  ;;  %v5819_v62 = vsel %vm1386_vm1, %v13967_v59, 0.0  ;;  %v13986_v58 = vcombine.high %v13951_v57, %v18707_v22 }
 0x561   :  { %18829 = vst [vmem:[#allocation83_spill] sm:$0xff] %v13955_v6 }
 0x562   :  { %5808 = vadd.xlane.f32.xlu0 %v5807_v41  ;;  %v13963_v41 = vpop.xlane.xlu1 %5613  ;;  %18832 = vst [vmem:[#allocation170_spill] sm:$0xff] %v13970_v8  ;;  %18835 = vst [vmem:[#allocation90_spill] sm:$0xff] %v13986_v58 }
 0x563   :  { %18830 = vst [vmem:[#allocation168_spill] sm:$0xff] %v13963_v41  ;;  %v5324_v41 = vcombine.high %v13140_v31, %v18707_v22  ;;  %v5828_v31 = vsel %vm1386_vm1, %v13970_v8, 0.0 }
 0x564   :  { %5817 = vadd.xlane.f32.xlu1 %v5816_v55  ;;  %v5354_v55 = vcombine.low %v5331_v32, %v5346_v21  ;;  %v13974_v6 = vpop.xlane.xlu0 %5610 }
 0x565   :  { %18833 = vst [vmem:[#allocation174_spill] sm:$0xff] %v13974_v6  ;;  %v5355_v6 = vcombine.high %v5331_v32, %v5346_v21  ;;  %v5338_v59 = vrot.slane %v5324_v41, %v18283_v28 }
 0x566   :  { %5814 = vadd.xlane.f32.xlu0 %v5813_v4  ;;  %v13982_v4 = vpop.xlane.xlu1 %5619  ;;  %v13990_v16 = vrot.slane %v5354_v55, %v18295_v23 }
 0x567   :  { %18834 = vst [vmem:[#allocation99_spill] sm:$0xff] %v13982_v4  ;;  %v5825_v4 = vsel %vm1386_vm1, %v13986_v58, 0.0  ;;  %v14006_v21 = vrot.slane %v5355_v6, %v18295_v23  ;;  %v5370_v32 = vcombine.low %v5338_v59, %v5353_v54  ;;  %v5412_v6 = vrot.slane %v13654_v46, %v18283_v28 }
 0x568   :  { %5823 = vadd.xlane.f32.xlu1 %v5822_v11  ;;  %18836 = vst [vmem:[#allocation100_spill] sm:$0xff] %v13990_v16  ;;  %v13992_v11 = vpop.xlane.xlu0 %5616  ;;  %v5834_v55 = vsel %vm1386_vm1, %v13990_v16, 0.0 }
 0x569   :  { %18837 = vst [vmem:[#allocation180_spill] sm:$0xff] %v13992_v11  ;;  %18840 = vst [vmem:[#allocation91_spill] sm:$0xff] %v14006_v21 }
 0x56a   :  { %5820 = vadd.xlane.f32.xlu0 %v5819_v62  ;;  %v13999_v57 = vpop.xlane.xlu1 %5625  ;;  %v14003_v62 = vcombine.high %v13970_v8, %v18707_v22 }
 0x56b   :  { %18838 = vst [vmem:[#allocation38_spill] sm:$0xff] %v13999_v57  ;;  %v14018_v57 = vcombine.high %v13990_v16, %v18707_v22 }
 0x56c   :  { %5829 = vadd.xlane.f32.xlu1 %v5828_v31  ;;  %18839 = vst [vmem:[#allocation85_spill] sm:$0xff] %v14003_v62  ;;  %v14008_v44 = vpop.xlane.xlu0 %5622  ;;  %v5831_v41 = vsel %vm1386_vm1, %v14003_v62, 0.0 }
 0x56d   :  { %18841 = vst [vmem:[#allocation216_spill] sm:$0xff] %v14008_v44  ;;  %18843 = vst [vmem:[#allocation177_spill] sm:$0xff] %v14018_v57  ;;  %v14023_v44 = vrot.slane %v5370_v32, %v18295_v23  ;;  %v5837_v62 = vsel %vm1386_vm1, %v14018_v57, 0.0 }
 0x56e   :  { %5826 = vadd.xlane.f32.xlu0 %v5825_v4  ;;  %v14014_v31 = vpop.xlane.xlu1 %5631  ;;  %v5371_v4 = vcombine.high %v5338_v59, %v5353_v54  ;;  %v14037_v59 = vcombine.high %v14006_v21, %v18707_v22  ;;  %v5405_v54 = vcombine.high %v13654_v46, %v18707_v22 }
 0x56f   :  { %18842 = vst [vmem:[#allocation98_spill] sm:$0xff] %v14014_v31  ;;  %18844 = vst [vmem:[#allocation101_spill] sm:$0xff] %v14023_v44  ;;  %v5397_v31 = vrot.slane %v13165_v29, %v18283_v28  ;;  %v5846_v16 = vsel %vm1386_vm1, %v14023_v44, 0.0  ;;  %v14056_v46 = vcombine.high %v14023_v44, %v18707_v22 }
 0x570   :  { %5835 = vadd.xlane.f32.xlu1 %v5834_v55  ;;  %v14025_v11 = vpop.xlane.xlu0 %5628  ;;  %v5840_v55 = vsel %vm1386_vm1, %v14006_v21, 0.0  ;;  %18847 = vst [vmem:[#allocation201_spill] sm:$0xff] %v14037_v59  ;;  %v5843_v57 = vsel %vm1386_vm1, %v14037_v59, 0.0 }
 0x571   :  { %18845 = vst [vmem:[#allocation178_spill] sm:$0xff] %v14025_v11  ;;  %v5420_v32 = vcombine.low %v5397_v31, %v5412_v6  ;;  %v14042_v11 = vrot.slane %v5371_v4, %v18295_v23  ;;  %18851 = vst [vmem:[#allocation20_spill] sm:$0xff] %v14056_v46  ;;  %v5419_v4 = vrot.slane %v5405_v54, %v18283_v28 }
 0x572   :  { %5832 = vadd.xlane.f32.xlu0 %v5831_v41  ;;  %v14033_v41 = vpop.xlane.xlu1 %5637 }
 0x573   :  { %18846 = vst [vmem:[#allocation84_spill] sm:$0xff] %v14033_v41  ;;  %18848 = vst [vmem:[#allocation183_spill] sm:$0xff] %v14042_v11  ;;  %v5390_v41 = vcombine.high %v13165_v29, %v18707_v22  ;;  %v14060_v21 = vrot.slane %v5420_v32, %v18295_v23  ;;  %v5852_v29 = vsel %vm1386_vm1, %v14042_v11, 0.0 }
 0x574   :  { %5841 = vadd.xlane.f32.xlu1 %v5840_v55  ;;  %v14044_v55 = vpop.xlane.xlu0 %5634 }
 0x575   :  { %18849 = vst [vmem:[#allocation87_spill] sm:$0xff] %v14044_v55  ;;  %v5421_v55 = vcombine.high %v5397_v31, %v5412_v6  ;;  %18852 = vst [vmem:[#allocation125_spill] sm:$0xff] %v14060_v21  ;;  %v5404_v59 = vrot.slane %v5390_v41, %v18283_v28  ;;  %v5858_v32 = vsel %vm1386_vm1, %v14060_v21, 0.0 }
 0x576   :  { %5838 = vadd.xlane.f32.xlu0 %v5837_v62  ;;  %v14052_v62 = vpop.xlane.xlu1 %5643 }
 0x577   :  { %18850 = vst [vmem:[#allocation171_spill] sm:$0xff] %v14052_v62  ;;  %v5849_v62 = vsel %vm1386_vm1, %v14056_v46, 0.0  ;;  %v14076_v31 = vrot.slane %v5421_v55, %v18295_v23  ;;  %v5436_v6 = vcombine.low %v5404_v59, %v5419_v4 }
 0x578   :  { %5847 = vadd.xlane.f32.xlu1 %v5846_v16  ;;  %v14062_v16 = vpop.xlane.xlu0 %5640 }
 0x579   :  { %18853 = vst [vmem:[#allocation92_spill] sm:$0xff] %v14062_v16  ;;  %18856 = vst [vmem:[#allocation95_spill] sm:$0xff] %v14076_v31  ;;  %v14091_v55 = vrot.slane %v5436_v6, %v18295_v23  ;;  %v5471_v6 = vcombine.high %v13665_v15, %v18707_v22 }
 0x57a   :  { %5844 = vadd.xlane.f32.xlu0 %v5843_v57  ;;  %v14069_v44 = vpop.xlane.xlu1 %5649  ;;  %v14073_v57 = vcombine.high %v14042_v11, %v18707_v22 }
 0x57b   :  { %18854 = vst [vmem:[#allocation128_spill] sm:$0xff] %v14069_v44  ;;  %v14088_v44 = vcombine.high %v14060_v21, %v18707_v22  ;;  %18860 = vst [vmem:[#allocation176_spill] sm:$0xff] %v14091_v55  ;;  %v5870_v21 = vsel %vm1386_vm1, %v14091_v55, 0.0 }
 0x57c   :  { %5853 = vadd.xlane.f32.xlu1 %v5852_v29  ;;  %18855 = vst [vmem:[#allocation18_spill] sm:$0xff] %v14073_v57  ;;  %v14078_v54 = vpop.xlane.xlu0 %5646  ;;  %v5855_v41 = vsel %vm1386_vm1, %v14073_v57, 0.0 }
 0x57d   :  { %18857 = vst [vmem:[#allocation94_spill] sm:$0xff] %v14078_v54  ;;  %18859 = vst [vmem:[#allocation96_spill] sm:$0xff] %v14088_v44  ;;  %v5478_v54 = vrot.slane %v13665_v15, %v18283_v28  ;;  %v5861_v57 = vsel %vm1386_vm1, %v14088_v44, 0.0  ;;  %v5485_v15 = vrot.slane %v5471_v6, %v18283_v28 }
 0x57e   :  { %5850 = vadd.xlane.f32.xlu0 %v5849_v62  ;;  %v14084_v29 = vpop.xlane.xlu1 %5655  ;;  %v5437_v62 = vcombine.high %v5404_v59, %v5419_v4  ;;  %v14107_v59 = vcombine.high %v14076_v31, %v18707_v22 }
 0x57f   :  { %18858 = vst [vmem:[#allocation88_spill] sm:$0xff] %v14084_v29  ;;  %v5463_v29 = vrot.slane %v13159_v60, %v18283_v28 }
 0x580   :  { %5859 = vadd.xlane.f32.xlu1 %v5858_v32  ;;  %v14095_v16 = vpop.xlane.xlu0 %5652  ;;  %v5864_v32 = vsel %vm1386_vm1, %v14076_v31, 0.0  ;;  %18863 = vst [vmem:[#allocation221_spill] sm:$0xff] %v14107_v59  ;;  %v14110_v4 = vrot.slane %v5437_v62, %v18295_v23  ;;  %v5867_v44 = vsel %vm1386_vm1, %v14107_v59, 0.0  ;;  %v14126_v62 = vcombine.high %v14091_v55, %v18707_v22 }
 0x581   :  { %18861 = vst [vmem:[#allocation29_spill] sm:$0xff] %v14095_v16 }
 0x582   :  { %5856 = vadd.xlane.f32.xlu0 %v5855_v41  ;;  %v14103_v41 = vpop.xlane.xlu1 %5661  ;;  %18864 = vst [vmem:[#allocation27_spill] sm:$0xff] %v14110_v4  ;;  %18867 = vst [vmem:[#allocation93_spill] sm:$0xff] %v14126_v62 }
 0x583   :  { %18862 = vst [vmem:[#allocation21_spill] sm:$0xff] %v14103_v41  ;;  %v5456_v41 = vcombine.high %v13159_v60, %v18707_v22  ;;  %v5876_v60 = vsel %vm1386_vm1, %v14110_v4, 0.0 }
 0x584   :  { %5865 = vadd.xlane.f32.xlu1 %v5864_v32  ;;  %v5486_v32 = vcombine.low %v5463_v29, %v5478_v54  ;;  %v14114_v16 = vpop.xlane.xlu0 %5658 }
 0x585   :  { %18865 = vst [vmem:[#allocation123_spill] sm:$0xff] %v14114_v16  ;;  %v5487_v16 = vcombine.high %v5463_v29, %v5478_v54  ;;  %v5470_v59 = vrot.slane %v5456_v41, %v18283_v28 }
 0x586   :  { %5862 = vadd.xlane.f32.xlu0 %v5861_v57  ;;  %v14122_v57 = vpop.xlane.xlu1 %5667  ;;  %v14130_v31 = vrot.slane %v5486_v32, %v18295_v23 }
 0x587   :  { %18866 = vst [vmem:[#allocation208_spill] sm:$0xff] %v14122_v57  ;;  %v5873_v57 = vsel %vm1386_vm1, %v14126_v62, 0.0  ;;  %v14146_v54 = vrot.slane %v5487_v16, %v18295_v23  ;;  %v5502_v29 = vcombine.low %v5470_v59, %v5485_v15 }
 0x588   :  { %5871 = vadd.xlane.f32.xlu1 %v5870_v21  ;;  %18868 = vst [vmem:[#allocation89_spill] sm:$0xff] %v14130_v31  ;;  %v14132_v21 = vpop.xlane.xlu0 %5664  ;;  %v5882_v32 = vsel %vm1386_vm1, %v14130_v31, 0.0  ;;  %v14158_v28 = vcombine.high %v14130_v31, %v18707_v22 }
 0x589   :  { %18869 = vst [vmem:[#allocation97_spill] sm:$0xff] %v14132_v21  ;;  %18872 = vst [vmem:[#allocation226_spill] sm:$0xff] %v14146_v54  ;;  %v14161_v16 = vrot.slane %v5502_v29, %v18295_v23 }
 0x58a   :  { %5868 = vadd.xlane.f32.xlu0 %v5867_v44  ;;  %v14139_v55 = vpop.xlane.xlu1 %5673  ;;  %v14143_v44 = vcombine.high %v14110_v4, %v18707_v22  ;;  %18875 = vst [vmem:[#allocation225_spill] sm:$0xff] %v14158_v28 }
 0x58b   :  { %18870 = vst [vmem:[#allocation175_spill] sm:$0xff] %v14139_v55  ;;  %18876 = vst [vmem:[#allocation43_spill] sm:$0xff] %v14161_v16  ;;  %v5894_v29 = vsel %vm1386_vm1, %v14161_v16, 0.0 }
 0x58c   :  { %5877 = vadd.xlane.f32.xlu1 %v5876_v60  ;;  %18871 = vst [vmem:[#allocation19_spill] sm:$0xff] %v14143_v44  ;;  %v14148_v6 = vpop.xlane.xlu0 %5670  ;;  %v5879_v41 = vsel %vm1386_vm1, %v14143_v44, 0.0 }
 0x58d   :  { %18873 = vst [vmem:[#allocation28_spill] sm:$0xff] %v14148_v6  ;;  %v5888_v6 = vsel %vm1386_vm1, %v14146_v54, 0.0 }
 0x58e   :  { %5874 = vadd.xlane.f32.xlu0 %v5873_v57  ;;  %v14154_v60 = vpop.xlane.xlu1 %5679  ;;  %v5503_v57 = vcombine.high %v5470_v59, %v5485_v15 }
 0x58f   :  { %18874 = vst [vmem:[#allocation223_spill] sm:$0xff] %v14154_v60  ;;  %v14173_v60 = vcombine.high %v14146_v54, %v18707_v22 }
 0x590   :  { %5883 = vadd.xlane.f32.xlu1 %v5882_v32  ;;  %v14163_v55 = vpop.xlane.xlu0 %5676  ;;  %v5885_v32 = vsel %vm1386_vm1, %v14158_v28, 0.0  ;;  %v14176_v59 = vrot.slane %v5503_v57, %v18295_v23  ;;  %v5906_v23 = vmul.f32 %v13230_v42, %v13230_v42 }
 0x591   :  { %18877 = vst [vmem:[#allocation181_spill] sm:$0xff] %v14163_v55  ;;  %18879 = vst [vmem:[#allocation205_spill] sm:$0xff] %v14173_v60  ;;  %v5908_v55 = vmul.f32 %v13233_v20, %v13233_v20 }
 0x592   :  { %5880 = vadd.xlane.f32.xlu0 %v5879_v41  ;;  %v14169_v21 = vpop.xlane.xlu1 %5685  ;;  %18880 = vst [vmem:[#allocation45_spill] sm:$0xff] %v14176_v59  ;;  %v5900_v57 = vsel %vm1386_vm1, %v14176_v59, 0.0 }
 0x593   :  { %18878 = vst [vmem:[#allocation11_spill] sm:$0xff] %v14169_v21  ;;  %v14188_v21 = vcombine.high %v14161_v16, %v18707_v22 }
 0x594   :  { %5889 = vadd.xlane.f32.xlu1 %v5888_v6  ;;  %v14178_v15 = vpop.xlane.xlu0 %5682  ;;  %v5891_v6 = vsel %vm1386_vm1, %v14173_v60, 0.0 }
 0x595   :  { %18881 = vst [vmem:[#allocation227_spill] sm:$0xff] %v14178_v15  ;;  %18883 = vst [vmem:[#allocation104_spill] sm:$0xff] %v14188_v21 }
 0x596   :  { %5886 = vadd.xlane.f32.xlu0 %v5885_v32  ;;  %v14184_v41 = vpop.xlane.xlu1 %5691 }
 0x597   :  { %18882 = vst [vmem:[#allocation230_spill] sm:$0xff] %v14184_v41  ;;  %v14202_v41 = vcombine.high %v14176_v59, %v18707_v22 }
 0x598   :  { %5895 = vadd.xlane.f32.xlu1 %v5894_v29  ;;  %v14190_v32 = vpop.xlane.xlu0 %5688  ;;  %v5897_v29 = vsel %vm1386_vm1, %v14188_v21, 0.0 }
 0x599   :  { %18884 = vst [vmem:[#allocation182_spill] sm:$0xff] %v14190_v32  ;;  %18886 = vst [vmem:[#allocation30_spill] sm:$0xff] %v14202_v41  ;;  %v6034_v32 = vsel %vm1386_vm1, %v5906_v23, 0.0  ;;  %v5910_v23 = vmul.f32 %v13242_v24, %v13242_v24 }
 0x59a   :  { %5892 = vadd.xlane.f32.xlu0 %v5891_v6  ;;  %v14198_v15 = vpop.xlane.xlu1 %5697 }
 0x59b   :  { %18885 = vst [vmem:[#allocation105_spill] sm:$0xff] %v14198_v15  ;;  %v5907_v15 = vmul.f32 %v13239_v33, %v13239_v33 }
 0x59c   :  { %5901 = vadd.xlane.f32.xlu1 %v5900_v57  ;;  %v14204_v6 = vpop.xlane.xlu0 %5694  ;;  %v5903_v57 = vsel %vm1386_vm1, %v14202_v41, 0.0  ;;  %v5909_v41 = vmul.f32 %v13250_v19, %v13250_v19 }
 0x59d   :  { %18887 = vst [vmem:[#allocation240_spill] sm:$0xff] %v14204_v6  ;;  %v6037_v6 = vsel %vm1386_vm1, %v5907_v15, 0.0  ;;  %v5911_v15 = vmul.f32 %v13266_v18, %v13266_v18 }
 0x59e   :  { %5898 = vadd.xlane.f32.xlu0 %v5897_v29  ;;  %v14211_v60 = vpop.xlane.xlu1 %5703  ;;  %v6040_v29 = vsel %vm1386_vm1, %v5908_v55, 0.0  ;;  %v6043_v55 = vsel %vm1386_vm1, %v5909_v41, 0.0  ;;  %v5913_v41 = vmul.f32 %v13279_v26, %v13279_v26  ;;  %v18948_v26 = vld [vmem:[#allocation106_spill] sm:$0xff] }
 0x59f   :  { %18888 = vst [vmem:[#allocation244_spill] sm:$0xff] %v14211_v60 }
 0x5a0   :  { %6035 = vadd.xlane.f32.xlu1 %v6034_v32  ;;  %v14215_v22 = vpop.xlane.xlu0 %5700 }
 0x5a1   :  { %18889 = vst [vmem:[#allocation120_spill] sm:$0xff] %v14215_v22  ;;  %v5912_v22 = vmul.f32 %v13253_v56, %v13253_v56 }
 0x5a2   :  { %5904 = vadd.xlane.f32.xlu0 %v5903_v57  ;;  %v14221_v32 = vpop.xlane.xlu1 %5709  ;;  %v6046_v57 = vsel %vm1386_vm1, %v5910_v23, 0.0  ;;  %v6049_v23 = vsel %vm1386_vm1, %v5911_v15, 0.0  ;;  %v5915_v15 = vmul.f32 %v13300_v0, %v13300_v0  ;;  %v18938_v0 = vld [vmem:[#allocation52_spill] sm:$0xff] }
 0x5a3   :  { %18890 = vst [vmem:[#allocation22_spill] sm:$0xff] %v14221_v32 }
 0x5a4   :  { %6041 = vadd.xlane.f32.xlu1 %v6040_v29  ;;  %v14225_v60 = vpop.xlane.xlu0 %5706 }
 0x5a5   :  { %18891 = vst [vmem:[#allocation33_spill] sm:$0xff] %v14225_v60  ;;  %v5914_v60 = vmul.f32 %v13282_v30, %v13282_v30 }
 0x5a6   :  { %6038 = vadd.xlane.f32.xlu0 %v6037_v6  ;;  %v14231_v21 = vpop.xlane.xlu1 %5715  ;;  %v6052_v6 = vsel %vm1386_vm1, %v5912_v22, 0.0  ;;  %v6055_v22 = vsel %vm1386_vm1, %v5913_v41, 0.0  ;;  %v5917_v41 = vmul.f32 %v13314_v47, %v13314_v47  ;;  %v18935_v47 = vld [vmem:[#allocation64_spill] sm:$0xff] }
 0x5a7   :  { %18892 = vst [vmem:[#allocation31_spill] sm:$0xff] %v14231_v21 }
 0x5a8   :  { %6047 = vadd.xlane.f32.xlu1 %v6046_v57  ;;  %v14235_v29 = vpop.xlane.xlu0 %5712 }
 0x5a9   :  { %18893 = vst [vmem:[#allocation212_spill] sm:$0xff] %v14235_v29  ;;  %v5916_v29 = vmul.f32 %v13294_v45, %v13294_v45  ;;  %v18940_v45 = vld [vmem:[#allocation156_spill] sm:$0xff] }
 0x5aa   :  { %6044 = vadd.xlane.f32.xlu0 %v6043_v55  ;;  %v14241_v32 = vpop.xlane.xlu1 %5721  ;;  %v6058_v55 = vsel %vm1386_vm1, %v5914_v60, 0.0  ;;  %v6061_v60 = vsel %vm1386_vm1, %v5915_v15, 0.0  ;;  %v5919_v15 = vmul.f32 %v13328_v53, %v13328_v53  ;;  %v18931_v53 = vld [vmem:[#allocation192_spill] sm:$0xff] }
 0x5ab   :  { %18894 = vst [vmem:[#allocation109_spill] sm:$0xff] %v14241_v32 }
 0x5ac   :  { %6053 = vadd.xlane.f32.xlu1 %v6052_v6  ;;  %v14245_v57 = vpop.xlane.xlu0 %5718 }
 0x5ad   :  { %18895 = vst [vmem:[#allocation209_spill] sm:$0xff] %v14245_v57  ;;  %v5918_v57 = vmul.f32 %v13303_v49, %v13303_v49  ;;  %v5957_v49 = vmul.f32 %v18935_v47, %v18935_v47  ;;  %v5959_v47 = vmul.f32 %v18938_v0, %v18938_v0 }
 0x5ae   :  { %6050 = vadd.xlane.f32.xlu0 %v6049_v23  ;;  %v6064_v23 = vsel %vm1386_vm1, %v5916_v29, 0.0  ;;  %v6067_v29 = vsel %vm1386_vm1, %v5917_v41, 0.0  ;;  %v5921_v41 = vmul.f32 %v13339_v25, %v13339_v25  ;;  %v18928_v25 = vld [vmem:[#allocation191_spill] sm:$0xff] }
 0x5b0   :  { %6059 = vadd.xlane.f32.xlu1 %v6058_v55 }
 0x5b1   :  { %v14251_v21 = vpop.xlane.xlu1 %5727 }
 0x5b2   :  { %18896 = vst [vmem:[#allocation111_spill] sm:$0xff] %v14251_v21  ;;  %6056 = vadd.xlane.f32.xlu0 %v6055_v22  ;;  %v6070_v22 = vsel %vm1386_vm1, %v5918_v57, 0.0  ;;  %v6073_v57 = vsel %vm1386_vm1, %v5919_v15, 0.0  ;;  %v5923_v15 = vmul.f32 %v13350_v3, %v13350_v3 }
 0x5b3   :  { %v14255_v6 = vpop.xlane.xlu0 %5724 }
 0x5b4   :  { %18897 = vst [vmem:[#allocation82_spill] sm:$0xff] %v14255_v6  ;;  %6065 = vadd.xlane.f32.xlu1 %v6064_v23  ;;  %v5920_v6 = vmul.f32 %v13317_v51, %v13317_v51  ;;  %v18933_v51 = vld [vmem:[#allocation36_spill] sm:$0xff] }
 0x5b5   :  { %v14261_v32 = vpop.xlane.xlu1 %5733 }
 0x5b6   :  { %18898 = vst [vmem:[#allocation126_spill] sm:$0xff] %v14261_v32  ;;  %6062 = vadd.xlane.f32.xlu0 %v6061_v60  ;;  %v6076_v60 = vsel %vm1386_vm1, %v5920_v6, 0.0  ;;  %v6079_v6 = vsel %vm1386_vm1, %v5921_v41, 0.0  ;;  %v5925_v41 = vmul.f32 %v13364_v9, %v13364_v9  ;;  %v18919_v9 = vld [vmem:[#allocation124_spill] sm:$0xff] }
 0x5b7   :  { %v14265_v55 = vpop.xlane.xlu0 %5730 }
 0x5b8   :  { %18899 = vst [vmem:[#allocation213_spill] sm:$0xff] %v14265_v55  ;;  %6071 = vadd.xlane.f32.xlu1 %v6070_v22  ;;  %v5922_v55 = vmul.f32 %v13332_v35, %v13332_v35 }
 0x5b9   :  { %v14271_v21 = vpop.xlane.xlu1 %5739 }
 0x5ba   :  { %18900 = vst [vmem:[#allocation136_spill] sm:$0xff] %v14271_v21  ;;  %6068 = vadd.xlane.f32.xlu0 %v6067_v29  ;;  %v6082_v29 = vsel %vm1386_vm1, %v5922_v55, 0.0  ;;  %v6085_v55 = vsel %vm1386_vm1, %v5923_v15, 0.0  ;;  %v5927_v15 = vmul.f32 %v13378_v10, %v13378_v10 }
 0x5bb   :  { %v14275_v23 = vpop.xlane.xlu0 %5736 }
 0x5bc   :  { %18901 = vst [vmem:[#allocation233_spill] sm:$0xff] %v14275_v23  ;;  %6077 = vadd.xlane.f32.xlu1 %v6076_v60  ;;  %v5924_v23 = vmul.f32 %v13342_v48, %v13342_v48  ;;  %v18926_v48 = vld [vmem:[#allocation148_spill] sm:$0xff] }
 0x5bd   :  { %v14281_v32 = vpop.xlane.xlu1 %5745 }
 0x5be   :  { %18902 = vst [vmem:[#allocation140_spill] sm:$0xff] %v14281_v32  ;;  %6074 = vadd.xlane.f32.xlu0 %v6073_v57  ;;  %v6088_v57 = vsel %vm1386_vm1, %v5924_v23, 0.0  ;;  %v6091_v23 = vsel %vm1386_vm1, %v5925_v41, 0.0  ;;  %v5931_v41 = vmul.f32 %v13402_v14, %v13402_v14 }
 0x5bf   :  { %v14285_v22 = vpop.xlane.xlu0 %5742 }
 0x5c0   :  { %18903 = vst [vmem:[#allocation237_spill] sm:$0xff] %v14285_v22  ;;  %6083 = vadd.xlane.f32.xlu1 %v6082_v29  ;;  %v5926_v22 = vmul.f32 %v13353_v52, %v13353_v52 }
 0x5c1   :  { %v14291_v21 = vpop.xlane.xlu1 %5751 }
 0x5c2   :  { %18904 = vst [vmem:[#allocation46_spill] sm:$0xff] %v14291_v21  ;;  %6080 = vadd.xlane.f32.xlu0 %v6079_v6  ;;  %v6094_v6 = vsel %vm1386_vm1, %v5926_v22, 0.0 }
 0x5c3   :  { %v14295_v60 = vpop.xlane.xlu0 %5748 }
 0x5c4   :  { %18905 = vst [vmem:[#allocation210_spill] sm:$0xff] %v14295_v60  ;;  %6089 = vadd.xlane.f32.xlu1 %v6088_v57  ;;  %v5928_v60 = vmul.f32 %v13367_v13, %v13367_v13  ;;  %v5930_v57 = vmul.f32 %v13382_v50, %v13382_v50  ;;  %v18913_v50 = vld [vmem:[#allocation219_spill] sm:$0xff] }
 0x5c5   :  { %v14301_v32 = vpop.xlane.xlu1 %5757 }
 0x5c6   :  { %18906 = vst [vmem:[#allocation13_spill] sm:$0xff] %v14301_v32  ;;  %6086 = vadd.xlane.f32.xlu0 %v6085_v55  ;;  %v5929_v55 = vmul.f32 %v13391_v7, %v13391_v7  ;;  %v6100_v22 = vsel %vm1386_vm1, %v5928_v60, 0.0  ;;  %v5933_v7 = vmul.f32 %v13416_v17, %v13416_v17  ;;  %v5936_v60 = vmul.f32 %v13420_v2, %v13420_v2 }
 0x5c7   :  { %v14305_v29 = vpop.xlane.xlu0 %5754  ;;  %v5937_v17 = vmul.f32 %v13443_v36, %v13443_v36 }
 0x5c8   :  { %18907 = vst [vmem:[#allocation17_spill] sm:$0xff] %v14305_v29  ;;  %6095 = vadd.xlane.f32.xlu1 %v6094_v6  ;;  %v5932_v6 = vmul.f32 %v13394_v27, %v13394_v27  ;;  %v6103_v14 = vsel %vm1386_vm1, %v5929_v55, 0.0  ;;  %v18912_v27 = vld [vmem:[#allocation229_spill] sm:$0xff]  ;;  %v6115_v36 = vsel %vm1386_vm1, %v5933_v7, 0.0 }
 0x5c9   :  { %v14311_v21 = vpop.xlane.xlu1 %5763  ;;  %v5940_v2 = vmul.f32 %v18912_v27, %v18912_v27  ;;  %v6124_v27 = vsel %vm1386_vm1, %v5936_v60, 0.0 }
 0x5ca   :  { %18908 = vst [vmem:[#allocation114_spill] sm:$0xff] %v14311_v21  ;;  %6092 = vadd.xlane.f32.xlu0 %v6091_v23  ;;  %v5934_v23 = vmul.f32 %v13406_v40, %v13406_v40  ;;  %v6097_v21 = vsel %vm1386_vm1, %v5927_v15, 0.0  ;;  %v5938_v40 = vmul.f32 %v13434_v1, %v13434_v1 }
 0x5cb   :  { %v14319_v29 = vpop.xlane.xlu0 %5760  ;;  %v14378_v60 = vsel %vm1386_vm1, %v5940_v2, 0.0 }
 0x5cc   :  { %18909 = vst [vmem:[#allocation115_spill] sm:$0xff] %v14319_v29  ;;  %6101 = vadd.xlane.f32.xlu1 %v6100_v22  ;;  %v5935_v29 = vmul.f32 %v13430_v43, %v13430_v43  ;;  %v6106_v22 = vsel %vm1386_vm1, %v5930_v57, 0.0  ;;  %v6109_v57 = vsel %vm1386_vm1, %v5931_v41, 0.0  ;;  %v6118_v55 = vsel %vm1386_vm1, %v5934_v23, 0.0  ;;  %v18914_v43 = vld [vmem:[#allocation232_spill] sm:$0xff]  ;;  %v18918_v23 = vld [vmem:[#allocation50_spill] sm:$0xff] }
 0x5cd   :  { %v14329_v32 = vpop.xlane.xlu1 %5769  ;;  %v5942_v1 = vmul.f32 %v18914_v43, %v18914_v43  ;;  %v14364_v41 = vsel %vm1386_vm1, %v5938_v40, 0.0  ;;  %v5943_v43 = vmul.f32 %v18918_v23, %v18918_v23  ;;  %v18922_v40 = vld [vmem:[#allocation220_spill] sm:$0xff] }
 0x5ce   :  { %18910 = vst [vmem:[#allocation135_spill] sm:$0xff] %v14329_v32  ;;  %6098 = vadd.xlane.f32.xlu0 %v6097_v21  ;;  %v6112_v32 = vsel %vm1386_vm1, %v5932_v6, 0.0  ;;  %v5939_v21 = vmul.f32 %v18913_v50, %v18913_v50  ;;  %v6121_v13 = vsel %vm1386_vm1, %v5935_v29, 0.0  ;;  %v18917_v50 = vld [vmem:[#allocation40_spill] sm:$0xff]  ;;  %v14375_v29 = vsel %vm1386_vm1, %v5937_v17, 0.0 }
 0x5cf   :  { %v14341_v15 = vpop.xlane.xlu0 %5766  ;;  %v5948_v23 = vmul.f32 %v18922_v40, %v18922_v40  ;;  %v18927_v40 = vld [vmem:[#allocation190_spill] sm:$0xff] }
 0x5d0   :  { %18911 = vst [vmem:[#allocation139_spill] sm:$0xff] %v14341_v15  ;;  %6107 = vadd.xlane.f32.xlu1 %v6106_v22  ;;  %v18915_v15 = vld [vmem:[#allocation48_spill] sm:$0xff]  ;;  %v5944_v22 = vmul.f32 %v18917_v50, %v18917_v50  ;;  %v18924_v50 = vld [vmem:[#allocation26_spill] sm:$0xff] }
 0x5d1   :  { %v5941_v6 = vmul.f32 %v18915_v15, %v18915_v15  ;;  %v14356_v10 = vpop.xlane.xlu1 %5775  ;;  %v5946_v15 = vmul.f32 %v18919_v9, %v18919_v9  ;;  %v14386_v9 = vsel %vm1386_vm1, %v5942_v1, 0.0  ;;  %v5950_v2 = vmul.f32 %v18924_v50, %v18924_v50 }
 0x5d2   :  { %18916 = vst [vmem:[#allocation151_spill] sm:$0xff] %v14356_v10  ;;  %6104 = vadd.xlane.f32.xlu0 %v6103_v14  ;;  %v18920_v10 = vld [vmem:[#allocation228_spill] sm:$0xff]  ;;  %v14381_v14 = vsel %vm1386_vm1, %v5939_v21, 0.0  ;;  %v14398_v21 = vsel %vm1386_vm1, %v5944_v22, 0.0  ;;  %v5952_v1 = vmul.f32 %v18927_v40, %v18927_v40  ;;  %v18929_v22 = vld [vmem:[#allocation231_spill] sm:$0xff]  ;;  %v14420_v40 = vsel %vm1386_vm1, %v5948_v23, 0.0 }
 0x5d3   :  { %v5945_v7 = vmul.f32 %v18920_v10, %v18920_v10  ;;  %v14372_v52 = vpop.xlane.xlu0 %5772  ;;  %v14389_v10 = vsel %vm1386_vm1, %v5941_v6, 0.0  ;;  %v5951_v6 = vmul.f32 %v18928_v25, %v18928_v25  ;;  %v14410_v50 = vsel %vm1386_vm1, %v5946_v15, 0.0  ;;  %v18932_v25 = vld [vmem:[#allocation62_spill] sm:$0xff] }
 0x5d4   :  { %18921 = vst [vmem:[#allocation152_spill] sm:$0xff] %v14372_v52  ;;  %6113 = vadd.xlane.f32.xlu1 %v6112_v32  ;;  %v18923_v52 = vld [vmem:[#allocation63_spill] sm:$0xff]  ;;  %v5949_v32 = vmul.f32 %v18926_v48, %v18926_v48  ;;  %v5954_v35 = vmul.f32 %v18929_v22, %v18929_v22  ;;  %v5955_v15 = vmul.f32 %v18933_v51, %v18933_v51  ;;  %v14432_v22 = vsel %vm1386_vm1, %v5950_v2, 0.0 }
 0x5d5   :  { %v5947_v17 = vmul.f32 %v18923_v52, %v18923_v52  ;;  %v14395_v3 = vpop.xlane.xlu1 %5781  ;;  %v14407_v52 = vsel %vm1386_vm1, %v5943_v43, 0.0  ;;  %v5956_v43 = vmul.f32 %v18932_v25, %v18932_v25  ;;  %v14444_v51 = vsel %vm1386_vm1, %v5952_v1, 0.0 }
 0x5d6   :  { %18925 = vst [vmem:[#allocation24_spill] sm:$0xff] %v14395_v3  ;;  %6110 = vadd.xlane.f32.xlu0 %v6109_v57  ;;  %v14413_v3 = vsel %vm1386_vm1, %v5945_v7, 0.0  ;;  %v5953_v57 = vmul.f32 %v18931_v53, %v18931_v53  ;;  %v14441_v25 = vsel %vm1386_vm1, %v5949_v32, 0.0  ;;  %v5961_v1 = vmul.f32 %v18940_v45, %v18940_v45 }
 0x5d7   :  { %v14417_v48 = vpop.xlane.xlu0 %5778  ;;  %v14429_v7 = vsel %vm1386_vm1, %v5947_v17, 0.0  ;;  %v18937_v17 = vld [vmem:[#allocation147_spill] sm:$0xff]  ;;  %v14477_v45 = vsel %vm1386_vm1, %v5957_v49, 0.0 }
 0x5d8   :  { %18930 = vst [vmem:[#allocation34_spill] sm:$0xff] %v14417_v48  ;;  %6119 = vadd.xlane.f32.xlu1 %v6118_v55  ;;  %v18934_v48 = vld [vmem:[#allocation241_spill] sm:$0xff]  ;;  %v14447_v55 = vsel %vm1386_vm1, %v5951_v6, 0.0  ;;  %v5960_v2 = vmul.f32 %v18937_v17, %v18937_v17  ;;  %v14463_v6 = vsel %vm1386_vm1, %v5953_v57, 0.0  ;;  %v14466_v17 = vsel %vm1386_vm1, %v5956_v43, 0.0  ;;  %18946 = vst [vmem:[#allocation149_spill] sm:$0xff] %v14477_v45 }
 0x5d9   :  { %v5958_v23 = vmul.f32 %v18934_v48, %v18934_v48  ;;  %v14438_v53 = vpop.xlane.xlu1 %5787  ;;  %v14452_v48 = vsel %vm1386_vm1, %v5954_v35, 0.0  ;;  %18942 = vst [vmem:[#allocation122_spill] sm:$0xff] %v14466_v17  ;;  %v14469_v35 = vsel %vm1386_vm1, %v5955_v15, 0.0  ;;  %v5966_v43 = vmul.f32 %v18948_v26, %v18948_v26  ;;  %v18958_v45 = vld [vmem:[#allocation65_spill] sm:$0xff] }
 0x5da   :  { %18936 = vst [vmem:[#allocation127_spill] sm:$0xff] %v14438_v53  ;;  %6116 = vadd.xlane.f32.xlu0 %v6115_v36  ;;  %v18939_v53 = vld [vmem:[#allocation117_spill] sm:$0xff]  ;;  %18943 = vst [vmem:[#allocation32_spill] sm:$0xff] %v14469_v35  ;;  %v14486_v15 = vsel %vm1386_vm1, %v5960_v2, 0.0  ;;  %v18951_v35 = vld [vmem:[#allocation238_spill] sm:$0xff] }
 0x5db   :  { %v5962_v32 = vmul.f32 %v18939_v53, %v18939_v53  ;;  %v14460_v30 = vpop.xlane.xlu0 %5784  ;;  %v18944_v36 = vld [vmem:[#allocation53_spill] sm:$0xff]  ;;  %v14474_v53 = vsel %vm1386_vm1, %v5958_v23, 0.0  ;;  %18950 = vst [vmem:[#allocation185_spill] sm:$0xff] %v14486_v15  ;;  %v18955_v2 = vld [vmem:[#allocation70_spill] sm:$0xff] }
 0x5dc   :  { %18941 = vst [vmem:[#allocation222_spill] sm:$0xff] %v14460_v30  ;;  %v5964_v0 = vmul.f32 %v18944_v36, %v18944_v36  ;;  %6125 = vadd.xlane.f32.xlu1 %v6124_v27  ;;  %18945 = vst [vmem:[#allocation146_spill] sm:$0xff] %v14474_v53  ;;  %v18947_v30 = vld [vmem:[#allocation129_spill] sm:$0xff]  ;;  %v5965_v27 = vmul.f32 %v18951_v35, %v18951_v35  ;;  %v18952_v36 = vld [vmem:[#allocation107_spill] sm:$0xff]  ;;  %v5970_v15 = vmul.f32 %v18955_v2, %v18955_v2 }
 0x5dd   :  { %v5963_v57 = vmul.f32 %v18947_v30, %v18947_v30  ;;  %v14483_v17 = vpop.xlane.xlu1 %5793  ;;  %v5968_v23 = vmul.f32 %v18952_v36, %v18952_v36  ;;  %v18953_v53 = vld [vmem:[#allocation193_spill] sm:$0xff]  ;;  %v14495_v30 = vsel %vm1386_vm1, %v5959_v47, 0.0  ;;  %v14498_v26 = vsel %vm1386_vm1, %v5962_v32, 0.0 }
 0x5de   :  { %18949 = vst [vmem:[#allocation184_spill] sm:$0xff] %v14483_v17  ;;  %v5967_v49 = vmul.f32 %v18953_v53, %v18953_v53  ;;  %6122 = vadd.xlane.f32.xlu0 %v6121_v13  ;;  %18954 = vst [vmem:[#allocation131_spill] sm:$0xff] %v14495_v30  ;;  %v14501_v17 = vsel %vm1386_vm1, %v5961_v1, 0.0  ;;  %v14508_v36 = vsel %vm1386_vm1, %v5964_v0, 0.0  ;;  %v5969_v13 = vmul.f32 %v18958_v45, %v18958_v45  ;;  %v18959_v53 = vld [vmem:[#allocation72_spill] sm:$0xff]  ;;  %v18960_v30 = vld [vmem:[#allocation59_spill] sm:$0xff] }
 0x5df   :  { %v14505_v35 = vpop.xlane.xlu0 %5790  ;;  %18957 = vst [vmem:[#allocation102_spill] sm:$0xff] %v14508_v36  ;;  %v5972_v47 = vmul.f32 %v18959_v53, %v18959_v53  ;;  %v5971_v32 = vmul.f32 %v18960_v30, %v18960_v30  ;;  %v14518_v1 = vsel %vm1386_vm1, %v5963_v57, 0.0  ;;  %v14521_v2 = vsel %vm1386_vm1, %v5966_v43, 0.0  ;;  %v18966_v57 = vld [vmem:[#allocation194_spill] sm:$0xff] }
 0x5e0   :  { %18956 = vst [vmem:[#allocation133_spill] sm:$0xff] %v14505_v35  ;;  %6131 = vadd.xlane.f32.xlu1 %v14364_v41  ;;  %18961 = vst [vmem:[#allocation103_spill] sm:$0xff] %v14521_v2  ;;  %v5974_v0 = vmul.f32 %v13683_v12, %v13683_v12  ;;  %v18962_v35 = vld [vmem:[#allocation144_spill] sm:$0xff]  ;;  %v14530_v53 = vsel %vm1386_vm1, %v5965_v27, 0.0  ;;  %v14533_v30 = vsel %vm1386_vm1, %v5968_v23, 0.0  ;;  %v14536_v41 = vsel %vm1386_vm1, %v5967_v49, 0.0 }
 0x5e1   :  { %v5973_v45 = vmul.f32 %v18962_v35, %v18962_v35  ;;  %v14527_v36 = vpop.xlane.xlu1 %5799  ;;  %18964 = vst [vmem:[#allocation206_spill] sm:$0xff] %v14530_v53  ;;  %18965 = vst [vmem:[#allocation130_spill] sm:$0xff] %v14533_v30  ;;  %v5976_v43 = vmul.f32 %v18966_v57, %v18966_v57  ;;  %v14542_v12 = vsel %vm1386_vm1, %v5970_v15, 0.0  ;;  %v18967_v35 = vld [vmem:[#allocation239_spill] sm:$0xff]  ;;  %v18968_v2 = vld [vmem:[#allocation58_spill] sm:$0xff]  ;;  %v14553_v49 = vsel %vm1386_vm1, %v5969_v13, 0.0 }
 0x5e2   :  { %18963 = vst [vmem:[#allocation42_spill] sm:$0xff] %v14527_v36  ;;  %6128 = vadd.xlane.f32.xlu0 %v14375_v29  ;;  %v5975_v36 = vmul.f32 %v18967_v35, %v18967_v35  ;;  %v5978_v27 = vmul.f32 %v18968_v2, %v18968_v2  ;;  %v18969_v53 = vld [vmem:[#allocation60_spill] sm:$0xff]  ;;  %v14556_v57 = vsel %vm1386_vm1, %v5972_v47, 0.0  ;;  %v14559_v29 = vsel %vm1386_vm1, %v5971_v32, 0.0  ;;  %v18972_v15 = vld [vmem:[#allocation71_spill] sm:$0xff] }
 0x5e3   :  { %v5977_v23 = vmul.f32 %v18969_v53, %v18969_v53  ;;  %v14550_v30 = vpop.xlane.xlu0 %5796  ;;  %18971 = vst [vmem:[#allocation132_spill] sm:$0xff] %v14556_v57  ;;  %v5980_v35 = vmul.f32 %v18972_v15, %v18972_v15  ;;  %v14565_v2 = vsel %vm1386_vm1, %v5974_v0, 0.0  ;;  %v14568_v53 = vsel %vm1386_vm1, %v5973_v45, 0.0  ;;  %v18977_v15 = vld [vmem:[#allocation150_spill] sm:$0xff] }
 0x5e4   :  { %18970 = vst [vmem:[#allocation54_spill] sm:$0xff] %v14550_v30  ;;  %6137 = vadd.xlane.f32.xlu1 %v14378_v60  ;;  %18973 = vst [vmem:[#allocation16_spill] sm:$0xff] %v14568_v53  ;;  %v18974_v30 = vld [vmem:[#allocation157_spill] sm:$0xff]  ;;  %v5982_v47 = vmul.f32 %v13751_v37, %v13751_v37  ;;  %v14577_v32 = vsel %vm1386_vm1, %v5976_v43, 0.0  ;;  %v5981_v60 = vmul.f32 %v13761_v39, %v13761_v39  ;;  %v14590_v37 = vsel %vm1386_vm1, %v5978_v27, 0.0 }
 0x5e5   :  { %v5979_v13 = vmul.f32 %v18974_v30, %v18974_v30  ;;  %v14574_v57 = vpop.xlane.xlu1 %5805  ;;  %18976 = vst [vmem:[#allocation143_spill] sm:$0xff] %v14577_v32  ;;  %v5984_v0 = vmul.f32 %v13766_v5, %v13766_v5  ;;  %v5983_v45 = vmul.f32 %v18977_v15, %v18977_v15  ;;  %v14587_v30 = vsel %vm1386_vm1, %v5975_v36, 0.0  ;;  %v18983_v15 = vld [vmem:[#allocation242_spill] sm:$0xff]  ;;  %v18984_v53 = vld [vmem:[#allocation165_spill] sm:$0xff] }
 0x5e6   :  { %18975 = vst [vmem:[#allocation47_spill] sm:$0xff] %v14574_v57  ;;  %6134 = vadd.xlane.f32.xlu0 %v14381_v14  ;;  %18978 = vst [vmem:[#allocation145_spill] sm:$0xff] %v14587_v30  ;;  %v14593_v43 = vsel %vm1386_vm1, %v5977_v23, 0.0  ;;  %v18980_v57 = vld [vmem:[#allocation68_spill] sm:$0xff]  ;;  %v14600_v5 = vsel %vm1386_vm1, %v5980_v35, 0.0  ;;  %v5985_v14 = vmul.f32 %v18983_v15, %v18983_v15  ;;  %v5988_v36 = vmul.f32 %v18984_v53, %v18984_v53  ;;  %v18985_v30 = vld [vmem:[#allocation81_spill] sm:$0xff] }
 0x5e7   :  { %18979 = vst [vmem:[#allocation121_spill] sm:$0xff] %v14593_v43  ;;  %v5986_v39 = vmul.f32 %v18980_v57, %v18980_v57  ;;  %v14597_v32 = vpop.xlane.xlu0 %5802  ;;  %18982 = vst [vmem:[#allocation186_spill] sm:$0xff] %v14600_v5  ;;  %v5987_v27 = vmul.f32 %v18985_v30, %v18985_v30  ;;  %v14610_v23 = vsel %vm1386_vm1, %v5979_v13, 0.0  ;;  %v14613_v57 = vsel %vm1386_vm1, %v5982_v47, 0.0  ;;  %v18987_v5 = vld [vmem:[#allocation245_spill] sm:$0xff] }
 0x5e8   :  { %18981 = vst [vmem:[#allocation118_spill] sm:$0xff] %v14597_v32  ;;  %6143 = vadd.xlane.f32.xlu1 %v14386_v9  ;;  %v18986_v32 = vld [vmem:[#allocation167_spill] sm:$0xff]  ;;  %v5989_v15 = vmul.f32 %v18987_v5, %v18987_v5  ;;  %v14622_v53 = vsel %vm1386_vm1, %v5981_v60, 0.0  ;;  %v14625_v30 = vsel %vm1386_vm1, %v5984_v0, 0.0  ;;  %v14628_v9 = vsel %vm1386_vm1, %v5983_v45, 0.0  ;;  %v18990_v5 = vld [vmem:[#allocation166_spill] sm:$0xff] }
 0x5e9   :  { %v5990_v35 = vmul.f32 %v18986_v32, %v18986_v32  ;;  %v14619_v43 = vpop.xlane.xlu1 %5811  ;;  %18989 = vst [vmem:[#allocation246_spill] sm:$0xff] %v14625_v30  ;;  %v5992_v13 = vmul.f32 %v13830_v38, %v13830_v38  ;;  %v14634_v47 = vsel %vm1386_vm1, %v5986_v39, 0.0  ;;  %v5994_v60 = vmul.f32 %v18990_v5, %v18990_v5  ;;  %v18991_v32 = vld [vmem:[#allocation169_spill] sm:$0xff] }
 0x5ea   :  { %18988 = vst [vmem:[#allocation211_spill] sm:$0xff] %v14619_v43  ;;  %6140 = vadd.xlane.f32.xlu0 %v14389_v10  ;;  %v5991_v43 = vmul.f32 %v13846_v34, %v13846_v34  ;;  %v5993_v0 = vmul.f32 %v18991_v32, %v18991_v32  ;;  %v14645_v45 = vsel %vm1386_vm1, %v5985_v14, 0.0  ;;  %v14648_v38 = vsel %vm1386_vm1, %v5988_v36, 0.0  ;;  %v18995_v39 = vld [vmem:[#allocation69_spill] sm:$0xff] }
 0x5eb   :  { %v14642_v30 = vpop.xlane.xlu0 %5808  ;;  %18993 = vst [vmem:[#allocation248_spill] sm:$0xff] %v14645_v45  ;;  %18994 = vst [vmem:[#allocation249_spill] sm:$0xff] %v14648_v38  ;;  %v14651_v10 = vsel %vm1386_vm1, %v5987_v27, 0.0  ;;  %v5996_v34 = vmul.f32 %v18995_v39, %v18995_v39  ;;  %v14657_v5 = vsel %vm1386_vm1, %v5990_v35, 0.0  ;;  %v14660_v32 = vsel %vm1386_vm1, %v5989_v15, 0.0  ;;  %v18998_v45 = vld [vmem:[#allocation23_spill] sm:$0xff] }
 0x5ec   :  { %18992 = vst [vmem:[#allocation247_spill] sm:$0xff] %v14642_v30  ;;  %6149 = vadd.xlane.f32.xlu1 %v14398_v21  ;;  %18996 = vst [vmem:[#allocation250_spill] sm:$0xff] %v14660_v32  ;;  %v18997_v30 = vld [vmem:[#allocation116_spill] sm:$0xff]  ;;  %v5998_v36 = vmul.f32 %v18998_v45, %v18998_v45  ;;  %v14669_v27 = vsel %vm1386_vm1, %v5992_v13, 0.0  ;;  %v19001_v39 = vld [vmem:[#allocation161_spill] sm:$0xff]  ;;  %v6000_v35 = vmul.f32 %v13902_v61, %v13902_v61  ;;  %v14682_v45 = vsel %vm1386_vm1, %v5994_v60, 0.0 }
 0x5ed   :  { %v5995_v14 = vmul.f32 %v18997_v30, %v18997_v30  ;;  %v14666_v38 = vpop.xlane.xlu1 %5817  ;;  %19000 = vst [vmem:[#allocation252_spill] sm:$0xff] %v14669_v27  ;;  %v5997_v21 = vmul.f32 %v19001_v39, %v19001_v39  ;;  %v5999_v15 = vmul.f32 %v13916_v63, %v13916_v63  ;;  %v14679_v30 = vsel %vm1386_vm1, %v5991_v43, 0.0  ;;  %19003 = vst [vmem:[#allocation254_spill] sm:$0xff] %v14682_v45  ;;  %v19008_v63 = vld [vmem:[#allocation74_spill] sm:$0xff]  ;;  %v19009_v32 = vld [vmem:[#allocation160_spill] sm:$0xff] }
 0x5ee   :  { %18999 = vst [vmem:[#allocation251_spill] sm:$0xff] %v14666_v38  ;;  %6146 = vadd.xlane.f32.xlu0 %v14407_v52  ;;  %19002 = vst [vmem:[#allocation253_spill] sm:$0xff] %v14679_v30  ;;  %v14685_v13 = vsel %vm1386_vm1, %v5993_v0, 0.0  ;;  %v19005_v38 = vld [vmem:[#allocation203_spill] sm:$0xff]  ;;  %v14692_v61 = vsel %vm1386_vm1, %v5996_v34, 0.0  ;;  %v6001_v52 = vmul.f32 %v19008_v63, %v19008_v63  ;;  %v6004_v43 = vmul.f32 %v19009_v32, %v19009_v32  ;;  %v19011_v45 = vld [vmem:[#allocation158_spill] sm:$0xff] }
 0x5ef   :  { %19004 = vst [vmem:[#allocation255_spill] sm:$0xff] %v14685_v13  ;;  %v6002_v39 = vmul.f32 %v19005_v38, %v19005_v38  ;;  %v14689_v27 = vpop.xlane.xlu0 %5814  ;;  %19007 = vst [vmem:[#allocation257_spill] sm:$0xff] %v14692_v61  ;;  %v19010_v30 = vld [vmem:[#allocation207_spill] sm:$0xff]  ;;  %v14701_v0 = vmul.f32 0.03125, %v19011_v45  ;;  %v14705_v38 = vsel %vm1386_vm1, %v5995_v14, 0.0  ;;  %v14708_v34 = vsel %vm1386_vm1, %v5998_v36, 0.0 }
 0x5f0   :  { %19006 = vst [vmem:[#allocation256_spill] sm:$0xff] %v14689_v27  ;;  %v6003_v60 = vmul.f32 %v19010_v30, %v19010_v30  ;;  %6155 = vadd.xlane.f32.xlu1 %v14410_v50  ;;  %19012 = vst [vmem:[#allocation158_spill] sm:$0xff] %v14705_v38  ;;  %v19014_v27 = vld [vmem:[#allocation179_spill] sm:$0xff]  ;;  %v14715_v32 = vsel %vm1386_vm1, %v5997_v21, 0.0  ;;  %v14718_v30 = vsel %vm1386_vm1, %v6000_v35, 0.0  ;;  %v14721_v45 = vsel %vm1386_vm1, %v5999_v15, 0.0 }
 0x5f1   :  { %19013 = vst [vmem:[#allocation258_spill] sm:$0xff] %v14708_v34  ;;  %v6006_v63 = vmul.f32 %v19014_v27, %v19014_v27  ;;  %v14712_v61 = vpop.xlane.xlu1 %5823  ;;  %19016 = vst [vmem:[#allocation260_spill] sm:$0xff] %v14715_v32  ;;  %v19019_v50 = vld [vmem:[#allocation86_spill] sm:$0xff]  ;;  %v14730_v27 = vsel %vm1386_vm1, %v6002_v39, 0.0  ;;  %v6008_v21 = vmul.f32 %v13970_v8, %v13970_v8  ;;  %v6007_v35 = vmul.f32 %v13986_v58, %v13986_v58  ;;  %v19115_v34 = vld [vmem:[#allocation149_spill] sm:$0xff] }
 0x5f2   :  { %19015 = vst [vmem:[#allocation259_spill] sm:$0xff] %v14712_v61  ;;  %19017 = vst [vmem:[#allocation261_spill] sm:$0xff] %v14718_v30  ;;  %v6005_v14 = vmul.f32 %v19019_v50, %v19019_v50  ;;  %v19020_v38 = vld [vmem:[#allocation142_spill] sm:$0xff]  ;;  %6152 = vadd.xlane.f32.xlu0 %v14413_v3  ;;  %v14739_v15 = vsel %vm1386_vm1, %v6001_v52, 0.0  ;;  %v14742_v50 = vsel %vm1386_vm1, %v6004_v43, 0.0  ;;  %v19026_v3 = vld [vmem:[#allocation100_spill] sm:$0xff]  ;;  %v14751_v8 = vmul.f32 %v14701_v0, %v14701_v0 }
 0x5f3   :  { %19018 = vst [vmem:[#allocation262_spill] sm:$0xff] %v14721_v45  ;;  %v14726_v36 = vmul.f32 0.03125, %v19020_v38  ;;  %19021 = vst [vmem:[#allocation142_spill] sm:$0xff] %v14730_v27  ;;  %v14736_v61 = vpop.xlane.xlu0 %5820  ;;  %v14745_v38 = vsel %vm1386_vm1, %v6003_v60, 0.0  ;;  %v6010_v39 = vmul.f32 %v19026_v3, %v19026_v3  ;;  %v19027_v27 = vld [vmem:[#allocation236_spill] sm:$0xff]  ;;  %v14758_v52 = vsel %vm1386_vm1, %v6006_v63, 0.0 }
 0x5f4   :  { %19022 = vst [vmem:[#allocation263_spill] sm:$0xff] %v14736_v61  ;;  %19023 = vst [vmem:[#allocation264_spill] sm:$0xff] %v14739_v15  ;;  %v14754_v58 = vmul.f32 0.03125, %v19027_v27  ;;  %6161 = vadd.xlane.f32.xlu1 %v14420_v40  ;;  %v19029_v43 = vld [vmem:[#allocation85_spill] sm:$0xff]  ;;  %v14767_v3 = vsel %vm1386_vm1, %v6005_v14, 0.0  ;;  %v14782_v60 = vsel %vm1386_vm1, %v6007_v35, 0.0 }
 0x5f5   :  { %19024 = vst [vmem:[#allocation265_spill] sm:$0xff] %v14742_v50  ;;  %19025 = vst [vmem:[#allocation266_spill] sm:$0xff] %v14745_v38  ;;  %v6009_v61 = vmul.f32 %v19029_v43, %v19029_v43  ;;  %v14764_v38 = vpop.xlane.xlu1 %5829  ;;  %v19032_v50 = vld [vmem:[#allocation91_spill] sm:$0xff]  ;;  %v19033_v15 = vld [vmem:[#allocation177_spill] sm:$0xff]  ;;  %v14775_v63 = vmul.f32 %v14726_v36, %v14726_v36  ;;  %v14779_v43 = vsel %vm1386_vm1, %v6008_v21, 0.0  ;;  %v14794_v45 = vsel %vm1386_vm1, %v6010_v39, 0.0 }
 0x5f6   :  { %19028 = vst [vmem:[#allocation236_spill] sm:$0xff] %v14758_v52  ;;  %19030 = vst [vmem:[#allocation267_spill] sm:$0xff] %v14764_v38  ;;  %v6012_v27 = vmul.f32 %v19032_v50, %v19032_v50  ;;  %v6011_v40 = vmul.f32 %v19033_v15, %v19033_v15  ;;  %6158 = vadd.xlane.f32.xlu0 %v14429_v7  ;;  %v19036_v14 = vld [vmem:[#allocation101_spill] sm:$0xff]  ;;  %v14800_v35 = vmul.f32 %v14754_v58, %v14754_v58  ;;  %v19139_v13 = vld [vmem:[#allocation172_spill] sm:$0xff] }
 0x5f7   :  { %19031 = vst [vmem:[#allocation268_spill] sm:$0xff] %v14767_v3  ;;  %19034 = vst [vmem:[#allocation269_spill] sm:$0xff] %v14779_v43  ;;  %v6014_v38 = vmul.f32 %v19036_v14, %v19036_v14  ;;  %v19037_v3 = vld [vmem:[#allocation195_spill] sm:$0xff]  ;;  %v14791_v52 = vpop.xlane.xlu0 %5826  ;;  %v19040_v7 = vld [vmem:[#allocation201_spill] sm:$0xff]  ;;  %v6016_v50 = vmul.f32 %v14042_v11, %v14042_v11 }
 0x5f8   :  { %19035 = vst [vmem:[#allocation270_spill] sm:$0xff] %v14782_v60  ;;  %v14789_v15 = vmul.f32 0.03125, %v19037_v3  ;;  %19038 = vst [vmem:[#allocation195_spill] sm:$0xff] %v14791_v52  ;;  %v6013_v21 = vmul.f32 %v19040_v7, %v19040_v7  ;;  %v19041_v60 = vld [vmem:[#allocation141_spill] sm:$0xff]  ;;  %6167 = vadd.xlane.f32.xlu1 %v14432_v22  ;;  %v14807_v3 = vsel %vm1386_vm1, %v6009_v61, 0.0  ;;  %v14816_v7 = vsel %vm1386_vm1, %v6012_v27, 0.0 }
 0x5f9   :  { %19039 = vst [vmem:[#allocation271_spill] sm:$0xff] %v14794_v45  ;;  %v14803_v14 = vmul.f32 0.03125, %v19041_v60  ;;  %19042 = vst [vmem:[#allocation141_spill] sm:$0xff] %v14807_v3  ;;  %v14813_v52 = vpop.xlane.xlu1 %5835  ;;  %v14819_v45 = vsel %vm1386_vm1, %v6011_v40, 0.0  ;;  %v6015_v22 = vmul.f32 %v14056_v46, %v14056_v46  ;;  %v19046_v60 = vld [vmem:[#allocation35_spill] sm:$0xff]  ;;  %v14828_v11 = vsel %vm1386_vm1, %v6014_v38, 0.0 }
 0x5fa   :  { %19043 = vst [vmem:[#allocation272_spill] sm:$0xff] %v14813_v52  ;;  %19044 = vst [vmem:[#allocation273_spill] sm:$0xff] %v14816_v7  ;;  %v14824_v61 = vmul.f32 0.03125, %v19046_v60  ;;  %6164 = vadd.xlane.f32.xlu0 %v14441_v25  ;;  %v19048_v39 = vld [vmem:[#allocation125_spill] sm:$0xff]  ;;  %v19049_v3 = vld [vmem:[#allocation18_spill] sm:$0xff]  ;;  %v14836_v40 = vmul.f32 %v14789_v15, %v14789_v15  ;;  %v14843_v25 = vsel %vm1386_vm1, %v6013_v21, 0.0 }
 0x5fb   :  { %19045 = vst [vmem:[#allocation274_spill] sm:$0xff] %v14819_v45  ;;  %19047 = vst [vmem:[#allocation35_spill] sm:$0xff] %v14828_v11  ;;  %v6018_v52 = vmul.f32 %v19048_v39, %v19048_v39  ;;  %v6017_v27 = vmul.f32 %v19049_v3, %v19049_v3  ;;  %v14840_v60 = vpop.xlane.xlu0 %5832  ;;  %v19052_v38 = vld [vmem:[#allocation95_spill] sm:$0xff]  ;;  %v14849_v39 = vmul.f32 %v14803_v14, %v14803_v14  ;;  %v19053_v3 = vld [vmem:[#allocation73_spill] sm:$0xff]  ;;  %v14856_v7 = vsel %vm1386_vm1, %v6016_v50, 0.0 }
 0x5fc   :  { %19050 = vst [vmem:[#allocation275_spill] sm:$0xff] %v14840_v60  ;;  %19051 = vst [vmem:[#allocation276_spill] sm:$0xff] %v14843_v25  ;;  %v6020_v11 = vmul.f32 %v19052_v38, %v19052_v38  ;;  %v14852_v45 = vmul.f32 0.03125, %v19053_v3  ;;  %6173 = vadd.xlane.f32.xlu1 %v14444_v51  ;;  %v19056_v46 = vld [vmem:[#allocation96_spill] sm:$0xff]  ;;  %v14865_v38 = vsel %vm1386_vm1, %v6015_v22, 0.0  ;;  %v19060_v30 = vld [vmem:[#allocation221_spill] sm:$0xff]  ;;  %v14873_v50 = vmul.f32 %v14824_v61, %v14824_v61 }
 0x5fd   :  { %19055 = vst [vmem:[#allocation277_spill] sm:$0xff] %v14856_v7  ;;  %v6019_v60 = vmul.f32 %v19056_v46, %v19056_v46  ;;  %v14862_v25 = vpop.xlane.xlu1 %5841  ;;  %19058 = vst [vmem:[#allocation279_spill] sm:$0xff] %v14865_v38  ;;  %v19059_v43 = vld [vmem:[#allocation176_spill] sm:$0xff]  ;;  %v6021_v51 = vmul.f32 %v19060_v30, %v19060_v30  ;;  %v14877_v46 = vsel %vm1386_vm1, %v6018_v52, 0.0  ;;  %v14880_v21 = vsel %vm1386_vm1, %v6017_v27, 0.0  ;;  %v19128_v7 = vld [vmem:[#allocation202_spill] sm:$0xff] }
 0x5fe   :  { %19054 = vst [vmem:[#allocation73_spill] sm:$0xff] %v14852_v45  ;;  %19057 = vst [vmem:[#allocation278_spill] sm:$0xff] %v14862_v25  ;;  %v6022_v3 = vmul.f32 %v19059_v43, %v19059_v43  ;;  %6170 = vadd.xlane.f32.xlu0 %v14447_v55  ;;  %v6024_v22 = vmul.f32 %v14110_v4, %v14110_v4  ;;  %v14889_v30 = vsel %vm1386_vm1, %v6020_v11, 0.0 }
 0x5ff   :  { %19061 = vst [vmem:[#allocation280_spill] sm:$0xff] %v14877_v46  ;;  %19062 = vst [vmem:[#allocation281_spill] sm:$0xff] %v14880_v21  ;;  %v14886_v25 = vpop.xlane.xlu0 %5838  ;;  %v6023_v55 = vmul.f32 %v14126_v62, %v14126_v62  ;;  %v6026_v52 = vmul.f32 %v14130_v31, %v14130_v31  ;;  %v14897_v27 = vmul.f32 %v14852_v45, %v14852_v45  ;;  %v19065_v21 = vld [vmem:[#allocation200_spill] sm:$0xff]  ;;  %v14904_v43 = vsel %vm1386_vm1, %v6019_v60, 0.0  ;;  %v19161_v45 = vld [vmem:[#allocation83_spill] sm:$0xff] }
 0x600   :  { %19063 = vst [vmem:[#allocation282_spill] sm:$0xff] %v14886_v25  ;;  %19064 = vst [vmem:[#allocation283_spill] sm:$0xff] %v14889_v30  ;;  %v14900_v4 = vmul.f32 0.03125, %v19065_v21  ;;  %6179 = vadd.xlane.f32.xlu1 %v14452_v48  ;;  %v6025_v11 = vmul.f32 %v14143_v44, %v14143_v44  ;;  %v14913_v31 = vsel %vm1386_vm1, %v6022_v3, 0.0  ;;  %v14916_v30 = vsel %vm1386_vm1, %v6021_v51, 0.0  ;;  %v19072_v44 = vld [vmem:[#allocation205_spill] sm:$0xff] }
 0x601   :  { %19067 = vst [vmem:[#allocation284_spill] sm:$0xff] %v14904_v43  ;;  %v14910_v25 = vpop.xlane.xlu1 %5847  ;;  %19069 = vst [vmem:[#allocation286_spill] sm:$0xff] %v14913_v31  ;;  %v6028_v48 = vmul.f32 %v14146_v54, %v14146_v54  ;;  %v14922_v60 = vsel %vm1386_vm1, %v6024_v22, 0.0  ;;  %v6027_v21 = vmul.f32 %v14158_v28, %v14158_v28  ;;  %v6030_v62 = vmul.f32 %v14161_v16, %v14161_v16  ;;  %v19078_v28 = vld [vmem:[#allocation122_spill] sm:$0xff] }
 0x602   :  { %19066 = vst [vmem:[#allocation200_spill] sm:$0xff] %v14900_v4  ;;  %19068 = vst [vmem:[#allocation285_spill] sm:$0xff] %v14910_v25  ;;  %6176 = vadd.xlane.f32.xlu0 %v14463_v6  ;;  %v6029_v3 = vmul.f32 %v19072_v44, %v19072_v44  ;;  %v19073_v25 = vld [vmem:[#allocation159_spill] sm:$0xff]  ;;  %v14936_v54 = vsel %vm1386_vm1, %v6023_v55, 0.0  ;;  %v14939_v6 = vsel %vm1386_vm1, %v6026_v52, 0.0  ;;  %v6032_v22 = vmul.f32 %v14176_v59, %v14176_v59  ;;  %v19080_v44 = vld [vmem:[#allocation104_spill] sm:$0xff] }
 0x603   :  { %19070 = vst [vmem:[#allocation287_spill] sm:$0xff] %v14916_v30  ;;  %19071 = vst [vmem:[#allocation288_spill] sm:$0xff] %v14922_v60  ;;  %v14931_v51 = vmul.f32 0.03125, %v19073_v25  ;;  %v14933_v30 = vpop.xlane.xlu0 %5844  ;;  %v14945_v16 = vmul.f32 %v14900_v4, %v14900_v4  ;;  %v14949_v25 = vsel %vm1386_vm1, %v6025_v11, 0.0  ;;  %v19081_v55 = vld [vmem:[#allocation30_spill] sm:$0xff]  ;;  %v19089_v11 = vld [vmem:[#allocation79_spill] sm:$0xff] }
 0x604   :  { %19075 = vst [vmem:[#allocation289_spill] sm:$0xff] %v14933_v30  ;;  %19076 = vst [vmem:[#allocation290_spill] sm:$0xff] %v14936_v54  ;;  %6185 = vadd.xlane.f32.xlu1 %v19078_v28  ;;  %v6031_v30 = vmul.f32 %v19080_v44, %v19080_v44  ;;  %v6033_v54 = vmul.f32 %v19081_v55, %v19081_v55  ;;  %v19083_v60 = vld [vmem:[#allocation66_spill] sm:$0xff]  ;;  %v14966_v28 = vsel %vm1386_vm1, %v6028_v48, 0.0  ;;  %v19091_v44 = vld [vmem:[#allocation32_spill] sm:$0xff]  ;;  %v14973_v55 = vsel %vm1386_vm1, %v6027_v21, 0.0 }
 0x605   :  { %19074 = vst [vmem:[#allocation159_spill] sm:$0xff] %v14931_v51  ;;  %19077 = vst [vmem:[#allocation291_spill] sm:$0xff] %v14939_v6  ;;  %v14958_v59 = vmul.f32 0.03125, %v19083_v60  ;;  %v19085_v31 = vld [vmem:[#allocation154_spill] sm:$0xff]  ;;  %v14963_v46 = vpop.xlane.xlu1 %5853  ;;  %v14976_v6 = vsel %vm1386_vm1, %v6030_v62, 0.0  ;;  %v14979_v60 = vsel %vm1386_vm1, %v6029_v3, 0.0 }
 0x606   :  { %19079 = vst [vmem:[#allocation122_spill] sm:$0xff] %v14949_v25  ;;  %v14961_v43 = vmul.f32 0.03125, %v19085_v31  ;;  %19087 = vst [vmem:[#allocation292_spill] sm:$0xff] %v14963_v46  ;;  %v14969_v25 = vmul.f32 0.03125, %v19089_v11  ;;  %6182 = vadd.xlane.f32.xlu0 %v19091_v44  ;;  %v14983_v31 = vmul.f32 %v14931_v51, %v14931_v51  ;;  %v19096_v11 = vld [vmem:[#allocation113_spill] sm:$0xff]  ;;  %v14993_v21 = vsel %vm1386_vm1, %v6032_v22, 0.0 }
 0x607   :  { %19084 = vst [vmem:[#allocation66_spill] sm:$0xff] %v14958_v59  ;;  %19088 = vst [vmem:[#allocation293_spill] sm:$0xff] %v14966_v28  ;;  %v14988_v28 = vmul.f32 0.03125, %v19096_v11  ;;  %v14990_v44 = vpop.xlane.xlu0 %5850  ;;  %v19100_v62 = vld [vmem:[#allocation197_spill] sm:$0xff]  ;;  %v19102_v3 = vld [vmem:[#allocation78_spill] sm:$0xff]  ;;  %v15003_v38 = vsel %vm1386_vm1, %v6031_v30, 0.0  ;;  %v15010_v11 = vmul.f32 %v14958_v59, %v14958_v59 }
 0x608   :  { %19086 = vst [vmem:[#allocation154_spill] sm:$0xff] %v14961_v43  ;;  %19090 = vst [vmem:[#allocation79_spill] sm:$0xff] %v14969_v25  ;;  %v15006_v46 = vsel %vm1386_vm1, %v6033_v54, 0.0  ;;  %v19117_v54 = vld [vmem:[#allocation153_spill] sm:$0xff]  ;;  %v19119_v30 = vld [vmem:[#allocation155_spill] sm:$0xff] }
 0x609   :  { %19092 = vst [vmem:[#allocation32_spill] sm:$0xff] %v14973_v55  ;;  %19093 = vst [vmem:[#allocation294_spill] sm:$0xff] %v14976_v6  ;;  %v14996_v6 = vmul.f32 0.03125, %v19100_v62  ;;  %v19104_v55 = vld [vmem:[#allocation146_spill] sm:$0xff]  ;;  %v15016_v62 = vmul.f32 %v14961_v43, %v14961_v43  ;;  %v15042_v43 = vmul.f32 0.03125, %v19117_v54  ;;  %v15045_v22 = vmul.f32 0.03125, %v19119_v30 }
 0x60a   :  { %19094 = vst [vmem:[#allocation295_spill] sm:$0xff] %v14979_v60  ;;  %19097 = vst [vmem:[#allocation113_spill] sm:$0xff] %v14988_v28  ;;  %v14999_v60 = vmul.f32 0.03125, %v19102_v3  ;;  %6191 = vadd.xlane.f32.xlu1 %v19104_v55  ;;  %v19108_v3 = vld [vmem:[#allocation164_spill] sm:$0xff]  ;;  %v15021_v55 = vpop.xlane.xlu1 %5859  ;;  %6188 = vadd.xlane.f32.xlu0 %v19115_v34  ;;  %v19123_v59 = vld [vmem:[#allocation199_spill] sm:$0xff] }
 0x60b   :  { %19098 = vst [vmem:[#allocation296_spill] sm:$0xff] %v14990_v44  ;;  %19099 = vst [vmem:[#allocation297_spill] sm:$0xff] %v14993_v21  ;;  %v15019_v21 = vmul.f32 0.03125, %v19108_v3  ;;  %v19113_v44 = vld [vmem:[#allocation67_spill] sm:$0xff]  ;;  %v15037_v3 = vmul.f32 %v14988_v28, %v14988_v28  ;;  %v15047_v51 = vpop.xlane.xlu0 %5856  ;;  %v15060_v28 = vmul.f32 0.03125, %v19123_v59  ;;  %v19125_v54 = vld [vmem:[#allocation185_spill] sm:$0xff] }
 0x60c   :  { %19101 = vst [vmem:[#allocation197_spill] sm:$0xff] %v14996_v6  ;;  %19103 = vst [vmem:[#allocation78_spill] sm:$0xff] %v14999_v60  ;;  %v15032_v32 = vmul.f32 0.03125, %v19113_v44  ;;  %v15051_v44 = vmul.f32 %v14996_v6, %v14996_v6  ;;  %v15072_v6 = vmul.f32 0.03125, %v19128_v7  ;;  %v19134_v30 = vld [vmem:[#allocation163_spill] sm:$0xff]  ;;  %v15091_v7 = vmul.f32 %v15042_v43, %v15042_v43  ;;  %v19156_v48 = vld [vmem:[#allocation162_spill] sm:$0xff] }
 0x60d   :  { %19105 = vst [vmem:[#allocation146_spill] sm:$0xff] %v15003_v38  ;;  %19106 = vst [vmem:[#allocation298_spill] sm:$0xff] %v15006_v46  ;;  %v15027_v46 = vmul.f32 %v14969_v25, %v14969_v25  ;;  %v15057_v25 = vmul.f32 %v14999_v60, %v14999_v60  ;;  %v15086_v4 = vmul.f32 0.03125, %v19134_v30  ;;  %v19136_v52 = vld [vmem:[#allocation131_spill] sm:$0xff]  ;;  %v19150_v30 = vld [vmem:[#allocation76_spill] sm:$0xff]  ;;  %v15141_v38 = vmul.f32 0.03125, %v19156_v48 }
 0x60e   :  { %19109 = vst [vmem:[#allocation164_spill] sm:$0xff] %v15019_v21  ;;  %19110 = vst [vmem:[#allocation299_spill] sm:$0xff] %v15021_v55  ;;  %6197 = vadd.xlane.f32.xlu1 %v19125_v54  ;;  %v15074_v34 = vpop.xlane.xlu1 %5865  ;;  %v15078_v59 = vmul.f32 %v15032_v32, %v15032_v32  ;;  %v19132_v55 = vld [vmem:[#allocation75_spill] sm:$0xff]  ;;  %6194 = vadd.xlane.f32.xlu0 %v19136_v52  ;;  %v15108_v52 = vmul.f32 %v15060_v28, %v15060_v28  ;;  %v19148_v54 = vld [vmem:[#allocation173_spill] sm:$0xff] }
 0x60f   :  { %19114 = vst [vmem:[#allocation67_spill] sm:$0xff] %v15032_v32  ;;  %19118 = vst [vmem:[#allocation149_spill] sm:$0xff] %v15042_v43  ;;  %v15083_v60 = vmul.f32 0.03125, %v19132_v55  ;;  %v15100_v32 = vmul.f32 0.03125, %v19139_v13  ;;  %v15102_v55 = vpop.xlane.xlu0 %5862  ;;  %v15118_v13 = vmul.f32 %v15072_v6, %v15072_v6 }
 0x610   :  { %19120 = vst [vmem:[#allocation153_spill] sm:$0xff] %v15045_v22  ;;  %19121 = vst [vmem:[#allocation155_spill] sm:$0xff] %v15047_v51  ;;  %v15067_v51 = vmul.f32 %v15019_v21, %v15019_v21  ;;  %v15097_v21 = vmul.f32 %v15045_v22, %v15045_v22  ;;  %v15123_v22 = vmul.f32 0.03125, %v19148_v54  ;;  %v19167_v54 = vld [vmem:[#allocation174_spill] sm:$0xff] }
 0x611   :  { %19124 = vst [vmem:[#allocation199_spill] sm:$0xff] %v15060_v28  ;;  %19129 = vst [vmem:[#allocation185_spill] sm:$0xff] %v15072_v6  ;;  %v15138_v28 = vmul.f32 %v15086_v4, %v15086_v4 }
 0x612   :  { %19130 = vst [vmem:[#allocation202_spill] sm:$0xff] %v15074_v34  ;;  %19133 = vst [vmem:[#allocation75_spill] sm:$0xff] %v15083_v60  ;;  %v19145_v34 = vld [vmem:[#allocation204_spill] sm:$0xff]  ;;  %6203 = vadd.xlane.f32.xlu1 %v14498_v26  ;;  %6200 = vadd.xlane.f32.xlu0 %v14501_v17 }
 0x613   :  { %19135 = vst [vmem:[#allocation163_spill] sm:$0xff] %v15086_v4  ;;  %19138 = vst [vmem:[#allocation131_spill] sm:$0xff] %v15097_v21  ;;  %v15113_v43 = vmul.f32 0.03125, %v19145_v34  ;;  %v15128_v21 = vpop.xlane.xlu1 %5871  ;;  %v15132_v34 = vmul.f32 %v15083_v60, %v15083_v60  ;;  %v15153_v60 = vmul.f32 0.03125, %v19161_v45  ;;  %v15155_v26 = vpop.xlane.xlu0 %5868  ;;  %v15172_v45 = vmul.f32 %v15123_v22, %v15123_v22 }
 0x614   :  { %19140 = vst [vmem:[#allocation172_spill] sm:$0xff] %v15100_v32  ;;  %19141 = vst [vmem:[#allocation300_spill] sm:$0xff] %v15102_v55  ;;  %v19191_v55 = vld [vmem:[#allocation98_spill] sm:$0xff] }
 0x615   :  { %19143 = vst [vmem:[#allocation301_spill] sm:$0xff] %v15108_v52  ;;  %19146 = vst [vmem:[#allocation204_spill] sm:$0xff] %v15113_v43  ;;  %v15126_v52 = vmul.f32 0.03125, %v19150_v30  ;;  %v15159_v48 = vmul.f32 %v15113_v43, %v15113_v43  ;;  %v19165_v30 = vld [vmem:[#allocation168_spill] sm:$0xff]  ;;  %v19183_v43 = vld [vmem:[#allocation38_spill] sm:$0xff]  ;;  %v15222_v17 = vmul.f32 0.03125, %v19191_v55 }
 0x616   :  { %19149 = vst [vmem:[#allocation173_spill] sm:$0xff] %v15123_v22  ;;  %19152 = vst [vmem:[#allocation302_spill] sm:$0xff] %v15128_v21  ;;  %v15148_v21 = vmul.f32 %v15100_v32, %v15100_v32  ;;  %v15164_v4 = vmul.f32 0.03125, %v19165_v30  ;;  %6206 = vadd.xlane.f32.xlu0 %v14518_v1 }
 0x617   :  { %19151 = vst [vmem:[#allocation76_spill] sm:$0xff] %v15126_v52  ;;  %19153 = vst [vmem:[#allocation303_spill] sm:$0xff] %v15132_v34  ;;  %v19169_v34 = vld [vmem:[#allocation102_spill] sm:$0xff]  ;;  %v15178_v32 = vmul.f32 %v15126_v52, %v15126_v52  ;;  %v15183_v30 = vpop.xlane.xlu1 %5877  ;;  %v15204_v52 = vmul.f32 0.03125, %v19183_v43  ;;  %v19193_v43 = vld [vmem:[#allocation103_spill] sm:$0xff] }
 0x618   :  { %19155 = vst [vmem:[#allocation304_spill] sm:$0xff] %v15138_v28  ;;  %19157 = vst [vmem:[#allocation162_spill] sm:$0xff] %v15141_v38  ;;  %6209 = vadd.xlane.f32.xlu1 %v19169_v34  ;;  %v19173_v28 = vld [vmem:[#allocation99_spill] sm:$0xff]  ;;  %v15189_v34 = vmul.f32 %v15141_v38, %v15141_v38 }
 0x619   :  { %19159 = vst [vmem:[#allocation305_spill] sm:$0xff] %v15148_v21  ;;  %19162 = vst [vmem:[#allocation83_spill] sm:$0xff] %v15153_v60  ;;  %v15167_v21 = vmul.f32 0.03125, %v19167_v54  ;;  %v15181_v6 = vmul.f32 0.03125, %v19173_v28  ;;  %v15199_v28 = vmul.f32 %v15153_v60, %v15153_v60  ;;  %v19185_v54 = vld [vmem:[#allocation216_spill] sm:$0xff] }
 0x61a   :  { %19163 = vst [vmem:[#allocation306_spill] sm:$0xff] %v15155_v26  ;;  %19166 = vst [vmem:[#allocation168_spill] sm:$0xff] %v15164_v4  ;;  %v19179_v26 = vld [vmem:[#allocation180_spill] sm:$0xff] }
 0x61b   :  { %19168 = vst [vmem:[#allocation174_spill] sm:$0xff] %v15167_v21  ;;  %19170 = vst [vmem:[#allocation102_spill] sm:$0xff] %v15172_v45  ;;  %v15194_v22 = vmul.f32 0.03125, %v19179_v26  ;;  %v15213_v26 = vmul.f32 %v15164_v4, %v15164_v4  ;;  %v15219_v38 = vmul.f32 %v15167_v21, %v15167_v21  ;;  %v19197_v45 = vld [vmem:[#allocation178_spill] sm:$0xff]  ;;  %v15236_v1 = vpop.xlane.xlu1 %5883  ;;  %v19202_v60 = vld [vmem:[#allocation84_spill] sm:$0xff] }
 0x61c   :  { %19172 = vst [vmem:[#allocation307_spill] sm:$0xff] %v15178_v32  ;;  %19174 = vst [vmem:[#allocation99_spill] sm:$0xff] %v15181_v6  ;;  %v15209_v32 = vpop.xlane.xlu0 %5874  ;;  %6215 = vadd.xlane.f32.xlu1 %v19193_v43  ;;  %v15234_v4 = vmul.f32 0.03125, %v19197_v45  ;;  %v15245_v21 = vmul.f32 0.03125, %v19202_v60  ;;  %v15253_v45 = vmul.f32 %v15204_v52, %v15204_v52 }
 0x61d   :  { %19175 = vst [vmem:[#allocation308_spill] sm:$0xff] %v15183_v30  ;;  %19177 = vst [vmem:[#allocation309_spill] sm:$0xff] %v15189_v34  ;;  %v15207_v34 = vmul.f32 0.03125, %v19185_v54  ;;  %v15240_v55 = vmul.f32 %v15194_v22, %v15194_v22  ;;  %v19204_v54 = vld [vmem:[#allocation87_spill] sm:$0xff] }
 0x61e   :  { %19180 = vst [vmem:[#allocation180_spill] sm:$0xff] %v15194_v22  ;;  %19181 = vst [vmem:[#allocation310_spill] sm:$0xff] %v15199_v28  ;;  %v19206_v28 = vld [vmem:[#allocation206_spill] sm:$0xff]  ;;  %v19220_v22 = vld [vmem:[#allocation128_spill] sm:$0xff] }
 0x61f   :  { %19184 = vst [vmem:[#allocation38_spill] sm:$0xff] %v15204_v52  ;;  %19186 = vst [vmem:[#allocation216_spill] sm:$0xff] %v15207_v34  ;;  %6212 = vadd.xlane.f32.xlu0 %v19206_v28  ;;  %v15270_v28 = vmul.f32 %v15222_v17, %v15222_v17 }
 0x620   :  { %19187 = vst [vmem:[#allocation311_spill] sm:$0xff] %v15209_v32  ;;  %19188 = vst [vmem:[#allocation312_spill] sm:$0xff] %v15213_v26  ;;  %v15229_v32 = vmul.f32 %v15181_v6, %v15181_v6  ;;  %v15259_v6 = vmul.f32 %v15207_v34, %v15207_v34  ;;  %v15264_v60 = vpop.xlane.xlu0 %5880  ;;  %v19218_v26 = vld [vmem:[#allocation130_spill] sm:$0xff]  ;;  %v15285_v34 = vmul.f32 0.03125, %v19220_v22  ;;  %v19238_v22 = vld [vmem:[#allocation123_spill] sm:$0xff] }
 0x621   :  { %19190 = vst [vmem:[#allocation313_spill] sm:$0xff] %v15219_v38  ;;  %19192 = vst [vmem:[#allocation98_spill] sm:$0xff] %v15222_v17  ;;  %v19210_v38 = vld [vmem:[#allocation171_spill] sm:$0xff]  ;;  %6221 = vadd.xlane.f32.xlu1 %v19218_v26 }
 0x622   :  { %19195 = vst [vmem:[#allocation103_spill] sm:$0xff] %v15229_v32  ;;  %19198 = vst [vmem:[#allocation178_spill] sm:$0xff] %v15234_v4  ;;  %v15248_v32 = vmul.f32 0.03125, %v19204_v54  ;;  %v15262_v30 = vmul.f32 0.03125, %v19210_v38  ;;  %v15280_v38 = vmul.f32 %v15234_v4, %v15234_v4  ;;  %v19222_v54 = vld [vmem:[#allocation94_spill] sm:$0xff] }
 0x623   :  { %19199 = vst [vmem:[#allocation314_spill] sm:$0xff] %v15236_v1  ;;  %19200 = vst [vmem:[#allocation315_spill] sm:$0xff] %v15240_v55  ;;  %v19216_v1 = vld [vmem:[#allocation92_spill] sm:$0xff]  ;;  %v15290_v55 = vpop.xlane.xlu1 %5889  ;;  %6218 = vadd.xlane.f32.xlu0 %v14536_v41  ;;  %v19248_v41 = vld [vmem:[#allocation97_spill] sm:$0xff] }
 0x624   :  { %19203 = vst [vmem:[#allocation84_spill] sm:$0xff] %v15245_v21  ;;  %19205 = vst [vmem:[#allocation87_spill] sm:$0xff] %v15248_v32  ;;  %v15275_v52 = vmul.f32 0.03125, %v19216_v1  ;;  %v15294_v1 = vmul.f32 %v15245_v21, %v15245_v21  ;;  %v15300_v17 = vmul.f32 %v15248_v32, %v15248_v32  ;;  %v15317_v26 = vpop.xlane.xlu0 %5886 }
 0x625   :  { %19207 = vst [vmem:[#allocation206_spill] sm:$0xff] %v15253_v45  ;;  %19209 = vst [vmem:[#allocation316_spill] sm:$0xff] %v15259_v6  ;;  %v19227_v6 = vld [vmem:[#allocation88_spill] sm:$0xff]  ;;  %v19232_v45 = vld [vmem:[#allocation29_spill] sm:$0xff]  ;;  %6227 = vadd.xlane.f32.xlu1 %v14542_v12 }
 0x626   :  { %19211 = vst [vmem:[#allocation171_spill] sm:$0xff] %v15262_v30  ;;  %19212 = vst [vmem:[#allocation317_spill] sm:$0xff] %v15264_v60  ;;  %v15303_v43 = vmul.f32 0.03125, %v19227_v6  ;;  %v15315_v21 = vmul.f32 0.03125, %v19232_v45  ;;  %v15321_v6 = vmul.f32 %v15275_v52, %v15275_v52  ;;  %v15334_v45 = vmul.f32 %v15285_v34, %v15285_v34 }
 0x627   :  { %19214 = vst [vmem:[#allocation318_spill] sm:$0xff] %v15270_v28  ;;  %19217 = vst [vmem:[#allocation92_spill] sm:$0xff] %v15275_v52  ;;  %v15288_v28 = vmul.f32 0.03125, %v19222_v54  ;;  %v19236_v54 = vld [vmem:[#allocation21_spill] sm:$0xff]  ;;  %6224 = vadd.xlane.f32.xlu0 %v14553_v49 }
 0x628   :  { %19221 = vst [vmem:[#allocation130_spill] sm:$0xff] %v15285_v34  ;;  %19224 = vst [vmem:[#allocation94_spill] sm:$0xff] %v15290_v55  ;;  %v15310_v55 = vmul.f32 %v15262_v30, %v15262_v30  ;;  %v15326_v32 = vmul.f32 0.03125, %v19236_v54  ;;  %v15345_v54 = vpop.xlane.xlu1 %5895  ;;  %v15351_v12 = vmul.f32 %v15303_v43, %v15303_v43  ;;  %v19264_v52 = vld [vmem:[#allocation181_spill] sm:$0xff] }
 0x629   :  { %19223 = vst [vmem:[#allocation128_spill] sm:$0xff] %v15288_v28  ;;  %19226 = vst [vmem:[#allocation319_spill] sm:$0xff] %v15300_v17  ;;  %v15340_v30 = vmul.f32 %v15288_v28, %v15288_v28  ;;  %v19243_v17 = vld [vmem:[#allocation208_spill] sm:$0xff] }
 0x62a   :  { %19228 = vst [vmem:[#allocation88_spill] sm:$0xff] %v15303_v43  ;;  %19230 = vst [vmem:[#allocation320_spill] sm:$0xff] %v15310_v55  ;;  %v15329_v55 = vmul.f32 0.03125, %v19238_v22  ;;  %v15343_v4 = vmul.f32 0.03125, %v19243_v17  ;;  %v19254_v22 = vld [vmem:[#allocation28_spill] sm:$0xff]  ;;  %v19260_v43 = vld [vmem:[#allocation223_spill] sm:$0xff] }
 0x62b   :  { %19233 = vst [vmem:[#allocation29_spill] sm:$0xff] %v15315_v21  ;;  %19234 = vst [vmem:[#allocation321_spill] sm:$0xff] %v15317_v26  ;;  %v19250_v26 = vld [vmem:[#allocation175_spill] sm:$0xff]  ;;  %v15384_v17 = vmul.f32 0.03125, %v19260_v43  ;;  %v19262_v28 = vld [vmem:[#allocation132_spill] sm:$0xff]  ;;  %6230 = vadd.xlane.f32.xlu0 %v14559_v29 }
 0x62c   :  { %19237 = vst [vmem:[#allocation21_spill] sm:$0xff] %v15326_v32  ;;  %19239 = vst [vmem:[#allocation123_spill] sm:$0xff] %v15329_v55  ;;  %v15357_v34 = vmul.f32 0.03125, %v19250_v26  ;;  %v15375_v26 = vmul.f32 %v15326_v32, %v15326_v32  ;;  %v15381_v60 = vmul.f32 %v15329_v55, %v15329_v55  ;;  %6233 = vadd.xlane.f32.xlu1 %v19262_v28  ;;  %v15399_v49 = vpop.xlane.xlu1 %5901  ;;  %v19277_v43 = vld [vmem:[#allocation230_spill] sm:$0xff] }
 0x62d   :  { %19240 = vst [vmem:[#allocation322_spill] sm:$0xff] %v15334_v45  ;;  %19242 = vst [vmem:[#allocation323_spill] sm:$0xff] %v15340_v30  ;;  %v15354_v45 = vmul.f32 0.03125, %v19248_v41  ;;  %v15371_v41 = vpop.xlane.xlu0 %5892  ;;  %v19266_v30 = vld [vmem:[#allocation11_spill] sm:$0xff]  ;;  %v15432_v29 = vmul.f32 %v15384_v17, %v15384_v17 }
 0x62e   :  { %19244 = vst [vmem:[#allocation208_spill] sm:$0xff] %v15343_v4  ;;  %19245 = vst [vmem:[#allocation324_spill] sm:$0xff] %v15345_v54  ;;  %v15364_v54 = vmul.f32 %v15315_v21, %v15315_v21  ;;  %v15397_v32 = vmul.f32 0.03125, %v19266_v30  ;;  %v19291_v30 = vld [vmem:[#allocation240_spill] sm:$0xff] }
 0x62f   :  { %19247 = vst [vmem:[#allocation325_spill] sm:$0xff] %v15351_v12  ;;  %19249 = vst [vmem:[#allocation97_spill] sm:$0xff] %v15354_v45  ;;  %v15369_v12 = vmul.f32 0.03125, %v19254_v22  ;;  %v15405_v28 = vmul.f32 %v15354_v45, %v15354_v45  ;;  %v15411_v22 = vmul.f32 %v15357_v34, %v15357_v34 }
 0x630   :  { %19251 = vst [vmem:[#allocation175_spill] sm:$0xff] %v15357_v34  ;;  %19256 = vst [vmem:[#allocation326_spill] sm:$0xff] %v15371_v41  ;;  %v15391_v41 = vmul.f32 %v15343_v4, %v15343_v4  ;;  %6239 = vadd.xlane.f32.xlu1 %v14565_v2  ;;  %v15448_v21 = vmul.f32 %v15397_v32, %v15397_v32  ;;  %v6036_v34 = vpop.xlane.xlu1 %6035  ;;  %v15456_v2 = vmul.f32 0.03125, %v19291_v30 }
 0x631   :  { %19255 = vst [vmem:[#allocation28_spill] sm:$0xff] %v15369_v12  ;;  %19257 = vst [vmem:[#allocation327_spill] sm:$0xff] %v15375_v26  ;;  %v15394_v26 = vmul.f32 0.03125, %v19264_v52  ;;  %v15426_v55 = vpop.xlane.xlu0 %5898  ;;  %v19283_v52 = vld [vmem:[#allocation182_spill] sm:$0xff] }
 0x632   :  { %19259 = vst [vmem:[#allocation328_spill] sm:$0xff] %v15381_v60  ;;  %19261 = vst [vmem:[#allocation223_spill] sm:$0xff] %v15384_v17  ;;  %v19275_v60 = vld [vmem:[#allocation227_spill] sm:$0xff]  ;;  %v19299_v17 = vld [vmem:[#allocation120_spill] sm:$0xff] }
 0x633   :  { %19265 = vst [vmem:[#allocation132_spill] sm:$0xff] %v15394_v26  ;;  %19267 = vst [vmem:[#allocation181_spill] sm:$0xff] %v15397_v32  ;;  %v15421_v4 = vmul.f32 0.03125, %v19275_v60  ;;  %v15442_v60 = vmul.f32 %v15394_v26, %v15394_v26  ;;  %v15473_v30 = vmul.f32 0.03125, %v19299_v17  ;;  %v19314_v17 = vld [vmem:[#allocation145_spill] sm:$0xff] }
 0x634   :  { %19268 = vst [vmem:[#allocation11_spill] sm:$0xff] %v15399_v49  ;;  %19270 = vst [vmem:[#allocation329_spill] sm:$0xff] %v15405_v28  ;;  %v15418_v49 = vmul.f32 %v15369_v12, %v15369_v12  ;;  %v15424_v28 = vmul.f32 0.03125, %v19277_v43  ;;  %v19288_v12 = vld [vmem:[#allocation105_spill] sm:$0xff] }
 0x635   :  { %19272 = vst [vmem:[#allocation330_spill] sm:$0xff] %v15411_v22  ;;  %19276 = vst [vmem:[#allocation227_spill] sm:$0xff] %v15421_v4  ;;  %v15451_v45 = vmul.f32 0.03125, %v19288_v12  ;;  %v15464_v26 = vmul.f32 %v15421_v4, %v15421_v4  ;;  %v15475_v32 = vpop.xlane.xlu0 %5904  ;;  %v19306_v4 = vld [vmem:[#allocation143_spill] sm:$0xff] }
 0x636   :  { %19274 = vst [vmem:[#allocation331_spill] sm:$0xff] %v15418_v49  ;;  %19278 = vst [vmem:[#allocation230_spill] sm:$0xff] %v15424_v28  ;;  %v15437_v49 = vmul.f32 0.03125, %v19283_v52  ;;  %v19304_v52 = vld [vmem:[#allocation22_spill] sm:$0xff]  ;;  %6245 = vadd.xlane.f32.xlu1 %v19306_v4 }
 0x637   :  { %19279 = vst [vmem:[#allocation332_spill] sm:$0xff] %v15426_v55  ;;  %19281 = vst [vmem:[#allocation333_spill] sm:$0xff] %v15432_v29  ;;  %v19293_v29 = vld [vmem:[#allocation244_spill] sm:$0xff]  ;;  %v6546_v55 = vmul.f32 0.03125, %v6036_v34 }
 0x638   :  { %19284 = vst [vmem:[#allocation182_spill] sm:$0xff] %v15437_v49  ;;  %19285 = vst [vmem:[#allocation334_spill] sm:$0xff] %v15442_v60  ;;  %v15459_v22 = vmul.f32 0.03125, %v19293_v29  ;;  %v19295_v60 = vld [vmem:[#allocation16_spill] sm:$0xff]  ;;  %v15481_v34 = vmul.f32 %v15437_v49, %v15437_v49  ;;  %v19310_v29 = vld [vmem:[#allocation33_spill] sm:$0xff] }
 0x639   :  { %19287 = vst [vmem:[#allocation335_spill] sm:$0xff] %v15448_v21  ;;  %19289 = vst [vmem:[#allocation105_spill] sm:$0xff] %v15451_v45  ;;  %6236 = vadd.xlane.f32.xlu0 %v19295_v60  ;;  %v15470_v21 = vmul.f32 %v15424_v28, %v15424_v28  ;;  %v6802_v43 = vsub.f32 %v6546_v55, %v14751_v8  ;;  %v19317_v60 = vld [vmem:[#allocation31_spill] sm:$0xff] }
 0x63a   :  { %19292 = vst [vmem:[#allocation240_spill] sm:$0xff] %v15456_v2  ;;  %19294 = vst [vmem:[#allocation244_spill] sm:$0xff] %v15459_v22  ;;  %v15507_v55 = vmul.f32 %v15459_v22, %v15459_v22  ;;  %v15517_v12 = vmul.f32 0.03125, %v19317_v60  ;;  %6251 = vadd.xlane.f32.xlu1 %v14590_v37 }
 0x63b   :  { %19296 = vst [vmem:[#allocation16_spill] sm:$0xff] %v15464_v26  ;;  %19298 = vst [vmem:[#allocation336_spill] sm:$0xff] %v15470_v21  ;;  %v15484_v26 = vmul.f32 0.03125, %v19304_v52  ;;  %v15497_v21 = vmul.f32 0.03125, %v19310_v29  ;;  %v15501_v52 = vmul.f32 %v15456_v2, %v15456_v2  ;;  %v15514_v29 = vmul.f32 %v15473_v30, %v15473_v30  ;;  %v19325_v2 = vld [vmem:[#allocation109_spill] sm:$0xff] }
 0x63c   :  { %19300 = vst [vmem:[#allocation120_spill] sm:$0xff] %v15473_v30  ;;  %19301 = vst [vmem:[#allocation337_spill] sm:$0xff] %v15475_v32  ;;  %v15492_v32 = vmul.f32 %v15451_v45, %v15451_v45  ;;  %v15537_v30 = vmul.f32 0.03125, %v19325_v2  ;;  %v19331_v45 = vld [vmem:[#allocation111_spill] sm:$0xff] }
 0x63d   :  { %19303 = vst [vmem:[#allocation338_spill] sm:$0xff] %v15481_v34  ;;  %19305 = vst [vmem:[#allocation22_spill] sm:$0xff] %v15484_v26  ;;  %v6042_v34 = vpop.xlane.xlu1 %6041  ;;  %6242 = vadd.xlane.f32.xlu0 %v19314_v17  ;;  %v15523_v8 = vmul.f32 %v15484_v26, %v15484_v26  ;;  %v15531_v60 = vmul.f32 %v15497_v21, %v15497_v21  ;;  %v15551_v2 = vmul.f32 0.03125, %v19331_v45 }
 0x63e   :  { %19308 = vst [vmem:[#allocation143_spill] sm:$0xff] %v15492_v32  ;;  %19311 = vst [vmem:[#allocation33_spill] sm:$0xff] %v15497_v21  ;;  %v6548_v49 = vmul.f32 0.03125, %v6042_v34  ;;  %v6039_v32 = vpop.xlane.xlu0 %6038  ;;  %v15565_v45 = vmul.f32 %v15537_v30, %v15537_v30  ;;  %v19343_v21 = vld [vmem:[#allocation213_spill] sm:$0xff] }
 0x63f   :  { %19312 = vst [vmem:[#allocation339_spill] sm:$0xff] %v15501_v52  ;;  %19316 = vst [vmem:[#allocation145_spill] sm:$0xff] %v15514_v29  ;;  %v6930_v52 = vadd.f32 1e-05, %v6802_v43  ;;  %v6547_v17 = vmul.f32 0.03125, %v6039_v32  ;;  %v19323_v43 = vld [vmem:[#allocation212_spill] sm:$0xff] }
 0x640   :  { %19318 = vst [vmem:[#allocation31_spill] sm:$0xff] %v15517_v12  ;;  %19320 = vst [vmem:[#allocation340_spill] sm:$0xff] %v15523_v8  ;;  %v6804_v34 = vsub.f32 %v6548_v49, %v14800_v35  ;;  %v15534_v28 = vmul.f32 0.03125, %v19323_v43  ;;  %v19327_v8 = vld [vmem:[#allocation209_spill] sm:$0xff]  ;;  %v15548_v43 = vmul.f32 %v15517_v12, %v15517_v12  ;;  %v15579_v12 = vmul.f32 %v15551_v2, %v15551_v2 }
 0x641   :  { %19322 = vst [vmem:[#allocation341_spill] sm:$0xff] %v15531_v60  ;;  %19326 = vst [vmem:[#allocation109_spill] sm:$0xff] %v15537_v30  ;;  %v6048_v4 = vpop.xlane.xlu1 %6047  ;;  %v15540_v29 = vmul.f32 0.03125, %v19327_v8  ;;  %v6803_v37 = vsub.f32 %v6547_v17, %v14775_v63  ;;  %v19329_v35 = vld [vmem:[#allocation121_spill] sm:$0xff]  ;;  %8817 = vrsqrt.f32 %v6930_v52 }
 0x642   :  { %19324 = vst [vmem:[#allocation212_spill] sm:$0xff] %v15534_v28  ;;  %v6932_v32 = vadd.f32 1e-05, %v6804_v34  ;;  %6248 = vadd.xlane.f32.xlu0 %v19329_v35  ;;  %v6550_v49 = vmul.f32 0.03125, %v6048_v4  ;;  %19332 = vst [vmem:[#allocation121_spill] sm:$0xff] %v15551_v2  ;;  %v6045_v60 = vpop.xlane.xlu0 %6044  ;;  %v19334_v4 = vld [vmem:[#allocation186_spill] sm:$0xff]  ;;  %v15559_v35 = vmul.f32 %v15534_v28, %v15534_v28 }
 0x643   :  { %19328 = vst [vmem:[#allocation209_spill] sm:$0xff] %v15540_v29  ;;  %v6549_v17 = vmul.f32 0.03125, %v6045_v60  ;;  %6257 = vadd.xlane.f32.xlu1 %v19334_v4  ;;  %v6931_v52 = vadd.f32 1e-05, %v6803_v37  ;;  %19338 = vst [vmem:[#allocation111_spill] sm:$0xff] %v15579_v12  ;;  %v19339_v37 = vld [vmem:[#allocation82_spill] sm:$0xff] }
 0x644   :  { %8819 = vrsqrt.f32 %v6932_v32  ;;  %v6806_v63 = vsub.f32 %v6550_v49, %v14836_v40  ;;  %v15571_v40 = vmul.f32 %v15540_v29, %v15540_v29  ;;  %v15582_v8 = vmul.f32 0.03125, %v19339_v37  ;;  %v19345_v4 = vld [vmem:[#allocation136_spill] sm:$0xff] }
 0x645   :  { %v6054_v22 = vpop.xlane.xlu1 %6053  ;;  %v6805_v60 = vsub.f32 %v6549_v17, %v14849_v39  ;;  %v15592_v29 = vmul.f32 0.03125, %v19343_v21  ;;  %v15595_v37 = vmul.f32 0.03125, %v19345_v4  ;;  %8821 = vrsqrt.f32 %v6931_v52  ;;  %v19350_v4 = vld [vmem:[#allocation140_spill] sm:$0xff] }
 0x646   :  { %6254 = vadd.xlane.f32.xlu0 %v14610_v23  ;;  %v6552_v49 = vmul.f32 0.03125, %v6054_v22  ;;  %v6934_v34 = vadd.f32 1e-05, %v6806_v63  ;;  %v6051_v30 = vpop.xlane.xlu0 %6050  ;;  %v19341_v22 = vld [vmem:[#allocation126_spill] sm:$0xff] }
 0x647   :  { %v6933_v26 = vadd.f32 1e-05, %v6805_v60  ;;  %v6551_v23 = vmul.f32 0.03125, %v6051_v30  ;;  %6263 = vadd.xlane.f32.xlu1 %v14613_v57  ;;  %v15589_v17 = vmul.f32 0.03125, %v19341_v22  ;;  %19344 = vst [vmem:[#allocation82_spill] sm:$0xff] %v15592_v29  ;;  %19346 = vst [vmem:[#allocation126_spill] sm:$0xff] %v15595_v37  ;;  %v15601_v57 = vmul.f32 %v15582_v8, %v15582_v8 }
 0x648   :  { %v6808_v39 = vsub.f32 %v6552_v49, %v14873_v50  ;;  %v19347_v30 = vld [vmem:[#allocation144_spill] sm:$0xff]  ;;  %v19348_v49 = vld [vmem:[#allocation233_spill] sm:$0xff] }
 0x649   :  { %19342 = vst [vmem:[#allocation186_spill] sm:$0xff] %v15589_v17  ;;  %v6060_v63 = vpop.xlane.xlu1 %6059  ;;  %8823 = vrsqrt.f32 %v6933_v26  ;;  %v6807_v60 = vsub.f32 %v6551_v23, %v14897_v27  ;;  %v15606_v22 = vmul.f32 0.03125, %v19348_v49  ;;  %v15609_v26 = vmul.f32 0.03125, %v19350_v4 }
 0x64a   :  { %v6936_v12 = vadd.f32 1e-05, %v6808_v39  ;;  %6260 = vadd.xlane.f32.xlu0 %v14622_v53  ;;  %v6554_v50 = vmul.f32 0.03125, %v6060_v63  ;;  %8825 = vrsqrt.f32 %v6934_v34  ;;  %v6057_v52 = vpop.xlane.xlu0 %6056  ;;  %v19352_v39 = vld [vmem:[#allocation246_spill] sm:$0xff]  ;;  %v15615_v23 = vmul.f32 %v15589_v17, %v15589_v17 }
 0x64b   :  { %19349 = vst [vmem:[#allocation213_spill] sm:$0xff] %v15606_v22  ;;  %19351 = vst [vmem:[#allocation136_spill] sm:$0xff] %v15609_v26  ;;  %v6553_v53 = vmul.f32 0.03125, %v6057_v52  ;;  %6269 = vadd.xlane.f32.xlu1 %v19352_v39  ;;  %v15621_v34 = vmul.f32 %v15592_v29, %v15592_v29  ;;  %v6935_v49 = vadd.f32 1e-05, %v6807_v60  ;;  %v15635_v17 = vmul.f32 %v15606_v22, %v15606_v22  ;;  %v19358_v39 = vld [vmem:[#allocation237_spill] sm:$0xff] }
 0x64c   :  { %8827 = vrsqrt.f32 %v6936_v12  ;;  %v6810_v27 = vsub.f32 %v6554_v50, %v14983_v31  ;;  %v15627_v31 = vmul.f32 %v15595_v37, %v15595_v37  ;;  %v15641_v2 = vmul.f32 %v15609_v26, %v15609_v26 }
 0x64d   :  { %v6066_v4 = vpop.xlane.xlu1 %6065  ;;  %v6809_v50 = vsub.f32 %v6553_v53, %v14945_v16  ;;  %v15648_v32 = vmul.f32 0.03125, %v19358_v39  ;;  %8829 = vrsqrt.f32 %v6935_v49  ;;  %v19365_v39 = vsub.f32 %v13230_v42, %v14701_v0  ;;  %v19369_v42 = vld [vmem:[#allocation13_spill] sm:$0xff] }
 0x64e   :  { %6266 = vadd.xlane.f32.xlu0 %v14628_v9  ;;  %v6556_v52 = vmul.f32 0.03125, %v6066_v4  ;;  %v6938_v21 = vadd.f32 1e-05, %v6810_v27  ;;  %v6063_v29 = vpop.xlane.xlu0 %6062  ;;  %v8818_v12 = vpop.eup %8817  ;;  %v19360_v27 = vld [vmem:[#allocation46_spill] sm:$0xff]  ;;  %v19366_v49 = vsub.f32 %v13233_v20, %v14754_v58  ;;  %v15673_v0 = vmul.f32 0.03125, %v19369_v42 }
 0x64f   :  { %v6937_v16 = vadd.f32 1e-05, %v6809_v50  ;;  %v6555_v53 = vmul.f32 0.03125, %v6063_v29  ;;  %6275 = vadd.xlane.f32.xlu1 %v14634_v47  ;;  %19359 = vst [vmem:[#allocation144_spill] sm:$0xff] %v15648_v32  ;;  %v15651_v63 = vmul.f32 0.03125, %v19360_v27  ;;  %v19363_v47 = vld [vmem:[#allocation210_spill] sm:$0xff]  ;;  %v7314_v26 = vmul.f32 %v8818_v12, %v19365_v39 }
 0x650   :  { %v6812_v9 = vsub.f32 %v6556_v52, %v15010_v11  ;;  %v19362_v11 = vld [vmem:[#allocation248_spill] sm:$0xff]  ;;  %v15656_v52 = vmul.f32 0.03125, %v19363_v47  ;;  %19370 = vst [vmem:[#allocation246_spill] sm:$0xff] %v15673_v0 }
 0x651   :  { %v8820_v4 = vpop.eup %8819  ;;  %19361 = vst [vmem:[#allocation233_spill] sm:$0xff] %v15651_v63  ;;  %v6072_v22 = vpop.xlane.xlu1 %6071  ;;  %8831 = vrsqrt.f32 %v6937_v16  ;;  %v6811_v50 = vsub.f32 %v6555_v53, %v15016_v62  ;;  %v19367_v53 = vld [vmem:[#allocation249_spill] sm:$0xff] }
 0x652   :  { %v6940_v60 = vadd.f32 1e-05, %v6812_v9  ;;  %6272 = vadd.xlane.f32.xlu0 %v19362_v11  ;;  %v6558_v29 = vmul.f32 0.03125, %v6072_v22  ;;  %19364 = vst [vmem:[#allocation140_spill] sm:$0xff] %v15656_v52  ;;  %8833 = vrsqrt.f32 %v6938_v21  ;;  %v6069_v37 = vpop.xlane.xlu0 %6068  ;;  %v7316_v27 = vmul.f32 %v8820_v4, %v19366_v49  ;;  %v8822_v58 = vpop.eup %8821 }
 0x653   :  { %v6939_v16 = vadd.f32 1e-05, %v6811_v50  ;;  %v6557_v9 = vmul.f32 0.03125, %v6069_v37  ;;  %6281 = vadd.xlane.f32.xlu1 %v19367_v53  ;;  %v15668_v22 = vmul.f32 %v15648_v32, %v15648_v32  ;;  %v15679_v50 = vmul.f32 %v15651_v63, %v15651_v63  ;;  %v19377_v63 = vld [vmem:[#allocation17_spill] sm:$0xff] }
 0x654   :  { %8835 = vrsqrt.f32 %v6940_v60  ;;  %v6814_v62 = vsub.f32 %v6558_v29, %v15027_v46  ;;  %v7442_v20 = vcombine.low %v7314_v26, %v7316_v27  ;;  %v15685_v39 = vmul.f32 %v15656_v52, %v15656_v52 }
 0x655   :  { %v6078_v12 = vpop.xlane.xlu1 %6077  ;;  %8837 = vrsqrt.f32 %v6939_v16  ;;  %v6813_v46 = vsub.f32 %v6557_v9, %v15037_v3  ;;  %v15693_v53 = vmul.f32 %v15673_v0, %v15673_v0  ;;  %v19374_v49 = vsub.f32 %v13239_v33, %v14726_v36 }
 0x656   :  { %v6942_v60 = vadd.f32 1e-05, %v6814_v62  ;;  %6278 = vadd.xlane.f32.xlu0 %v14651_v10  ;;  %v6560_v37 = vmul.f32 0.03125, %v6078_v12  ;;  %v8824_v4 = vpop.eup %8823  ;;  %v6075_v27 = vpop.xlane.xlu0 %6074  ;;  %v15706_v29 = vmul.f32 0.03125, %v19377_v63  ;;  %v19379_v0 = vsub.f32 %v13242_v24, %v14789_v15 }
 0x657   :  { %v8826_v3 = vpop.eup %8825  ;;  %v6941_v10 = vadd.f32 1e-05, %v6813_v46  ;;  %v6559_v62 = vmul.f32 0.03125, %v6075_v27  ;;  %6287 = vadd.xlane.f32.xlu1 %v14657_v5  ;;  %v7315_v11 = vmul.f32 %v8822_v58, %v19374_v49  ;;  %v19380_v36 = vsub.f32 %v13253_v56, %v14824_v61  ;;  %v19381_v49 = vld [vmem:[#allocation252_spill] sm:$0xff] }
 0x658   :  { %8839 = vrsqrt.f32 %v6942_v60  ;;  %v6816_v16 = vsub.f32 %v6560_v37, %v15051_v44  ;;  %v19375_v60 = vsub.f32 %v13250_v19, %v14803_v14  ;;  %v19376_v37 = vld [vmem:[#allocation250_spill] sm:$0xff]  ;;  %19378 = vst [vmem:[#allocation237_spill] sm:$0xff] %v15706_v29  ;;  %v7318_v33 = vmul.f32 %v8826_v3, %v19379_v0 }
 0x659   :  { %v8828_v9 = vpop.eup %8827  ;;  %v6084_v47 = vpop.xlane.xlu1 %6083  ;;  %8841 = vrsqrt.f32 %v6941_v10  ;;  %v6815_v5 = vsub.f32 %v6559_v62, %v15057_v25 }
 0x65a   :  { %v7317_v44 = vmul.f32 %v8824_v4, %v19375_v60  ;;  %v6944_v46 = vadd.f32 1e-05, %v6816_v16  ;;  %6284 = vadd.xlane.f32.xlu0 %v19376_v37  ;;  %v6562_v27 = vmul.f32 0.03125, %v6084_v47  ;;  %v6081_v12 = vpop.xlane.xlu0 %6080  ;;  %v7320_v19 = vmul.f32 %v8828_v9, %v19380_v36  ;;  %v19382_v47 = vld [vmem:[#allocation114_spill] sm:$0xff]  ;;  %v8830_v15 = vpop.eup %8829  ;;  %v19387_v60 = vld [vmem:[#allocation115_spill] sm:$0xff] }
 0x65b   :  { %v6943_v58 = vadd.f32 1e-05, %v6815_v5  ;;  %v6561_v4 = vmul.f32 0.03125, %v6081_v12  ;;  %6293 = vadd.xlane.f32.xlu1 %v19381_v49  ;;  %v15717_v63 = vmul.f32 0.03125, %v19382_v47  ;;  %v19384_v16 = vld [vmem:[#allocation14_spill] sm:$0xff]  ;;  %v15729_v9 = vmul.f32 %v15706_v29, %v15706_v29  ;;  %v19391_v49 = vld [vmem:[#allocation73_spill] sm:$0xff] }
 0x65c   :  { %v7450_v14 = vcombine.low %v7315_v11, %v7317_v44  ;;  %8843 = vrsqrt.f32 %v6944_v46  ;;  %v6818_v25 = vsub.f32 %v6562_v27, %v15067_v51  ;;  %v15720_v62 = vrot.slane %v7442_v20, %v19384_v16  ;;  %v19385_v51 = vld [vmem:[#allocation253_spill] sm:$0xff]  ;;  %v19389_v36 = vld [vmem:[#allocation254_spill] sm:$0xff] }
 0x65d   :  { %19383 = vst [vmem:[#allocation46_spill] sm:$0xff] %v15717_v63  ;;  %v6090_v10 = vpop.xlane.xlu1 %6089  ;;  %v7458_v56 = vcombine.low %v7318_v33, %v7320_v19  ;;  %8845 = vrsqrt.f32 %v6943_v58  ;;  %v6817_v11 = vsub.f32 %v6561_v4, %v15078_v59  ;;  %v15734_v44 = vmul.f32 0.03125, %v19387_v60  ;;  %v19397_v60 = vld [vmem:[#allocation255_spill] sm:$0xff]  ;;  %v19430_v20 = vld [vmem:[#allocation197_spill] sm:$0xff] }
 0x65e   :  { %v15723_v24 = vrot.slane %v7450_v14, %v19384_v16  ;;  %v6946_v61 = vadd.f32 1e-05, %v6818_v25  ;;  %6290 = vadd.xlane.f32.xlu0 %v19385_v51  ;;  %v6564_v0 = vmul.f32 0.03125, %v6090_v10  ;;  %v8832_v3 = vpop.eup %8831  ;;  %v6087_v46 = vpop.xlane.xlu0 %6086  ;;  %v15742_v14 = vmul.f32 %v15717_v63, %v15717_v63  ;;  %v19396_v51 = vld [vmem:[#allocation131_spill] sm:$0xff] }
 0x65f   :  { %19388 = vst [vmem:[#allocation248_spill] sm:$0xff] %v15734_v44  ;;  %v8834_v37 = vpop.eup %8833  ;;  %v6945_v59 = vadd.f32 1e-05, %v6817_v11  ;;  %v6563_v33 = vmul.f32 0.03125, %v6087_v46  ;;  %6299 = vadd.xlane.f32.xlu1 %v19389_v36  ;;  %v19392_v47 = vsub.f32 %v13266_v18, %v19391_v49  ;;  %v15756_v25 = vmul.f32 %v15734_v44, %v15734_v44  ;;  %v19398_v18 = vld [vmem:[#allocation56_spill] sm:$0xff] }
 0x660   :  { %v7474_v5 = vcombine.low %v15720_v62, %v15723_v24  ;;  %8847 = vrsqrt.f32 %v6946_v61  ;;  %v6820_v27 = vsub.f32 %v6564_v0, %v15091_v7  ;;  %v19393_v62 = vld [vmem:[#allocation49_spill] sm:$0xff]  ;;  %v19394_v24 = vld [vmem:[#allocation200_spill] sm:$0xff]  ;;  %v7465_v29 = vrot.slane %v7458_v56, %v19384_v16 }
 0x661   :  { %v8836_v19 = vpop.eup %8835  ;;  %v6096_v4 = vpop.xlane.xlu1 %6095  ;;  %v7319_v10 = vmul.f32 %v8830_v15, %v19392_v47  ;;  %v19395_v61 = vsub.f32 %v19393_v62, %v19394_v24  ;;  %8849 = vrsqrt.f32 %v6945_v59  ;;  %v6819_v0 = vsub.f32 %v6563_v33, %v19396_v51  ;;  %v19399_v15 = vld [vmem:[#allocation159_spill] sm:$0xff]  ;;  %v19401_v62 = vld [vmem:[#allocation137_spill] sm:$0xff] }
 0x662   :  { %v6948_v11 = vadd.f32 1e-05, %v6820_v27  ;;  %6296 = vadd.xlane.f32.xlu0 %v19397_v60  ;;  %v6566_v46 = vmul.f32 0.03125, %v6096_v4  ;;  %v8838_v36 = vpop.eup %8837  ;;  %v6093_v12 = vpop.xlane.xlu0 %6092  ;;  %v19400_v49 = vsub.f32 %v19398_v18, %v19399_v15  ;;  %v19404_v24 = vld [vmem:[#allocation301_spill] sm:$0xff]  ;;  %v19407_v18 = vld [vmem:[#allocation154_spill] sm:$0xff] }
 0x663   :  { %v7321_v7 = vmul.f32 %v8832_v3, %v19395_v61  ;;  %v19402_v3 = vld [vmem:[#allocation66_spill] sm:$0xff]  ;;  %v6947_v33 = vadd.f32 1e-05, %v6819_v0  ;;  %v6565_v4 = vmul.f32 0.03125, %v6093_v12  ;;  %v19405_v51 = vld [vmem:[#allocation257_spill] sm:$0xff] }
 0x664   :  { %v7322_v47 = vmul.f32 %v8834_v37, %v19400_v49  ;;  %v19403_v59 = vsub.f32 %v19401_v62, %v19402_v3  ;;  %8851 = vrsqrt.f32 %v6948_v11  ;;  %v6822_v61 = vsub.f32 %v6566_v46, %v19404_v24  ;;  %6305 = vadd.xlane.f32.xlu1 %v19405_v51  ;;  %v19409_v0 = vld [vmem:[#allocation158_spill] sm:$0xff]  ;;  %v19410_v62 = vld [vmem:[#allocation135_spill] sm:$0xff] }
 0x665   :  { %v7466_v63 = vcombine.low %v7319_v10, %v7321_v7  ;;  %v8840_v60 = vpop.eup %8839  ;;  %v6102_v58 = vpop.xlane.xlu1 %6101  ;;  %v19406_v7 = vld [vmem:[#allocation234_spill] sm:$0xff]  ;;  %8853 = vrsqrt.f32 %v6947_v33  ;;  %v6821_v11 = vsub.f32 %v6565_v4, %v15118_v13  ;;  %v15774_v3 = vmul.f32 0.03125, %v19410_v62  ;;  %v19421_v62 = vld [vmem:[#allocation15_spill] sm:$0xff] }
 0x666   :  { %v7324_v27 = vmul.f32 %v8836_v19, %v19403_v59  ;;  %v19408_v37 = vsub.f32 %v19406_v7, %v19407_v18  ;;  %v6950_v19 = vadd.f32 1e-05, %v6822_v61  ;;  %6302 = vadd.xlane.f32.xlu0 %v19409_v0  ;;  %v6568_v12 = vmul.f32 0.03125, %v6102_v58  ;;  %v8842_v46 = vpop.eup %8841  ;;  %v19412_v59 = vld [vmem:[#allocation139_spill] sm:$0xff]  ;;  %v19414_v51 = vld [vmem:[#allocation214_spill] sm:$0xff] }
 0x667   :  { %v7473_v10 = vrot.slane %v7466_v63, %v19384_v16  ;;  %19411 = vst [vmem:[#allocation210_spill] sm:$0xff] %v15774_v3  ;;  %v15777_v56 = vmul.f32 0.03125, %v19412_v59  ;;  %v6099_v63 = vpop.xlane.xlu0 %6098  ;;  %v19415_v7 = vld [vmem:[#allocation79_spill] sm:$0xff]  ;;  %v6949_v13 = vadd.f32 1e-05, %v6821_v11  ;;  %v19420_v18 = vld [vmem:[#allocation258_spill] sm:$0xff]  ;;  %v15790_v59 = vrot.slane %v7474_v5, %v19421_v62 }
 0x668   :  { %v7323_v15 = vmul.f32 %v8838_v36, %v19408_v37  ;;  %v7492_v49 = vcombine.low %v7322_v47, %v7324_v27  ;;  %v19416_v36 = vsub.f32 %v19414_v51, %v19415_v7  ;;  %v19417_v27 = vld [vmem:[#allocation151_spill] sm:$0xff]  ;;  %v6567_v4 = vmul.f32 0.03125, %v6099_v63  ;;  %6311 = vadd.xlane.f32.xlu1 %v19420_v18  ;;  %v19428_v63 = vld [vmem:[#allocation260_spill] sm:$0xff]  ;;  %v19435_v5 = vld [vmem:[#allocation78_spill] sm:$0xff] }
 0x669   :  { %19413 = vst [vmem:[#allocation249_spill] sm:$0xff] %v15777_v56  ;;  %v7482_v24 = vcombine.low %v7465_v29, %v7473_v10  ;;  %v15785_v33 = vmul.f32 0.03125, %v19417_v27  ;;  %v19419_v61 = vld [vmem:[#allocation303_spill] sm:$0xff]  ;;  %v8844_v37 = vpop.eup %8843  ;;  %8855 = vrsqrt.f32 %v6950_v19  ;;  %v6108_v0 = vpop.xlane.xlu1 %6107  ;;  %19422 = vst [vmem:[#allocation250_spill] sm:$0xff] %v15790_v59  ;;  %v19425_v10 = vld [vmem:[#allocation113_spill] sm:$0xff] }
 0x66a   :  { %v15782_v47 = vmul.f32 %v8840_v60, %v19416_v36  ;;  %v6824_v58 = vsub.f32 %v6568_v12, %v19419_v61  ;;  %v19424_v60 = vld [vmem:[#allocation41_spill] sm:$0xff]  ;;  %8857 = vrsqrt.f32 %v6949_v13  ;;  %v19427_v36 = vld [vmem:[#allocation304_spill] sm:$0xff]  ;;  %6308 = vadd.xlane.f32.xlu0 %v19428_v63  ;;  %v6570_v27 = vmul.f32 0.03125, %v6108_v0  ;;  %v8846_v61 = vpop.eup %8845 }
 0x66b   :  { %19418 = vst [vmem:[#allocation13_spill] sm:$0xff] %v15785_v33  ;;  %v15793_v29 = vrot.slane %v7482_v24, %v19421_v62  ;;  %v19426_v51 = vsub.f32 %v19424_v60, %v19425_v10  ;;  %v6823_v12 = vsub.f32 %v6567_v4, %v19427_v36  ;;  %v6105_v19 = vpop.xlane.xlu0 %6104  ;;  %v19429_v18 = vld [vmem:[#allocation112_spill] sm:$0xff]  ;;  %v19432_v13 = vld [vmem:[#allocation305_spill] sm:$0xff]  ;;  %v7499_v0 = vrot.slane %v7492_v49, %v19384_v16 }
 0x66c   :  { %v6952_v11 = vadd.f32 1e-05, %v6824_v58  ;;  %v19431_v24 = vsub.f32 %v19429_v18, %v19430_v20  ;;  %v6826_v58 = vsub.f32 %v6570_v27, %v19432_v13  ;;  %v6569_v4 = vmul.f32 0.03125, %v6105_v19  ;;  %v19433_v60 = vld [vmem:[#allocation261_spill] sm:$0xff]  ;;  %v19434_v63 = vld [vmem:[#allocation44_spill] sm:$0xff]  ;;  %v19439_v19 = vld [vmem:[#allocation262_spill] sm:$0xff] }
 0x66d   :  { %19423 = vst [vmem:[#allocation17_spill] sm:$0xff] %v15793_v29  ;;  %v7325_v7 = vmul.f32 %v8842_v46, %v19426_v51  ;;  %6317 = vadd.xlane.f32.xlu1 %v19433_v60  ;;  %v8848_v10 = vpop.eup %8847  ;;  %v6951_v51 = vadd.f32 1e-05, %v6823_v12  ;;  %v6114_v36 = vpop.xlane.xlu1 %6113  ;;  %v19436_v26 = vsub.f32 %v19434_v63, %v19435_v5  ;;  %v15819_v27 = vmul.f32 %v15774_v3, %v15774_v3  ;;  %v19446_v46 = vld [vmem:[#allocation142_spill] sm:$0xff]  ;;  %v19455_v5 = vld [vmem:[#allocation215_spill] sm:$0xff] }
 0x66e   :  { %v7328_v42 = vmul.f32 %v8844_v37, %v19431_v24  ;;  %8859 = vrsqrt.f32 %v6952_v11  ;;  %v6825_v49 = vsub.f32 %v6569_v4, %v15159_v48  ;;  %6314 = vadd.xlane.f32.xlu0 %v19439_v19  ;;  %v6572_v12 = vmul.f32 0.03125, %v6114_v36  ;;  %v8850_v18 = vpop.eup %8849  ;;  %v19441_v24 = vld [vmem:[#allocation12_spill] sm:$0xff]  ;;  %v19445_v4 = vld [vmem:[#allocation102_spill] sm:$0xff] }
 0x66f   :  { %v7500_v52 = vcombine.low %v7323_v15, %v7325_v7  ;;  %v7327_v20 = vmul.f32 %v8846_v61, %v19436_v26  ;;  %19438 = vst [vmem:[#allocation252_spill] sm:$0xff] %v15819_v27  ;;  %v6954_v61 = vadd.f32 1e-05, %v6826_v58  ;;  %v15832_v63 = vmul.f32 %v15777_v56, %v15777_v56  ;;  %v19478_v26 = vld [vmem:[#allocation199_spill] sm:$0xff] }
 0x670   :  { %v7508_v37 = vcombine.low %v15782_v47, %v7328_v42  ;;  %v19442_v42 = vld [vmem:[#allocation164_spill] sm:$0xff]  ;;  %v6953_v48 = vadd.f32 1e-05, %v6825_v49  ;;  %v6828_v19 = vsub.f32 %v6572_v12, %v19445_v4  ;;  %8861 = vrsqrt.f32 %v6951_v51  ;;  %v19452_v12 = vld [vmem:[#allocation307_spill] sm:$0xff]  ;;  %v19456_v51 = vld [vmem:[#allocation149_spill] sm:$0xff] }
 0x671   :  { %v7507_v15 = vrot.slane %v7500_v52, %v19384_v16  ;;  %v6111_v52 = vpop.xlane.xlu0 %6110  ;;  %v19443_v47 = vsub.f32 %v19441_v24, %v19442_v42  ;;  %19444 = vst [vmem:[#allocation114_spill] sm:$0xff] %v15832_v63  ;;  %6323 = vadd.xlane.f32.xlu1 %v19446_v46  ;;  %v8852_v11 = vpop.eup %8851  ;;  %v15840_v24 = vmul.f32 %v15785_v33, %v15785_v33  ;;  %v19453_v4 = vld [vmem:[#allocation264_spill] sm:$0xff]  ;;  %v19477_v33 = vld [vmem:[#allocation235_spill] sm:$0xff] }
 0x672   :  { %v6571_v36 = vmul.f32 0.03125, %v6111_v52  ;;  %8863 = vrsqrt.f32 %v6953_v48  ;;  %v6956_v49 = vadd.f32 1e-05, %v6828_v19  ;;  %6320 = vadd.xlane.f32.xlu0 %v19453_v4  ;;  %v8854_v3 = vpop.eup %8853  ;;  %v19457_v44 = vsub.f32 %v19455_v5, %v19456_v51  ;;  %v19458_v48 = vld [vmem:[#allocation309_spill] sm:$0xff] }
 0x673   :  { %v15828_v13 = vmul.f32 %v8848_v10, %v19443_v47  ;;  %v7524_v60 = vcombine.low %v7499_v0, %v7507_v15  ;;  %19448 = vst [vmem:[#allocation14_spill] sm:$0xff] %v15840_v24  ;;  %v6120_v0 = vpop.xlane.xlu1 %6119  ;;  %v19449_v10 = vld [vmem:[#allocation51_spill] sm:$0xff]  ;;  %8865 = vrsqrt.f32 %v6954_v61  ;;  %v7515_v56 = vrot.slane %v7508_v37, %v19384_v16 }
 0x674   :  { %v19450_v15 = vld [vmem:[#allocation67_spill] sm:$0xff]  ;;  %v6827_v52 = vsub.f32 %v6571_v36, %v19452_v12  ;;  %v6574_v46 = vmul.f32 0.03125, %v6120_v0  ;;  %v7332_v7 = vmul.f32 %v8852_v11, %v19457_v44  ;;  %8867 = vrsqrt.f32 %v6956_v49  ;;  %v19459_v36 = vld [vmem:[#allocation265_spill] sm:$0xff]  ;;  %v19465_v49 = vld [vmem:[#allocation310_spill] sm:$0xff] }
 0x675   :  { %v19451_v42 = vsub.f32 %v19449_v10, %v19450_v15  ;;  %v6117_v58 = vpop.xlane.xlu0 %6116  ;;  %6329 = vadd.xlane.f32.xlu1 %v19459_v36  ;;  %v19460_v0 = vld [vmem:[#allocation187_spill] sm:$0xff]  ;;  %v19479_v21 = vsub.f32 %v19477_v33, %v19478_v26  ;;  %v19509_v33 = vld [vmem:[#allocation172_spill] sm:$0xff] }
 0x676   :  { %v6830_v19 = vsub.f32 %v6574_v46, %v19458_v48  ;;  %v6573_v10 = vmul.f32 0.03125, %v6117_v58  ;;  %v7542_v61 = vcombine.low %v15828_v13, %v7332_v7  ;;  %v8856_v44 = vpop.eup %8855  ;;  %v19467_v48 = vld [vmem:[#allocation24_spill] sm:$0xff] }
 0x677   :  { %v7329_v47 = vmul.f32 %v8850_v18, %v19451_v42  ;;  %v6955_v18 = vadd.f32 1e-05, %v6827_v52  ;;  %v6126_v15 = vpop.xlane.xlu1 %6125  ;;  %v19461_v42 = vld [vmem:[#allocation153_spill] sm:$0xff]  ;;  %v19466_v52 = vld [vmem:[#allocation266_spill] sm:$0xff]  ;;  %v8858_v51 = vpop.eup %8857  ;;  %v15866_v36 = vmul.f32 0.03125, %v19467_v48 }
 0x678   :  { %v19462_v12 = vsub.f32 %v19460_v0, %v19461_v42  ;;  %v6829_v58 = vsub.f32 %v6573_v10, %v19465_v49  ;;  %6326 = vadd.xlane.f32.xlu0 %v19466_v52  ;;  %v6576_v46 = vmul.f32 0.03125, %v6126_v15  ;;  %v19474_v49 = vld [vmem:[#allocation217_spill] sm:$0xff] }
 0x679   :  { %v7516_v32 = vcombine.low %v7327_v20, %v7329_v47  ;;  %v19463_v20 = vld [vmem:[#allocation152_spill] sm:$0xff]  ;;  %v6958_v47 = vadd.f32 1e-05, %v6830_v19  ;;  %19468 = vst [vmem:[#allocation115_spill] sm:$0xff] %v15866_v36  ;;  %v6123_v37 = vpop.xlane.xlu0 %6122  ;;  %8869 = vrsqrt.f32 %v6955_v18  ;;  %v19475_v52 = vld [vmem:[#allocation185_spill] sm:$0xff] }
 0x67a   :  { %v7331_v4 = vmul.f32 %v8854_v3, %v19462_v12  ;;  %v15861_v11 = vmul.f32 0.03125, %v19463_v20  ;;  %v19469_v3 = vld [vmem:[#allocation34_spill] sm:$0xff]  ;;  %v6957_v0 = vadd.f32 1e-05, %v6829_v58  ;;  %v19472_v19 = vld [vmem:[#allocation312_spill] sm:$0xff]  ;;  %v6575_v10 = vmul.f32 0.03125, %v6123_v37 }
 0x67b   :  { %v7523_v5 = vrot.slane %v7516_v32, %v19384_v16  ;;  %v15869_v7 = vmul.f32 0.03125, %v19469_v3  ;;  %v15872_v32 = vrot.slane %v7524_v60, %v19421_v62  ;;  %v6832_v42 = vsub.f32 %v6576_v46, %v19472_v19  ;;  %v19473_v12 = vld [vmem:[#allocation236_spill] sm:$0xff]  ;;  %v8860_v15 = vpop.eup %8859  ;;  %v6132_v20 = vpop.xlane.xlu1 %6131 }
 0x67c   :  { %19464 = vst [vmem:[#allocation253_spill] sm:$0xff] %v15861_v11  ;;  %6335 = vadd.xlane.f32.xlu1 %v19473_v12  ;;  %8871 = vrsqrt.f32 %v6958_v47  ;;  %v19476_v48 = vsub.f32 %v19474_v49, %v19475_v52  ;;  %v15882_v60 = vmul.f32 %v8856_v44, %v19479_v21  ;;  %v19482_v46 = vld [vmem:[#allocation268_spill] sm:$0xff]  ;;  %v6578_v47 = vmul.f32 0.03125, %v6132_v20  ;;  %v19484_v12 = vld [vmem:[#allocation75_spill] sm:$0xff] }
 0x67d   :  { %19470 = vst [vmem:[#allocation254_spill] sm:$0xff] %v15869_v7  ;;  %19471 = vst [vmem:[#allocation73_spill] sm:$0xff] %v15872_v32  ;;  %v7532_v13 = vcombine.low %v7515_v56, %v7523_v5  ;;  %8873 = vrsqrt.f32 %v6957_v0  ;;  %v6960_v18 = vadd.f32 1e-05, %v6832_v42  ;;  %v19481_v5 = vld [vmem:[#allocation313_spill] sm:$0xff]  ;;  %6332 = vadd.xlane.f32.xlu0 %v19482_v46  ;;  %v6129_v37 = vpop.xlane.xlu0 %6128  ;;  %v19483_v19 = vld [vmem:[#allocation188_spill] sm:$0xff]  ;;  %v15898_v26 = vmul.f32 %v15861_v11, %v15861_v11 }
 0x67e   :  { %v7333_v3 = vmul.f32 %v8858_v51, %v19476_v48  ;;  %v6831_v58 = vsub.f32 %v6575_v10, %v19481_v5  ;;  %v19485_v49 = vsub.f32 %v19483_v19, %v19484_v12  ;;  %v19487_v44 = vld [vmem:[#allocation103_spill] sm:$0xff]  ;;  %v6577_v0 = vmul.f32 0.03125, %v6129_v37  ;;  %v19488_v42 = vld [vmem:[#allocation269_spill] sm:$0xff]  ;;  %v19492_v19 = vld [vmem:[#allocation270_spill] sm:$0xff] }
 0x67f   :  { %v15885_v56 = vrot.slane %v7532_v13, %v19421_v62  ;;  %19486 = vst [vmem:[#allocation200_spill] sm:$0xff] %v15898_v26  ;;  %8875 = vrsqrt.f32 %v6960_v18  ;;  %v6834_v13 = vsub.f32 %v6578_v47, %v19487_v44  ;;  %v6138_v20 = vpop.xlane.xlu1 %6137  ;;  %v15909_v18 = vmul.f32 %v15866_v36, %v15866_v36  ;;  %v19491_v47 = vld [vmem:[#allocation315_spill] sm:$0xff] }
 0x680   :  { %v7336_v51 = vmul.f32 %v8860_v15, %v19485_v49  ;;  %v7550_v52 = vcombine.low %v7331_v4, %v7333_v3  ;;  %6341 = vadd.xlane.f32.xlu1 %v19488_v42  ;;  %v6959_v10 = vadd.f32 1e-05, %v6831_v58  ;;  %v7549_v4 = vrot.slane %v7542_v61, %v19384_v16  ;;  %v8862_v3 = vpop.eup %8861  ;;  %v19498_v5 = vld [vmem:[#allocation127_spill] sm:$0xff]  ;;  %v19500_v61 = vld [vmem:[#allocation224_spill] sm:$0xff] }
 0x681   :  { %19480 = vst [vmem:[#allocation49_spill] sm:$0xff] %v15885_v56  ;;  %19490 = vst [vmem:[#allocation131_spill] sm:$0xff] %v15909_v18  ;;  %v6833_v37 = vsub.f32 %v6577_v0, %v19491_v47  ;;  %6338 = vadd.xlane.f32.xlu0 %v19492_v19  ;;  %v6580_v58 = vmul.f32 0.03125, %v6138_v20  ;;  %v8864_v12 = vpop.eup %8863  ;;  %v19496_v0 = vld [vmem:[#allocation206_spill] sm:$0xff]  ;;  %v19497_v20 = vld [vmem:[#allocation271_spill] sm:$0xff]  ;;  %v15924_v49 = vmul.f32 0.03125, %v19498_v5 }
 0x682   :  { %v7557_v15 = vrot.slane %v7550_v52, %v19384_v16  ;;  %v7558_v48 = vcombine.low %v15882_v60, %v7336_v51  ;;  %v15917_v60 = vmul.f32 %v15869_v7, %v15869_v7  ;;  %v6962_v51 = vadd.f32 1e-05, %v6834_v13  ;;  %v6135_v52 = vpop.xlane.xlu0 %6134  ;;  %v8866_v42 = vpop.eup %8865  ;;  %v19501_v13 = vld [vmem:[#allocation163_spill] sm:$0xff]  ;;  %v19504_v18 = vld [vmem:[#allocation204_spill] sm:$0xff] }
 0x683   :  { %v6961_v21 = vadd.f32 1e-05, %v6833_v37  ;;  %v6836_v47 = vsub.f32 %v6580_v58, %v19496_v0  ;;  %v6579_v19 = vmul.f32 0.03125, %v6135_v52  ;;  %v8868_v11 = vpop.eup %8867  ;;  %19499 = vst [vmem:[#allocation56_spill] sm:$0xff] %v15924_v49  ;;  %8877 = vrsqrt.f32 %v6959_v10  ;;  %v6144_v36 = vpop.xlane.xlu1 %6143  ;;  %v19506_v58 = vld [vmem:[#allocation316_spill] sm:$0xff]  ;;  %v19507_v0 = vld [vmem:[#allocation141_spill] sm:$0xff] }
 0x684   :  { %19494 = vst [vmem:[#allocation255_spill] sm:$0xff] %v15917_v60  ;;  %v7574_v44 = vcombine.low %v7549_v4, %v7557_v15  ;;  %6347 = vadd.xlane.f32.xlu1 %v19497_v20  ;;  %v19502_v60 = vsub.f32 %v19500_v61, %v19501_v13  ;;  %v19503_v15 = vld [vmem:[#allocation25_spill] sm:$0xff]  ;;  %v6582_v20 = vmul.f32 0.03125, %v6144_v36  ;;  %v19511_v61 = vld [vmem:[#allocation39_spill] sm:$0xff]  ;;  %v15944_v36 = vmul.f32 %v15924_v49, %v15924_v49  ;;  %v19553_v49 = vld [vmem:[#allocation174_spill] sm:$0xff] }
 0x685   :  { %v19505_v26 = vsub.f32 %v19503_v15, %v19504_v18  ;;  %8879 = vrsqrt.f32 %v6961_v21  ;;  %v6964_v37 = vadd.f32 1e-05, %v6836_v47  ;;  %v6835_v52 = vsub.f32 %v6579_v19, %v19506_v58  ;;  %6344 = vadd.xlane.f32.xlu0 %v19507_v0  ;;  %v19508_v10 = vld [vmem:[#allocation37_spill] sm:$0xff]  ;;  %v19514_v21 = vld [vmem:[#allocation318_spill] sm:$0xff] }
 0x686   :  { %v7335_v4 = vmul.f32 %v8862_v3, %v19502_v60  ;;  %8881 = vrsqrt.f32 %v6962_v51  ;;  %v6141_v5 = vpop.xlane.xlu0 %6140  ;;  %v19510_v24 = vsub.f32 %v19508_v10, %v19509_v33  ;;  %v19512_v3 = vld [vmem:[#allocation173_spill] sm:$0xff]  ;;  %v6838_v18 = vsub.f32 %v6582_v20, %v19514_v21  ;;  %v8870_v19 = vpop.eup %8869  ;;  %19516 = vst [vmem:[#allocation159_spill] sm:$0xff] %v15944_v36  ;;  %v19519_v58 = vld [vmem:[#allocation274_spill] sm:$0xff]  ;;  %v19520_v20 = vld [vmem:[#allocation184_spill] sm:$0xff] }
 0x687   :  { %v7337_v46 = vmul.f32 %v8864_v12, %v19505_v26  ;;  %v19513_v60 = vsub.f32 %v19511_v61, %v19512_v3  ;;  %8883 = vrsqrt.f32 %v6964_v37  ;;  %v6963_v26 = vadd.f32 1e-05, %v6835_v52  ;;  %v19515_v47 = vld [vmem:[#allocation273_spill] sm:$0xff]  ;;  %v19639_v36 = vld [vmem:[#allocation88_spill] sm:$0xff] }
 0x688   :  { %v7338_v28 = vmul.f32 %v8866_v42, %v19510_v24  ;;  %v6581_v12 = vmul.f32 0.03125, %v6141_v5  ;;  %6353 = vadd.xlane.f32.xlu1 %v19515_v47  ;;  %v7565_v33 = vrot.slane %v7558_v48, %v19384_v16  ;;  %v6966_v15 = vadd.f32 1e-05, %v6838_v18 }
 0x689   :  { %v7566_v7 = vcombine.low %v7335_v4, %v7337_v46  ;;  %v7340_v13 = vmul.f32 %v8868_v11, %v19513_v60  ;;  %v6150_v46 = vpop.xlane.xlu1 %6149  ;;  %v8872_v42 = vpop.eup %8871  ;;  %v19517_v11 = vld [vmem:[#allocation222_spill] sm:$0xff]  ;;  %6350 = vadd.xlane.f32.xlu0 %v19519_v58  ;;  %v15954_v5 = vmul.f32 0.03125, %v19520_v20  ;;  %8885 = vrsqrt.f32 %v6963_v26  ;;  %v19523_v60 = vld [vmem:[#allocation35_spill] sm:$0xff] }
 0x68a   :  { %v15949_v4 = vmul.f32 0.03125, %v19517_v11  ;;  %v6837_v37 = vsub.f32 %v6581_v12, %v15280_v38  ;;  %v6584_v52 = vmul.f32 0.03125, %v6150_v46  ;;  %v8874_v0 = vpop.eup %8873  ;;  %v6147_v10 = vpop.xlane.xlu0 %6146  ;;  %v15957_v48 = vrot.slane %v7574_v44, %v19421_v62  ;;  %v19524_v38 = vld [vmem:[#allocation108_spill] sm:$0xff]  ;;  %v19528_v46 = vld [vmem:[#allocation134_spill] sm:$0xff]  ;;  %v19529_v44 = vld [vmem:[#allocation83_spill] sm:$0xff] }
 0x68b   :  { %v7573_v24 = vrot.slane %v7566_v7, %v19384_v16  ;;  %v7592_v51 = vcombine.low %v7338_v28, %v7340_v13  ;;  %19521 = vst [vmem:[#allocation66_spill] sm:$0xff] %v15954_v5  ;;  %v6583_v3 = vmul.f32 0.03125, %v6147_v10  ;;  %v19525_v13 = vld [vmem:[#allocation76_spill] sm:$0xff]  ;;  %8887 = vrsqrt.f32 %v6966_v15  ;;  %v19534_v20 = vld [vmem:[#allocation319_spill] sm:$0xff] }
 0x68c   :  { %19518 = vst [vmem:[#allocation137_spill] sm:$0xff] %v15949_v4  ;;  %19522 = vst [vmem:[#allocation301_spill] sm:$0xff] %v15957_v48  ;;  %v6965_v7 = vadd.f32 1e-05, %v6837_v37  ;;  %v6840_v61 = vsub.f32 %v6584_v52, %v15294_v1  ;;  %6359 = vadd.xlane.f32.xlu1 %v19523_v60  ;;  %v19526_v21 = vsub.f32 %v19524_v38, %v19525_v13  ;;  %v8876_v12 = vpop.eup %8875  ;;  %v19532_v37 = vld [vmem:[#allocation162_spill] sm:$0xff]  ;;  %v19537_v13 = vld [vmem:[#allocation168_spill] sm:$0xff] }
 0x68d   :  { %v7582_v28 = vcombine.low %v7565_v33, %v7573_v24  ;;  %v6156_v47 = vpop.xlane.xlu1 %6155  ;;  %v19530_v11 = vsub.f32 %v19528_v46, %v19529_v44  ;;  %v19531_v24 = vld [vmem:[#allocation55_spill] sm:$0xff]  ;;  %v6839_v10 = vsub.f32 %v6583_v3, %v19534_v20  ;;  %v19536_v38 = vld [vmem:[#allocation218_spill] sm:$0xff]  ;;  %v19539_v44 = vld [vmem:[#allocation133_spill] sm:$0xff] }
 0x68e   :  { %v7339_v18 = vmul.f32 %v8870_v19, %v19526_v21  ;;  %v19533_v1 = vsub.f32 %v19531_v24, %v19532_v37  ;;  %8889 = vrsqrt.f32 %v6965_v7  ;;  %v6968_v52 = vadd.f32 1e-05, %v6840_v61  ;;  %v19535_v19 = vld [vmem:[#allocation276_spill] sm:$0xff]  ;;  %v6153_v60 = vpop.xlane.xlu0 %6152 }
 0x68f   :  { %v15965_v26 = vrot.slane %v7582_v28, %v19421_v62  ;;  %v7341_v33 = vmul.f32 %v8874_v0, %v19530_v11  ;;  %6356 = vadd.xlane.f32.xlu0 %v19535_v19  ;;  %v6586_v15 = vmul.f32 0.03125, %v6156_v47  ;;  %v19538_v21 = vsub.f32 %v19536_v38, %v19537_v13  ;;  %v19541_v61 = vld [vmem:[#allocation320_spill] sm:$0xff]  ;;  %v19542_v47 = vld [vmem:[#allocation277_spill] sm:$0xff] }
 0x690   :  { %v15973_v58 = vmul.f32 %v8872_v42, %v19533_v1  ;;  %v15985_v7 = vmul.f32 0.03125, %v19539_v44  ;;  %8891 = vrsqrt.f32 %v6968_v52  ;;  %v6585_v11 = vmul.f32 0.03125, %v6153_v60  ;;  %6365 = vadd.xlane.f32.xlu1 %v19542_v47  ;;  %v19545_v60 = vld [vmem:[#allocation279_spill] sm:$0xff] }
 0x691   :  { %19527 = vst [vmem:[#allocation257_spill] sm:$0xff] %v15965_v26  ;;  %v7344_v0 = vmul.f32 %v8876_v12, %v19538_v21  ;;  %v7600_v46 = vcombine.low %v7339_v18, %v7341_v33  ;;  %v6842_v3 = vsub.f32 %v6586_v15, %v19541_v61  ;;  %v6967_v24 = vadd.f32 1e-05, %v6839_v10  ;;  %v6162_v37 = vpop.xlane.xlu1 %6161  ;;  %v8878_v12 = vpop.eup %8877  ;;  %v19555_v33 = vld [vmem:[#allocation189_spill] sm:$0xff] }
 0x692   :  { %19540 = vst [vmem:[#allocation234_spill] sm:$0xff] %v15985_v7  ;;  %v7599_v1 = vrot.slane %v7592_v51, %v19384_v16  ;;  %v15996_v52 = vmul.f32 %v15949_v4, %v15949_v4  ;;  %v6841_v15 = vsub.f32 %v6585_v11, %v15321_v6  ;;  %v6588_v10 = vmul.f32 0.03125, %v6162_v37  ;;  %v8880_v38 = vpop.eup %8879  ;;  %v19549_v6 = vld [vmem:[#allocation322_spill] sm:$0xff]  ;;  %v19550_v37 = vld [vmem:[#allocation280_spill] sm:$0xff] }
 0x693   :  { %v7607_v20 = vrot.slane %v7600_v46, %v19384_v16  ;;  %v7608_v18 = vcombine.low %v15973_v58, %v7344_v0  ;;  %6362 = vadd.xlane.f32.xlu0 %v19545_v60  ;;  %v16004_v58 = vmul.f32 %v15954_v5, %v15954_v5  ;;  %v6970_v21 = vadd.f32 1e-05, %v6842_v3  ;;  %v6159_v0 = vpop.xlane.xlu0 %6158  ;;  %v8882_v44 = vpop.eup %8881  ;;  %v19552_v3 = vld [vmem:[#allocation57_spill] sm:$0xff]  ;;  %v19556_v4 = vld [vmem:[#allocation180_spill] sm:$0xff] }
 0x694   :  { %19544 = vst [vmem:[#allocation154_spill] sm:$0xff] %v15996_v52  ;;  %v6969_v42 = vadd.f32 1e-05, %v6841_v15  ;;  %v6844_v11 = vsub.f32 %v6588_v10, %v19549_v6  ;;  %v6587_v60 = vmul.f32 0.03125, %v6159_v0  ;;  %6371 = vadd.xlane.f32.xlu1 %v19550_v37  ;;  %v8884_v19 = vpop.eup %8883  ;;  %v16012_v13 = vmul.f32 %v15985_v7, %v15985_v7  ;;  %v19558_v0 = vld [vmem:[#allocation323_spill] sm:$0xff]  ;;  %v19559_v37 = vld [vmem:[#allocation281_spill] sm:$0xff] }
 0x695   :  { %19547 = vst [vmem:[#allocation158_spill] sm:$0xff] %v16004_v58  ;;  %v7624_v46 = vcombine.low %v7599_v1, %v7607_v20  ;;  %8893 = vrsqrt.f32 %v6967_v24  ;;  %v6168_v28 = vpop.xlane.xlu1 %6167  ;;  %v19554_v1 = vsub.f32 %v19552_v3, %v19553_v49  ;;  %v19557_v47 = vsub.f32 %v19555_v33, %v19556_v4  ;;  %v19560_v24 = vld [vmem:[#allocation138_spill] sm:$0xff]  ;;  %v19563_v49 = vld [vmem:[#allocation229_spill] sm:$0xff] }
 0x696   :  { %19551 = vst [vmem:[#allocation135_spill] sm:$0xff] %v16012_v13  ;;  %8895 = vrsqrt.f32 %v6969_v42  ;;  %v6972_v10 = vadd.f32 1e-05, %v6844_v11  ;;  %v6843_v6 = vsub.f32 %v6587_v60, %v19558_v0  ;;  %v6590_v5 = vmul.f32 0.03125, %v6168_v28  ;;  %v19561_v13 = vld [vmem:[#allocation99_spill] sm:$0xff]  ;;  %v8886_v4 = vpop.eup %8885  ;;  %v19566_v33 = vld [vmem:[#allocation325_spill] sm:$0xff] }
 0x697   :  { %v7343_v20 = vmul.f32 %v8878_v12, %v19554_v1  ;;  %v7345_v15 = vmul.f32 %v8880_v38, %v19557_v47  ;;  %6368 = vadd.xlane.f32.xlu0 %v19559_v37  ;;  %8897 = vrsqrt.f32 %v6970_v21  ;;  %v6165_v61 = vpop.xlane.xlu0 %6164  ;;  %v19562_v58 = vsub.f32 %v19560_v24, %v19561_v13  ;;  %v19564_v12 = vld [vmem:[#allocation38_spill] sm:$0xff]  ;;  %v19567_v11 = vld [vmem:[#allocation283_spill] sm:$0xff]  ;;  %v19584_v21 = vld [vmem:[#allocation232_spill] sm:$0xff] }
 0x698   :  { %v19565_v3 = vsub.f32 %v19563_v49, %v19564_v12  ;;  %8899 = vrsqrt.f32 %v6972_v10  ;;  %v6971_v42 = vadd.f32 1e-05, %v6843_v6  ;;  %v6846_v38 = vsub.f32 %v6590_v5, %v19566_v33  ;;  %6377 = vadd.xlane.f32.xlu1 %v19567_v11  ;;  %v19571_v5 = vld [vmem:[#allocation284_spill] sm:$0xff]  ;;  %v19572_v37 = vld [vmem:[#allocation54_spill] sm:$0xff] }
 0x699   :  { %v7616_v51 = vcombine.low %v7343_v20, %v7345_v15  ;;  %v7346_v52 = vmul.f32 %v8882_v44, %v19562_v58  ;;  %v6589_v47 = vmul.f32 0.03125, %v6165_v61  ;;  %v6174_v60 = vpop.xlane.xlu1 %6173  ;;  %v7615_v20 = vrot.slane %v7608_v18, %v19384_v16  ;;  %v8888_v44 = vpop.eup %8887  ;;  %v19569_v15 = vld [vmem:[#allocation42_spill] sm:$0xff]  ;;  %v19576_v12 = vld [vmem:[#allocation216_spill] sm:$0xff] }
 0x69a   :  { %v7348_v1 = vmul.f32 %v8884_v19, %v19565_v3  ;;  %v16035_v19 = vmul.f32 0.03125, %v19569_v15  ;;  %v6974_v10 = vadd.f32 1e-05, %v6846_v38  ;;  %v6592_v61 = vmul.f32 0.03125, %v6174_v60  ;;  %v19578_v38 = vld [vmem:[#allocation327_spill] sm:$0xff]  ;;  %v19579_v11 = vld [vmem:[#allocation286_spill] sm:$0xff] }
 0x69b   :  { %v7623_v13 = vrot.slane %v7616_v51, %v19384_v16  ;;  %v6845_v0 = vsub.f32 %v6589_v47, %v15364_v54  ;;  %6374 = vadd.xlane.f32.xlu0 %v19571_v5  ;;  %v8890_v6 = vpop.eup %8889  ;;  %v16040_v24 = vmul.f32 0.03125, %v19572_v37  ;;  %v6171_v49 = vpop.xlane.xlu0 %6170  ;;  %v16043_v18 = vrot.slane %v7624_v46, %v19421_v62  ;;  %v19581_v46 = vld [vmem:[#allocation48_spill] sm:$0xff]  ;;  %v19582_v37 = vld [vmem:[#allocation178_spill] sm:$0xff] }
 0x69c   :  { %v7642_v58 = vcombine.low %v7346_v52, %v7348_v1  ;;  %19570 = vst [vmem:[#allocation139_spill] sm:$0xff] %v16035_v19  ;;  %v19575_v52 = vld [vmem:[#allocation219_spill] sm:$0xff]  ;;  %8901 = vrsqrt.f32 %v6971_v42  ;;  %v6848_v54 = vsub.f32 %v6592_v61, %v19578_v38  ;;  %v6591_v47 = vmul.f32 0.03125, %v6171_v49  ;;  %6383 = vadd.xlane.f32.xlu1 %v19579_v11  ;;  %v19587_v61 = vld [vmem:[#allocation328_spill] sm:$0xff] }
 0x69d   :  { %19573 = vst [vmem:[#allocation214_spill] sm:$0xff] %v16040_v24  ;;  %19574 = vst [vmem:[#allocation79_spill] sm:$0xff] %v16043_v18  ;;  %v7632_v51 = vcombine.low %v7615_v20, %v7623_v13  ;;  %v19577_v3 = vsub.f32 %v19575_v52, %v19576_v12  ;;  %v6973_v33 = vadd.f32 1e-05, %v6845_v0  ;;  %v8892_v60 = vpop.eup %8891  ;;  %8903 = vrsqrt.f32 %v6974_v10  ;;  %v6180_v15 = vpop.xlane.xlu1 %6179  ;;  %v19585_v52 = vld [vmem:[#allocation98_spill] sm:$0xff]  ;;  %v19588_v12 = vld [vmem:[#allocation287_spill] sm:$0xff] }
 0x69e   :  { %v19583_v20 = vsub.f32 %v19581_v46, %v19582_v37  ;;  %v6976_v0 = vadd.f32 1e-05, %v6848_v54  ;;  %v6847_v49 = vsub.f32 %v6591_v47, %v19587_v61  ;;  %v6594_v10 = vmul.f32 0.03125, %v6180_v15  ;;  %v19589_v38 = vld [vmem:[#allocation40_spill] sm:$0xff] }
 0x69f   :  { %v7347_v1 = vmul.f32 %v8886_v4, %v19577_v3  ;;  %v16051_v5 = vrot.slane %v7632_v51, %v19421_v62  ;;  %v19586_v4 = vsub.f32 %v19584_v21, %v19585_v52  ;;  %8905 = vrsqrt.f32 %v6973_v33  ;;  %6380 = vadd.xlane.f32.xlu0 %v19588_v12  ;;  %v6177_v3 = vpop.xlane.xlu0 %6176  ;;  %v19590_v11 = vld [vmem:[#allocation84_spill] sm:$0xff]  ;;  %v19603_v21 = vld [vmem:[#allocation291_spill] sm:$0xff] }
 0x6a0   :  { %v7349_v13 = vmul.f32 %v8890_v6, %v19583_v20  ;;  %v19591_v46 = vsub.f32 %v19589_v38, %v19590_v11  ;;  %8907 = vrsqrt.f32 %v6976_v0  ;;  %v6850_v54 = vsub.f32 %v6594_v10, %v15391_v41  ;;  %v19594_v15 = vld [vmem:[#allocation288_spill] sm:$0xff]  ;;  %v19597_v41 = vld [vmem:[#allocation329_spill] sm:$0xff]  ;;  %v19606_v0 = vld [vmem:[#allocation87_spill] sm:$0xff] }
 0x6a1   :  { %19580 = vst [vmem:[#allocation151_spill] sm:$0xff] %v16051_v5  ;;  %v16059_v42 = vmul.f32 %v8888_v44, %v19586_v4  ;;  %v19592_v44 = vld [vmem:[#allocation47_spill] sm:$0xff]  ;;  %v6593_v47 = vmul.f32 0.03125, %v6177_v3  ;;  %6389 = vadd.xlane.f32.xlu1 %v19594_v15  ;;  %v6975_v20 = vadd.f32 1e-05, %v6847_v49  ;;  %v6186_v52 = vpop.xlane.xlu1 %6185  ;;  %v7649_v4 = vrot.slane %v7642_v58, %v19384_v16  ;;  %v19598_v3 = vld [vmem:[#allocation290_spill] sm:$0xff] }
 0x6a2   :  { %v7352_v6 = vmul.f32 %v8892_v60, %v19591_v46  ;;  %v7650_v37 = vcombine.low %v7347_v1, %v7349_v13  ;;  %v16071_v33 = vmul.f32 0.03125, %v19592_v44  ;;  %v8894_v60 = vpop.eup %8893  ;;  %v16080_v13 = vmul.f32 %v16035_v19, %v16035_v19  ;;  %v19613_v19 = vld [vmem:[#allocation124_spill] sm:$0xff] }
 0x6a3   :  { %v6849_v10 = vsub.f32 %v6593_v47, %v19597_v41  ;;  %6386 = vadd.xlane.f32.xlu0 %v19598_v3  ;;  %v6596_v49 = vmul.f32 0.03125, %v6186_v52  ;;  %v8896_v38 = vpop.eup %8895  ;;  %v16088_v58 = vmul.f32 %v16040_v24, %v16040_v24  ;;  %v6978_v46 = vadd.f32 1e-05, %v6850_v54  ;;  %v19602_v41 = vld [vmem:[#allocation330_spill] sm:$0xff]  ;;  %v19608_v24 = vld [vmem:[#allocation228_spill] sm:$0xff] }
 0x6a4   :  { %19593 = vst [vmem:[#allocation303_spill] sm:$0xff] %v16071_v33  ;;  %v7657_v61 = vrot.slane %v7650_v37, %v19384_v16  ;;  %v7658_v1 = vcombine.low %v16059_v42, %v7352_v6  ;;  %19595 = vst [vmem:[#allocation258_spill] sm:$0xff] %v16080_v13  ;;  %v6183_v6 = vpop.xlane.xlu0 %6182  ;;  %v8898_v44 = vpop.eup %8897  ;;  %v16094_v15 = vmul.f32 %v16071_v33, %v16071_v33  ;;  %8909 = vrsqrt.f32 %v6975_v20  ;;  %v19605_v54 = vld [vmem:[#allocation50_spill] sm:$0xff]  ;;  %v19609_v42 = vld [vmem:[#allocation92_spill] sm:$0xff] }
 0x6a5   :  { %19599 = vst [vmem:[#allocation15_spill] sm:$0xff] %v16088_v58  ;;  %v6977_v47 = vadd.f32 1e-05, %v6849_v10  ;;  %v6852_v3 = vsub.f32 %v6596_v49, %v19602_v41  ;;  %v6595_v52 = vmul.f32 0.03125, %v6183_v6  ;;  %6395 = vadd.xlane.f32.xlu1 %v19603_v21  ;;  %v8900_v12 = vpop.eup %8899  ;;  %v6192_v11 = vpop.xlane.xlu1 %6191  ;;  %v19610_v7 = vsub.f32 %v19608_v24, %v19609_v42  ;;  %v19611_v49 = vld [vmem:[#allocation331_spill] sm:$0xff]  ;;  %v19612_v41 = vld [vmem:[#allocation122_spill] sm:$0xff] }
 0x6a6   :  { %v7674_v37 = vcombine.low %v7649_v4, %v7657_v61  ;;  %19601 = vst [vmem:[#allocation41_spill] sm:$0xff] %v16094_v15  ;;  %v19607_v4 = vsub.f32 %v19605_v54, %v19606_v0  ;;  %v6598_v21 = vmul.f32 0.03125, %v6192_v11  ;;  %v19614_v20 = vld [vmem:[#allocation171_spill] sm:$0xff]  ;;  %v19616_v58 = vld [vmem:[#allocation220_spill] sm:$0xff]  ;;  %v19617_v0 = vld [vmem:[#allocation130_spill] sm:$0xff] }
 0x6a7   :  { %v7353_v28 = vmul.f32 %v8896_v38, %v19610_v7  ;;  %8911 = vrsqrt.f32 %v6977_v47  ;;  %v6980_v10 = vadd.f32 1e-05, %v6852_v3  ;;  %v6851_v6 = vsub.f32 %v6595_v52, %v19611_v49  ;;  %6392 = vadd.xlane.f32.xlu0 %v19612_v41  ;;  %v19619_v24 = vld [vmem:[#allocation333_spill] sm:$0xff]  ;;  %v19621_v11 = vld [vmem:[#allocation118_spill] sm:$0xff] }
 0x6a8   :  { %v7351_v61 = vmul.f32 %v8894_v60, %v19607_v4  ;;  %8913 = vrsqrt.f32 %v6978_v46  ;;  %v6189_v15 = vpop.xlane.xlu0 %6188  ;;  %v19615_v33 = vsub.f32 %v19613_v19, %v19614_v20  ;;  %v19618_v60 = vsub.f32 %v19616_v58, %v19617_v0  ;;  %v19620_v47 = vld [vmem:[#allocation293_spill] sm:$0xff] }
 0x6a9   :  { %8915 = vrsqrt.f32 %v6980_v10  ;;  %v6979_v7 = vadd.f32 1e-05, %v6851_v6  ;;  %v6854_v38 = vsub.f32 %v6598_v21, %v19619_v24  ;;  %v6597_v42 = vmul.f32 0.03125, %v6189_v15  ;;  %6401 = vadd.xlane.f32.xlu1 %v19620_v47  ;;  %v8902_v3 = vpop.eup %8901  ;;  %v6198_v52 = vpop.xlane.xlu1 %6197  ;;  %v19626_v15 = vld [vmem:[#allocation32_spill] sm:$0xff]  ;;  %v19627_v21 = vld [vmem:[#allocation247_spill] sm:$0xff] }
 0x6aa   :  { %v7354_v51 = vmul.f32 %v8898_v44, %v19615_v33  ;;  %v7356_v54 = vmul.f32 %v8900_v12, %v19618_v60  ;;  %v7666_v4 = vcombine.low %v7351_v61, %v7353_v28  ;;  %v16117_v46 = vmul.f32 0.03125, %v19621_v11  ;;  %v8904_v58 = vpop.eup %8903  ;;  %v19623_v12 = vld [vmem:[#allocation211_spill] sm:$0xff]  ;;  %v19625_v61 = vld [vmem:[#allocation334_spill] sm:$0xff]  ;;  %v19633_v47 = vld [vmem:[#allocation128_spill] sm:$0xff] }
 0x6ab   :  { %v7665_v19 = vrot.slane %v7658_v1, %v19384_v16  ;;  %v16122_v28 = vmul.f32 0.03125, %v19623_v12  ;;  %v6982_v44 = vadd.f32 1e-05, %v6854_v38  ;;  %v6853_v10 = vsub.f32 %v6597_v42, %v19625_v61  ;;  %6398 = vadd.xlane.f32.xlu0 %v19626_v15  ;;  %v19631_v38 = vld [vmem:[#allocation294_spill] sm:$0xff]  ;;  %v19632_v42 = vld [vmem:[#allocation63_spill] sm:$0xff]  ;;  %v19635_v15 = vld [vmem:[#allocation148_spill] sm:$0xff] }
 0x6ac   :  { %19622 = vst [vmem:[#allocation113_spill] sm:$0xff] %v16117_v46  ;;  %v7692_v49 = vcombine.low %v7354_v51, %v7356_v54  ;;  %v7673_v33 = vrot.slane %v7666_v4, %v19384_v16  ;;  %v6600_v6 = vmul.f32 0.03125, %v6198_v52  ;;  %v8906_v41 = vpop.eup %8905  ;;  %v16127_v20 = vmul.f32 0.03125, %v19627_v21  ;;  %v6195_v51 = vpop.xlane.xlu0 %6194  ;;  %v19630_v54 = vld [vmem:[#allocation335_spill] sm:$0xff] }
 0x6ad   :  { %19624 = vst [vmem:[#allocation304_spill] sm:$0xff] %v16122_v28  ;;  %8917 = vrsqrt.f32 %v6979_v7  ;;  %v16130_v1 = vrot.slane %v7674_v37, %v19421_v62  ;;  %v6981_v60 = vadd.f32 1e-05, %v6853_v10  ;;  %v6599_v24 = vmul.f32 0.03125, %v6195_v51  ;;  %6407 = vadd.xlane.f32.xlu1 %v19631_v38  ;;  %v8908_v12 = vpop.eup %8907  ;;  %v6204_v61 = vpop.xlane.xlu1 %6203  ;;  %v19636_v7 = vld [vmem:[#allocation29_spill] sm:$0xff]  ;;  %v19638_v37 = vld [vmem:[#allocation26_spill] sm:$0xff] }
 0x6ae   :  { %19628 = vst [vmem:[#allocation260_spill] sm:$0xff] %v16127_v20  ;;  %v7682_v0 = vcombine.low %v7665_v19, %v7673_v33  ;;  %v6856_v4 = vsub.f32 %v6600_v6, %v19630_v54  ;;  %v19634_v11 = vsub.f32 %v19632_v42, %v19633_v47  ;;  %8919 = vrsqrt.f32 %v6982_v44  ;;  %v19642_v51 = vld [vmem:[#allocation16_spill] sm:$0xff]  ;;  %v19644_v42 = vld [vmem:[#allocation190_spill] sm:$0xff]  ;;  %v19645_v47 = vld [vmem:[#allocation21_spill] sm:$0xff] }
 0x6af   :  { %19629 = vst [vmem:[#allocation112_spill] sm:$0xff] %v16130_v1  ;;  %v19637_v21 = vsub.f32 %v19635_v15, %v19636_v7  ;;  %v19640_v19 = vsub.f32 %v19638_v37, %v19639_v36  ;;  %8921 = vrsqrt.f32 %v6981_v60  ;;  %v6855_v54 = vsub.f32 %v6599_v24, %v19642_v51  ;;  %v19648_v60 = vld [vmem:[#allocation336_spill] sm:$0xff]  ;;  %v19658_v36 = vld [vmem:[#allocation251_spill] sm:$0xff] }
 0x6b0   :  { %v7355_v52 = vmul.f32 %v8902_v3, %v19634_v11  ;;  %v16146_v10 = vrot.slane %v7682_v0, %v19421_v62  ;;  %v6984_v6 = vadd.f32 1e-05, %v6856_v4  ;;  %v19643_v3 = vld [vmem:[#allocation295_spill] sm:$0xff]  ;;  %v6602_v44 = vmul.f32 0.03125, %v6204_v61  ;;  %v6201_v38 = vpop.xlane.xlu0 %6200  ;;  %v19649_v61 = vld [vmem:[#allocation297_spill] sm:$0xff] }
 0x6b1   :  { %v7357_v13 = vmul.f32 %v8906_v41, %v19637_v21  ;;  %v16143_v33 = vmul.f32 %v8904_v58, %v19640_v19  ;;  %6404 = vadd.xlane.f32.xlu0 %v19643_v3  ;;  %v19646_v11 = vsub.f32 %v19644_v42, %v19645_v47  ;;  %v16159_v0 = vmul.f32 %v16117_v46, %v16117_v46  ;;  %v6210_v21 = vpop.xlane.xlu1 %6209  ;;  %v8910_v37 = vpop.eup %8909  ;;  %v19652_v3 = vld [vmem:[#allocation338_spill] sm:$0xff] }
 0x6b2   :  { %19641 = vst [vmem:[#allocation197_spill] sm:$0xff] %v16146_v10  ;;  %8923 = vrsqrt.f32 %v6984_v6  ;;  %v6858_v4 = vsub.f32 %v6602_v44, %v19648_v60  ;;  %v6601_v24 = vmul.f32 0.03125, %v6201_v38  ;;  %6413 = vadd.xlane.f32.xlu1 %v19649_v61  ;;  %v6983_v7 = vadd.f32 1e-05, %v6855_v54  ;;  %v19653_v38 = vld [vmem:[#allocation146_spill] sm:$0xff]  ;;  %v19668_v61 = vld [vmem:[#allocation208_spill] sm:$0xff] }
 0x6b3   :  { %v7360_v41 = vmul.f32 %v8908_v12, %v19646_v11  ;;  %v7700_v15 = vcombine.low %v7355_v52, %v7357_v13  ;;  %19647 = vst [vmem:[#allocation305_spill] sm:$0xff] %v16159_v0  ;;  %v7699_v13 = vrot.slane %v7692_v49, %v19384_v16  ;;  %v16170_v6 = vmul.f32 %v16122_v28, %v16122_v28  ;;  %v19659_v28 = vld [vmem:[#allocation191_spill] sm:$0xff] }
 0x6b4   :  { %v6857_v44 = vsub.f32 %v6601_v24, %v19652_v3  ;;  %v6604_v54 = vmul.f32 0.03125, %v6210_v21  ;;  %v8912_v42 = vpop.eup %8911  ;;  %v6986_v11 = vadd.f32 1e-05, %v6858_v4  ;;  %v19657_v24 = vld [vmem:[#allocation143_spill] sm:$0xff]  ;;  %v16184_v46 = vmul.f32 0.03125, %v19658_v36 }
 0x6b5   :  { %v7707_v52 = vrot.slane %v7700_v15, %v19384_v16  ;;  %v7708_v12 = vcombine.low %v16143_v33, %v7360_v41  ;;  %19651 = vst [vmem:[#allocation261_spill] sm:$0xff] %v16170_v6  ;;  %6410 = vadd.xlane.f32.xlu0 %v19653_v38  ;;  %v16178_v33 = vmul.f32 %v16127_v20, %v16127_v20  ;;  %v6207_v41 = vpop.xlane.xlu0 %6206  ;;  %v8914_v60 = vpop.eup %8913  ;;  %8925 = vrsqrt.f32 %v6983_v7  ;;  %v19660_v49 = vld [vmem:[#allocation123_spill] sm:$0xff] }
 0x6b6   :  { %v6985_v51 = vadd.f32 1e-05, %v6857_v44  ;;  %v6860_v3 = vsub.f32 %v6604_v54, %v19657_v24  ;;  %v6603_v38 = vmul.f32 0.03125, %v6207_v41  ;;  %v8916_v21 = vpop.eup %8915  ;;  %v6216_v47 = vpop.xlane.xlu1 %6215  ;;  %v19661_v19 = vsub.f32 %v19659_v28, %v19660_v49  ;;  %v19665_v44 = vld [vmem:[#allocation339_spill] sm:$0xff]  ;;  %v19666_v54 = vld [vmem:[#allocation298_spill] sm:$0xff] }
 0x6b7   :  { %19655 = vst [vmem:[#allocation44_spill] sm:$0xff] %v16178_v33  ;;  %v7724_v15 = vcombine.low %v7699_v13, %v7707_v52  ;;  %v19662_v33 = vld [vmem:[#allocation192_spill] sm:$0xff]  ;;  %v19663_v13 = vld [vmem:[#allocation97_spill] sm:$0xff]  ;;  %v6606_v41 = vmul.f32 0.03125, %v6216_v47  ;;  %v19667_v7 = vld [vmem:[#allocation231_spill] sm:$0xff]  ;;  %v16203_v47 = vmul.f32 %v16184_v46, %v16184_v46 }
 0x6b8   :  { %v7359_v4 = vmul.f32 %v8910_v37, %v19661_v19  ;;  %v19664_v52 = vsub.f32 %v19662_v33, %v19663_v13  ;;  %8927 = vrsqrt.f32 %v6985_v51  ;;  %v6988_v58 = vadd.f32 1e-05, %v6860_v3  ;;  %v19670_v28 = vld [vmem:[#allocation62_spill] sm:$0xff]  ;;  %v19671_v37 = vld [vmem:[#allocation175_spill] sm:$0xff] }
 0x6b9   :  { %v6859_v20 = vsub.f32 %v6603_v38, %v19665_v44  ;;  %6416 = vadd.xlane.f32.xlu0 %v19666_v54  ;;  %8929 = vrsqrt.f32 %v6986_v11  ;;  %v6213_v36 = vpop.xlane.xlu0 %6212  ;;  %v19669_v0 = vsub.f32 %v19667_v7, %v19668_v61  ;;  %v19672_v19 = vsub.f32 %v19670_v28, %v19671_v37  ;;  %19673 = vst [vmem:[#allocation78_spill] sm:$0xff] %v16203_v47  ;;  %v19674_v38 = vld [vmem:[#allocation256_spill] sm:$0xff] }
 0x6ba   :  { %v7361_v6 = vmul.f32 %v8912_v42, %v19664_v52  ;;  %v8918_v33 = vpop.eup %8917  ;;  %8931 = vrsqrt.f32 %v6988_v58  ;;  %v6862_v42 = vsub.f32 %v6606_v41, %v15507_v55  ;;  %v6605_v3 = vmul.f32 0.03125, %v6213_v36  ;;  %v6222_v11 = vpop.xlane.xlu1 %6221  ;;  %v19675_v58 = vld [vmem:[#allocation145_spill] sm:$0xff]  ;;  %v19676_v52 = vld [vmem:[#allocation259_spill] sm:$0xff]  ;;  %v19679_v36 = vld [vmem:[#allocation36_spill] sm:$0xff] }
 0x6bb   :  { %v7362_v63 = vmul.f32 %v8914_v60, %v19669_v0  ;;  %v7364_v49 = vmul.f32 %v8916_v21, %v19672_v19  ;;  %v6987_v51 = vadd.f32 1e-05, %v6859_v20  ;;  %v8920_v60 = vpop.eup %8919  ;;  %v6608_v13 = vmul.f32 0.03125, %v6222_v11  ;;  %v19682_v37 = vld [vmem:[#allocation340_spill] sm:$0xff] }
 0x6bc   :  { %v7716_v24 = vcombine.low %v7359_v4, %v7361_v6  ;;  %v7715_v6 = vrot.slane %v7708_v12, %v19384_v16  ;;  %v16208_v4 = vmul.f32 0.03125, %v19674_v38  ;;  %v6990_v21 = vadd.f32 1e-05, %v6862_v42  ;;  %v8922_v55 = vpop.eup %8921  ;;  %v19684_v38 = vld [vmem:[#allocation64_spill] sm:$0xff] }
 0x6bd   :  { %v7742_v0 = vcombine.low %v7362_v63, %v7364_v49  ;;  %v6861_v20 = vsub.f32 %v6605_v3, %v19675_v58  ;;  %v16212_v44 = vmul.f32 0.03125, %v19676_v52  ;;  %v6219_v54 = vpop.xlane.xlu0 %6218  ;;  %v16215_v41 = vrot.slane %v7724_v15, %v19421_v62  ;;  %v19685_v58 = vld [vmem:[#allocation132_spill] sm:$0xff] }
 0x6be   :  { %v7723_v61 = vrot.slane %v7716_v24, %v19384_v16  ;;  %v19680_v24 = vld [vmem:[#allocation28_spill] sm:$0xff]  ;;  %8933 = vrsqrt.f32 %v6987_v51  ;;  %v6864_v19 = vsub.f32 %v6608_v13, %v19682_v37  ;;  %v6607_v49 = vmul.f32 0.03125, %v6219_v54  ;;  %v6228_v3 = vpop.xlane.xlu1 %6227  ;;  %v19690_v51 = vld [vmem:[#allocation341_spill] sm:$0xff] }
 0x6bf   :  { %19677 = vst [vmem:[#allocation262_spill] sm:$0xff] %v16212_v44  ;;  %19678 = vst [vmem:[#allocation12_spill] sm:$0xff] %v16215_v41  ;;  %v19681_v63 = vsub.f32 %v19679_v36, %v19680_v24  ;;  %v6989_v28 = vadd.f32 1e-05, %v6861_v20  ;;  %v8924_v42 = vpop.eup %8923  ;;  %8935 = vrsqrt.f32 %v6990_v21  ;;  %v19686_v15 = vsub.f32 %v19684_v38, %v19685_v58  ;;  %v19691_v24 = vld [vmem:[#allocation147_spill] sm:$0xff] }
 0x6c0   :  { %v7732_v12 = vcombine.low %v7715_v6, %v7723_v61  ;;  %v19687_v6 = vld [vmem:[#allocation241_spill] sm:$0xff]  ;;  %v19688_v61 = vld [vmem:[#allocation223_spill] sm:$0xff]  ;;  %v6863_v20 = vsub.f32 %v6607_v49, %v19690_v51  ;;  %v6610_v13 = vmul.f32 0.03125, %v6228_v3  ;;  %v19695_v49 = vcombine.high %v15790_v59, %v15793_v29 }
 0x6c1   :  { %v7363_v7 = vmul.f32 %v8918_v33, %v19681_v63  ;;  %v7365_v52 = vmul.f32 %v8922_v55, %v19686_v15  ;;  %v19689_v47 = vsub.f32 %v19687_v6, %v19688_v61  ;;  %8937 = vrsqrt.f32 %v6989_v28  ;;  %v6225_v54 = vpop.xlane.xlu0 %6224  ;;  %v19694_v38 = vld [vmem:[#allocation263_spill] sm:$0xff]  ;;  %v19706_v59 = vld [vmem:[#allocation117_spill] sm:$0xff] }
 0x6c2   :  { %v16222_v11 = vrot.slane %v7732_v12, %v19421_v62  ;;  %v6992_v33 = vadd.f32 1e-05, %v6864_v19  ;;  %v19692_v12 = vld [vmem:[#allocation181_spill] sm:$0xff]  ;;  %v16239_v58 = vmul.f32 0.03125, %v19694_v38  ;;  %v6991_v28 = vadd.f32 1e-05, %v6863_v20  ;;  %v6234_v19 = vpop.xlane.xlu1 %6233  ;;  %v8926_v15 = vpop.eup %8925 }
 0x6c3   :  { %v7366_v36 = vmul.f32 %v8920_v60, %v19689_v47  ;;  %v19693_v63 = vsub.f32 %v19691_v24, %v19692_v12  ;;  %v7750_v27 = vcombine.low %v7363_v7, %v7365_v52  ;;  %v6866_v47 = vsub.f32 %v6610_v13, %v15548_v43  ;;  %8258 = vrot.lane.b32.xlu1 %v19695_v49, %s9164_s1  ;;  %v19696_v52 = vld [vmem:[#allocation160_spill] sm:$0xff]  ;;  %v19697_v20 = vld [vmem:[#allocation207_spill] sm:$0xff]  ;;  %v19704_v13 = vld [vmem:[#allocation182_spill] sm:$0xff] }
 0x6c4   :  { %19683 = vst [vmem:[#allocation164_spill] sm:$0xff] %v16222_v11  ;;  %8939 = vrsqrt.f32 %v6992_v33  ;;  %v6609_v60 = vmul.f32 0.03125, %v6225_v54  ;;  %v16252_v43 = vmul.f32 %v16208_v4, %v16208_v4  ;;  %v6612_v33 = vmul.f32 0.03125, %v6234_v19  ;;  %v19710_v12 = vld [vmem:[#allocation105_spill] sm:$0xff] }
 0x6c5   :  { %v7368_v37 = vmul.f32 %v8924_v42, %v19693_v63  ;;  %v7749_v42 = vrot.slane %v7742_v0, %v19384_v16  ;;  %v7757_v7 = vrot.slane %v7750_v27, %v19384_v16  ;;  %v8928_v51 = vpop.eup %8927  ;;  %v16259_v0 = vmul.f32 %v16212_v44, %v16212_v44  ;;  %v19707_v44 = vld [vmem:[#allocation230_spill] sm:$0xff] }
 0x6c6   :  { %v6865_v61 = vsub.f32 %v6609_v60, %v15559_v35  ;;  %v6994_v27 = vadd.f32 1e-05, %v6866_v47  ;;  %v8930_v24 = vpop.eup %8929  ;;  %v6868_v38 = vsub.f32 %v6612_v33, %v15565_v45  ;;  %v16266_v19 = vmul.f32 %v16239_v58, %v16239_v58  ;;  %v6240_v49 = vpop.xlane.xlu1 %6239 }
 0x6c7   :  { %v7758_v3 = vcombine.low %v7366_v36, %v7368_v37  ;;  %v6231_v36 = vpop.xlane.xlu0 %6230  ;;  %v7774_v54 = vcombine.low %v7749_v42, %v7757_v7  ;;  %v8932_v60 = vpop.eup %8931  ;;  %8941 = vrsqrt.f32 %v6991_v28  ;;  %v19699_v47 = vcombine.high %v15957_v48, %v15965_v26  ;;  %v19700_v42 = vld [vmem:[#allocation52_spill] sm:$0xff]  ;;  %v19701_v7 = vld [vmem:[#allocation227_spill] sm:$0xff]  ;;  %v19709_v48 = vld [vmem:[#allocation53_spill] sm:$0xff] }
 0x6c8   :  { %v6993_v37 = vadd.f32 1e-05, %v6865_v61  ;;  %v6611_v35 = vmul.f32 0.03125, %v6231_v36  ;;  %v19702_v55 = vsub.f32 %v19700_v42, %v19701_v7  ;;  %v19703_v61 = vld [vmem:[#allocation156_spill] sm:$0xff]  ;;  %v6996_v36 = vadd.f32 1e-05, %v6868_v38 }
 0x6c9   :  { %8262 = vrot.lane.b32.xlu1 %v19699_v47, %s9164_s1  ;;  %v19705_v45 = vsub.f32 %v19703_v61, %v19704_v13  ;;  %v6614_v21 = vmul.f32 0.03125, %v6240_v49  ;;  %v19708_v26 = vsub.f32 %v19706_v59, %v19707_v44  ;;  %v19711_v42 = vsub.f32 %v19709_v48, %v19710_v12  ;;  %v19712_v13 = vld [vmem:[#allocation111_spill] sm:$0xff] }
 0x6ca   :  { %v7367_v63 = vmul.f32 %v8926_v15, %v19702_v55  ;;  %8943 = vrsqrt.f32 %v6993_v37  ;;  %v6867_v6 = vsub.f32 %v6611_v35, %v15571_v40  ;;  %v19713_v40 = vld [vmem:[#allocation86_spill] sm:$0xff]  ;;  %v7765_v59 = vrot.slane %v7758_v3, %v19384_v16  ;;  %v19716_v7 = vld [vmem:[#allocation195_spill] sm:$0xff] }
 0x6cb   :  { %v7369_v33 = vmul.f32 %v8928_v51, %v19705_v45  ;;  %8945 = vrsqrt.f32 %v6994_v27  ;;  %v6237_v28 = vpop.xlane.xlu0 %6236  ;;  %v7370_v47 = vmul.f32 %v8930_v24, %v19708_v26  ;;  %v7372_v55 = vmul.f32 %v8932_v60, %v19711_v42  ;;  %v8934_v38 = vpop.eup %8933  ;;  %v19720_v42 = vld [vmem:[#allocation240_spill] sm:$0xff] }
 0x6cc   :  { %8947 = vrsqrt.f32 %v6996_v36  ;;  %v6995_v15 = vadd.f32 1e-05, %v6867_v6  ;;  %v6870_v51 = vsub.f32 %v6614_v21, %v19712_v13  ;;  %v6613_v37 = vmul.f32 0.03125, %v6237_v28  ;;  %v6246_v27 = vpop.xlane.xlu1 %6245  ;;  %v8936_v44 = vpop.eup %8935  ;;  %v19715_v6 = vld [vmem:[#allocation267_spill] sm:$0xff] }
 0x6cd   :  { %v7766_v29 = vcombine.low %v7367_v63, %v7369_v33  ;;  %v19714_v63 = vcombine.high %v16043_v18, %v16051_v5  ;;  %v7792_v26 = vcombine.low %v7370_v47, %v7372_v55  ;;  %v16295_v24 = vmul.f32 0.03125, %v19715_v6  ;;  %v19728_v6 = vld [vmem:[#allocation244_spill] sm:$0xff] }
 0x6ce   :  { %v6998_v21 = vadd.f32 1e-05, %v6870_v51  ;;  %v6869_v12 = vsub.f32 %v6613_v37, %v15601_v57  ;;  %v6616_v60 = vmul.f32 0.03125, %v6246_v27  ;;  %v8938_v49 = vpop.eup %8937  ;;  %v16299_v61 = vmul.f32 0.03125, %v19716_v7  ;;  %v19719_v57 = vld [vmem:[#allocation129_spill] sm:$0xff]  ;;  %v19724_v37 = vld [vmem:[#allocation238_spill] sm:$0xff] }
 0x6cf   :  { %8264 = vrot.lane.b32.xlu1 %v19714_v63, %s9164_s1  ;;  %v7773_v48 = vrot.slane %v7766_v29, %v19384_v16  ;;  %8949 = vrsqrt.f32 %v6995_v15  ;;  %v6243_v45 = vpop.xlane.xlu0 %6242  ;;  %v16302_v33 = vrot.slane %v7774_v54, %v19421_v62  ;;  %v19718_v47 = vcombine.high %v15872_v32, %v15885_v56  ;;  %v19725_v27 = vld [vmem:[#allocation120_spill] sm:$0xff] }
 0x6d0   :  { %v6997_v29 = vadd.f32 1e-05, %v6869_v12  ;;  %v6872_v36 = vsub.f32 %v6616_v60, %v15615_v23  ;;  %v6615_v28 = vmul.f32 0.03125, %v6243_v45  ;;  %v19721_v55 = vsub.f32 %v19719_v57, %v19720_v42  ;;  %v6252_v15 = vpop.xlane.xlu1 %6251  ;;  %v19730_v57 = vld [vmem:[#allocation107_spill] sm:$0xff]  ;;  %v19783_v5 = vld [vmem:[#allocation136_spill] sm:$0xff] }
 0x6d1   :  { %19717 = vst [vmem:[#allocation102_spill] sm:$0xff] %v16302_v33  ;;  %v7782_v3 = vcombine.low %v7765_v59, %v7773_v48  ;;  %8260 = vrot.lane.b32.xlu0 %v19718_v47, %s9164_s1  ;;  %v8940_v51 = vpop.eup %8939  ;;  %8951 = vrsqrt.f32 %v6998_v21  ;;  %v19722_v54 = vcombine.high %v16215_v41, %v16222_v11  ;;  %v19726_v63 = vsub.f32 %v19724_v37, %v19725_v27  ;;  %v19727_v48 = vld [vmem:[#allocation106_spill] sm:$0xff]  ;;  %v19733_v37 = vld [vmem:[#allocation272_spill] sm:$0xff] }
 0x6d2   :  { %v7371_v13 = vmul.f32 %v8934_v38, %v19721_v55  ;;  %v19729_v12 = vsub.f32 %v19727_v48, %v19728_v6  ;;  %8953 = vrsqrt.f32 %v6997_v29  ;;  %v7000_v38 = vadd.f32 1e-05, %v6872_v36  ;;  %v19742_v48 = vld [vmem:[#allocation212_spill] sm:$0xff] }
 0x6d3   :  { %8268 = vrot.lane.b32.xlu1 %v19722_v54, %s9164_s1  ;;  %v16317_v23 = vrot.slane %v7782_v3, %v19421_v62  ;;  %v7373_v59 = vmul.f32 %v8938_v49, %v19726_v63  ;;  %v6871_v21 = vsub.f32 %v6615_v28, %v15621_v34  ;;  %v6618_v7 = vmul.f32 0.03125, %v6252_v15  ;;  %v6249_v45 = vpop.xlane.xlu0 %6248  ;;  %v19731_v3 = vld [vmem:[#allocation22_spill] sm:$0xff]  ;;  %v19739_v49 = vld [vmem:[#allocation33_spill] sm:$0xff]  ;;  %v19747_v41 = vld [vmem:[#allocation72_spill] sm:$0xff] }
 0x6d4   :  { %v7374_v60 = vmul.f32 %v8936_v44, %v19729_v12  ;;  %v19732_v42 = vsub.f32 %v19730_v57, %v19731_v3  ;;  %v16334_v27 = vmul.f32 0.03125, %v19733_v37  ;;  %8955 = vrsqrt.f32 %v7000_v38  ;;  %v6258_v28 = vpop.xlane.xlu1 %6257  ;;  %v8942_v63 = vpop.eup %8941 }
 0x6d5   :  { %19723 = vst [vmem:[#allocation142_spill] sm:$0xff] %v16317_v23  ;;  %v7791_v47 = vcombine.high %v16302_v33, %v16317_v23  ;;  %v7800_v54 = vcombine.low %v7371_v13, %v7373_v59  ;;  %v6874_v44 = vsub.f32 %v6618_v7, %v15627_v31  ;;  %v6617_v34 = vmul.f32 0.03125, %v6249_v45  ;;  %v19735_v31 = vld [vmem:[#allocation170_spill] sm:$0xff]  ;;  %v19741_v7 = vld [vmem:[#allocation65_spill] sm:$0xff] }
 0x6d6   :  { %v7376_v55 = vmul.f32 %v8940_v51, %v19732_v42  ;;  %v19734_v29 = vcombine.high %v16130_v1, %v16146_v10  ;;  %v6999_v36 = vadd.f32 1e-05, %v6871_v21  ;;  %v7799_v51 = vrot.slane %v7792_v26, %v19384_v16  ;;  %v19736_v26 = vld [vmem:[#allocation90_spill] sm:$0xff]  ;;  %v19748_v10 = vld [vmem:[#allocation109_spill] sm:$0xff]  ;;  %v19782_v1 = vld [vmem:[#allocation71_spill] sm:$0xff] }
 0x6d7   :  { %v7807_v13 = vrot.slane %v7800_v54, %v19384_v16  ;;  %v16345_v59 = vmul.f32 %v16295_v24, %v16295_v24  ;;  %v6873_v6 = vsub.f32 %v6617_v34, %v15635_v17  ;;  %v6620_v12 = vmul.f32 0.03125, %v6258_v28  ;;  %v8944_v38 = vpop.eup %8943  ;;  %v6255_v45 = vpop.xlane.xlu0 %6254  ;;  %v19737_v34 = vld [vmem:[#allocation100_spill] sm:$0xff]  ;;  %v19744_v33 = vld [vmem:[#allocation70_spill] sm:$0xff] }
 0x6d8   :  { %8266 = vrot.lane.b32.xlu0 %v19734_v29, %s9164_s1  ;;  %v7808_v15 = vcombine.low %v7374_v60, %v7376_v55  ;;  %v16352_v21 = vmul.f32 %v16299_v61, %v16299_v61  ;;  %v7002_v60 = vadd.f32 1e-05, %v6874_v44  ;;  %v8946_v3 = vpop.eup %8945  ;;  %v16358_v42 = vmul.f32 %v16334_v27, %v16334_v27  ;;  %v6264_v28 = vpop.xlane.xlu1 %6263  ;;  %v19738_v44 = vld [vmem:[#allocation193_spill] sm:$0xff]  ;;  %v19745_v29 = vld [vmem:[#allocation31_spill] sm:$0xff] }
 0x6d9   :  { %v7824_v57 = vcombine.low %v7799_v51, %v7807_v13  ;;  %v7001_v55 = vadd.f32 1e-05, %v6873_v6  ;;  %v6876_v17 = vsub.f32 %v6620_v12, %v15641_v2  ;;  %v6619_v54 = vmul.f32 0.03125, %v6255_v45  ;;  %v8948_v37 = vpop.eup %8947 }
 0x6da   :  { %8957 = vrsqrt.f32 %v6999_v36  ;;  %v19740_v51 = vsub.f32 %v19738_v44, %v19739_v49  ;;  %v19743_v35 = vsub.f32 %v19741_v7, %v19742_v48  ;;  %v6622_v12 = vmul.f32 0.03125, %v6264_v28  ;;  %v19750_v7 = vld [vmem:[#allocation275_spill] sm:$0xff] }
 0x6db   :  { %8959 = vrsqrt.f32 %v7001_v55  ;;  %v7004_v6 = vadd.f32 1e-05, %v6876_v17  ;;  %v6875_v2 = vsub.f32 %v6619_v54, %v15668_v22  ;;  %v19746_v36 = vsub.f32 %v19744_v33, %v19745_v29  ;;  %v19751_v17 = vld [vmem:[#allocation278_spill] sm:$0xff] }
 0x6dc   :  { %8270 = vrot.lane.b32.xlu0 %v7791_v47, %s9164_s1  ;;  %v7375_v13 = vmul.f32 %v8942_v63, %v19740_v51  ;;  %v7377_v23 = vmul.f32 %v8944_v38, %v19743_v35  ;;  %8961 = vrsqrt.f32 %v7002_v60  ;;  %v6261_v47 = vpop.xlane.xlu0 %6260  ;;  %v19749_v49 = vsub.f32 %v19747_v41, %v19748_v10  ;;  %v8950_v44 = vpop.eup %8949 }
 0x6dd   :  { %v7378_v11 = vmul.f32 %v8946_v3, %v19746_v36  ;;  %8963 = vrsqrt.f32 %v7004_v6  ;;  %v7003_v48 = vadd.f32 1e-05, %v6875_v2  ;;  %v6878_v35 = vsub.f32 %v6622_v12, %v15679_v50  ;;  %v6270_v60 = vpop.xlane.xlu1 %6269  ;;  %v19752_v50 = vld [vmem:[#allocation282_spill] sm:$0xff]  ;;  %v19755_v6 = vld [vmem:[#allocation59_spill] sm:$0xff]  ;;  %v19756_v2 = vld [vmem:[#allocation209_spill] sm:$0xff] }
 0x6de   :  { %v7816_v45 = vcombine.low %v7375_v13, %v7377_v23  ;;  %v7380_v63 = vmul.f32 %v8948_v37, %v19749_v49  ;;  %v6621_v38 = vmul.f32 0.03125, %v6261_v47  ;;  %v16379_v22 = vmul.f32 0.03125, %v19750_v7  ;;  %v8952_v3 = vpop.eup %8951  ;;  %v19761_v7 = vld [vmem:[#allocation121_spill] sm:$0xff] }
 0x6df   :  { %v7815_v23 = vrot.slane %v7808_v15, %v19384_v16  ;;  %v16384_v54 = vmul.f32 0.03125, %v19751_v17  ;;  %v7006_v10 = vadd.f32 1e-05, %v6878_v35  ;;  %v6624_v37 = vmul.f32 0.03125, %v6270_v60  ;;  %v8954_v29 = vpop.eup %8953 }
 0x6e0   :  { %v7823_v55 = vrot.slane %v7816_v45, %v19384_v16  ;;  %v7842_v33 = vcombine.low %v7378_v11, %v7380_v63  ;;  %v6877_v41 = vsub.f32 %v6621_v38, %v15685_v39  ;;  %v16388_v28 = vmul.f32 0.03125, %v19752_v50  ;;  %v6267_v51 = vpop.xlane.xlu0 %6266  ;;  %v19760_v38 = vld [vmem:[#allocation61_spill] sm:$0xff] }
 0x6e1   :  { %v16391_v13 = vrot.slane %v7824_v57, %v19421_v62  ;;  %v19757_v11 = vsub.f32 %v19755_v6, %v19756_v2  ;;  %8965 = vrsqrt.f32 %v7003_v48  ;;  %v6880_v45 = vsub.f32 %v6624_v37, %v15693_v53  ;;  %v8956_v39 = vpop.eup %8955  ;;  %v6276_v49 = vpop.xlane.xlu1 %6275 }
 0x6e2   :  { %19753 = vst [vmem:[#allocation51_spill] sm:$0xff] %v16388_v28  ;;  %v7832_v15 = vcombine.low %v7815_v23, %v7823_v55  ;;  %v7005_v47 = vadd.f32 1e-05, %v6877_v41  ;;  %v6623_v36 = vmul.f32 0.03125, %v6267_v51  ;;  %8967 = vrsqrt.f32 %v7006_v10  ;;  %v19763_v10 = vld [vmem:[#allocation194_spill] sm:$0xff] }
 0x6e3   :  { %19754 = vst [vmem:[#allocation67_spill] sm:$0xff] %v16391_v13  ;;  %v7379_v12 = vmul.f32 %v8950_v44, %v19757_v11  ;;  %v19759_v57 = vsub.f32 %v19347_v30, %v15582_v8  ;;  %v19762_v60 = vsub.f32 %v19760_v38, %v19761_v7  ;;  %v7008_v44 = vadd.f32 1e-05, %v6880_v45  ;;  %v19764_v41 = vld [vmem:[#allocation186_spill] sm:$0xff]  ;;  %v19775_v8 = vld [vmem:[#allocation60_spill] sm:$0xff] }
 0x6e4   :  { %v16398_v63 = vrot.slane %v7832_v15, %v19421_v62  ;;  %8969 = vrsqrt.f32 %v7005_v47  ;;  %v6879_v48 = vsub.f32 %v6623_v36, %v15729_v9  ;;  %v6626_v53 = vmul.f32 0.03125, %v6276_v49  ;;  %v6273_v55 = vpop.xlane.xlu0 %6272  ;;  %v19766_v47 = vld [vmem:[#allocation85_spill] sm:$0xff] }
 0x6e5   :  { %v7381_v35 = vmul.f32 %v8954_v29, %v19759_v57  ;;  %v7382_v23 = vmul.f32 %v8952_v3, %v19762_v60  ;;  %v19765_v37 = vsub.f32 %v19763_v10, %v19764_v41  ;;  %v16416_v30 = vmul.f32 %v16379_v22, %v16379_v22  ;;  %v6282_v15 = vpop.xlane.xlu1 %6281  ;;  %v19767_v57 = vld [vmem:[#allocation91_spill] sm:$0xff]  ;;  %v19770_v41 = vld [vmem:[#allocation285_spill] sm:$0xff] }
 0x6e6   :  { %19758 = vst [vmem:[#allocation307_spill] sm:$0xff] %v16398_v63  ;;  %v7841_v17 = vcombine.high %v16391_v13, %v16398_v63  ;;  %8971 = vrsqrt.f32 %v7008_v44  ;;  %v6882_v9 = vsub.f32 %v6626_v53, %v15742_v14  ;;  %v6625_v3 = vmul.f32 0.03125, %v6273_v55  ;;  %v19769_v55 = vld [vmem:[#allocation252_spill] sm:$0xff]  ;;  %v19780_v63 = vld [vmem:[#allocation126_spill] sm:$0xff] }
 0x6e7   :  { %v7384_v50 = vmul.f32 %v8956_v39, %v19765_v37  ;;  %v7850_v51 = vcombine.low %v7379_v12, %v7381_v35  ;;  %v7007_v29 = vadd.f32 1e-05, %v6879_v48  ;;  %v7849_v6 = vrot.slane %v7842_v33, %v19384_v16  ;;  %v8958_v12 = vpop.eup %8957  ;;  %v19869_v44 = vld [vmem:[#allocation66_spill] sm:$0xff] }
 0x6e8   :  { %8272 = vrot.lane.b32.xlu1 %v7841_v17, %s9164_s1  ;;  %v16426_v36 = vmul.f32 %v16384_v54, %v16384_v54  ;;  %v6881_v14 = vsub.f32 %v6625_v3, %v15756_v25  ;;  %v6628_v39 = vmul.f32 0.03125, %v6282_v15  ;;  %v8960_v49 = vpop.eup %8959  ;;  %v16433_v33 = vmul.f32 %v16388_v28, %v16388_v28  ;;  %v6279_v7 = vpop.xlane.xlu0 %6278  ;;  %v19773_v3 = vld [vmem:[#allocation82_spill] sm:$0xff] }
 0x6e9   :  { %v7857_v2 = vrot.slane %v7850_v51, %v19384_v16  ;;  %v7858_v11 = vcombine.low %v7382_v23, %v7384_v50  ;;  %v7010_v38 = vadd.f32 1e-05, %v6882_v9  ;;  %v8962_v23 = vpop.eup %8961  ;;  %v6627_v25 = vmul.f32 0.03125, %v6279_v7  ;;  %v6288_v50 = vpop.xlane.xlu1 %6287  ;;  %v19772_v51 = vld [vmem:[#allocation239_spill] sm:$0xff]  ;;  %v19826_v28 = vld [vmem:[#allocation210_spill] sm:$0xff] }
 0x6ea   :  { %v7009_v53 = vadd.f32 1e-05, %v6881_v14  ;;  %v6884_v17 = vsub.f32 %v6628_v39, %v19769_v55  ;;  %v8964_v10 = vpop.eup %8963  ;;  %v16439_v37 = vmul.f32 0.03125, %v19770_v41  ;;  %8973 = vrsqrt.f32 %v7007_v29  ;;  %v19778_v14 = vld [vmem:[#allocation114_spill] sm:$0xff] }
 0x6eb   :  { %v7874_v60 = vcombine.low %v7849_v6, %v7857_v2  ;;  %v19774_v15 = vsub.f32 %v19772_v51, %v19773_v3  ;;  %v19776_v6 = vld [vmem:[#allocation213_spill] sm:$0xff]  ;;  %v6883_v45 = vsub.f32 %v6627_v25, %v19778_v14  ;;  %v6630_v39 = vmul.f32 0.03125, %v6288_v50  ;;  %v19779_v41 = vld [vmem:[#allocation58_spill] sm:$0xff] }
 0x6ec   :  { %19771 = vst [vmem:[#allocation264_spill] sm:$0xff] %v16439_v37  ;;  %v19777_v2 = vsub.f32 %v19775_v8, %v19776_v6  ;;  %8975 = vrsqrt.f32 %v7009_v53  ;;  %v7012_v48 = vadd.f32 1e-05, %v6884_v17  ;;  %v6285_v7 = vpop.xlane.xlu0 %6284  ;;  %v19781_v29 = vsub.f32 %v19779_v41, %v19780_v63  ;;  %v19785_v8 = vld [vmem:[#allocation14_spill] sm:$0xff]  ;;  %v19789_v6 = vld [vmem:[#allocation292_spill] sm:$0xff] }
 0x6ed   :  { %v7383_v9 = vmul.f32 %v8958_v12, %v19774_v15  ;;  %8977 = vrsqrt.f32 %v7010_v38  ;;  %v19784_v51 = vsub.f32 %v19782_v1, %v19783_v5  ;;  %v7011_v3 = vadd.f32 1e-05, %v6883_v45  ;;  %v6294_v38 = vpop.xlane.xlu1 %6293  ;;  %v19786_v15 = vld [vmem:[#allocation289_spill] sm:$0xff]  ;;  %v19788_v45 = vld [vmem:[#allocation200_spill] sm:$0xff] }
 0x6ee   :  { %v7385_v35 = vmul.f32 %v8960_v49, %v19777_v2  ;;  %v7386_v13 = vmul.f32 %v8962_v23, %v19781_v29  ;;  %8979 = vrsqrt.f32 %v7012_v48  ;;  %v6886_v49 = vsub.f32 %v6630_v39, %v19785_v8  ;;  %v8966_v17 = vpop.eup %8965  ;;  %v19793_v29 = vld [vmem:[#allocation157_spill] sm:$0xff] }
 0x6ef   :  { %v7388_v12 = vmul.f32 %v8964_v10, %v19784_v51  ;;  %v6629_v53 = vmul.f32 0.03125, %v6285_v7  ;;  %v16457_v25 = vmul.f32 %v16439_v37, %v16439_v37  ;;  %v8968_v50 = vpop.eup %8967  ;;  %v16462_v5 = vmul.f32 0.03125, %v19786_v15  ;;  %v19794_v51 = vld [vmem:[#allocation144_spill] sm:$0xff] }
 0x6f0   :  { %v7866_v55 = vcombine.low %v7383_v9, %v7385_v35  ;;  %v7865_v35 = vrot.slane %v7858_v11, %v19384_v16  ;;  %v7014_v1 = vadd.f32 1e-05, %v6886_v49  ;;  %v6632_v10 = vmul.f32 0.03125, %v6294_v38  ;;  %v6291_v14 = vpop.xlane.xlu0 %6290  ;;  %v19798_v15 = vld [vmem:[#allocation140_spill] sm:$0xff] }
 0x6f1   :  { %v7892_v23 = vcombine.low %v7386_v13, %v7388_v12  ;;  %19787 = vst [vmem:[#allocation215_spill] sm:$0xff] %v16462_v5  ;;  %v6885_v48 = vsub.f32 %v6629_v53, %v19788_v45  ;;  %v8970_v9 = vpop.eup %8969  ;;  %v16466_v2 = vmul.f32 0.03125, %v19789_v6  ;;  %8981 = vrsqrt.f32 %v7011_v3  ;;  %v19792_v13 = vld [vmem:[#allocation131_spill] sm:$0xff]  ;;  %v6300_v53 = vpop.xlane.xlu1 %6299  ;;  %v19800_v6 = vld [vmem:[#allocation196_spill] sm:$0xff] }
 0x6f2   :  { %v7873_v63 = vrot.slane %v7866_v55, %v19384_v16  ;;  %v16469_v39 = vrot.slane %v7874_v60, %v19421_v62  ;;  %v6888_v55 = vsub.f32 %v6632_v10, %v19792_v13  ;;  %v6631_v41 = vmul.f32 0.03125, %v6291_v14  ;;  %v19797_v3 = vld [vmem:[#allocation243_spill] sm:$0xff] }
 0x6f3   :  { %19790 = vst [vmem:[#allocation149_spill] sm:$0xff] %v16466_v2  ;;  %v7013_v7 = vadd.f32 1e-05, %v6885_v48  ;;  %v19795_v12 = vsub.f32 %v19793_v29, %v19794_v51  ;;  %v8972_v49 = vpop.eup %8971  ;;  %8983 = vrsqrt.f32 %v7014_v1  ;;  %v19799_v45 = vsub.f32 %v19797_v3, %v19798_v15  ;;  %v19803_v14 = vld [vmem:[#allocation255_spill] sm:$0xff]  ;;  %v19804_v51 = vld [vmem:[#allocation110_spill] sm:$0xff]  ;;  %v19807_v3 = vld [vmem:[#allocation296_spill] sm:$0xff] }
 0x6f4   :  { %19791 = vst [vmem:[#allocation309_spill] sm:$0xff] %v16469_v39  ;;  %v7882_v11 = vcombine.low %v7865_v35, %v7873_v63  ;;  %v19801_v35 = vld [vmem:[#allocation233_spill] sm:$0xff]  ;;  %v7016_v10 = vadd.f32 1e-05, %v6888_v55  ;;  %v6887_v13 = vsub.f32 %v6631_v41, %v19803_v14  ;;  %v6634_v29 = vmul.f32 0.03125, %v6300_v53 }
 0x6f5   :  { %v7387_v8 = vmul.f32 %v8966_v17, %v19795_v12  ;;  %v7389_v60 = vmul.f32 %v8970_v9, %v19799_v45  ;;  %v19802_v63 = vsub.f32 %v19800_v6, %v19801_v35  ;;  %8985 = vrsqrt.f32 %v7013_v7  ;;  %v6297_v17 = vpop.xlane.xlu0 %6296  ;;  %v6306_v53 = vpop.xlane.xlu1 %6305 }
 0x6f6   :  { %v16476_v38 = vrot.slane %v7882_v11, %v19421_v62  ;;  %v19805_v11 = vld [vmem:[#allocation246_spill] sm:$0xff]  ;;  %v16493_v15 = vmul.f32 0.03125, %v19807_v3  ;;  %8987 = vrsqrt.f32 %v7016_v10  ;;  %v6633_v55 = vmul.f32 0.03125, %v6297_v17  ;;  %v19825_v17 = vld [vmem:[#allocation165_spill] sm:$0xff] }
 0x6f7   :  { %v7390_v48 = vmul.f32 %v8968_v50, %v19802_v63  ;;  %v19806_v12 = vsub.f32 %v19804_v51, %v19805_v11  ;;  %v7900_v56 = vcombine.low %v7387_v8, %v7389_v60  ;;  %v19809_v50 = vld [vmem:[#allocation159_spill] sm:$0xff]  ;;  %v7015_v41 = vadd.f32 1e-05, %v6887_v13  ;;  %v8974_v8 = vpop.eup %8973  ;;  %v19811_v10 = vld [vmem:[#allocation154_spill] sm:$0xff]  ;;  %v19822_v11 = vld [vmem:[#allocation68_spill] sm:$0xff] }
 0x6f8   :  { %19796 = vst [vmem:[#allocation265_spill] sm:$0xff] %v16476_v38  ;;  %v7891_v1 = vcombine.high %v16469_v39, %v16476_v38  ;;  %19808 = vst [vmem:[#allocation187_spill] sm:$0xff] %v16493_v15  ;;  %v6890_v7 = vsub.f32 %v6634_v29, %v19809_v50  ;;  %v7899_v45 = vrot.slane %v7892_v23, %v19384_v16  ;;  %v6636_v29 = vmul.f32 0.03125, %v6306_v53  ;;  %v19814_v50 = vld [vmem:[#allocation158_spill] sm:$0xff]  ;;  %v19816_v38 = vld [vmem:[#allocation237_spill] sm:$0xff] }
 0x6f9   :  { %v7392_v18 = vmul.f32 %v8972_v49, %v19806_v12  ;;  %v7907_v6 = vrot.slane %v7900_v56, %v19384_v16  ;;  %v16503_v63 = vmul.f32 %v16462_v5, %v16462_v5  ;;  %v6889_v14 = vsub.f32 %v6633_v55, %v19811_v10  ;;  %v8976_v13 = vpop.eup %8975  ;;  %v6312_v35 = vpop.xlane.xlu1 %6311  ;;  %v19821_v12 = vld [vmem:[#allocation135_spill] sm:$0xff]  ;;  %v19823_v60 = vld [vmem:[#allocation46_spill] sm:$0xff] }
 0x6fa   :  { %8274 = vrot.lane.b32.xlu0 %v7891_v1, %s9164_s1  ;;  %v16510_v23 = vmul.f32 %v16466_v2, %v16466_v2  ;;  %v7018_v56 = vadd.f32 1e-05, %v6890_v7  ;;  %v8978_v51 = vpop.eup %8977  ;;  %v6892_v9 = vsub.f32 %v6636_v29, %v19814_v50  ;;  %v16517_v10 = vmul.f32 %v16493_v15, %v16493_v15  ;;  %v19815_v1 = vld [vmem:[#allocation150_spill] sm:$0xff] }
 0x6fb   :  { %v7908_v49 = vcombine.low %v7390_v48, %v7392_v18  ;;  %v6303_v18 = vpop.xlane.xlu0 %6302  ;;  %v7924_v48 = vcombine.low %v7899_v45, %v7907_v6  ;;  %v7017_v3 = vadd.f32 1e-05, %v6889_v14  ;;  %v8980_v53 = vpop.eup %8979  ;;  %8989 = vrsqrt.f32 %v7015_v41  ;;  %v19818_v45 = vld [vmem:[#allocation242_spill] sm:$0xff]  ;;  %v19819_v6 = vld [vmem:[#allocation248_spill] sm:$0xff] }
 0x6fc   :  { %v6635_v55 = vmul.f32 0.03125, %v6303_v18  ;;  %v19817_v7 = vsub.f32 %v19815_v1, %v19816_v38  ;;  %v19820_v32 = vsub.f32 %v19818_v45, %v19819_v6  ;;  %v7020_v14 = vadd.f32 1e-05, %v6892_v9  ;;  %v19833_v6 = vld [vmem:[#allocation155_spill] sm:$0xff] }
 0x6fd   :  { %8991 = vrsqrt.f32 %v7017_v3  ;;  %v6638_v18 = vmul.f32 0.03125, %v6312_v35  ;;  %v19824_v41 = vsub.f32 %v19822_v11, %v19823_v60  ;;  %v19827_v38 = vsub.f32 %v19825_v17, %v19826_v28  ;;  %v19830_v11 = vld [vmem:[#allocation299_spill] sm:$0xff] }
 0x6fe   :  { %v7391_v39 = vmul.f32 %v8974_v8, %v19817_v7  ;;  %v7393_v37 = vmul.f32 %v8976_v13, %v19820_v32  ;;  %v6891_v29 = vsub.f32 %v6635_v55, %v19821_v12  ;;  %8993 = vrsqrt.f32 %v7018_v56  ;;  %v8982_v1 = vpop.eup %8981  ;;  %v19828_v32 = vld [vmem:[#allocation258_spill] sm:$0xff]  ;;  %v6318_v56 = vpop.xlane.xlu1 %6317  ;;  %v19832_v17 = vld [vmem:[#allocation15_spill] sm:$0xff] }
 0x6ff   :  { %v6309_v50 = vpop.xlane.xlu0 %6308  ;;  %v7394_v5 = vmul.f32 %v8978_v51, %v19824_v41  ;;  %v7396_v8 = vmul.f32 %v8980_v53, %v19827_v38  ;;  %8995 = vrsqrt.f32 %v7020_v14  ;;  %v6894_v13 = vsub.f32 %v6638_v18, %v19828_v32 }
 0x700   :  { %v7916_v2 = vcombine.low %v7391_v39, %v7393_v37  ;;  %v7019_v7 = vadd.f32 1e-05, %v6891_v29  ;;  %v6637_v9 = vmul.f32 0.03125, %v6309_v50  ;;  %v7915_v37 = vrot.slane %v7908_v49, %v19384_v16  ;;  %v8984_v51 = vpop.eup %8983  ;;  %v19836_v50 = vld [vmem:[#allocation81_spill] sm:$0xff] }
 0x701   :  { %v7942_v60 = vcombine.low %v7394_v5, %v7396_v8  ;;  %v16538_v3 = vmul.f32 0.03125, %v19830_v11  ;;  %v7022_v28 = vadd.f32 1e-05, %v6894_v13  ;;  %v6640_v53 = vmul.f32 0.03125, %v6318_v56  ;;  %v19839_v8 = vld [vmem:[#allocation41_spill] sm:$0xff] }
 0x702   :  { %v7923_v39 = vrot.slane %v7916_v2, %v19384_v16  ;;  %v6893_v55 = vsub.f32 %v6637_v9, %v19832_v17  ;;  %v8986_v45 = vpop.eup %8985  ;;  %v16542_v14 = vmul.f32 0.03125, %v19833_v6  ;;  %v16545_v18 = vrot.slane %v7924_v48, %v19421_v62  ;;  %v19837_v2 = vld [vmem:[#allocation249_spill] sm:$0xff]  ;;  %v6324_v56 = vpop.xlane.xlu1 %6323 }
 0x703   :  { %19831 = vst [vmem:[#allocation153_spill] sm:$0xff] %v16538_v3  ;;  %v6315_v29 = vpop.xlane.xlu0 %6314  ;;  %v19838_v5 = vsub.f32 %v19836_v50, %v19837_v2  ;;  %8997 = vrsqrt.f32 %v7019_v7  ;;  %v6896_v32 = vsub.f32 %v6640_v53, %v19839_v8  ;;  %v8988_v9 = vpop.eup %8987  ;;  %v19841_v17 = vld [vmem:[#allocation245_spill] sm:$0xff]  ;;  %v6642_v53 = vmul.f32 0.03125, %v6324_v56  ;;  %v19848_v2 = vld [vmem:[#allocation198_spill] sm:$0xff] }
 0x704   :  { %19834 = vst [vmem:[#allocation152_spill] sm:$0xff] %v16542_v14  ;;  %19835 = vst [vmem:[#allocation310_spill] sm:$0xff] %v16545_v18  ;;  %v7932_v49 = vcombine.low %v7915_v37, %v7923_v39  ;;  %v7021_v38 = vadd.f32 1e-05, %v6893_v55  ;;  %v6639_v13 = vmul.f32 0.03125, %v6315_v29  ;;  %8999 = vrsqrt.f32 %v7022_v28  ;;  %v19842_v6 = vld [vmem:[#allocation253_spill] sm:$0xff] }
 0x705   :  { %v7395_v41 = vmul.f32 %v8982_v1, %v19838_v5  ;;  %v19843_v48 = vsub.f32 %v19841_v17, %v19842_v6  ;;  %v19844_v37 = vld [vmem:[#allocation167_spill] sm:$0xff]  ;;  %v19845_v39 = vld [vmem:[#allocation13_spill] sm:$0xff]  ;;  %v7024_v1 = vadd.f32 1e-05, %v6896_v32  ;;  %v19851_v17 = vld [vmem:[#allocation202_spill] sm:$0xff]  ;;  %v7949_v56 = vrot.slane %v7942_v60, %v19384_v16 }
 0x706   :  { %v16552_v11 = vrot.slane %v7932_v49, %v19421_v62  ;;  %v19846_v15 = vsub.f32 %v19844_v37, %v19845_v39  ;;  %9001 = vrsqrt.f32 %v7021_v38  ;;  %v19847_v7 = vld [vmem:[#allocation305_spill] sm:$0xff]  ;;  %v19849_v49 = vld [vmem:[#allocation115_spill] sm:$0xff]  ;;  %v16569_v6 = vmul.f32 0.03125, %v19851_v17  ;;  %v19857_v17 = vld [vmem:[#allocation78_spill] sm:$0xff] }
 0x707   :  { %v7397_v35 = vmul.f32 %v8986_v45, %v19843_v48  ;;  %v6895_v55 = vsub.f32 %v6639_v13, %v19847_v7  ;;  %v6321_v29 = vpop.xlane.xlu0 %6320  ;;  %v19850_v5 = vsub.f32 %v19848_v2, %v19849_v49  ;;  %9003 = vrsqrt.f32 %v7024_v1  ;;  %v6330_v13 = vpop.xlane.xlu1 %6329  ;;  %v19855_v1 = vld [vmem:[#allocation44_spill] sm:$0xff]  ;;  %v19865_v60 = vld [vmem:[#allocation166_spill] sm:$0xff] }
 0x708   :  { %19840 = vst [vmem:[#allocation266_spill] sm:$0xff] %v16552_v11  ;;  %v7398_v50 = vmul.f32 %v8984_v51, %v19846_v15  ;;  %v7941_v28 = vcombine.high %v16545_v18, %v16552_v11  ;;  %19852 = vst [vmem:[#allocation24_spill] sm:$0xff] %v16569_v6  ;;  %v19853_v15 = vld [vmem:[#allocation261_spill] sm:$0xff]  ;;  %v6641_v38 = vmul.f32 0.03125, %v6321_v29  ;;  %v16584_v29 = vmul.f32 %v16542_v14, %v16542_v14  ;;  %v19859_v11 = vld [vmem:[#allocation80_spill] sm:$0xff] }
 0x709   :  { %v7400_v8 = vmul.f32 %v8988_v9, %v19850_v5  ;;  %v7950_v12 = vcombine.low %v7395_v41, %v7397_v35  ;;  %v6898_v51 = vsub.f32 %v6642_v53, %v19853_v15  ;;  %v7023_v32 = vadd.f32 1e-05, %v6895_v55  ;;  %v8990_v35 = vpop.eup %8989  ;;  %v19866_v45 = vld [vmem:[#allocation56_spill] sm:$0xff] }
 0x70a   :  { %8276 = vrot.lane.b32.xlu1 %v7941_v28, %s9164_s1  ;;  %v16577_v41 = vmul.f32 %v16538_v3, %v16538_v3  ;;  %v6897_v7 = vsub.f32 %v6641_v38, %v19855_v1  ;;  %v6644_v53 = vmul.f32 0.03125, %v6330_v13  ;;  %v8992_v55 = vpop.eup %8991  ;;  %v16590_v5 = vmul.f32 %v16569_v6, %v16569_v6  ;;  %v19868_v1 = vld [vmem:[#allocation69_spill] sm:$0xff] }
 0x70b   :  { %v7957_v48 = vrot.slane %v7950_v12, %v19384_v16  ;;  %v7958_v9 = vcombine.low %v7398_v50, %v7400_v8  ;;  %v7026_v50 = vadd.f32 1e-05, %v6898_v51  ;;  %v6327_v28 = vpop.xlane.xlu0 %6326  ;;  %v8994_v49 = vpop.eup %8993  ;;  %9005 = vrsqrt.f32 %v7023_v32  ;;  %v19860_v12 = vld [vmem:[#allocation254_spill] sm:$0xff] }
 0x70c   :  { %v7025_v8 = vadd.f32 1e-05, %v6897_v7  ;;  %v6900_v15 = vsub.f32 %v6644_v53, %v19857_v17  ;;  %v6643_v38 = vmul.f32 0.03125, %v6327_v28  ;;  %v8996_v13 = vpop.eup %8995  ;;  %v6336_v39 = vpop.xlane.xlu1 %6335  ;;  %v19861_v51 = vsub.f32 %v19859_v11, %v19860_v12 }
 0x70d   :  { %v7974_v2 = vcombine.low %v7949_v56, %v7957_v48  ;;  %v19862_v56 = vld [vmem:[#allocation169_spill] sm:$0xff]  ;;  %v6646_v53 = vmul.f32 0.03125, %v6336_v39  ;;  %v19867_v32 = vsub.f32 %v19865_v60, %v19866_v45  ;;  %v19870_v11 = vsub.f32 %v19868_v1, %v19869_v44 }
 0x70e   :  { %v7399_v18 = vmul.f32 %v8990_v35, %v19861_v51  ;;  %v19863_v48 = vld [vmem:[#allocation137_spill] sm:$0xff]  ;;  %9007 = vrsqrt.f32 %v7025_v8  ;;  %v7028_v14 = vadd.f32 1e-05, %v6900_v15  ;;  %v6899_v7 = vsub.f32 %v6643_v38, %v16252_v43  ;;  %v19871_v15 = vld [vmem:[#allocation300_spill] sm:$0xff] }
 0x70f   :  { %v19864_v3 = vsub.f32 %v19862_v56, %v19863_v48  ;;  %9009 = vrsqrt.f32 %v7026_v50  ;;  %v6333_v28 = vpop.xlane.xlu0 %6332  ;;  %v7402_v6 = vmul.f32 %v8994_v49, %v19867_v32  ;;  %v7404_v35 = vmul.f32 %v8996_v13, %v19870_v11  ;;  %v19872_v50 = vld [vmem:[#allocation302_spill] sm:$0xff] }
 0x710   :  { %9011 = vrsqrt.f32 %v7028_v14  ;;  %v7027_v12 = vadd.f32 1e-05, %v6899_v7  ;;  %v8998_v8 = vpop.eup %8997  ;;  %v16610_v43 = vmul.f32 0.03125, %v19871_v15  ;;  %v6342_v39 = vpop.xlane.xlu1 %6341  ;;  %v16615_v49 = vmul.f32 0.03125, %v19872_v50  ;;  %v19873_v13 = vld [vmem:[#allocation306_spill] sm:$0xff]  ;;  %v19882_v15 = vld [vmem:[#allocation23_spill] sm:$0xff] }
 0x711   :  { %v7401_v37 = vmul.f32 %v8992_v55, %v19864_v3  ;;  %v6902_v3 = vsub.f32 %v6646_v53, %v16259_v0  ;;  %v6645_v55 = vmul.f32 0.03125, %v6333_v28  ;;  %v7992_v45 = vcombine.low %v7402_v6, %v7404_v35  ;;  %v9000_v60 = vpop.eup %8999  ;;  %v19875_v53 = vld [vmem:[#allocation116_spill] sm:$0xff]  ;;  %v19876_v28 = vld [vmem:[#allocation234_spill] sm:$0xff] }
 0x712   :  { %v6648_v38 = vmul.f32 0.03125, %v6342_v39  ;;  %v16619_v1 = vmul.f32 0.03125, %v19873_v13  ;;  %9013 = vrsqrt.f32 %v7027_v12  ;;  %v16622_v56 = vrot.slane %v7974_v2, %v19421_v62  ;;  %v19879_v12 = vld [vmem:[#allocation161_spill] sm:$0xff]  ;;  %v19883_v39 = vld [vmem:[#allocation139_spill] sm:$0xff] }
 0x713   :  { %v7966_v17 = vcombine.low %v7399_v18, %v7401_v37  ;;  %v7965_v18 = vrot.slane %v7958_v9, %v19384_v16  ;;  %v7030_v44 = vadd.f32 1e-05, %v6902_v3  ;;  %v6901_v14 = vsub.f32 %v6645_v55, %v16266_v19  ;;  %v9002_v0 = vpop.eup %9001  ;;  %v6339_v51 = vpop.xlane.xlu0 %6338  ;;  %v19880_v3 = vld [vmem:[#allocation214_spill] sm:$0xff]  ;;  %v19886_v13 = vld [vmem:[#allocation303_spill] sm:$0xff] }
 0x714   :  { %19874 = vst [vmem:[#allocation34_spill] sm:$0xff] %v16622_v56  ;;  %v6904_v6 = vsub.f32 %v6648_v38, %v16345_v59  ;;  %v6647_v7 = vmul.f32 0.03125, %v6339_v51  ;;  %v9004_v19 = vpop.eup %9003  ;;  %v6348_v11 = vpop.xlane.xlu1 %6347  ;;  %v19881_v55 = vsub.f32 %v19879_v12, %v19880_v3  ;;  %v19885_v38 = vld [vmem:[#allocation77_spill] sm:$0xff]  ;;  %v16657_v3 = vmul.f32 %v16615_v49, %v16615_v49 }
 0x715   :  { %v7973_v37 = vrot.slane %v7966_v17, %v19384_v16  ;;  %v7029_v48 = vadd.f32 1e-05, %v6901_v14  ;;  %v19877_v17 = vsub.f32 %v19875_v53, %v19876_v28  ;;  %9015 = vrsqrt.f32 %v7030_v44 }
 0x716   :  { %v7405_v2 = vmul.f32 %v9002_v0, %v19881_v55  ;;  %v7032_v59 = vadd.f32 1e-05, %v6904_v6  ;;  %v6903_v50 = vsub.f32 %v6647_v7, %v16352_v21  ;;  %v6650_v14 = vmul.f32 0.03125, %v6348_v11  ;;  %v19888_v11 = vld [vmem:[#allocation96_spill] sm:$0xff] }
 0x717   :  { %v7982_v9 = vcombine.low %v7965_v18, %v7973_v37  ;;  %v7403_v32 = vmul.f32 %v8998_v8, %v19877_v17  ;;  %v19884_v18 = vsub.f32 %v19882_v15, %v19883_v39  ;;  %9017 = vrsqrt.f32 %v7029_v48  ;;  %v6345_v8 = vpop.xlane.xlu0 %6344  ;;  %v19889_v15 = vld [vmem:[#allocation176_spill] sm:$0xff]  ;;  %v19895_v39 = vld [vmem:[#allocation74_spill] sm:$0xff] }
 0x718   :  { %v19887_v51 = vsub.f32 %v19885_v38, %v19886_v13  ;;  %9019 = vrsqrt.f32 %v7032_v59  ;;  %v6906_v21 = vsub.f32 %v6650_v14, %v16358_v42  ;;  %v6649_v48 = vmul.f32 0.03125, %v6345_v8  ;;  %v6354_v7 = vpop.xlane.xlu1 %6353  ;;  %v19890_v14 = vld [vmem:[#allocation221_spill] sm:$0xff] }
 0x719   :  { %v16629_v35 = vrot.slane %v7982_v9, %v19421_v62  ;;  %v7406_v37 = vmul.f32 %v9000_v60, %v19884_v18  ;;  %v8000_v53 = vcombine.low %v7403_v32, %v7405_v2  ;;  %v16647_v60 = vmul.f32 %v16610_v43, %v16610_v43 }
 0x71a   :  { %v7408_v9 = vmul.f32 %v9004_v19, %v19887_v51  ;;  %v7031_v6 = vadd.f32 1e-05, %v6903_v50  ;;  %v7999_v28 = vrot.slane %v7992_v45, %v19384_v16  ;;  %v9006_v19 = vpop.eup %9005  ;;  %v6905_v42 = vsub.f32 %v6649_v48, %v16416_v30  ;;  %v19891_v51 = vld [vmem:[#allocation308_spill] sm:$0xff]  ;;  %v19892_v48 = vld [vmem:[#allocation119_spill] sm:$0xff] }
 0x71b   :  { %19878 = vst [vmem:[#allocation312_spill] sm:$0xff] %v16629_v35  ;;  %v7991_v44 = vcombine.high %v16622_v56, %v16629_v35  ;;  %v8007_v17 = vrot.slane %v8000_v53, %v19384_v16  ;;  %v6652_v55 = vmul.f32 0.03125, %v6354_v7  ;;  %v9008_v2 = vpop.eup %9007  ;;  %v16664_v45 = vmul.f32 %v16619_v1, %v16619_v1  ;;  %v19893_v7 = vld [vmem:[#allocation113_spill] sm:$0xff]  ;;  %v19899_v35 = vld [vmem:[#allocation304_spill] sm:$0xff] }
 0x71c   :  { %v8008_v32 = vcombine.low %v7406_v37, %v7408_v9  ;;  %v7034_v18 = vadd.f32 1e-05, %v6906_v21  ;;  %v6351_v37 = vpop.xlane.xlu0 %6350  ;;  %v9010_v50 = vpop.eup %9009  ;;  %v16670_v9 = vmul.f32 0.03125, %v19891_v51  ;;  %9021 = vrsqrt.f32 %v7031_v6  ;;  %v19898_v51 = vld [vmem:[#allocation203_spill] sm:$0xff] }
 0x71d   :  { %8278 = vrot.lane.b32.xlu0 %v7991_v44, %s9164_s1  ;;  %v8024_v59 = vcombine.low %v7999_v28, %v8007_v17  ;;  %v7033_v44 = vadd.f32 1e-05, %v6905_v42  ;;  %v6908_v38 = vsub.f32 %v6652_v55, %v16426_v36  ;;  %v6651_v30 = vmul.f32 0.03125, %v6351_v37  ;;  %v9012_v13 = vpop.eup %9011  ;;  %v6360_v53 = vpop.xlane.xlu1 %6359  ;;  %v19896_v28 = vld [vmem:[#allocation260_spill] sm:$0xff] }
 0x71e   :  { %v19894_v0 = vsub.f32 %v19892_v48, %v19893_v7  ;;  %v19897_v17 = vsub.f32 %v19895_v39, %v19896_v28  ;;  %v6654_v36 = vmul.f32 0.03125, %v6360_v53  ;;  %v19900_v6 = vsub.f32 %v19898_v51, %v19899_v35  ;;  %v19903_v53 = vld [vmem:[#allocation314_spill] sm:$0xff] }
 0x71f   :  { %9023 = vrsqrt.f32 %v7033_v44  ;;  %v7036_v8 = vadd.f32 1e-05, %v6908_v38  ;;  %v6907_v42 = vsub.f32 %v6651_v30, %v16433_v33  ;;  %v19901_v48 = vsub.f32 %v19696_v52, %v16184_v46  ;;  %v19902_v30 = vld [vmem:[#allocation311_spill] sm:$0xff] }
 0x720   :  { %v7407_v21 = vmul.f32 %v9006_v19, %v19894_v0  ;;  %v7409_v12 = vmul.f32 %v9008_v2, %v19897_v17  ;;  %9025 = vrsqrt.f32 %v7034_v18  ;;  %v6357_v55 = vpop.xlane.xlu0 %6356  ;;  %v7410_v56 = vmul.f32 %v9010_v50, %v19900_v6  ;;  %v9014_v19 = vpop.eup %9013 }
 0x721   :  { %v7412_v0 = vmul.f32 %v9012_v13, %v19901_v48  ;;  %9027 = vrsqrt.f32 %v7036_v8  ;;  %v7035_v39 = vadd.f32 1e-05, %v6907_v42  ;;  %v6910_v2 = vsub.f32 %v6654_v36, %v16457_v25  ;;  %v6366_v18 = vpop.xlane.xlu1 %6365  ;;  %v19906_v48 = vld [vmem:[#allocation179_spill] sm:$0xff] }
 0x722   :  { %v8016_v37 = vcombine.low %v7407_v21, %v7409_v12  ;;  %v6653_v44 = vmul.f32 0.03125, %v6357_v55  ;;  %v16688_v33 = vmul.f32 %v16670_v9, %v16670_v9  ;;  %v8015_v12 = vrot.slane %v8008_v32, %v19384_v16  ;;  %v9016_v38 = vpop.eup %9015 }
 0x723   :  { %v8042_v50 = vcombine.low %v7410_v56, %v7412_v0  ;;  %v16693_v46 = vmul.f32 0.03125, %v19902_v30  ;;  %v7038_v52 = vadd.f32 1e-05, %v6910_v2  ;;  %v6656_v13 = vmul.f32 0.03125, %v6366_v18  ;;  %v19907_v0 = vld [vmem:[#allocation262_spill] sm:$0xff] }
 0x724   :  { %v8023_v35 = vrot.slane %v8016_v37, %v19384_v16  ;;  %v6909_v8 = vsub.f32 %v6653_v44, %v16503_v63  ;;  %v9018_v25 = vpop.eup %9017  ;;  %v16697_v7 = vmul.f32 0.03125, %v19903_v53  ;;  %v6363_v21 = vpop.xlane.xlu0 %6362  ;;  %v16700_v28 = vrot.slane %v8024_v59, %v19421_v62  ;;  %v19911_v53 = vld [vmem:[#allocation27_spill] sm:$0xff] }
 0x725   :  { %v19904_v56 = vsub.f32 %v19697_v20, %v16208_v4  ;;  %9029 = vrsqrt.f32 %v7035_v39  ;;  %v6912_v36 = vsub.f32 %v6656_v13, %v16510_v23  ;;  %v6655_v55 = vmul.f32 0.03125, %v6363_v21  ;;  %v9020_v63 = vpop.eup %9019  ;;  %v6372_v37 = vpop.xlane.xlu1 %6371 }
 0x726   :  { %v8032_v32 = vcombine.low %v8015_v12, %v8023_v35  ;;  %v7037_v42 = vadd.f32 1e-05, %v6909_v8  ;;  %9031 = vrsqrt.f32 %v7038_v52  ;;  %v19905_v59 = vsub.f32 %v19713_v40, %v16239_v58  ;;  %v19910_v40 = vld [vmem:[#allocation317_spill] sm:$0xff] }
 0x727   :  { %v7411_v17 = vmul.f32 %v9014_v19, %v19904_v56  ;;  %v19908_v2 = vsub.f32 %v19906_v48, %v19907_v0  ;;  %v7040_v20 = vadd.f32 1e-05, %v6912_v36  ;;  %v6911_v19 = vsub.f32 %v6655_v55, %v16517_v10 }
 0x728   :  { %v16707_v51 = vrot.slane %v8032_v32, %v19421_v62  ;;  %v7413_v6 = vmul.f32 %v9018_v25, %v19905_v59  ;;  %9033 = vrsqrt.f32 %v7037_v42  ;;  %v6658_v23 = vmul.f32 0.03125, %v6372_v37  ;;  %v6369_v39 = vpop.xlane.xlu0 %6368  ;;  %v19912_v42 = vld [vmem:[#allocation93_spill] sm:$0xff] }
 0x729   :  { %v7414_v4 = vmul.f32 %v9016_v38, %v19908_v2  ;;  %v19909_v18 = vsub.f32 %v19735_v31, %v16295_v24  ;;  %v16724_v30 = vmul.f32 0.03125, %v19910_v40  ;;  %9035 = vrsqrt.f32 %v7040_v20  ;;  %v6378_v8 = vpop.xlane.xlu1 %6377  ;;  %v9022_v25 = vpop.eup %9021 }
 0x72a   :  { %v8041_v44 = vcombine.high %v16700_v28, %v16707_v51  ;;  %v8050_v35 = vcombine.low %v7411_v17, %v7413_v6  ;;  %v8040_v58 = vcombine.low %v16700_v28, %v16707_v51  ;;  %v6914_v38 = vsub.f32 %v6658_v23, %v16577_v41 }
 0x72b   :  { %v7416_v12 = vmul.f32 %v9020_v63, %v19909_v18  ;;  %v6657_v10 = vmul.f32 0.03125, %v6369_v39  ;;  %v7039_v52 = vadd.f32 1e-05, %v6911_v19  ;;  %v8049_v13 = vrot.slane %v8042_v50, %v19384_v16 }
 0x72c   :  { %8280 = vrot.lane.b32.xlu1 %v8041_v44, %s9164_s1  ;;  %v8057_v24 = vrot.slane %v8050_v35, %v19384_v16  ;;  %v7304_v21 = vsub.f32 %v19911_v53, %v16670_v9  ;;  %v16734_v32 = vmul.f32 %v16693_v46, %v16693_v46  ;;  %v6660_v56 = vmul.f32 0.03125, %v6378_v8  ;;  %v9024_v17 = vpop.eup %9023  ;;  %v6375_v63 = vpop.xlane.xlu0 %6374 }
 0x72d   :  { %v8058_v31 = vcombine.low %v7414_v4, %v7416_v12  ;;  %v6913_v41 = vsub.f32 %v6657_v10, %v16584_v29  ;;  %v7303_v36 = vsub.f32 %v19912_v42, %v16693_v46  ;;  %v16741_v50 = vmul.f32 %v16697_v7, %v16697_v7  ;;  %v9026_v59 = vpop.eup %9025  ;;  %v19913_v4 = vld [vmem:[#allocation94_spill] sm:$0xff]  ;;  %v6384_v19 = vpop.xlane.xlu1 %6383  ;;  %v19964_v46 = vld [vmem:[#allocation151_spill] sm:$0xff] }
 0x72e   :  { %v7042_v55 = vadd.f32 1e-05, %v6914_v38  ;;  %v8074_v37 = vcombine.low %v8049_v13, %v8057_v24  ;;  %v16745_v6 = vmul.f32 %v16724_v30, %v16724_v30  ;;  %v6916_v29 = vsub.f32 %v6660_v56, %v16590_v5  ;;  %v9028_v2 = vpop.eup %9027  ;;  %v19918_v24 = vld [vmem:[#allocation321_spill] sm:$0xff] }
 0x72f   :  { %v7041_v48 = vadd.f32 1e-05, %v6913_v41  ;;  %v6659_v0 = vmul.f32 0.03125, %v6375_v63  ;;  %v16749_v20 = vmul.f32 0.03125, %v19913_v4  ;;  %9037 = vrsqrt.f32 %v7039_v52 }
 0x730   :  { %v19914_v23 = vsub.f32 %v19736_v26, %v16299_v61  ;;  %v19915_v44 = vsub.f32 %v19766_v47, %v16379_v22  ;;  %v7044_v12 = vadd.f32 1e-05, %v6916_v29  ;;  %v6662_v5 = vmul.f32 0.03125, %v6384_v19  ;;  %v6381_v40 = vpop.xlane.xlu0 %6380 }
 0x731   :  { %9039 = vrsqrt.f32 %v7041_v48  ;;  %v6915_v35 = vsub.f32 %v6659_v0, %v16647_v60  ;;  %v19916_v10 = vsub.f32 %v19737_v34, %v16334_v27  ;;  %v19917_v61 = vsub.f32 %v19767_v57, %v16384_v54 }
 0x732   :  { %v7415_v39 = vmul.f32 %v9022_v25, %v19914_v23  ;;  %v7417_v18 = vmul.f32 %v9024_v17, %v19915_v44  ;;  %9041 = vrsqrt.f32 %v7042_v55  ;;  %v6918_v22 = vsub.f32 %v6662_v5, %v16657_v3  ;;  %v9030_v13 = vpop.eup %9029  ;;  %v6390_v25 = vpop.xlane.xlu1 %6389  ;;  %v19919_v17 = vld [vmem:[#allocation324_spill] sm:$0xff]  ;;  %v19921_v23 = vld [vmem:[#allocation177_spill] sm:$0xff] }
 0x733   :  { %v7418_v52 = vmul.f32 %v9026_v59, %v19916_v10  ;;  %v7420_v26 = vmul.f32 %v9028_v2, %v19917_v61  ;;  %9043 = vrsqrt.f32 %v7044_v12  ;;  %v7043_v8 = vadd.f32 1e-05, %v6915_v35  ;;  %v9032_v34 = vpop.eup %9031  ;;  %v19920_v59 = vld [vmem:[#allocation326_spill] sm:$0xff]  ;;  %v19924_v5 = vld [vmem:[#allocation201_spill] sm:$0xff] }
 0x734   :  { %v8066_v38 = vcombine.low %v7415_v39, %v7417_v18  ;;  %v6661_v47 = vmul.f32 0.03125, %v6381_v40  ;;  %v16766_v60 = vmul.f32 0.03125, %v19918_v24  ;;  %v8065_v41 = vrot.slane %v8058_v31, %v19384_v16  ;;  %v6387_v29 = vpop.xlane.xlu0 %6386  ;;  %v19922_v39 = vld [vmem:[#allocation51_spill] sm:$0xff]  ;;  %v19927_v10 = vld [vmem:[#allocation101_spill] sm:$0xff] }
 0x735   :  { %v8092_v27 = vcombine.low %v7418_v52, %v7420_v26  ;;  %v16771_v55 = vmul.f32 0.03125, %v19919_v17  ;;  %v7046_v54 = vadd.f32 1e-05, %v6918_v22  ;;  %v6664_v63 = vmul.f32 0.03125, %v6390_v25  ;;  %v9034_v3 = vpop.eup %9033  ;;  %v19925_v40 = vld [vmem:[#allocation215_spill] sm:$0xff]  ;;  %v19928_v52 = vld [vmem:[#allocation264_spill] sm:$0xff] }
 0x736   :  { %v8073_v56 = vrot.slane %v8066_v38, %v19384_v16  ;;  %v6917_v57 = vsub.f32 %v6661_v47, %v16664_v45  ;;  %v16775_v48 = vmul.f32 0.03125, %v19920_v59  ;;  %9045 = vrsqrt.f32 %v7043_v8  ;;  %v9036_v45 = vpop.eup %9035  ;;  %v6396_v12 = vpop.xlane.xlu1 %6395  ;;  %v19930_v24 = vld [vmem:[#allocation183_spill] sm:$0xff]  ;;  %v19931_v25 = vld [vmem:[#allocation149_spill] sm:$0xff] }
 0x737   :  { %v16778_v0 = vrot.slane %v8074_v37, %v19421_v62  ;;  %v6920_v4 = vsub.f32 %v6664_v63, %v16688_v33  ;;  %v6663_v19 = vmul.f32 0.03125, %v6387_v29  ;;  %v19923_v44 = vsub.f32 %v19921_v23, %v19922_v39 }
 0x738   :  { %v8082_v31 = vcombine.low %v8065_v41, %v8073_v56  ;;  %v7045_v2 = vadd.f32 1e-05, %v6917_v57  ;;  %9047 = vrsqrt.f32 %v7046_v54  ;;  %v19926_v38 = vsub.f32 %v19924_v5, %v19925_v40  ;;  %v6393_v47 = vpop.xlane.xlu0 %6392  ;;  %v19933_v5 = vld [vmem:[#allocation11_spill] sm:$0xff] }
 0x739   :  { %v7419_v18 = vmul.f32 %v9030_v13, %v19923_v44  ;;  %v19929_v61 = vsub.f32 %v19927_v10, %v19928_v52  ;;  %v7048_v33 = vadd.f32 1e-05, %v6920_v4  ;;  %v6919_v8 = vsub.f32 %v6663_v19, %v16734_v32 }
 0x73a   :  { %v16785_v35 = vrot.slane %v8082_v31, %v19421_v62  ;;  %v7421_v37 = vmul.f32 %v9034_v3, %v19926_v38  ;;  %9049 = vrsqrt.f32 %v7045_v2  ;;  %v6666_v22 = vmul.f32 0.03125, %v6396_v12  ;;  %v6402_v3 = vpop.xlane.xlu1 %6401 }
 0x73b   :  { %v7422_v26 = vmul.f32 %v9032_v34, %v19929_v61  ;;  %v19932_v41 = vsub.f32 %v19930_v24, %v19931_v25  ;;  %9051 = vrsqrt.f32 %v7048_v33  ;;  %v7047_v57 = vadd.f32 1e-05, %v6919_v8  ;;  %v19935_v33 = vld [vmem:[#allocation20_spill] sm:$0xff]  ;;  %v19936_v8 = vld [vmem:[#allocation187_spill] sm:$0xff] }
 0x73c   :  { %v8091_v13 = vcombine.high %v16778_v0, %v16785_v35  ;;  %v8100_v17 = vcombine.low %v7419_v18, %v7421_v37  ;;  %v8090_v54 = vcombine.low %v16778_v0, %v16785_v35  ;;  %v6922_v34 = vsub.f32 %v6666_v22, %v16741_v50  ;;  %v9038_v2 = vpop.eup %9037  ;;  %v19939_v24 = vld [vmem:[#allocation152_spill] sm:$0xff] }
 0x73d   :  { %v7424_v56 = vmul.f32 %v9036_v45, %v19932_v41  ;;  %v6665_v63 = vmul.f32 0.03125, %v6393_v47  ;;  %v6796_v32 = vmul.f32 %v16749_v20, %v16749_v20  ;;  %v8099_v59 = vrot.slane %v8092_v27, %v19384_v16  ;;  %v6399_v27 = vpop.xlane.xlu0 %6398 }
 0x73e   :  { %8282 = vrot.lane.b32.xlu0 %v8091_v13, %s9164_s1  ;;  %v8107_v29 = vrot.slane %v8100_v17, %v19384_v16  ;;  %v6795_v4 = vmul.f32 %v16766_v60, %v16766_v60  ;;  %v7050_v19 = vadd.f32 1e-05, %v6922_v34  ;;  %v6668_v50 = vmul.f32 0.03125, %v6402_v3  ;;  %v9040_v39 = vpop.eup %9039  ;;  %v19938_v13 = vld [vmem:[#allocation18_spill] sm:$0xff]  ;;  %v19941_v34 = vld [vmem:[#allocation337_spill] sm:$0xff] }
 0x73f   :  { %v8108_v31 = vcombine.low %v7422_v26, %v7424_v56  ;;  %v6921_v23 = vsub.f32 %v6665_v63, %v16745_v6  ;;  %v6798_v44 = vmul.f32 %v16771_v55, %v16771_v55  ;;  %v6797_v18 = vmul.f32 %v16775_v48, %v16775_v48  ;;  %v9042_v12 = vpop.eup %9041  ;;  %v19934_v6 = vld [vmem:[#allocation332_spill] sm:$0xff]  ;;  %v6408_v26 = vpop.xlane.xlu1 %6407 }
 0x740   :  { %9053 = vrsqrt.f32 %v7047_v57  ;;  %v8124_v45 = vcombine.low %v8099_v59, %v8107_v29  ;;  %v16815_v40 = vmul.f32 0.03125, %v19933_v5  ;;  %v6924_v37 = vsub.f32 %v6668_v50, %v6796_v32  ;;  %v9044_v52 = vpop.eup %9043  ;;  %v19942_v59 = vld [vmem:[#allocation125_spill] sm:$0xff]  ;;  %v19945_v50 = vld [vmem:[#allocation95_spill] sm:$0xff] }
 0x741   :  { %v7049_v38 = vadd.f32 1e-05, %v6921_v23  ;;  %v6667_v10 = vmul.f32 0.03125, %v6399_v27  ;;  %v16818_v61 = vmul.f32 0.03125, %v19934_v6  ;;  %9055 = vrsqrt.f32 %v7050_v19  ;;  %v6405_v32 = vpop.xlane.xlu0 %6404  ;;  %v19943_v29 = vld [vmem:[#allocation153_spill] sm:$0xff]  ;;  %v19946_v27 = vld [vmem:[#allocation24_spill] sm:$0xff] }
 0x742   :  { %v19937_v22 = vsub.f32 %v19935_v33, %v19936_v8  ;;  %v19940_v25 = vsub.f32 %v19938_v13, %v19939_v24  ;;  %v7052_v56 = vadd.f32 1e-05, %v6924_v37  ;;  %v6670_v57 = vmul.f32 0.03125, %v6408_v26 }
 0x743   :  { %9057 = vrsqrt.f32 %v7049_v38  ;;  %v6923_v17 = vsub.f32 %v6667_v10, %v6795_v4  ;;  %v16827_v63 = vmul.f32 0.03125, %v19941_v34  ;;  %v19944_v19 = vsub.f32 %v19942_v59, %v19943_v29  ;;  %v9046_v6 = vpop.eup %9045  ;;  %v6414_v10 = vpop.xlane.xlu1 %6413 }
 0x744   :  { %v7423_v47 = vmul.f32 %v9038_v2, %v19937_v22  ;;  %v7425_v41 = vmul.f32 %v9040_v39, %v19940_v25  ;;  %v19947_v2 = vsub.f32 %v19945_v50, %v19946_v27  ;;  %9059 = vrsqrt.f32 %v7052_v56  ;;  %v19951_v50 = vld [vmem:[#allocation250_spill] sm:$0xff]  ;;  %v19952_v27 = vld [vmem:[#allocation17_spill] sm:$0xff] }
 0x745   :  { %v7426_v23 = vmul.f32 %v9042_v12, %v19944_v19  ;;  %v7051_v39 = vadd.f32 1e-05, %v6923_v17  ;;  %v6926_v38 = vsub.f32 %v6670_v57, %v6798_v44  ;;  %v6669_v37 = vmul.f32 0.03125, %v6405_v32  ;;  %v9048_v22 = vpop.eup %9047  ;;  %v6411_v25 = vpop.xlane.xlu0 %6410 }
 0x746   :  { %v8116_v3 = vcombine.low %v7423_v47, %v7425_v41  ;;  %v7428_v5 = vmul.f32 %v9044_v52, %v19947_v2  ;;  %v6800_v4 = vmul.f32 %v16815_v40, %v16815_v40  ;;  %v8115_v26 = vrot.slane %v8108_v31, %v19384_v16 }
 0x747   :  { %v6799_v12 = vmul.f32 %v16818_v61, %v16818_v61  ;;  %v7054_v47 = vadd.f32 1e-05, %v6926_v38  ;;  %v6925_v52 = vsub.f32 %v6669_v37, %v6797_v18  ;;  %v6672_v13 = vmul.f32 0.03125, %v6414_v10  ;;  %v9050_v24 = vpop.eup %9049  ;;  %v8259_v18 = vpop.permute.xlu1 %8258 }
 0x748   :  { %v8123_v33 = vrot.slane %v8116_v3, %v19384_v16  ;;  %v8142_v8 = vcombine.low %v7426_v23, %v7428_v5  ;;  %v6801_v44 = vmul.f32 %v16827_v63, %v16827_v63  ;;  %v16844_v41 = vrot.slane %v8124_v45, %v19421_v62  ;;  %v9052_v3 = vpop.eup %9051 }
 0x749   :  { %v19948_v31 = vsub.f32 %v19888_v11, %v16610_v43  ;;  %9061 = vrsqrt.f32 %v7051_v39  ;;  %v7053_v57 = vadd.f32 1e-05, %v6925_v52  ;;  %v6928_v34 = vsub.f32 %v6672_v13, %v6800_v4  ;;  %v19955_v52 = vld [vmem:[#allocation19_spill] sm:$0xff] }
 0x74a   :  { %v8132_v56 = vcombine.low %v8115_v26, %v8123_v33  ;;  %v6671_v32 = vmul.f32 0.03125, %v6411_v25  ;;  %9063 = vrsqrt.f32 %v7054_v47  ;;  %v19949_v29 = vsub.f32 %v19890_v14, %v16619_v1  ;;  %v6417_v14 = vpop.xlane.xlu0 %6416  ;;  %v16877_v26 = vld [vmem:[%s17034_s3] ss:$0 sm:$0xff]  ;;  %v19954_v47 = vld [vmem:[#allocation89_spill] sm:$0xff]  ;;  %s9165_s3 = smov [#allocation7]  }
 0x74b   :  { %v7427_v17 = vmul.f32 %v9046_v6, %v19948_v31  ;;  %v19950_v19 = vsub.f32 %v19889_v15, %v16615_v49  ;;  %9065 = vrsqrt.f32 %v7053_v57  ;;  %v7056_v43 = vadd.f32 1e-05, %v6928_v34  ;;  %v16865_v6 = vld [vmem:[%s17033_s2] ss:$0 sm:$0xff]  ;;  %v19956_v25 = vld [vmem:[#allocation301_spill] sm:$0xff]  ;;  %v19959_v34 = vld [vmem:[#allocation226_spill] sm:$0xff] }
 0x74c   :  { %v16850_v59 = vrot.slane %v8132_v56, %v19421_v62  ;;  %v7429_v45 = vmul.f32 %v9050_v24, %v19949_v29  ;;  %v6927_v11 = vsub.f32 %v6671_v32, %v6799_v12  ;;  %v19953_v2 = vcombine.low %v19951_v50, %v19952_v27  ;;  %v19957_v56 = vld [vmem:[#allocation257_spill] sm:$0xff]  ;;  %s8376_s8 = sshll.u32 %s9165_s3, 4  ;;  %s8377_s8 = int_to_ptr.vmem [resolvable:$true] %s8376_s8 }
 0x74d   :  { %v7430_v23 = vmul.f32 %v9048_v22, %v19950_v19  ;;  %v7432_v15 = vmul.f32 %v9052_v3, %v7304_v21  ;;  %v9054_v38 = vpop.eup %9053  ;;  %9067 = vrsqrt.f32 %v7056_v43  ;;  %v6673_v4 = vmul.f32 0.03125, %v6417_v14  ;;  %v8263_v22 = vpop.permute.xlu1 %8262  ;;  %v19960_v29 = vld [vmem:[#allocation73_spill] sm:$0xff]  ;;  %s9130_s9 = scalar_lea.vmem %s8377_s8, 4096  ;;  %p9135_p11 = scmp.lt.s32.totalorder %s8377_s8, %s8377_s8 }
 0x74e   :  { %v8306_v5 = vsel %vm4171_vm2, %v19953_v2, %v8259_v18  ;;  %v8141_v49 = vcombine.high %v16844_v41, %v16850_v59  ;;  %v8150_v39 = vcombine.low %v7427_v17, %v7429_v45  ;;  %v7055_v37 = vadd.f32 1e-05, %v6927_v11  ;;  %v9056_v12 = vpop.eup %9055  ;;  %v8261_v18 = vpop.permute.xlu0 %8260  ;;  %v19961_v45 = vld [vmem:[#allocation49_spill] sm:$0xff]  ;;  %p9131_p10 = scmp.ne.s32.totalorder %s8377_s8, %s9130_s9  ;;  %p9136_p12 = scmp.lt.s32.totalorder %s9130_s9, %s9130_s9 }
 0x74f   :  { %v8322_v1 = vmul.f32 %v16865_v6, %v8306_v5  ;;  %v8149_v10 = vrot.slane %v8142_v8, %v19384_v16  ;;  %v8158_v53 = vcombine.low %v7430_v23, %v7432_v15  ;;  %v8140_v21 = vcombine.low %v16844_v41, %v16850_v59  ;;  %v19963_v5 = vld [vmem:[#allocation79_spill] sm:$0xff] }
 0x750   :  { %8284 = vrot.lane.b32.xlu1 %v8141_v49, %s9164_s1  ;;  %v8157_v9 = vrot.slane %v8150_v39, %v19384_v16  ;;  %v7306_v8 = vsub.f32 %v19954_v47, %v16697_v7  ;;  %v7305_v13 = vsub.f32 %v19955_v52, %v16724_v30  ;;  %v6929_v24 = vsub.f32 %v6673_v4, %v6801_v44  ;;  %v9058_v57 = vpop.eup %9057  ;;  %v19969_v47 = vld [vmem:[#allocation225_spill] sm:$0xff]  ;;  %p9137_p13 = por %p9136_p12, %p9135_p11 }
 0x751   :  { %v8338_v33 = vadd.f32 %v16877_v26, %v8322_v1  ;;  %v19958_v31 = vcombine.low %v19956_v25, %v19957_v56  ;;  %v7308_v32 = vsub.f32 %v19959_v34, %v16749_v20  ;;  %v7431_v7 = vmul.f32 %v9054_v38, %v7303_v36  ;;  %v9060_v11 = vpop.eup %9059  ;;  %v8265_v27 = vpop.permute.xlu1 %8264  ;;  %v19966_v38 = vld [vmem:[#allocation112_spill] sm:$0xff]  ;;  %v19970_v56 = vld [vmem:[#allocation43_spill] sm:$0xff] }
 0x752   :  { %v8174_v30 = vcombine.low %v8149_v10, %v8157_v9  ;;  %9069 = vrsqrt.f32 %v7055_v37  ;;  %v7057_v44 = vadd.f32 1e-05, %v6929_v24  ;;  %v19962_v19 = vcombine.low %v19960_v29, %v19961_v45  ;;  %v8267_v39 = vpop.permute.xlu0 %8266  ;;  %v19967_v37 = vld [vmem:[#allocation197_spill] sm:$0xff]  ;;  %v19973_v34 = vld [vmem:[#allocation164_spill] sm:$0xff]  ;;  %p9138_p0 = pnand %p9137_p13, %p9131_p10 }
 0x753   :  { %v8308_v17 = vsel %vm4171_vm2, %v19958_v31, %v8263_v22  ;;  %8355 = vst.msk [vmem:[#allocation7 + $0x8] sm:$0xff] %vm72_vm0, %v8338_v33  ;;  %v7433_v43 = vmul.f32 %v9058_v57, %v7305_v13  ;;  %v7434_v2 = vmul.f32 %v9056_v12, %v7306_v8  ;;  %v19965_v42 = vcombine.low %v19963_v5, %v19964_v46  ;;  %v19972_v57 = vld [vmem:[#allocation12_spill] sm:$0xff] }
 0x754   :  { %v8324_v3 = vmul.f32 %v16865_v6, %v8308_v17  ;;  %v8307_v23 = vsel %vm4171_vm2, %v19962_v19, %v8261_v18  ;;  %9071 = vrsqrt.f32 %v7057_v44  ;;  %v7436_v14 = vmul.f32 %v9060_v11, %v7308_v32 }
 0x755   :  { %v8323_v50 = vmul.f32 %v16865_v6, %v8307_v23  ;;  %v8309_v36 = vsel %vm4171_vm2, %v19965_v42, %v8265_v27  ;;  %v8166_v1 = vcombine.low %v7431_v7, %v7433_v43  ;;  %v19968_v4 = vcombine.low %v19966_v38, %v19967_v37  ;;  %v8269_v24 = vpop.permute.xlu1 %8268  ;;  %v19975_v7 = vld [vmem:[#allocation45_spill] sm:$0xff]  ;;  %v19977_v23 = vld [vmem:[#allocation142_spill] sm:$0xff]  ;;  %v19979_v37 = vld [vmem:[#allocation104_spill] sm:$0xff] }
 0x756   :  { %v8340_v20 = vadd.f32 %v16877_v26, %v8324_v3  ;;  %v8325_v15 = vmul.f32 %v16865_v6, %v8309_v36  ;;  %v8165_v33 = vrot.slane %v8158_v53, %v19384_v16  ;;  %v8192_v9 = vcombine.low %v7434_v2, %v7436_v14  ;;  %v9062_v12 = vpop.eup %9061  ;;  %v19971_v53 = vld [vmem:[#allocation205_spill] sm:$0xff] }
 0x757   :  { %v8339_v49 = vadd.f32 %v16877_v26, %v8323_v50  ;;  %v8310_v10 = vsel %vm4171_vm2, %v19968_v4, %v8267_v39  ;;  %v8173_v22 = vrot.slane %v8166_v1, %v19384_v16  ;;  %v7307_v8 = vsub.f32 %v19969_v47, %v16766_v60  ;;  %v9064_v25 = vpop.eup %9063 }
 0x758   :  { %8357 = vst.msk [vmem:[#allocation7 + $0x28] sm:$0xff] %vm72_vm0, %v8340_v20  ;;  %v8341_v52 = vadd.f32 %v16877_v26, %v8325_v15  ;;  %v8326_v13 = vmul.f32 %v16865_v6, %v8310_v10  ;;  %v7310_v31 = vsub.f32 %v19970_v56, %v16771_v55  ;;  %v7309_v17 = vsub.f32 %v19971_v53, %v16775_v48  ;;  %v9066_v18 = vpop.eup %9065  ;;  %v8271_v55 = vpop.permute.xlu0 %8270  ;;  %v19976_v48 = vld [vmem:[#allocation102_spill] sm:$0xff] }
 0x759   :  { %8356 = vst.msk [vmem:[#allocation7 + $0x18] sm:$0xff] %vm72_vm0, %v8339_v49  ;;  %v19974_v32 = vcombine.low %v19972_v57, %v19973_v34  ;;  %v8182_v60 = vcombine.low %v8165_v33, %v8173_v22  ;;  %v7312_v44 = vsub.f32 %v19975_v7, %v16815_v40  ;;  %v16937_v19 = vrot.slane %v8174_v30, %v19421_v62  ;;  %v19980_v10 = vld [vmem:[#allocation30_spill] sm:$0xff]  ;;  %v19985_v7 = vld [vmem:[#allocation265_spill] sm:$0xff] }
 0x75a   :  { %8358 = vst.msk [vmem:[#allocation7 + $0x38] sm:$0xff] %vm72_vm0, %v8341_v52  ;;  %v8342_v29 = vadd.f32 %v16877_v26, %v8326_v13  ;;  %v19978_v43 = vcombine.low %v19976_v48, %v19977_v23  ;;  %v7435_v50 = vmul.f32 %v9062_v12, %v7307_v8  ;;  %v7437_v40 = vmul.f32 %v9066_v18, %v7309_v17  ;;  %v9068_v27 = vpop.eup %9067  ;;  %v8273_v47 = vpop.permute.xlu1 %8272  ;;  %v19981_v8 = vld [vmem:[#allocation67_spill] sm:$0xff]  ;;  %v19984_v18 = vld [vmem:[#allocation309_spill] sm:$0xff]  ;;  %v19988_v48 = vld [vmem:[#allocation266_spill] sm:$0xff] }
 0x75b   :  { %v8311_v3 = vsel %vm4171_vm2, %v19974_v32, %v8269_v24  ;;  %v16944_v20 = vrot.slane %v8182_v60, %v19421_v62  ;;  %v7438_v46 = vmul.f32 %v9064_v25, %v7310_v31  ;;  %v7440_v42 = vmul.f32 %v9068_v27, %v7312_v44  ;;  %v19982_v52 = vld [vmem:[#allocation307_spill] sm:$0xff] }
 0x75c   :  { %v8327_v45 = vmul.f32 %v16865_v6, %v8311_v3  ;;  %v8312_v11 = vsel %vm4171_vm2, %v19978_v43, %v8271_v55  ;;  %8359 = vst.msk [vmem:[#allocation7 + $0x48] sm:$0xff] %vm72_vm0, %v8342_v29  ;;  %v8200_v36 = vcombine.low %v7435_v50, %v7437_v40  ;;  %v8199_v49 = vrot.slane %v8192_v9, %v19384_v16  ;;  %v19990_v50 = vld [vmem:[#allocation34_spill] sm:$0xff]  ;;  %v19991_v40 = vld [vmem:[#allocation312_spill] sm:$0xff] }
 0x75d   :  { %v8328_v5 = vmul.f32 %v16865_v6, %v8312_v11  ;;  %v8191_v30 = vcombine.high %v16937_v19, %v16944_v20  ;;  %v8190_v1 = vcombine.low %v16937_v19, %v16944_v20  ;;  %v8208_v39 = vcombine.low %v7438_v46, %v7440_v42  ;;  %v19987_v19 = vld [vmem:[#allocation310_spill] sm:$0xff] }
 0x75e   :  { %v8343_v2 = vadd.f32 %v16877_v26, %v8327_v45  ;;  %v8207_v15 = vrot.slane %v8200_v36, %v19384_v16  ;;  %v7311_v4 = vsub.f32 %v19979_v37, %v16818_v61  ;;  %v7313_v33 = vsub.f32 %v19980_v10, %v16827_v63 }
 0x75f   :  { %v8344_v14 = vadd.f32 %v16877_v26, %v8328_v5  ;;  %8286 = vrot.lane.b32.xlu0 %v8191_v30, %s9164_s1  ;;  %v9070_v38 = vpop.eup %9069  ;;  %v19983_v13 = vcombine.low %v19981_v8, %v19982_v52  ;;  %v8215_v61 = vrot.slane %v8208_v39, %v19384_v16  ;;  %v19986_v44 = vcombine.low %v19984_v18, %v19985_v7 }
 0x760   :  { %8360 = vst.msk [vmem:[#allocation7 + $0x58] sm:$0xff] %vm72_vm0, %v8343_v2  ;;  %v8224_v22 = vcombine.low %v8199_v49, %v8207_v15  ;;  %v7439_v24 = vmul.f32 %v9070_v38, %v7311_v4  ;;  %v19992_v27 = vcombine.low %v19990_v50, %v19991_v40 }
 0x761   :  { %8361 = vst.msk [vmem:[#allocation7 + $0x68] sm:$0xff] %vm72_vm0, %v8344_v14  ;;  %v9072_v12 = vpop.eup %9071  ;;  %v8313_v9 = vsel %vm4171_vm2, %v19983_v13, %v8273_v47 }
 0x762   :  { %v7441_v25 = vmul.f32 %v9072_v12, %v7313_v33  ;;  %v8329_v56 = vmul.f32 %v16865_v6, %v8313_v9  ;;  %v8231_v57 = vrot.slane %v8224_v22, %v19421_v62 }
 0x764   :  { %v8216_v31 = vcombine.low %v7439_v24, %v7441_v25  ;;  %v8345_v53 = vadd.f32 %v16877_v26, %v8329_v56 }
 0x766   :  { %v8223_v17 = vrot.slane %v8216_v31, %v19384_v16  ;;  %8362 = vst.msk [vmem:[#allocation7 + $0x78] sm:$0xff] %vm72_vm0, %v8345_v53 }
 0x768   :  { %v8232_v63 = vcombine.low %v8215_v61, %v8223_v17 }
 0x76a   :  { %v8239_v34 = vrot.slane %v8232_v63, %v19421_v62  ;;  %v19989_v62 = vcombine.low %v19987_v19, %v19988_v48 }
 0x76c   :  { %v8241_v32 = vcombine.high %v8231_v57, %v8239_v34  ;;  %v8240_v3 = vcombine.low %v8231_v57, %v8239_v34  ;;  %v8275_v60 = vpop.permute.xlu0 %8274 }
 0x76d   :  { %v8314_v29 = vsel %vm4171_vm2, %v19986_v44, %v8275_v60 }
 0x76e   :  { %8288 = vrot.lane.b32.xlu1 %v8241_v32, %s9164_s1  ;;  %v8330_v45 = vmul.f32 %v16865_v6, %v8314_v29 }
 0x770   :  { %v8346_v16 = vadd.f32 %v16877_v26, %v8330_v45 }
 0x772   :  { %8363 = vst.msk [vmem:[#allocation7 + $0x88] sm:$0xff] %vm72_vm0, %v8346_v16 }
 0x77c   :  { %v8277_v55 = vpop.permute.xlu1 %8276 }
 0x77d   :  { %v8315_v23 = vsel %vm4171_vm2, %v19989_v62, %v8277_v55 }
 0x77e   :  { %v8331_v43 = vmul.f32 %v16865_v6, %v8315_v23 }
 0x780   :  { %v8347_v11 = vadd.f32 %v16877_v26, %v8331_v43 }
 0x782   :  { %8364 = vst.msk [vmem:[#allocation7 + $0x98] sm:$0xff] %vm72_vm0, %v8347_v11 }
 0x78f   :  { %v8279_v20 = vpop.permute.xlu0 %8278 }
 0x790   :  { %v8316_v2 = vsel %vm4171_vm2, %v19992_v27, %v8279_v20 }
 0x791   :  { %v8332_v5 = vmul.f32 %v16865_v6, %v8316_v2 }
 0x793   :  { %v8348_v46 = vadd.f32 %v16877_v26, %v8332_v5 }
 0x795   :  { %8365 = vst.msk [vmem:[#allocation7 + $0xa8] sm:$0xff] %vm72_vm0, %v8348_v46 }
 0x79e   :  { %v8281_v30 = vpop.permute.xlu1 %8280 }
 0x79f   :  { %v8317_v42 = vsel %vm4171_vm2, %v8040_v58, %v8281_v30 }
 0x7a0   :  { %v8333_v36 = vmul.f32 %v16865_v6, %v8317_v42 }
 0x7a2   :  { %v8349_v14 = vadd.f32 %v16877_v26, %v8333_v36 }
 0x7a4   :  { %8366 = vst.msk [vmem:[#allocation7 + $0xb8] sm:$0xff] %vm72_vm0, %v8349_v14 }
 0x7b0   :  { %v8283_v49 = vpop.permute.xlu0 %8282 }
 0x7b1   :  { %v8318_v15 = vsel %vm4171_vm2, %v8090_v54, %v8283_v49 }
 0x7b2   :  { %v8334_v39 = vmul.f32 %v16865_v6, %v8318_v15 }
 0x7b4   :  { %v8350_v38 = vadd.f32 %v16877_v26, %v8334_v39 }
 0x7b6   :  { %8367 = vst.msk [vmem:[#allocation7 + $0xc8] sm:$0xff] %vm72_vm0, %v8350_v38 }
 0x7c2   :  { %v8285_v28 = vpop.permute.xlu1 %8284 }
 0x7c3   :  { %v8319_v51 = vsel %vm4171_vm2, %v8140_v21, %v8285_v28 }
 0x7c4   :  { %v8335_v58 = vmul.f32 %v16865_v6, %v8319_v51 }
 0x7c6   :  { %v8351_v37 = vadd.f32 %v16877_v26, %v8335_v58 }
 0x7c8   :  { %8368 = vst.msk [vmem:[#allocation7 + $0xd8] sm:$0xff] %vm72_vm0, %v8351_v37 }
 0x7d1   :  { %v8287_v0 = vpop.permute.xlu0 %8286 }
 0x7d2   :  { %v8320_v35 = vsel %vm4171_vm2, %v8190_v1, %v8287_v0 }
 0x7d3   :  { %v8336_v54 = vmul.f32 %v16865_v6, %v8320_v35 }
 0x7d5   :  { %v8352_v4 = vadd.f32 %v16877_v26, %v8336_v54 }
 0x7d7   :  { %8369 = vst.msk [vmem:[#allocation7 + $0xe8] sm:$0xff] %vm72_vm0, %v8352_v4 }
 0x7e0   :  { %v8289_v10 = vpop.permute.xlu1 %8288 }
 0x7e1   :  { %v8321_v41 = vsel %vm4171_vm2, %v8240_v3, %v8289_v10 }
 0x7e2   :  { %v8337_v59 = vmul.f32 %v16865_v6, %v8321_v41 }
 0x7e4   :  { %v8353_v21 = vadd.f32 %v16877_v26, %v8337_v59 }
 0x7e6   :  { %8370 = vst.msk [vmem:[#allocation7 + $0xf8] sm:$0xff] %vm72_vm0, %v8353_v21 }
 0x7e7   :  { %9141 = shalt.err (!%p9138_p0)
}
 0x7e8   :  { %8382 = dma.vmem_to_hbm [thread:$0]  %s8377_s8, 4096, %s17035_s4, [#allocation4], %s9157_s18, %s9157_s18, %s9158_s19  }
 0x7e9   :  { %9154 = dma.done.wait [#allocation4], 4096  }
 0x7ea   :  { %9155 = vsyncadd [#allocation4], 4294963200 }
 0x7eb   :  { %8386 = vsyncpa [#allocation3], 1 }
 0x7ec   :  { %8387 = vsyncpa [#allocation6], 1 }
 0x7ed   :  { %8388 = vsyncpa [#allocation4], 1 }

</bundles_post_ra>
